<compile_context>
chip_gen: v7x
topology: tpu7x:2x2x1
jax: 0.10.0
libtpu: 0.0.40
codegen_flags: <defaults>
</compile_context>

<pallas_src>
import functools

import jax
import jax.numpy as jnp
from jax.experimental import pallas as pl
from jax.experimental.pallas import tpu as pltpu

NUM_CLASSES = 10
BN_EPS = 1e-5
LANE = 128
VMEM_LIMIT = 32 * 1024 * 1024  # safe on v5e (128 MiB phys), v6e (128), v7x (64)


def _round_up(x, m):
    return (x + m - 1) // m * m


# ----------------------------------------------------------------------------
# Pallas kernels
# ----------------------------------------------------------------------------
def _conv_bn_relu_pool_kernel(x_ref, w_ref, scale_ref, shift_ref, o_ref,
                              *, H, W, Cin, Cout):
    """Fused 3x3 conv (pad=1, stride=1) + BN + ReLU + 2x2/2 max-pool, one batch item.

    x_ref:     (H+2, W+2, Cin)    bf16  spatially zero-padded activation
    w_ref:     (9, Cin, Cout)     bf16  tap-major weights, tap = dy*3+dx
    scale_ref: (1, Cout)          f32   folded BN scale  (gamma/sqrt(var+eps))
    shift_ref: (1, Cout)          f32   folded conv-bias + BN shift
    o_ref:     (H//2, W//2, Cout) bf16  pooled output
    """
    Ho, Wo = H // 2, W // 2
    xb = x_ref[...]                                   # load padded block once
    acc = jnp.zeros((H * W, Cout), jnp.float32)
    # in-kernel im2col: 9 shifted taps, each a small MXU matmul, f32 accumulation
    for dy in range(3):
        for dx in range(3):
            a = xb[dy:dy + H, dx:dx + W, :].reshape(H * W, Cin)
            acc = acc + jnp.dot(a, w_ref[dy * 3 + dx],
                                preferred_element_type=jnp.float32)
    # fused epilogue: BN affine + conv bias + ReLU (f32)
    y = acc * scale_ref[...] + shift_ref[...]
    y = jnp.maximum(y, 0.0)
    # fused 2x2 max-pool; rows of y are ordered h*W + w
    y = jnp.max(y.reshape(H * Wo, 2, Cout), axis=1)   # pool over w -> (H*Wo, C)
    y = jnp.max(y.reshape(Ho, 2, Wo, Cout), axis=1)   # pool over h -> (Ho, Wo, C)
    o_ref[...] = y.astype(o_ref.dtype)


def _head_kernel(x_ref, w1_ref, b1_ref, w2_ref, b2_ref, o_ref):
    """Fused classifier head: global-avg-pool + fc1 + ReLU + (dropout=id) + fc2.

    x_ref:  (N, HW, 512) bf16   w1_ref: (512, 1024) bf16   b1_ref: (1, 1024) f32
    w2_ref: (1024, 128)  bf16   b2_ref: (1, 128) f32       o_ref:  (N, 128)  f32
    """
    g = jnp.mean(x_ref[...].astype(jnp.float32), axis=1)          # GAP -> (N, 512)
    h = jnp.dot(g.astype(jnp.bfloat16), w1_ref[...],
                preferred_element_type=jnp.float32) + b1_ref[...]
    h = jnp.maximum(h, 0.0)                                       # fc1 + ReLU
    # TODO(synk): train-mode dropout (PRNG mask + 1/keep scaling) not implemented;
    # Dropout(0.5) is the identity in eval/inference mode.
    out = jnp.dot(h.astype(jnp.bfloat16), w2_ref[...],
                  preferred_element_type=jnp.float32) + b2_ref[...]
    o_ref[...] = out.astype(o_ref.dtype)


# ----------------------------------------------------------------------------
# Pallas wrappers
# ----------------------------------------------------------------------------
def conv_bn_relu_pool(x, w_taps, scale, shift):
    """x: (N, H, W, Cin) bf16 NHWC -> (N, H//2, W//2, Cout) bf16."""
    N, H, W, Cin = x.shape
    assert H % 2 == 0 and W % 2 == 0
    Cout = w_taps.shape[-1]
    Hp, Wp = H + 2, W + 2
    Ho, Wo = H // 2, W // 2

    xp = jnp.pad(x, ((0, 0), (1, 1), (1, 1), (0, 0)))  # spatial zero pad (pad=1)
    kernel = functools.partial(_conv_bn_relu_pool_kernel,
                               H=H, W=W, Cin=Cin, Cout=Cout)
    return pl.pallas_call(
        kernel,
        out_shape=jax.ShapeDtypeStruct((N, Ho, Wo, Cout), jnp.bfloat16),
        grid=(N,),  # tile over batch: pipelined, megacore-parallel, VMEM-bounded
        in_specs=[
            pl.BlockSpec((None, Hp, Wp, Cin), lambda n: (n, 0, 0, 0)),
            pl.BlockSpec((9, Cin, Cout), lambda n: (0, 0, 0)),
            pl.BlockSpec((1, Cout), lambda n: (0, 0)),
            pl.BlockSpec((1, Cout), lambda n: (0, 0)),
        ],
        out_specs=pl.BlockSpec((None, Ho, Wo, Cout), lambda n: (n, 0, 0, 0)),
        compiler_params=pltpu.CompilerParams(
            dimension_semantics=("parallel",),
            vmem_limit_bytes=VMEM_LIMIT,
        ),
    )(xp, w_taps, scale.reshape(1, Cout), shift.reshape(1, Cout))


def classifier_head(x, w1, b1, w2, b2):
    """x: (N, Hf, Wf, 512) bf16 -> (N, Npad) f32 logits (lane-dense, slice later)."""
    N, Hf, Wf, C = x.shape
    HW = Hf * Wf
    D1 = w1.shape[1]
    Np = w2.shape[1]
    xr = x.reshape(N, HW, C)
    return pl.pallas_call(
        _head_kernel,
        out_shape=jax.ShapeDtypeStruct((N, Np), jnp.float32),
        grid=(1,),
        in_specs=[
            pl.BlockSpec((N, HW, C), lambda i: (0, 0, 0)),
            pl.BlockSpec((C, D1), lambda i: (0, 0)),
            pl.BlockSpec((1, D1), lambda i: (0, 0)),
            pl.BlockSpec((D1, Np), lambda i: (0, 0)),
            pl.BlockSpec((1, Np), lambda i: (0, 0)),
        ],
        out_specs=pl.BlockSpec((N, Np), lambda i: (0, 0)),
        compiler_params=pltpu.CompilerParams(
            dimension_semantics=("arbitrary",),
            vmem_limit_bytes=VMEM_LIMIT,
        ),
    )(xr, w1, b1, w2, b2)


# ----------------------------------------------------------------------------
# Parameter prep (fold BN, tap-major weights, lane padding, bf16 cast)
# ----------------------------------------------------------------------------
def _prep_conv(conv_w, conv_b, gamma, beta, run_mean, run_var, *, cin_pad, cout_pad):
    """conv_w: (Cout, Cin, 3, 3) PyTorch layout -> (9, cin_pad, cout_pad) bf16 +
    folded f32 scale/shift (eval-mode BatchNorm with running stats)."""
    Cout, Cin = conv_w.shape[0], conv_w.shape[1]
    w = jnp.transpose(conv_w, (2, 3, 1, 0)).reshape(9, Cin, Cout)  # (dy*3+dx, cin, cout)
    inv_std = 1.0 / jnp.sqrt(run_var + BN_EPS)
    scale = gamma * inv_std
    shift = (conv_b - run_mean) * scale + beta
    if cin_pad > Cin:
        w = jnp.pad(w, ((0, 0), (0, cin_pad - Cin), (0, 0)))
    if cout_pad > Cout:
        w = jnp.pad(w, ((0, 0), (0, 0), (0, cout_pad - Cout)))
        scale = jnp.pad(scale, (0, cout_pad - Cout))
        shift = jnp.pad(shift, (0, cout_pad - Cout))
    return (w.astype(jnp.bfloat16),
            scale.astype(jnp.float32),
            shift.astype(jnp.float32))


# ----------------------------------------------------------------------------
# Model
# ----------------------------------------------------------------------------
def init_params(key):
    ks = jax.random.split(key, 16)
    p = {}

    def conv_block(kw, kb, kbn, cin, cout, name):
        k1, k2, k3, k4 = jax.random.split(kbn, 4)
        p[f"{name}_w"] = 0.05 * jax.random.normal(kw, (cout, cin, 3, 3), jnp.float32)
        p[f"{name}_b"] = 0.05 * jax.random.normal(kb, (cout,), jnp.float32)
        p[f"{name}_gamma"] = 1.0 + 0.1 * jax.random.normal(k1, (cout,), jnp.float32)
        p[f"{name}_beta"] = 0.1 * jax.random.normal(k2, (cout,), jnp.float32)
        p[f"{name}_mean"] = 0.1 * jax.random.normal(k3, (cout,), jnp.float32)
        p[f"{name}_var"] = 0.5 + jnp.abs(jax.random.normal(k4, (cout,), jnp.float32)) * 0.2

    conv_block(ks[0], ks[1], ks[2], 3, 64, "c1")
    conv_block(ks[3], ks[4], ks[5], 64, 128, "c2")
    conv_block(ks[6], ks[7], ks[8], 128, 512, "c3")

    # fc weights stored directly in matmul (in, out) layout
    p["fc1_w"] = 0.02 * jax.random.normal(ks[9], (512, 1024), jnp.float32)
    p["fc1_b"] = 0.02 * jax.random.normal(ks[10], (1024,), jnp.float32)
    p["fc2_w"] = 0.02 * jax.random.normal(ks[11], (1024, NUM_CLASSES), jnp.float32)
    p["fc2_b"] = 0.02 * jax.random.normal(ks[12], (NUM_CLASSES,), jnp.float32)
    return p


def simplenet2d_forward(params, x_nchw):
    """x_nchw: (N, 3, H, W) float32 (PyTorch convention). Returns (N, num_classes) f32."""
    x = jnp.transpose(x_nchw, (0, 2, 3, 1)).astype(jnp.bfloat16)   # NCHW -> NHWC, bf16
    # pad conv1's 3 input channels up to a full 128-lane slab (zero channels;
    # matching weight rows are zero so results are unchanged)
    x = jnp.pad(x, ((0, 0), (0, 0), (0, 0), (0, LANE - x.shape[-1])))

    # channel padding plan keeps every kernel I/O 128-lane dense
    cin_pads = {"c1": LANE, "c2": LANE, "c3": LANE}
    cout_pads = {"c1": LANE, "c2": LANE, "c3": 512}

    for name in ("c1", "c2", "c3"):
        w, scale, shift = _prep_conv(
            params[f"{name}_w"], params[f"{name}_b"],
            params[f"{name}_gamma"], params[f"{name}_beta"],
            params[f"{name}_mean"], params[f"{name}_var"],
            cin_pad=cin_pads[name], cout_pad=cout_pads[name])
        x = conv_bn_relu_pool(x, w, scale, shift)

    # fused head: GAP + fc1 + ReLU + dropout(eval)=identity + fc2 (output padded to 128)
    w1 = params["fc1_w"].astype(jnp.bfloat16)
    b1 = params["fc1_b"].reshape(1, -1).astype(jnp.float32)
    n_pad = _round_up(NUM_CLASSES, LANE)
    w2 = jnp.pad(params["fc2_w"],
                 ((0, 0), (0, n_pad - NUM_CLASSES))).astype(jnp.bfloat16)
    b2 = jnp.pad(params["fc2_b"],
                 (0, n_pad - NUM_CLASSES)).reshape(1, -1).astype(jnp.float32)

    logits = classifier_head(x, w1, b1, w2, b2)
    return logits[:, :NUM_CLASSES]


if __name__ == "__main__":
    key = jax.random.PRNGKey(0)
    pkey, xkey = jax.random.split(key)
    params = init_params(pkey)

    # small input consistent with the module: batch=2, 3 channels, 16x16 spatial
    x = jax.random.normal(xkey, (2, 3, 16, 16), jnp.float32)

    logits = jax.jit(simplenet2d_forward)(params, x)
    jax.block_until_ready(logits)
    assert logits.shape == (2, NUM_CLASSES)
    assert bool(jnp.all(jnp.isfinite(logits)))
    print("KERNEL_OK")
</pallas_src>

<mosaic_0001>
module attributes {stable_mosaic.version = 11 : i64} {
  func.func @_conv_bn_relu_pool_kernel(%arg0: i32, %arg1: memref<1x10x10x128xbf16, #tpu.memory_space<vmem>>, %arg2: memref<9x128x128xbf16, #tpu.memory_space<vmem>>, %arg3: memref<1x128xf32, #tpu.memory_space<vmem>>, %arg4: memref<1x128xf32, #tpu.memory_space<vmem>>, %arg5: memref<1x4x4x128xbf16, #tpu.memory_space<vmem>>) attributes {dimension_semantics = [#tpu.dimension_semantics<parallel>], iteration_bounds = array<i64: 2>, scalar_prefetch = 0 : i64, scratch_operands = 0 : i64, tpu.core_type = #tpu.core_type<tc>, window_params = [{transform_indices = @transform_0, window_bounds = array<i64: 1, 10, 10, 128>}, {pipeline_mode = #tpu.pipeline_mode<synchronous>, transform_indices = @transform_1, window_bounds = array<i64: 9, 128, 128>}, {pipeline_mode = #tpu.pipeline_mode<synchronous>, transform_indices = @transform_2, window_bounds = array<i64: 1, 128>}, {pipeline_mode = #tpu.pipeline_mode<synchronous>, transform_indices = @transform_3, window_bounds = array<i64: 1, 128>}, {transform_indices = @transform_4, window_bounds = array<i64: 1, 4, 4, 128>}]} {
    %c0 = arith.constant 0 : index
    %c0_0 = arith.constant 0 : index
    %c0_1 = arith.constant 0 : index
    %c0_2 = arith.constant 0 : index
    %0 = vector.load %arg1[%c0, %c0_0, %c0_1, %c0_2] : memref<1x10x10x128xbf16, #tpu.memory_space<vmem>>, vector<1x10x10x128xbf16>
    %1 = vector.shape_cast %0 : vector<1x10x10x128xbf16> to vector<10x10x128xbf16>
    %cst = arith.constant 0.000000e+00 : f32
    %2 = vector.broadcast %cst : f32 to vector<64x128xf32>
    %3 = vector.extract_strided_slice %1 {offsets = [0, 0, 0], sizes = [8, 8, 128], strides = [1, 1, 1]} : vector<10x10x128xbf16> to vector<8x8x128xbf16>
    %4 = vector.shape_cast %3 : vector<8x8x128xbf16> to vector<64x128xbf16>
    %c0_3 = arith.constant 0 : index
    %c0_4 = arith.constant 0 : index
    %c0_5 = arith.constant 0 : index
    %5 = vector.load %arg2[%c0_3, %c0_4, %c0_5] : memref<9x128x128xbf16, #tpu.memory_space<vmem>>, vector<1x128x128xbf16>
    %6 = vector.shape_cast %5 : vector<1x128x128xbf16> to vector<128x128xbf16>
    %cst_6 = arith.constant dense<0.000000e+00> : vector<64x128xf32>
    %7 = tpu.matmul %4, %6, %cst_6 {dimension_numbers = #tpu.dot_dimension_numbers<[1], [0], [0], [1], [0, 0, 1, 1], [], []>} : vector<64x128xbf16>, vector<128x128xbf16>, vector<64x128xf32> -> vector<64x128xf32>
    %8 = arith.addf %2, %7 : vector<64x128xf32>
    %9 = vector.extract_strided_slice %1 {offsets = [0, 1, 0], sizes = [8, 8, 128], strides = [1, 1, 1]} : vector<10x10x128xbf16> to vector<8x8x128xbf16>
    %10 = vector.shape_cast %9 : vector<8x8x128xbf16> to vector<64x128xbf16>
    %c1 = arith.constant 1 : index
    %c0_7 = arith.constant 0 : index
    %c0_8 = arith.constant 0 : index
    %11 = vector.load %arg2[%c1, %c0_7, %c0_8] : memref<9x128x128xbf16, #tpu.memory_space<vmem>>, vector<1x128x128xbf16>
    %12 = vector.shape_cast %11 : vector<1x128x128xbf16> to vector<128x128xbf16>
    %cst_9 = arith.constant dense<0.000000e+00> : vector<64x128xf32>
    %13 = tpu.matmul %10, %12, %cst_9 {dimension_numbers = #tpu.dot_dimension_numbers<[1], [0], [0], [1], [0, 0, 1, 1], [], []>} : vector<64x128xbf16>, vector<128x128xbf16>, vector<64x128xf32> -> vector<64x128xf32>
    %14 = arith.addf %8, %13 : vector<64x128xf32>
    %15 = vector.extract_strided_slice %1 {offsets = [0, 2, 0], sizes = [8, 8, 128], strides = [1, 1, 1]} : vector<10x10x128xbf16> to vector<8x8x128xbf16>
    %16 = vector.shape_cast %15 : vector<8x8x128xbf16> to vector<64x128xbf16>
    %c2 = arith.constant 2 : index
    %c0_10 = arith.constant 0 : index
    %c0_11 = arith.constant 0 : index
    %17 = vector.load %arg2[%c2, %c0_10, %c0_11] : memref<9x128x128xbf16, #tpu.memory_space<vmem>>, vector<1x128x128xbf16>
    %18 = vector.shape_cast %17 : vector<1x128x128xbf16> to vector<128x128xbf16>
    %cst_12 = arith.constant dense<0.000000e+00> : vector<64x128xf32>
    %19 = tpu.matmul %16, %18, %cst_12 {dimension_numbers = #tpu.dot_dimension_numbers<[1], [0], [0], [1], [0, 0, 1, 1], [], []>} : vector<64x128xbf16>, vector<128x128xbf16>, vector<64x128xf32> -> vector<64x128xf32>
    %20 = arith.addf %14, %19 : vector<64x128xf32>
    %21 = vector.extract_strided_slice %1 {offsets = [1, 0, 0], sizes = [8, 8, 128], strides = [1, 1, 1]} : vector<10x10x128xbf16> to vector<8x8x128xbf16>
    %22 = vector.shape_cast %21 : vector<8x8x128xbf16> to vector<64x128xbf16>
    %c3 = arith.constant 3 : index
    %c0_13 = arith.constant 0 : index
    %c0_14 = arith.constant 0 : index
    %23 = vector.load %arg2[%c3, %c0_13, %c0_14] : memref<9x128x128xbf16, #tpu.memory_space<vmem>>, vector<1x128x128xbf16>
    %24 = vector.shape_cast %23 : vector<1x128x128xbf16> to vector<128x128xbf16>
    %cst_15 = arith.constant dense<0.000000e+00> : vector<64x128xf32>
    %25 = tpu.matmul %22, %24, %cst_15 {dimension_numbers = #tpu.dot_dimension_numbers<[1], [0], [0], [1], [0, 0, 1, 1], [], []>} : vector<64x128xbf16>, vector<128x128xbf16>, vector<64x128xf32> -> vector<64x128xf32>
    %26 = arith.addf %20, %25 : vector<64x128xf32>
    %27 = vector.extract_strided_slice %1 {offsets = [1, 1, 0], sizes = [8, 8, 128], strides = [1, 1, 1]} : vector<10x10x128xbf16> to vector<8x8x128xbf16>
    %28 = vector.shape_cast %27 : vector<8x8x128xbf16> to vector<64x128xbf16>
    %c4 = arith.constant 4 : index
    %c0_16 = arith.constant 0 : index
    %c0_17 = arith.constant 0 : index
    %29 = vector.load %arg2[%c4, %c0_16, %c0_17] : memref<9x128x128xbf16, #tpu.memory_space<vmem>>, vector<1x128x128xbf16>
    %30 = vector.shape_cast %29 : vector<1x128x128xbf16> to vector<128x128xbf16>
    %cst_18 = arith.constant dense<0.000000e+00> : vector<64x128xf32>
    %31 = tpu.matmul %28, %30, %cst_18 {dimension_numbers = #tpu.dot_dimension_numbers<[1], [0], [0], [1], [0, 0, 1, 1], [], []>} : vector<64x128xbf16>, vector<128x128xbf16>, vector<64x128xf32> -> vector<64x128xf32>
    %32 = arith.addf %26, %31 : vector<64x128xf32>
    %33 = vector.extract_strided_slice %1 {offsets = [1, 2, 0], sizes = [8, 8, 128], strides = [1, 1, 1]} : vector<10x10x128xbf16> to vector<8x8x128xbf16>
    %34 = vector.shape_cast %33 : vector<8x8x128xbf16> to vector<64x128xbf16>
    %c5 = arith.constant 5 : index
    %c0_19 = arith.constant 0 : index
    %c0_20 = arith.constant 0 : index
    %35 = vector.load %arg2[%c5, %c0_19, %c0_20] : memref<9x128x128xbf16, #tpu.memory_space<vmem>>, vector<1x128x128xbf16>
    %36 = vector.shape_cast %35 : vector<1x128x128xbf16> to vector<128x128xbf16>
    %cst_21 = arith.constant dense<0.000000e+00> : vector<64x128xf32>
    %37 = tpu.matmul %34, %36, %cst_21 {dimension_numbers = #tpu.dot_dimension_numbers<[1], [0], [0], [1], [0, 0, 1, 1], [], []>} : vector<64x128xbf16>, vector<128x128xbf16>, vector<64x128xf32> -> vector<64x128xf32>
    %38 = arith.addf %32, %37 : vector<64x128xf32>
    %39 = vector.extract_strided_slice %1 {offsets = [2, 0, 0], sizes = [8, 8, 128], strides = [1, 1, 1]} : vector<10x10x128xbf16> to vector<8x8x128xbf16>
    %40 = vector.shape_cast %39 : vector<8x8x128xbf16> to vector<64x128xbf16>
    %c6 = arith.constant 6 : index
    %c0_22 = arith.constant 0 : index
    %c0_23 = arith.constant 0 : index
    %41 = vector.load %arg2[%c6, %c0_22, %c0_23] : memref<9x128x128xbf16, #tpu.memory_space<vmem>>, vector<1x128x128xbf16>
    %42 = vector.shape_cast %41 : vector<1x128x128xbf16> to vector<128x128xbf16>
    %cst_24 = arith.constant dense<0.000000e+00> : vector<64x128xf32>
    %43 = tpu.matmul %40, %42, %cst_24 {dimension_numbers = #tpu.dot_dimension_numbers<[1], [0], [0], [1], [0, 0, 1, 1], [], []>} : vector<64x128xbf16>, vector<128x128xbf16>, vector<64x128xf32> -> vector<64x128xf32>
    %44 = arith.addf %38, %43 : vector<64x128xf32>
    %45 = vector.extract_strided_slice %1 {offsets = [2, 1, 0], sizes = [8, 8, 128], strides = [1, 1, 1]} : vector<10x10x128xbf16> to vector<8x8x128xbf16>
    %46 = vector.shape_cast %45 : vector<8x8x128xbf16> to vector<64x128xbf16>
    %c7 = arith.constant 7 : index
    %c0_25 = arith.constant 0 : index
    %c0_26 = arith.constant 0 : index
    %47 = vector.load %arg2[%c7, %c0_25, %c0_26] : memref<9x128x128xbf16, #tpu.memory_space<vmem>>, vector<1x128x128xbf16>
    %48 = vector.shape_cast %47 : vector<1x128x128xbf16> to vector<128x128xbf16>
    %cst_27 = arith.constant dense<0.000000e+00> : vector<64x128xf32>
    %49 = tpu.matmul %46, %48, %cst_27 {dimension_numbers = #tpu.dot_dimension_numbers<[1], [0], [0], [1], [0, 0, 1, 1], [], []>} : vector<64x128xbf16>, vector<128x128xbf16>, vector<64x128xf32> -> vector<64x128xf32>
    %50 = arith.addf %44, %49 : vector<64x128xf32>
    %51 = vector.extract_strided_slice %1 {offsets = [2, 2, 0], sizes = [8, 8, 128], strides = [1, 1, 1]} : vector<10x10x128xbf16> to vector<8x8x128xbf16>
    %52 = vector.shape_cast %51 : vector<8x8x128xbf16> to vector<64x128xbf16>
    %c8 = arith.constant 8 : index
    %c0_28 = arith.constant 0 : index
    %c0_29 = arith.constant 0 : index
    %53 = vector.load %arg2[%c8, %c0_28, %c0_29] : memref<9x128x128xbf16, #tpu.memory_space<vmem>>, vector<1x128x128xbf16>
    %54 = vector.shape_cast %53 : vector<1x128x128xbf16> to vector<128x128xbf16>
    %cst_30 = arith.constant dense<0.000000e+00> : vector<64x128xf32>
    %55 = tpu.matmul %52, %54, %cst_30 {dimension_numbers = #tpu.dot_dimension_numbers<[1], [0], [0], [1], [0, 0, 1, 1], [], []>} : vector<64x128xbf16>, vector<128x128xbf16>, vector<64x128xf32> -> vector<64x128xf32>
    %56 = arith.addf %50, %55 : vector<64x128xf32>
    %c0_31 = arith.constant 0 : index
    %c0_32 = arith.constant 0 : index
    %57 = vector.load %arg3[%c0_31, %c0_32] : memref<1x128xf32, #tpu.memory_space<vmem>>, vector<1x128xf32>
    %58 = vector.broadcast %57 : vector<1x128xf32> to vector<64x128xf32>
    %59 = arith.mulf %56, %58 : vector<64x128xf32>
    %c0_33 = arith.constant 0 : index
    %c0_34 = arith.constant 0 : index
    %60 = vector.load %arg4[%c0_33, %c0_34] : memref<1x128xf32, #tpu.memory_space<vmem>>, vector<1x128xf32>
    %61 = vector.broadcast %60 : vector<1x128xf32> to vector<64x128xf32>
    %62 = arith.addf %59, %61 : vector<64x128xf32>
    %cst_35 = arith.constant 0.000000e+00 : f32
    %63 = vector.broadcast %cst_35 : f32 to vector<64x128xf32>
    %64 = arith.maximumf %62, %63 : vector<64x128xf32>
    %65 = vector.shape_cast %64 : vector<64x128xf32> to vector<32x2x128xf32>
    %cst_36 = arith.constant dense<0xFF800000> : vector<32x128xf32>
    %66 = vector.multi_reduction <maximumf>, %65, %cst_36 [1] : vector<32x2x128xf32> to vector<32x128xf32>
    %67 = vector.shape_cast %66 : vector<32x128xf32> to vector<4x2x4x128xf32>
    %cst_37 = arith.constant dense<0xFF800000> : vector<4x4x128xf32>
    %68 = vector.multi_reduction <maximumf>, %67, %cst_37 [1] : vector<4x2x4x128xf32> to vector<4x4x128xf32>
    %69 = arith.truncf %68 : vector<4x4x128xf32> to vector<4x4x128xbf16>
    %c0_38 = arith.constant 0 : index
    %c0_39 = arith.constant 0 : index
    %c0_40 = arith.constant 0 : index
    %c0_41 = arith.constant 0 : index
    %70 = vector.load %arg5[%c0_38, %c0_39, %c0_40, %c0_41] : memref<1x4x4x128xbf16, #tpu.memory_space<vmem>>, vector<1x4x4x128xbf16>
    %71 = vector.shape_cast %70 : vector<1x4x4x128xbf16> to vector<4x4x128xbf16>
    %72 = vector.shape_cast %69 : vector<4x4x128xbf16> to vector<1x4x4x128xbf16>
    tpu.vector_store %arg5[%c0_38, %c0_39, %c0_40, %c0_41], %72 {strides = array<i32>} : memref<1x4x4x128xbf16, #tpu.memory_space<vmem>>, vector<1x4x4x128xbf16>,
    return
  }
  func.func @transform_0(%arg0: i32) -> (i32, i32, i32, i32) {
    %c0_i32 = arith.constant 0 : i32
    %c0_i32_0 = arith.constant 0 : i32
    %c0_i32_1 = arith.constant 0 : i32
    %c0_i32_2 = arith.constant 0 : i32
    return %arg0, %c0_i32, %c0_i32_0, %c0_i32_1 : i32, i32, i32, i32
  }
  func.func @transform_1(%arg0: i32) -> (i32, i32, i32) {
    %c0_i32 = arith.constant 0 : i32
    %c0_i32_0 = arith.constant 0 : i32
    %c0_i32_1 = arith.constant 0 : i32
    %c0_i32_2 = arith.constant 0 : i32
    return %c0_i32, %c0_i32_0, %c0_i32_1 : i32, i32, i32
  }
  func.func @transform_2(%arg0: i32) -> (i32, i32) {
    %c0_i32 = arith.constant 0 : i32
    %c0_i32_0 = arith.constant 0 : i32
    %c0_i32_1 = arith.constant 0 : i32
    return %c0_i32, %c0_i32_0 : i32, i32
  }
  func.func @transform_3(%arg0: i32) -> (i32, i32) {
    %c0_i32 = arith.constant 0 : i32
    %c0_i32_0 = arith.constant 0 : i32
    %c0_i32_1 = arith.constant 0 : i32
    return %c0_i32, %c0_i32_0 : i32, i32
  }
  func.func @transform_4(%arg0: i32) -> (i32, i32, i32, i32) {
    %c0_i32 = arith.constant 0 : i32
    %c0_i32_0 = arith.constant 0 : i32
    %c0_i32_1 = arith.constant 0 : i32
    %c0_i32_2 = arith.constant 0 : i32
    return %arg0, %c0_i32, %c0_i32_0, %c0_i32_1 : i32, i32, i32, i32
  }
}

module attributes {stable_mosaic.version = 11 : i64} {
  func.func @_conv_bn_relu_pool_kernel(%arg0: i32, %arg1: memref<1x18x18x128xbf16, #tpu.memory_space<vmem>>, %arg2: memref<9x128x128xbf16, #tpu.memory_space<vmem>>, %arg3: memref<1x128xf32, #tpu.memory_space<vmem>>, %arg4: memref<1x128xf32, #tpu.memory_space<vmem>>, %arg5: memref<1x8x8x128xbf16, #tpu.memory_space<vmem>>) attributes {dimension_semantics = [#tpu.dimension_semantics<parallel>], iteration_bounds = array<i64: 2>, scalar_prefetch = 0 : i64, scratch_operands = 0 : i64, tpu.core_type = #tpu.core_type<tc>, window_params = [{transform_indices = @transform_0, window_bounds = array<i64: 1, 18, 18, 128>}, {pipeline_mode = #tpu.pipeline_mode<synchronous>, transform_indices = @transform_1, window_bounds = array<i64: 9, 128, 128>}, {pipeline_mode = #tpu.pipeline_mode<synchronous>, transform_indices = @transform_2, window_bounds = array<i64: 1, 128>}, {pipeline_mode = #tpu.pipeline_mode<synchronous>, transform_indices = @transform_3, window_bounds = array<i64: 1, 128>}, {transform_indices = @transform_4, window_bounds = array<i64: 1, 8, 8, 128>}]} {
    %c0 = arith.constant 0 : index
    %c0_0 = arith.constant 0 : index
    %c0_1 = arith.constant 0 : index
    %c0_2 = arith.constant 0 : index
    %0 = vector.load %arg1[%c0, %c0_0, %c0_1, %c0_2] : memref<1x18x18x128xbf16, #tpu.memory_space<vmem>>, vector<1x18x18x128xbf16>
    %1 = vector.shape_cast %0 : vector<1x18x18x128xbf16> to vector<18x18x128xbf16>
    %cst = arith.constant 0.000000e+00 : f32
    %2 = vector.broadcast %cst : f32 to vector<256x128xf32>
    %3 = vector.extract_strided_slice %1 {offsets = [0, 0, 0], sizes = [16, 16, 128], strides = [1, 1, 1]} : vector<18x18x128xbf16> to vector<16x16x128xbf16>
    %4 = vector.shape_cast %3 : vector<16x16x128xbf16> to vector<256x128xbf16>
    %c0_3 = arith.constant 0 : index
    %c0_4 = arith.constant 0 : index
    %c0_5 = arith.constant 0 : index
    %5 = vector.load %arg2[%c0_3, %c0_4, %c0_5] : memref<9x128x128xbf16, #tpu.memory_space<vmem>>, vector<1x128x128xbf16>
    %6 = vector.shape_cast %5 : vector<1x128x128xbf16> to vector<128x128xbf16>
    %cst_6 = arith.constant dense<0.000000e+00> : vector<256x128xf32>
    %7 = tpu.matmul %4, %6, %cst_6 {dimension_numbers = #tpu.dot_dimension_numbers<[1], [0], [0], [1], [0, 0, 1, 1], [], []>} : vector<256x128xbf16>, vector<128x128xbf16>, vector<256x128xf32> -> vector<256x128xf32>
    %8 = arith.addf %2, %7 : vector<256x128xf32>
    %9 = vector.extract_strided_slice %1 {offsets = [0, 1, 0], sizes = [16, 16, 128], strides = [1, 1, 1]} : vector<18x18x128xbf16> to vector<16x16x128xbf16>
    %10 = vector.shape_cast %9 : vector<16x16x128xbf16> to vector<256x128xbf16>
    %c1 = arith.constant 1 : index
    %c0_7 = arith.constant 0 : index
    %c0_8 = arith.constant 0 : index
    %11 = vector.load %arg2[%c1, %c0_7, %c0_8] : memref<9x128x128xbf16, #tpu.memory_space<vmem>>, vector<1x128x128xbf16>
    %12 = vector.shape_cast %11 : vector<1x128x128xbf16> to vector<128x128xbf16>
    %cst_9 = arith.constant dense<0.000000e+00> : vector<256x128xf32>
    %13 = tpu.matmul %10, %12, %cst_9 {dimension_numbers = #tpu.dot_dimension_numbers<[1], [0], [0], [1], [0, 0, 1, 1], [], []>} : vector<256x128xbf16>, vector<128x128xbf16>, vector<256x128xf32> -> vector<256x128xf32>
    %14 = arith.addf %8, %13 : vector<256x128xf32>
    %15 = vector.extract_strided_slice %1 {offsets = [0, 2, 0], sizes = [16, 16, 128], strides = [1, 1, 1]} : vector<18x18x128xbf16> to vector<16x16x128xbf16>
    %16 = vector.shape_cast %15 : vector<16x16x128xbf16> to vector<256x128xbf16>
    %c2 = arith.constant 2 : index
    %c0_10 = arith.constant 0 : index
    %c0_11 = arith.constant 0 : index
    %17 = vector.load %arg2[%c2, %c0_10, %c0_11] : memref<9x128x128xbf16, #tpu.memory_space<vmem>>, vector<1x128x128xbf16>
    %18 = vector.shape_cast %17 : vector<1x128x128xbf16> to vector<128x128xbf16>
    %cst_12 = arith.constant dense<0.000000e+00> : vector<256x128xf32>
    %19 = tpu.matmul %16, %18, %cst_12 {dimension_numbers = #tpu.dot_dimension_numbers<[1], [0], [0], [1], [0, 0, 1, 1], [], []>} : vector<256x128xbf16>, vector<128x128xbf16>, vector<256x128xf32> -> vector<256x128xf32>
    %20 = arith.addf %14, %19 : vector<256x128xf32>
    %21 = vector.extract_strided_slice %1 {offsets = [1, 0, 0], sizes = [16, 16, 128], strides = [1, 1, 1]} : vector<18x18x128xbf16> to vector<16x16x128xbf16>
    %22 = vector.shape_cast %21 : vector<16x16x128xbf16> to vector<256x128xbf16>
    %c3 = arith.constant 3 : index
    %c0_13 = arith.constant 0 : index
    %c0_14 = arith.constant 0 : index
    %23 = vector.load %arg2[%c3, %c0_13, %c0_14] : memref<9x128x128xbf16, #tpu.memory_space<vmem>>, vector<1x128x128xbf16>
    %24 = vector.shape_cast %23 : vector<1x128x128xbf16> to vector<128x128xbf16>
    %cst_15 = arith.constant dense<0.000000e+00> : vector<256x128xf32>
    %25 = tpu.matmul %22, %24, %cst_15 {dimension_numbers = #tpu.dot_dimension_numbers<[1], [0], [0], [1], [0, 0, 1, 1], [], []>} : vector<256x128xbf16>, vector<128x128xbf16>, vector<256x128xf32> -> vector<256x128xf32>
    %26 = arith.addf %20, %25 : vector<256x128xf32>
    %27 = vector.extract_strided_slice %1 {offsets = [1, 1, 0], sizes = [16, 16, 128], strides = [1, 1, 1]} : vector<18x18x128xbf16> to vector<16x16x128xbf16>
    %28 = vector.shape_cast %27 : vector<16x16x128xbf16> to vector<256x128xbf16>
    %c4 = arith.constant 4 : index
    %c0_16 = arith.constant 0 : index
    %c0_17 = arith.constant 0 : index
    %29 = vector.load %arg2[%c4, %c0_16, %c0_17] : memref<9x128x128xbf16, #tpu.memory_space<vmem>>, vector<1x128x128xbf16>
    %30 = vector.shape_cast %29 : vector<1x128x128xbf16> to vector<128x128xbf16>
    %cst_18 = arith.constant dense<0.000000e+00> : vector<256x128xf32>
    %31 = tpu.matmul %28, %30, %cst_18 {dimension_numbers = #tpu.dot_dimension_numbers<[1], [0], [0], [1], [0, 0, 1, 1], [], []>} : vector<256x128xbf16>, vector<128x128xbf16>, vector<256x128xf32> -> vector<256x128xf32>
    %32 = arith.addf %26, %31 : vector<256x128xf32>
    %33 = vector.extract_strided_slice %1 {offsets = [1, 2, 0], sizes = [16, 16, 128], strides = [1, 1, 1]} : vector<18x18x128xbf16> to vector<16x16x128xbf16>
    %34 = vector.shape_cast %33 : vector<16x16x128xbf16> to vector<256x128xbf16>
    %c5 = arith.constant 5 : index
    %c0_19 = arith.constant 0 : index
    %c0_20 = arith.constant 0 : index
    %35 = vector.load %arg2[%c5, %c0_19, %c0_20] : memref<9x128x128xbf16, #tpu.memory_space<vmem>>, vector<1x128x128xbf16>
    %36 = vector.shape_cast %35 : vector<1x128x128xbf16> to vector<128x128xbf16>
    %cst_21 = arith.constant dense<0.000000e+00> : vector<256x128xf32>
    %37 = tpu.matmul %34, %36, %cst_21 {dimension_numbers = #tpu.dot_dimension_numbers<[1], [0], [0], [1], [0, 0, 1, 1], [], []>} : vector<256x128xbf16>, vector<128x128xbf16>, vector<256x128xf32> -> vector<256x128xf32>
    %38 = arith.addf %32, %37 : vector<256x128xf32>
    %39 = vector.extract_strided_slice %1 {offsets = [2, 0, 0], sizes = [16, 16, 128], strides = [1, 1, 1]} : vector<18x18x128xbf16> to vector<16x16x128xbf16>
    %40 = vector.shape_cast %39 : vector<16x16x128xbf16> to vector<256x128xbf16>
    %c6 = arith.constant 6 : index
    %c0_22 = arith.constant 0 : index
    %c0_23 = arith.constant 0 : index
    %41 = vector.load %arg2[%c6, %c0_22, %c0_23] : memref<9x128x128xbf16, #tpu.memory_space<vmem>>, vector<1x128x128xbf16>
    %42 = vector.shape_cast %41 : vector<1x128x128xbf16> to vector<128x128xbf16>
    %cst_24 = arith.constant dense<0.000000e+00> : vector<256x128xf32>
    %43 = tpu.matmul %40, %42, %cst_24 {dimension_numbers = #tpu.dot_dimension_numbers<[1], [0], [0], [1], [0, 0, 1, 1], [], []>} : vector<256x128xbf16>, vector<128x128xbf16>, vector<256x128xf32> -> vector<256x128xf32>
    %44 = arith.addf %38, %43 : vector<256x128xf32>
    %45 = vector.extract_strided_slice %1 {offsets = [2, 1, 0], sizes = [16, 16, 128], strides = [1, 1, 1]} : vector<18x18x128xbf16> to vector<16x16x128xbf16>
    %46 = vector.shape_cast %45 : vector<16x16x128xbf16> to vector<256x128xbf16>
    %c7 = arith.constant 7 : index
    %c0_25 = arith.constant 0 : index
    %c0_26 = arith.constant 0 : index
    %47 = vector.load %arg2[%c7, %c0_25, %c0_26] : memref<9x128x128xbf16, #tpu.memory_space<vmem>>, vector<1x128x128xbf16>
    %48 = vector.shape_cast %47 : vector<1x128x128xbf16> to vector<128x128xbf16>
    %cst_27 = arith.constant dense<0.000000e+00> : vector<256x128xf32>
    %49 = tpu.matmul %46, %48, %cst_27 {dimension_numbers = #tpu.dot_dimension_numbers<[1], [0], [0], [1], [0, 0, 1, 1], [], []>} : vector<256x128xbf16>, vector<128x128xbf16>, vector<256x128xf32> -> vector<256x128xf32>
    %50 = arith.addf %44, %49 : vector<256x128xf32>
    %51 = vector.extract_strided_slice %1 {offsets = [2, 2, 0], sizes = [16, 16, 128], strides = [1, 1, 1]} : vector<18x18x128xbf16> to vector<16x16x128xbf16>
    %52 = vector.shape_cast %51 : vector<16x16x128xbf16> to vector<256x128xbf16>
    %c8 = arith.constant 8 : index
    %c0_28 = arith.constant 0 : index
    %c0_29 = arith.constant 0 : index
    %53 = vector.load %arg2[%c8, %c0_28, %c0_29] : memref<9x128x128xbf16, #tpu.memory_space<vmem>>, vector<1x128x128xbf16>
    %54 = vector.shape_cast %53 : vector<1x128x128xbf16> to vector<128x128xbf16>
    %cst_30 = arith.constant dense<0.000000e+00> : vector<256x128xf32>
    %55 = tpu.matmul %52, %54, %cst_30 {dimension_numbers = #tpu.dot_dimension_numbers<[1], [0], [0], [1], [0, 0, 1, 1], [], []>} : vector<256x128xbf16>, vector<128x128xbf16>, vector<256x128xf32> -> vector<256x128xf32>
    %56 = arith.addf %50, %55 : vector<256x128xf32>
    %c0_31 = arith.constant 0 : index
    %c0_32 = arith.constant 0 : index
    %57 = vector.load %arg3[%c0_31, %c0_32] : memref<1x128xf32, #tpu.memory_space<vmem>>, vector<1x128xf32>
    %58 = vector.broadcast %57 : vector<1x128xf32> to vector<256x128xf32>
    %59 = arith.mulf %56, %58 : vector<256x128xf32>
    %c0_33 = arith.constant 0 : index
    %c0_34 = arith.constant 0 : index
    %60 = vector.load %arg4[%c0_33, %c0_34] : memref<1x128xf32, #tpu.memory_space<vmem>>, vector<1x128xf32>
    %61 = vector.broadcast %60 : vector<1x128xf32> to vector<256x128xf32>
    %62 = arith.addf %59, %61 : vector<256x128xf32>
    %cst_35 = arith.constant 0.000000e+00 : f32
    %63 = vector.broadcast %cst_35 : f32 to vector<256x128xf32>
    %64 = arith.maximumf %62, %63 : vector<256x128xf32>
    %65 = vector.shape_cast %64 : vector<256x128xf32> to vector<128x2x128xf32>
    %cst_36 = arith.constant dense<0xFF800000> : vector<128x128xf32>
    %66 = vector.multi_reduction <maximumf>, %65, %cst_36 [1] : vector<128x2x128xf32> to vector<128x128xf32>
    %67 = vector.shape_cast %66 : vector<128x128xf32> to vector<8x2x8x128xf32>
    %cst_37 = arith.constant dense<0xFF800000> : vector<8x8x128xf32>
    %68 = vector.multi_reduction <maximumf>, %67, %cst_37 [1] : vector<8x2x8x128xf32> to vector<8x8x128xf32>
    %69 = arith.truncf %68 : vector<8x8x128xf32> to vector<8x8x128xbf16>
    %c0_38 = arith.constant 0 : index
    %c0_39 = arith.constant 0 : index
    %c0_40 = arith.constant 0 : index
    %c0_41 = arith.constant 0 : index
    %70 = vector.load %arg5[%c0_38, %c0_39, %c0_40, %c0_41] : memref<1x8x8x128xbf16, #tpu.memory_space<vmem>>, vector<1x8x8x128xbf16>
    %71 = vector.shape_cast %70 : vector<1x8x8x128xbf16> to vector<8x8x128xbf16>
    %72 = vector.shape_cast %69 : vector<8x8x128xbf16> to vector<1x8x8x128xbf16>
    tpu.vector_store %arg5[%c0_38, %c0_39, %c0_40, %c0_41], %72 {strides = array<i32>} : memref<1x8x8x128xbf16, #tpu.memory_space<vmem>>, vector<1x8x8x128xbf16>,
    return
  }
  func.func @transform_0(%arg0: i32) -> (i32, i32, i32, i32) {
    %c0_i32 = arith.constant 0 : i32
    %c0_i32_0 = arith.constant 0 : i32
    %c0_i32_1 = arith.constant 0 : i32
    %c0_i32_2 = arith.constant 0 : i32
    return %arg0, %c0_i32, %c0_i32_0, %c0_i32_1 : i32, i32, i32, i32
  }
  func.func @transform_1(%arg0: i32) -> (i32, i32, i32) {
    %c0_i32 = arith.constant 0 : i32
    %c0_i32_0 = arith.constant 0 : i32
    %c0_i32_1 = arith.constant 0 : i32
    %c0_i32_2 = arith.constant 0 : i32
    return %c0_i32, %c0_i32_0, %c0_i32_1 : i32, i32, i32
  }
  func.func @transform_2(%arg0: i32) -> (i32, i32) {
    %c0_i32 = arith.constant 0 : i32
    %c0_i32_0 = arith.constant 0 : i32
    %c0_i32_1 = arith.constant 0 : i32
    return %c0_i32, %c0_i32_0 : i32, i32
  }
  func.func @transform_3(%arg0: i32) -> (i32, i32) {
    %c0_i32 = arith.constant 0 : i32
    %c0_i32_0 = arith.constant 0 : i32
    %c0_i32_1 = arith.constant 0 : i32
    return %c0_i32, %c0_i32_0 : i32, i32
  }
  func.func @transform_4(%arg0: i32) -> (i32, i32, i32, i32) {
    %c0_i32 = arith.constant 0 : i32
    %c0_i32_0 = arith.constant 0 : i32
    %c0_i32_1 = arith.constant 0 : i32
    %c0_i32_2 = arith.constant 0 : i32
    return %arg0, %c0_i32, %c0_i32_0, %c0_i32_1 : i32, i32, i32, i32
  }
}

module attributes {stable_mosaic.version = 11 : i64} {
  func.func @_conv_bn_relu_pool_kernel(%arg0: i32, %arg1: memref<1x6x6x128xbf16, #tpu.memory_space<vmem>>, %arg2: memref<9x128x512xbf16, #tpu.memory_space<vmem>>, %arg3: memref<1x512xf32, #tpu.memory_space<vmem>>, %arg4: memref<1x512xf32, #tpu.memory_space<vmem>>, %arg5: memref<1x2x2x512xbf16, #tpu.memory_space<vmem>>) attributes {dimension_semantics = [#tpu.dimension_semantics<parallel>], iteration_bounds = array<i64: 2>, scalar_prefetch = 0 : i64, scratch_operands = 0 : i64, tpu.core_type = #tpu.core_type<tc>, window_params = [{transform_indices = @transform_0, window_bounds = array<i64: 1, 6, 6, 128>}, {pipeline_mode = #tpu.pipeline_mode<synchronous>, transform_indices = @transform_1, window_bounds = array<i64: 9, 128, 512>}, {pipeline_mode = #tpu.pipeline_mode<synchronous>, transform_indices = @transform_2, window_bounds = array<i64: 1, 512>}, {pipeline_mode = #tpu.pipeline_mode<synchronous>, transform_indices = @transform_3, window_bounds = array<i64: 1, 512>}, {transform_indices = @transform_4, window_bounds = array<i64: 1, 2, 2, 512>}]} {
    %c0 = arith.constant 0 : index
    %c0_0 = arith.constant 0 : index
    %c0_1 = arith.constant 0 : index
    %c0_2 = arith.constant 0 : index
    %0 = vector.load %arg1[%c0, %c0_0, %c0_1, %c0_2] : memref<1x6x6x128xbf16, #tpu.memory_space<vmem>>, vector<1x6x6x128xbf16>
    %1 = vector.shape_cast %0 : vector<1x6x6x128xbf16> to vector<6x6x128xbf16>
    %cst = arith.constant 0.000000e+00 : f32
    %2 = vector.broadcast %cst : f32 to vector<16x512xf32>
    %3 = vector.extract_strided_slice %1 {offsets = [0, 0, 0], sizes = [4, 4, 128], strides = [1, 1, 1]} : vector<6x6x128xbf16> to vector<4x4x128xbf16>
    %4 = vector.shape_cast %3 : vector<4x4x128xbf16> to vector<16x128xbf16>
    %c0_3 = arith.constant 0 : index
    %c0_4 = arith.constant 0 : index
    %c0_5 = arith.constant 0 : index
    %5 = vector.load %arg2[%c0_3, %c0_4, %c0_5] : memref<9x128x512xbf16, #tpu.memory_space<vmem>>, vector<1x128x512xbf16>
    %6 = vector.shape_cast %5 : vector<1x128x512xbf16> to vector<128x512xbf16>
    %cst_6 = arith.constant dense<0.000000e+00> : vector<16x512xf32>
    %7 = tpu.matmul %4, %6, %cst_6 {dimension_numbers = #tpu.dot_dimension_numbers<[1], [0], [0], [1], [0, 0, 1, 1], [], []>} : vector<16x128xbf16>, vector<128x512xbf16>, vector<16x512xf32> -> vector<16x512xf32>
    %8 = arith.addf %2, %7 : vector<16x512xf32>
    %9 = vector.extract_strided_slice %1 {offsets = [0, 1, 0], sizes = [4, 4, 128], strides = [1, 1, 1]} : vector<6x6x128xbf16> to vector<4x4x128xbf16>
    %10 = vector.shape_cast %9 : vector<4x4x128xbf16> to vector<16x128xbf16>
    %c1 = arith.constant 1 : index
    %c0_7 = arith.constant 0 : index
    %c0_8 = arith.constant 0 : index
    %11 = vector.load %arg2[%c1, %c0_7, %c0_8] : memref<9x128x512xbf16, #tpu.memory_space<vmem>>, vector<1x128x512xbf16>
    %12 = vector.shape_cast %11 : vector<1x128x512xbf16> to vector<128x512xbf16>
    %cst_9 = arith.constant dense<0.000000e+00> : vector<16x512xf32>
    %13 = tpu.matmul %10, %12, %cst_9 {dimension_numbers = #tpu.dot_dimension_numbers<[1], [0], [0], [1], [0, 0, 1, 1], [], []>} : vector<16x128xbf16>, vector<128x512xbf16>, vector<16x512xf32> -> vector<16x512xf32>
    %14 = arith.addf %8, %13 : vector<16x512xf32>
    %15 = vector.extract_strided_slice %1 {offsets = [0, 2, 0], sizes = [4, 4, 128], strides = [1, 1, 1]} : vector<6x6x128xbf16> to vector<4x4x128xbf16>
    %16 = vector.shape_cast %15 : vector<4x4x128xbf16> to vector<16x128xbf16>
    %c2 = arith.constant 2 : index
    %c0_10 = arith.constant 0 : index
    %c0_11 = arith.constant 0 : index
    %17 = vector.load %arg2[%c2, %c0_10, %c0_11] : memref<9x128x512xbf16, #tpu.memory_space<vmem>>, vector<1x128x512xbf16>
    %18 = vector.shape_cast %17 : vector<1x128x512xbf16> to vector<128x512xbf16>
    %cst_12 = arith.constant dense<0.000000e+00> : vector<16x512xf32>
    %19 = tpu.matmul %16, %18, %cst_12 {dimension_numbers = #tpu.dot_dimension_numbers<[1], [0], [0], [1], [0, 0, 1, 1], [], []>} : vector<16x128xbf16>, vector<128x512xbf16>, vector<16x512xf32> -> vector<16x512xf32>
    %20 = arith.addf %14, %19 : vector<16x512xf32>
    %21 = vector.extract_strided_slice %1 {offsets = [1, 0, 0], sizes = [4, 4, 128], strides = [1, 1, 1]} : vector<6x6x128xbf16> to vector<4x4x128xbf16>
    %22 = vector.shape_cast %21 : vector<4x4x128xbf16> to vector<16x128xbf16>
    %c3 = arith.constant 3 : index
    %c0_13 = arith.constant 0 : index
    %c0_14 = arith.constant 0 : index
    %23 = vector.load %arg2[%c3, %c0_13, %c0_14] : memref<9x128x512xbf16, #tpu.memory_space<vmem>>, vector<1x128x512xbf16>
    %24 = vector.shape_cast %23 : vector<1x128x512xbf16> to vector<128x512xbf16>
    %cst_15 = arith.constant dense<0.000000e+00> : vector<16x512xf32>
    %25 = tpu.matmul %22, %24, %cst_15 {dimension_numbers = #tpu.dot_dimension_numbers<[1], [0], [0], [1], [0, 0, 1, 1], [], []>} : vector<16x128xbf16>, vector<128x512xbf16>, vector<16x512xf32> -> vector<16x512xf32>
    %26 = arith.addf %20, %25 : vector<16x512xf32>
    %27 = vector.extract_strided_slice %1 {offsets = [1, 1, 0], sizes = [4, 4, 128], strides = [1, 1, 1]} : vector<6x6x128xbf16> to vector<4x4x128xbf16>
    %28 = vector.shape_cast %27 : vector<4x4x128xbf16> to vector<16x128xbf16>
    %c4 = arith.constant 4 : index
    %c0_16 = arith.constant 0 : index
    %c0_17 = arith.constant 0 : index
    %29 = vector.load %arg2[%c4, %c0_16, %c0_17] : memref<9x128x512xbf16, #tpu.memory_space<vmem>>, vector<1x128x512xbf16>
    %30 = vector.shape_cast %29 : vector<1x128x512xbf16> to vector<128x512xbf16>
    %cst_18 = arith.constant dense<0.000000e+00> : vector<16x512xf32>
    %31 = tpu.matmul %28, %30, %cst_18 {dimension_numbers = #tpu.dot_dimension_numbers<[1], [0], [0], [1], [0, 0, 1, 1], [], []>} : vector<16x128xbf16>, vector<128x512xbf16>, vector<16x512xf32> -> vector<16x512xf32>
    %32 = arith.addf %26, %31 : vector<16x512xf32>
    %33 = vector.extract_strided_slice %1 {offsets = [1, 2, 0], sizes = [4, 4, 128], strides = [1, 1, 1]} : vector<6x6x128xbf16> to vector<4x4x128xbf16>
    %34 = vector.shape_cast %33 : vector<4x4x128xbf16> to vector<16x128xbf16>
    %c5 = arith.constant 5 : index
    %c0_19 = arith.constant 0 : index
    %c0_20 = arith.constant 0 : index
    %35 = vector.load %arg2[%c5, %c0_19, %c0_20] : memref<9x128x512xbf16, #tpu.memory_space<vmem>>, vector<1x128x512xbf16>
    %36 = vector.shape_cast %35 : vector<1x128x512xbf16> to vector<128x512xbf16>
    %cst_21 = arith.constant dense<0.000000e+00> : vector<16x512xf32>
    %37 = tpu.matmul %34, %36, %cst_21 {dimension_numbers = #tpu.dot_dimension_numbers<[1], [0], [0], [1], [0, 0, 1, 1], [], []>} : vector<16x128xbf16>, vector<128x512xbf16>, vector<16x512xf32> -> vector<16x512xf32>
    %38 = arith.addf %32, %37 : vector<16x512xf32>
    %39 = vector.extract_strided_slice %1 {offsets = [2, 0, 0], sizes = [4, 4, 128], strides = [1, 1, 1]} : vector<6x6x128xbf16> to vector<4x4x128xbf16>
    %40 = vector.shape_cast %39 : vector<4x4x128xbf16> to vector<16x128xbf16>
    %c6 = arith.constant 6 : index
    %c0_22 = arith.constant 0 : index
    %c0_23 = arith.constant 0 : index
    %41 = vector.load %arg2[%c6, %c0_22, %c0_23] : memref<9x128x512xbf16, #tpu.memory_space<vmem>>, vector<1x128x512xbf16>
    %42 = vector.shape_cast %41 : vector<1x128x512xbf16> to vector<128x512xbf16>
    %cst_24 = arith.constant dense<0.000000e+00> : vector<16x512xf32>
    %43 = tpu.matmul %40, %42, %cst_24 {dimension_numbers = #tpu.dot_dimension_numbers<[1], [0], [0], [1], [0, 0, 1, 1], [], []>} : vector<16x128xbf16>, vector<128x512xbf16>, vector<16x512xf32> -> vector<16x512xf32>
    %44 = arith.addf %38, %43 : vector<16x512xf32>
    %45 = vector.extract_strided_slice %1 {offsets = [2, 1, 0], sizes = [4, 4, 128], strides = [1, 1, 1]} : vector<6x6x128xbf16> to vector<4x4x128xbf16>
    %46 = vector.shape_cast %45 : vector<4x4x128xbf16> to vector<16x128xbf16>
    %c7 = arith.constant 7 : index
    %c0_25 = arith.constant 0 : index
    %c0_26 = arith.constant 0 : index
    %47 = vector.load %arg2[%c7, %c0_25, %c0_26] : memref<9x128x512xbf16, #tpu.memory_space<vmem>>, vector<1x128x512xbf16>
    %48 = vector.shape_cast %47 : vector<1x128x512xbf16> to vector<128x512xbf16>
    %cst_27 = arith.constant dense<0.000000e+00> : vector<16x512xf32>
    %49 = tpu.matmul %46, %48, %cst_27 {dimension_numbers = #tpu.dot_dimension_numbers<[1], [0], [0], [1], [0, 0, 1, 1], [], []>} : vector<16x128xbf16>, vector<128x512xbf16>, vector<16x512xf32> -> vector<16x512xf32>
    %50 = arith.addf %44, %49 : vector<16x512xf32>
    %51 = vector.extract_strided_slice %1 {offsets = [2, 2, 0], sizes = [4, 4, 128], strides = [1, 1, 1]} : vector<6x6x128xbf16> to vector<4x4x128xbf16>
    %52 = vector.shape_cast %51 : vector<4x4x128xbf16> to vector<16x128xbf16>
    %c8 = arith.constant 8 : index
    %c0_28 = arith.constant 0 : index
    %c0_29 = arith.constant 0 : index
    %53 = vector.load %arg2[%c8, %c0_28, %c0_29] : memref<9x128x512xbf16, #tpu.memory_space<vmem>>, vector<1x128x512xbf16>
    %54 = vector.shape_cast %53 : vector<1x128x512xbf16> to vector<128x512xbf16>
    %cst_30 = arith.constant dense<0.000000e+00> : vector<16x512xf32>
    %55 = tpu.matmul %52, %54, %cst_30 {dimension_numbers = #tpu.dot_dimension_numbers<[1], [0], [0], [1], [0, 0, 1, 1], [], []>} : vector<16x128xbf16>, vector<128x512xbf16>, vector<16x512xf32> -> vector<16x512xf32>
    %56 = arith.addf %50, %55 : vector<16x512xf32>
    %c0_31 = arith.constant 0 : index
    %c0_32 = arith.constant 0 : index
    %57 = vector.load %arg3[%c0_31, %c0_32] : memref<1x512xf32, #tpu.memory_space<vmem>>, vector<1x512xf32>
    %58 = vector.broadcast %57 : vector<1x512xf32> to vector<16x512xf32>
    %59 = arith.mulf %56, %58 : vector<16x512xf32>
    %c0_33 = arith.constant 0 : index
    %c0_34 = arith.constant 0 : index
    %60 = vector.load %arg4[%c0_33, %c0_34] : memref<1x512xf32, #tpu.memory_space<vmem>>, vector<1x512xf32>
    %61 = vector.broadcast %60 : vector<1x512xf32> to vector<16x512xf32>
    %62 = arith.addf %59, %61 : vector<16x512xf32>
    %cst_35 = arith.constant 0.000000e+00 : f32
    %63 = vector.broadcast %cst_35 : f32 to vector<16x512xf32>
    %64 = arith.maximumf %62, %63 : vector<16x512xf32>
    %65 = vector.shape_cast %64 : vector<16x512xf32> to vector<8x2x512xf32>
    %cst_36 = arith.constant dense<0xFF800000> : vector<8x512xf32>
    %66 = vector.multi_reduction <maximumf>, %65, %cst_36 [1] : vector<8x2x512xf32> to vector<8x512xf32>
    %67 = vector.shape_cast %66 : vector<8x512xf32> to vector<2x2x2x512xf32>
    %cst_37 = arith.constant dense<0xFF800000> : vector<2x2x512xf32>
    %68 = vector.multi_reduction <maximumf>, %67, %cst_37 [1] : vector<2x2x2x512xf32> to vector<2x2x512xf32>
    %69 = arith.truncf %68 : vector<2x2x512xf32> to vector<2x2x512xbf16>
    %c0_38 = arith.constant 0 : index
    %c0_39 = arith.constant 0 : index
    %c0_40 = arith.constant 0 : index
    %c0_41 = arith.constant 0 : index
    %70 = vector.load %arg5[%c0_38, %c0_39, %c0_40, %c0_41] : memref<1x2x2x512xbf16, #tpu.memory_space<vmem>>, vector<1x2x2x512xbf16>
    %71 = vector.shape_cast %70 : vector<1x2x2x512xbf16> to vector<2x2x512xbf16>
    %72 = vector.shape_cast %69 : vector<2x2x512xbf16> to vector<1x2x2x512xbf16>
    tpu.vector_store %arg5[%c0_38, %c0_39, %c0_40, %c0_41], %72 {strides = array<i32>} : memref<1x2x2x512xbf16, #tpu.memory_space<vmem>>, vector<1x2x2x512xbf16>,
    return
  }
  func.func @transform_0(%arg0: i32) -> (i32, i32, i32, i32) {
    %c0_i32 = arith.constant 0 : i32
    %c0_i32_0 = arith.constant 0 : i32
    %c0_i32_1 = arith.constant 0 : i32
    %c0_i32_2 = arith.constant 0 : i32
    return %arg0, %c0_i32, %c0_i32_0, %c0_i32_1 : i32, i32, i32, i32
  }
  func.func @transform_1(%arg0: i32) -> (i32, i32, i32) {
    %c0_i32 = arith.constant 0 : i32
    %c0_i32_0 = arith.constant 0 : i32
    %c0_i32_1 = arith.constant 0 : i32
    %c0_i32_2 = arith.constant 0 : i32
    return %c0_i32, %c0_i32_0, %c0_i32_1 : i32, i32, i32
  }
  func.func @transform_2(%arg0: i32) -> (i32, i32) {
    %c0_i32 = arith.constant 0 : i32
    %c0_i32_0 = arith.constant 0 : i32
    %c0_i32_1 = arith.constant 0 : i32
    return %c0_i32, %c0_i32_0 : i32, i32
  }
  func.func @transform_3(%arg0: i32) -> (i32, i32) {
    %c0_i32 = arith.constant 0 : i32
    %c0_i32_0 = arith.constant 0 : i32
    %c0_i32_1 = arith.constant 0 : i32
    return %c0_i32, %c0_i32_0 : i32, i32
  }
  func.func @transform_4(%arg0: i32) -> (i32, i32, i32, i32) {
    %c0_i32 = arith.constant 0 : i32
    %c0_i32_0 = arith.constant 0 : i32
    %c0_i32_1 = arith.constant 0 : i32
    %c0_i32_2 = arith.constant 0 : i32
    return %arg0, %c0_i32, %c0_i32_0, %c0_i32_1 : i32, i32, i32, i32
  }
}

module attributes {stable_mosaic.version = 11 : i64} {
  func.func @_head_kernel(%arg0: i32, %arg1: memref<2x4x512xbf16, #tpu.memory_space<vmem>>, %arg2: memref<512x1024xbf16, #tpu.memory_space<vmem>>, %arg3: memref<1x1024xf32, #tpu.memory_space<vmem>>, %arg4: memref<1024x128xbf16, #tpu.memory_space<vmem>>, %arg5: memref<1x128xf32, #tpu.memory_space<vmem>>, %arg6: memref<2x128xf32, #tpu.memory_space<vmem>>) attributes {dimension_semantics = [#tpu.dimension_semantics<arbitrary>], iteration_bounds = array<i64: 1>, scalar_prefetch = 0 : i64, scratch_operands = 0 : i64, tpu.core_type = #tpu.core_type<tc>, window_params = [{pipeline_mode = #tpu.pipeline_mode<synchronous>, transform_indices = @transform_0, window_bounds = array<i64: 2, 4, 512>}, {pipeline_mode = #tpu.pipeline_mode<synchronous>, transform_indices = @transform_1, window_bounds = array<i64: 512, 1024>}, {pipeline_mode = #tpu.pipeline_mode<synchronous>, transform_indices = @transform_2, window_bounds = array<i64: 1, 1024>}, {pipeline_mode = #tpu.pipeline_mode<synchronous>, transform_indices = @transform_3, window_bounds = array<i64: 1024, 128>}, {pipeline_mode = #tpu.pipeline_mode<synchronous>, transform_indices = @transform_4, window_bounds = array<i64: 1, 128>}, {pipeline_mode = #tpu.pipeline_mode<synchronous>, transform_indices = @transform_5, window_bounds = array<i64: 2, 128>}]} {
    %c0 = arith.constant 0 : index
    %c0_0 = arith.constant 0 : index
    %c0_1 = arith.constant 0 : index
    %0 = vector.load %arg1[%c0, %c0_0, %c0_1] : memref<2x4x512xbf16, #tpu.memory_space<vmem>>, vector<2x4x512xbf16>
    %1 = arith.extf %0 : vector<2x4x512xbf16> to vector<2x4x512xf32>
    %cst = arith.constant dense<0.000000e+00> : vector<2x512xf32>
    %2 = vector.multi_reduction <add>, %1, %cst [1] : vector<2x4x512xf32> to vector<2x512xf32>
    %cst_2 = arith.constant 4.000000e+00 : f32
    %3 = vector.broadcast %cst_2 : f32 to vector<2x512xf32>
    %4 = arith.divf %2, %3 : vector<2x512xf32>
    %5 = arith.truncf %4 : vector<2x512xf32> to vector<2x512xbf16>
    %c0_3 = arith.constant 0 : index
    %c0_4 = arith.constant 0 : index
    %6 = vector.load %arg2[%c0_3, %c0_4] : memref<512x1024xbf16, #tpu.memory_space<vmem>>, vector<512x1024xbf16>
    %cst_5 = arith.constant dense<0.000000e+00> : vector<2x1024xf32>
    %7 = tpu.matmul %5, %6, %cst_5 {dimension_numbers = #tpu.dot_dimension_numbers<[1], [0], [0], [1], [0, 0, 1, 1], [], []>} : vector<2x512xbf16>, vector<512x1024xbf16>, vector<2x1024xf32> -> vector<2x1024xf32>
    %c0_6 = arith.constant 0 : index
    %c0_7 = arith.constant 0 : index
    %8 = vector.load %arg3[%c0_6, %c0_7] : memref<1x1024xf32, #tpu.memory_space<vmem>>, vector<1x1024xf32>
    %9 = vector.broadcast %8 : vector<1x1024xf32> to vector<2x1024xf32>
    %10 = arith.addf %7, %9 : vector<2x1024xf32>
    %cst_8 = arith.constant 0.000000e+00 : f32
    %11 = vector.broadcast %cst_8 : f32 to vector<2x1024xf32>
    %12 = arith.maximumf %10, %11 : vector<2x1024xf32>
    %13 = arith.truncf %12 : vector<2x1024xf32> to vector<2x1024xbf16>
    %c0_9 = arith.constant 0 : index
    %c0_10 = arith.constant 0 : index
    %14 = vector.load %arg4[%c0_9, %c0_10] : memref<1024x128xbf16, #tpu.memory_space<vmem>>, vector<1024x128xbf16>
    %cst_11 = arith.constant dense<0.000000e+00> : vector<2x128xf32>
    %15 = tpu.matmul %13, %14, %cst_11 {dimension_numbers = #tpu.dot_dimension_numbers<[1], [0], [0], [1], [0, 0, 1, 1], [], []>} : vector<2x1024xbf16>, vector<1024x128xbf16>, vector<2x128xf32> -> vector<2x128xf32>
    %c0_12 = arith.constant 0 : index
    %c0_13 = arith.constant 0 : index
    %16 = vector.load %arg5[%c0_12, %c0_13] : memref<1x128xf32, #tpu.memory_space<vmem>>, vector<1x128xf32>
    %17 = vector.broadcast %16 : vector<1x128xf32> to vector<2x128xf32>
    %18 = arith.addf %15, %17 : vector<2x128xf32>
    %c0_14 = arith.constant 0 : index
    %c0_15 = arith.constant 0 : index
    %19 = vector.load %arg6[%c0_14, %c0_15] : memref<2x128xf32, #tpu.memory_space<vmem>>, vector<2x128xf32>
    tpu.vector_store %arg6[%c0_14, %c0_15], %18 {strides = array<i32>} : memref<2x128xf32, #tpu.memory_space<vmem>>, vector<2x128xf32>,
    return
  }
  func.func @transform_0(%arg0: i32) -> (i32, i32, i32) {
    %c0_i32 = arith.constant 0 : i32
    %c0_i32_0 = arith.constant 0 : i32
    %c0_i32_1 = arith.constant 0 : i32
    %c0_i32_2 = arith.constant 0 : i32
    return %c0_i32, %c0_i32_0, %c0_i32_1 : i32, i32, i32
  }
  func.func @transform_1(%arg0: i32) -> (i32, i32) {
    %c0_i32 = arith.constant 0 : i32
    %c0_i32_0 = arith.constant 0 : i32
    %c0_i32_1 = arith.constant 0 : i32
    return %c0_i32, %c0_i32_0 : i32, i32
  }
  func.func @transform_2(%arg0: i32) -> (i32, i32) {
    %c0_i32 = arith.constant 0 : i32
    %c0_i32_0 = arith.constant 0 : i32
    %c0_i32_1 = arith.constant 0 : i32
    return %c0_i32, %c0_i32_0 : i32, i32
  }
  func.func @transform_3(%arg0: i32) -> (i32, i32) {
    %c0_i32 = arith.constant 0 : i32
    %c0_i32_0 = arith.constant 0 : i32
    %c0_i32_1 = arith.constant 0 : i32
    return %c0_i32, %c0_i32_0 : i32, i32
  }
  func.func @transform_4(%arg0: i32) -> (i32, i32) {
    %c0_i32 = arith.constant 0 : i32
    %c0_i32_0 = arith.constant 0 : i32
    %c0_i32_1 = arith.constant 0 : i32
    return %c0_i32, %c0_i32_0 : i32, i32
  }
  func.func @transform_5(%arg0: i32) -> (i32, i32) {
    %c0_i32 = arith.constant 0 : i32
    %c0_i32_0 = arith.constant 0 : i32
    %c0_i32_1 = arith.constant 0 : i32
    return %c0_i32, %c0_i32_0 : i32, i32
  }
}

</mosaic_0001>

<bundles_post_ra>
// kernel: simplenet2d_forward.5
= control target key start
LH: loop header
LB: loop body
LE: loop exit
PB: predicated region body
PF: predicated region fallthrough
CT: control target
= control target key end

     0   :  { %s3366_s15 = smov 0   ;;  %s4083_s0 = inlined_call_operand.vmem [shape: bf16[2,10,10,128], index: 0, kind: input, shape index: {}]   ;;  %s4084_s1 = inlined_call_operand.vmem [shape: bf16[9,128,128], index: 1, kind: input, shape index: {}]   ;;  %s4085_s2 = inlined_call_operand.vmem [shape: f32[1,128], index: 2, kind: input, shape index: {}]   ;;  %s4086_s3 = inlined_call_operand.vmem [shape: f32[1,128], index: 3, kind: input, shape index: {}]   ;;  %s4087_s4 = inlined_call_operand.vmem [shape: bf16[2,4,4,128], index: 4, kind: output, shape index: {}]  }
   0x1 LB: > { %s2583_s16 = sadd.s32 4294967295, %s3338_s15   ;;  %p2587_p0 = scmp.ge.s32.totalorder %s3338_s15, 1  ;;  %s3338_s15 = sphi %s3366_s15, %s14_s15  }
   0x2   : > { %p162_p1 = scmp.lt.s32.totalorder %s3338_s15, 3 }
   0x4   : > { %p163_p2 = pnand %p2587_p0, %p162_p1 }
   0x5   : > { %v3251_v0 = vld [vmem:[%s4084_s1 + $0x40] sm:$0xff] (!%p163_p2)   ;;  %p188_p3 = scmp.lt.s32.totalorder (!%p163_p2), %s2583_s16, 1  ;;  %v3253_v2 = vld [vmem:[%s4084_s1 + $0x48] sm:$0xff] (!%p163_p2)   ;;  %v3255_v4 = vld [vmem:[%s4084_s1 + $0x50] sm:$0xff] (!%p163_p2)   ;;  %vm235_vm0 = vsmask.f32 (!%p163_p2), 3328 }
   0x6   : > { %166 = sbr.rel (%p163_p2) target bundleno = 489 (0x1e9), region = 36  ;;  %v3252_v1 = vld [vmem:[%s4084_s1 + $0x100] sm:$0xff] (!%p163_p2)   ;;  %2945 = vmatprep.subr.bf16.mxu1 (!%p163_p2), %v3251_v0  ;;  %v3254_v3 = vld [vmem:[%s4084_s1 + $0x108] sm:$0xff] (!%p163_p2)   ;;  %v3256_v5 = vld [vmem:[%s4084_s1 + $0x110] sm:$0xff] (!%p163_p2)   ;;  %vm236_vm1 = vsmask.f32 (!%p163_p2), 7440 }
   0x7   : > { %3041 = vmatprep.subr.bf16.mxu0 (!%p163_p2), %v3252_v1  ;;  %2946 = vmatpush3.bf16.msra.mxu1 (!%p163_p2), %v3251_v0  ;;  %v3257_v6 = vld [vmem:[%s4084_s1 + $0x58] sm:$0xff] (!%p163_p2)   ;;  %v3259_v8 = vld [vmem:[%s4084_s1 + $0x60] sm:$0xff] (!%p163_p2)   ;;  %v3261_v10 = vld [vmem:[%s4084_s1 + $0x68] sm:$0xff] (!%p163_p2)   ;;  %vm641_vm3 = vcmask (!%p163_p2), 1042432   ;;  %vm642_vm4 = vcmask (!%p163_p2), 1046532   ;;  %vm1948_vm6 = vcmask (!%p163_p2), 1041408  }
   0x8   : > { %3042 = vmatpush3.bf16.msra.mxu0 (!%p163_p2), %v3252_v1  ;;  %2947 = vmatprep.subr.bf16.mxu1 (!%p163_p2), %v3253_v2  ;;  %v3258_v7 = vld [vmem:[%s4084_s1 + $0x118] sm:$0xff] (!%p163_p2)   ;;  %v3260_v9 = vld [vmem:[%s4084_s1 + $0x120] sm:$0xff] (!%p163_p2)   ;;  %v3262_v14 = vld [vmem:[%s4084_s1 + $0x128] sm:$0xff] (!%p163_p2)   ;;  %vm2462_vm7 = vcmask (!%p163_p2), 1041409   ;;  %vm2465_vm8 = vcmask (!%p163_p2), 1042434   ;;  %vm2468_vm9 = vcmask (!%p163_p2), 1043459  }
   0x9   : > { %3043 = vmatprep.subr.bf16.mxu0 (!%p163_p2), %v3254_v3  ;;  %v3263_v22 = vld [vmem:[%s4084_s1 + $0x70] sm:$0xff] (!%p163_p2)   ;;  %v3265_v38 = vld [vmem:[%s4084_s1 + $0x78] sm:$0xff] (!%p163_p2)   ;;  %vm3463_vm2 = vmor (!%p163_p2), %vm235_vm0, %vm236_vm1 }
   0xa   : > { %v3264_v23 = vld [vmem:[%s4084_s1 + $0x130] sm:$0xff] (!%p163_p2)   ;;  %v3266_v48 = vld [vmem:[%s4084_s1 + $0x138] sm:$0xff] (!%p163_p2)   ;;  %v3267_v62 = vld [vmem:[%s4084_s1] sm:$0xff] (!%p163_p2)  }
   0xb   : > { %2948 = vmatpush3.bf16.msra.mxu1 (!%p163_p2), %v3253_v2  ;;  %vm3576_vm5 = vmor (!%p163_p2), %vm641_vm3, %vm642_vm4  ;;  %v3295_v39 = vld [vmem:[%s4084_s1 + $0xa8] sm:$0xff] (!%p163_p2)  }
   0xc   : > { %3044 = vmatpush3.bf16.msra.mxu0 (!%p163_p2), %v3254_v3  ;;  %2949 = vmatprep.subr.bf16.mxu1 (!%p163_p2), %v3255_v4  ;;  %v3268_v3 = vld [vmem:[%s4084_s1 + $0x140] sm:$0xff] (!%p163_p2)  }
   0xd   : > { %s4093_s16 = smov (!%p188_p3, %s2583_s16), 1  ;;  %3045 = vmatprep.subr.bf16.mxu0 %v3256_v5 }
   0xe   : > { %s3241_s7 = smul.u32 80, %s4093_s16  ;;  %s2836_s26 = sshll.u32 %s4093_s16, 3 }
   0xf   : > { %2950 = vmatpush3.bf16.msra.mxu1 %v3255_v4  ;;  %s4031_s16 = scalar_lea.vmem %s4087_s4, %s2836_s26 }
  0x10   : > { %3046 = vmatpush3.bf16.msra.mxu0 %v3256_v5  ;;  %2951 = vmatprep.subr.bf16.mxu1 %v3257_v6  ;;  %s3410_s14 = scalar_lea.vmem %s4083_s0, %s3241_s7 }
  0x11   : > { %3047 = vmatprep.subr.bf16.mxu0 %v3258_v7  ;;  %v3416_v11 = vld [vmem:[%s3410_s14] sm:$0xf]  ;;  %v3419_v12 = vld [vmem:[%s3410_s14 + $0x4] sm:$0x1]  ;;  %v3422_v13 = vld [vmem:[%s3410_s14 + $0x8] sm:$0xf] }
  0x12   : > { %v3428_v15 = vld [vmem:[%s3410_s14 + $0xc] sm:$0x1]  ;;  %v239_v16 = vshrl.u32 %v3416_v11, 16  ;;  %v242_v17 = vshll.u32 %v3416_v11, 16  ;;  %v248_v18 = vshll.u32 %v3419_v12, 16  ;;  %v253_v19 = vshrl.u32 %v3422_v13, 16 }
  0x13   : > { %2952 = vmatpush3.bf16.msra.mxu1 %v3257_v6  ;;  %v256_v20 = vshll.u32 %v3422_v13, 16  ;;  %v262_v21 = vshll.u32 %v3428_v15, 16  ;;  %v3443_v30 = vld [vmem:[%s3410_s14 + $0x10] sm:$0xf]  ;;  %v3446_v31 = vld [vmem:[%s3410_s14 + $0x14] sm:$0x1] }
  0x14   : > { %3048 = vmatpush3.bf16.msra.mxu0 %v3258_v7  ;;  %2953 = vmatprep.subr.bf16.mxu1 %v3259_v8  ;;  %v241_v24 = vrot.slane %v239_v16, 4  ;;  %v244_v25 = vrot.slane %v242_v17, 5  ;;  %v250_v26 = vrot.slane %v248_v18, 5  ;;  %v255_v27 = vrot.slane %v253_v19, 4  ;;  %v3449_v33 = vld [vmem:[%s3410_s14 + $0x18] sm:$0xf] }
  0x15   : > { %3049 = vmatprep.subr.bf16.mxu0 %v3260_v9  ;;  %v258_v28 = vrot.slane %v256_v20, 5  ;;  %v264_v29 = vrot.slane %v262_v21, 5  ;;  %v3452_v34 = vld [vmem:[%s3410_s14 + $0x1c] sm:$0x1]  ;;  %v267_v35 = vshrl.u32 %v3443_v30, 16  ;;  %v270_v36 = vshll.u32 %v3443_v30, 16 }
  0x16   : > { %v245_v32 = vor.u32 %v244_v25, %v241_v24  ;;  %v2683_v37 = vcombine.low %v3422_v13, %v3443_v30  ;;  %v276_v41 = vshll.u32 %v3446_v31, 16  ;;  %v281_v42 = vshrl.u32 %v3449_v33, 16  ;;  %v3475_v52 = vld [vmem:[%s3410_s14 + $0x20] sm:$0xf]  ;;  %v3480_v56 = vld [vmem:[%s3410_s14 + $0x24] sm:$0x1] }
  0x17   : > { %2954 = vmatpush3.bf16.msra.mxu1 %v3259_v8  ;;  %v259_v40 = vor.u32 %v258_v28, %v255_v27  ;;  %v284_v43 = vshll.u32 %v3449_v33, 16  ;;  %v269_v45 = vrot.slane %v267_v35, 4  ;;  %v272_v46 = vrot.slane %v270_v36, 5  ;;  %v3269_v17 = vld [vmem:[%s4084_s1 + $0x8] sm:$0xff]   ;;  %v3273_v35 = vld [vmem:[%s4084_s1 + $0x18] sm:$0xff]  }
  0x18   : > { %3050 = vmatpush3.bf16.msra.mxu0 %v3260_v9  ;;  %2955 = vmatprep.subr.bf16.mxu1 %v3261_v10  ;;  %v246_v44 = vrot.slane %v245_v32, 4  ;;  %v290_v47 = vshll.u32 %v3452_v34, 16  ;;  %v283_v50 = vrot.slane %v281_v42, 4  ;;  %v278_v55 = vrot.slane %v276_v41, 5  ;;  %v3270_v24 = vld [vmem:[%s4084_s1 + $0x148] sm:$0xff]   ;;  %v3272_v32 = vld [vmem:[%s4084_s1 + $0x150] sm:$0xff]  }
  0x19   : > { %3051 = vmatprep.subr.bf16.mxu0 %v3262_v14  ;;  %v260_v49 = vrot.slane %v259_v40, 4  ;;  %v286_v51 = vrot.slane %v284_v43, 5  ;;  %v273_v54 = vor.u32 %v272_v46, %v269_v45  ;;  %v295_v60 = vshrl.u32 %v3475_v52, 16  ;;  %v3516_v25 = vld [vmem:[%s3410_s14 + $0x28] sm:$0xf] }
  0x1a   : > { %v251_v53 = vsel %vm3463_vm2, %v246_v44, %v250_v26  ;;  %v292_v59 = vrot.slane %v290_v47, 5  ;;  %v298_v0 = vshll.u32 %v3475_v52, 16  ;;  %v304_v1 = vshll.u32 %v3480_v56, 16  ;;  %v3520_v27 = vld [vmem:[%s3410_s14 + $0x2c] sm:$0x1] }
  0x1b   : > { %2956 = vmatpush3.bf16.msra.mxu1 %v3261_v10  ;;  %v265_v57 = vsel %vm3463_vm2, %v260_v49, %v264_v29  ;;  %v287_v58 = vor.u32 %v286_v51, %v283_v50  ;;  %v274_v63 = vrot.slane %v273_v54, 4  ;;  %v297_v4 = vrot.slane %v295_v60, 4  ;;  %v3535_v42 = vld [vmem:[%s3410_s14 + $0x34] sm:$0x1]  ;;  %v3274_v54 = vld [vmem:[%s4084_s1 + $0x158] sm:$0xff]  }
  0x1c   : > { %3052 = vmatpush3.bf16.msra.mxu0 %v3262_v14  ;;  %2957 = vmatprep.subr.bf16.mxu1 %v3263_v22  ;;  %v2607_v61 = vcombine.low %v251_v53, %v265_v57  ;;  %v300_v6 = vrot.slane %v298_v0, 5  ;;  %v2684_v7 = vcombine.low %v3449_v33, %v3475_v52  ;;  %v306_v16 = vrot.slane %v304_v1, 5  ;;  %v3544_v53 = vld [vmem:[%s3410_s14 + $0x38] sm:$0xf]  ;;  %v3559_v0 = vld [vmem:[%s3410_s14 + $0x40] sm:$0xf] }
  0x1d   : > { %3053 = vmatprep.subr.bf16.mxu0 %v3264_v23  ;;  %v288_v2 = vrot.slane %v287_v58, 4  ;;  %v279_v5 = vsel %vm3463_vm2, %v274_v63, %v278_v55  ;;  %v650_v19 = vrot.slane %v3428_v15, 5  ;;  %v654_v20 = vrot.slane %v3446_v31, 5  ;;  %v3275_v55 = vld [vmem:[%s4084_s1 + $0x20] sm:$0xff]   ;;  %v3553_v58 = vld [vmem:[%s3410_s14 + $0x3c] sm:$0x1] }
  0x1e   : > { %2961 = vmatprep.mubr.bf16.mxu1 %v2607_v61  ;;  %v2711_v9 = vcombine.low %v265_v57, %v279_v5  ;;  %v301_v14 = vor.u32 %v300_v6, %v297_v4  ;;  %v2632_v26 = vrot.slane %v3422_v13, 9  ;;  %v309_v28 = vshrl.u32 %v3516_v25, 16  ;;  %v3562_v1 = vld [vmem:[%s3410_s14 + $0x44] sm:$0x1]  ;;  %v3278_v15 = vld [vmem:[%s4084_s1 + $0x168] sm:$0xff]  }
  0x1f   : > { %2958 = vmatpush3.bf16.msra.mxu1 %v3263_v22  ;;  %v293_v8 = vsel %vm3463_vm2, %v288_v2, %v292_v59  ;;  %v3271_v22 = vld [vmem:[%s4084_s1 + $0x10] sm:$0xff]   ;;  %v312_v29 = vshll.u32 %v3516_v25, 16  ;;  %v318_v36 = vshll.u32 %v3520_v27, 16  ;;  %v332_v45 = vshll.u32 %v3535_v42, 16 }
  0x20   : > { %3054 = vmatpush3.bf16.msra.mxu0 %v3264_v23  ;;  %2959 = vmatprep.subr.bf16.mxu1 %v3265_v38  ;;  %v3499_v10 = vcombine.low %v279_v5, %v293_v8  ;;  %v302_v18 = vrot.slane %v301_v14, 4  ;;  %v311_v40 = vrot.slane %v309_v28, 4  ;;  %v2633_v46 = vrot.slane %v3443_v30, 9  ;;  %v3277_v28 = vld [vmem:[%s4084_s1 + $0x28] sm:$0xff]  }
  0x21   : > { %3055 = vmatprep.subr.bf16.mxu0 %v3266_v48  ;;  %3057 = vmatprep.mubr.bf16.mxu0 %v2711_v9  ;;  %v314_v41 = vrot.slane %v312_v29, 5  ;;  %v320_v49 = vrot.slane %v318_v36, 5  ;;  %v334_v57 = vrot.slane %v332_v45, 5  ;;  %v337_v59 = vshrl.u32 %v3544_v53, 16 }
  0x22   : > { %v307_v21 = vsel %vm3463_vm2, %v302_v18, %v306_v16  ;;  %v340_v60 = vshll.u32 %v3544_v53, 16  ;;  %v346_v63 = vshll.u32 %v3553_v58, 16  ;;  %v979_v4 = vshrl.u32 %v3559_v0, 16  ;;  %v3276_v16 = vld [vmem:[%s4084_s1 + $0x160] sm:$0xff]  }
  0x23   : > { %2960 = vmatpush3.bf16.msra.mxu1 %v3265_v38  ;;  %v2712_v23 = vcombine.low %v293_v8, %v307_v21  ;;  %v3532_v38 = vld [vmem:[%s3410_s14 + $0x30] sm:$0xf]  ;;  %v339_v2 = vrot.slane %v337_v59, 4  ;;  %v982_v5 = vshll.u32 %v3559_v0, 16  ;;  %v988_v14 = vshll.u32 %v3562_v1, 16  ;;  %v3284_v59 = vld [vmem:[%s4084_s1 + $0x80] sm:$0xff]  }
  0x24   : > { %3056 = vmatpush3.bf16.msra.mxu0 %v3266_v48  ;;  %2969 = vmatprep.subr.bf16.mxu1 %v3267_v62  ;;  %v323_v43 = vshrl.u32 %v3532_v38, 16  ;;  %v326_v44 = vshll.u32 %v3532_v38, 16  ;;  %v2685_v47 = vcombine.low %v3516_v25, %v3532_v38  ;;  %v315_v48 = vor.u32 %v314_v41, %v311_v40 }
  0x25   : > { %3065 = vmatprep.subr.bf16.mxu0 %v3268_v3  ;;  %v348_v9 = vrot.slane %v346_v63, 5  ;;  %v990_v41 = vrot.slane %v988_v14, 5  ;;  %v3598_v45 = vsel %vm3576_vm5, %v2632_v26, %v650_v19  ;;  %v646_v26 = vrot.slane %v3419_v12, 5  ;;  %v3644_v63 = vld [vmem:[%s3410_s14 + $0x48] sm:$0xf]  ;;  %v3285_v14 = vld [vmem:[%s4084_s1 + $0x180] sm:$0xff]  }
  0x26   : > { %2962 = vmatmul.mubr.bf16.vlgmr.msra.gmra.mrb[0].mxu1 %v3499_v10  ;;  %v325_v50 = vrot.slane %v323_v43, 4  ;;  %v328_v51 = vrot.slane %v326_v44, 5  ;;  %v316_v61 = vrot.slane %v315_v48, 4  ;;  %v3604_v48 = vsel %vm3576_vm5, %v2633_v46, %v654_v20 }
  0x27   : > { %2970 = vmatpush3.bf16.msra.mxu1 %v3267_v62  ;;  %3058 = vmatmul.mubr.bf16.vlgmr.msra.gmra.mrb[0].mxu0 %v2712_v23  ;;  %v984_v23 = vrot.slane %v982_v5, 5  ;;  %v2740_v20 = vcombine.low %v3598_v45, %v3604_v48  ;;  %v658_v46 = vrot.slane %v3452_v34, 5  ;;  %v2634_v12 = vrot.slane %v3449_v33, 9  ;;  %v218_v5 = vld [vmem:[%s3410_s14 + $0x4c] sm:$0x1] }
  0x28   : > { %2971 = vmatprep.subr.bf16.mxu1 %v3269_v17  ;;  %3066 = vmatpush3.bf16.msra.mxu0 %v3268_v3  ;;  %v329_v62 = vor.u32 %v328_v51, %v325_v50  ;;  %v342_v3 = vrot.slane %v340_v60, 5  ;;  %v321_v6 = vsel %vm3463_vm2, %v316_v61, %v320_v49  ;;  %v3279_v49 = vld [vmem:[%s4084_s1 + $0x30] sm:$0xff]   ;;  %v662_v51 = vrot.slane %v3480_v56, 5 }
  0x29   : > { %3067 = vmatprep.subr.bf16.mxu0 %v3270_v24  ;;  %v2635_v34 = vrot.slane %v3475_v52, 9  ;;  %v2631_v56 = vrot.slane %v3416_v11, 9  ;;  %v2636_v60 = vrot.slane %v3516_v25, 9  ;;  %v666_v61 = vrot.slane %v3520_v27, 5  ;;  %v3287_v27 = vld [vmem:[%s4084_s1 + $0x88] sm:$0xff]  }
  0x2a   : > { %v330_v8 = vrot.slane %v329_v62, 4  ;;  %v343_v18 = vor.u32 %v342_v3, %v339_v2  ;;  %v2637_v62 = vrot.slane %v3532_v38, 9  ;;  %v1142_v2 = vrot.slane %v3562_v1, 5 }
  0x2b   : > { %2972 = vmatpush3.bf16.msra.mxu1 %v3269_v17  ;;  %v3572_v17 = vcombine.low %v307_v21, %v321_v6  ;;  %v2686_v21 = vcombine.low %v3544_v53, %v3559_v0  ;;  %v3650_v3 = vcombine.low %v3443_v30, %v3449_v33  ;;  %v3664_v1 = vsel %vm3576_vm5, %v2634_v12, %v658_v46  ;;  %v3312_v30 = vld [vmem:[%s4084_s1 + $0x1e0] sm:$0xff]   ;;  %v3327_v33 = vld [vmem:[%s4084_s1 + $0x218] sm:$0xff]  }
  0x2c   : > { %2973 = vmatprep.subr.bf16.mxu1 %v3271_v22  ;;  %3068 = vmatpush3.bf16.msra.mxu0 %v3270_v24  ;;  %v335_v29 = vsel %vm3463_vm2, %v330_v8, %v334_v57  ;;  %v344_v36 = vrot.slane %v343_v18, 4  ;;  %v3282_v57 = vld [vmem:[%s4084_s1 + $0x178] sm:$0xff]   ;;  %v3660_v8 = vcombine.low %v3475_v52, %v3516_v25  ;;  %v3711_v46 = vcombine.low %v3532_v38, %v3544_v53  ;;  %v3293_v24 = vld [vmem:[%s4084_s1 + $0xa0] sm:$0xff]   ;;  %v3330_v25 = vld [vmem:[%s4084_s1 + $0x230] sm:$0xff]  }
  0x2d   : > { %3069 = vmatprep.subr.bf16.mxu0 %v3272_v32  ;;  %2965 = vmatprep.mubr.bf16.mxu1 %v3572_v17  ;;  %v3328_v52 = vld [vmem:[%s4084_s1 + $0x220] sm:$0xff]   ;;  %v3331_v38 = vld [vmem:[%s4084_s1 + $0x238] sm:$0xff]  }
  0x2e   : > { %v349_v43 = vsel %vm3463_vm2, %v344_v36, %v348_v9  ;;  %v1591_v9 = vrot.slane %v218_v5, 5  ;;  %v1437_v36 = vshll.u32 %v3644_v63, 16 }
  0x2f   : > { %2974 = vmatpush3.bf16.msra.mxu1 %v3271_v22  ;;  %v981_v22 = vrot.slane %v979_v4, 4  ;;  %v3609_v50 = vcombine.low %v335_v29, %v349_v43  ;;  %v670_v4 = vrot.slane %v3535_v42, 5  ;;  %v3668_v42 = vsel %vm3576_vm5, %v2635_v34, %v662_v51  ;;  %v3290_v34 = vld [vmem:[%s4084_s1 + $0x190] sm:$0xff]  }
  0x30   : > { %2975 = vmatprep.subr.bf16.mxu1 %v3273_v35  ;;  %3070 = vmatpush3.bf16.msra.mxu0 %v3272_v32  ;;  %v2619_v32 = vcombine.low %v3416_v11, %v3422_v13  ;;  %v2723_v11 = vrot.slane %v3559_v0, 9  ;;  %v3313_v13 = vld [vmem:[%s4084_s1 + $0xe8] sm:$0xff]  }
  0x31   : > { %3071 = vmatprep.subr.bf16.mxu0 %v3274_v54  ;;  %v985_v40 = vor.u32 %v984_v23, %v981_v22  ;;  %2966 = vmatmul.mubr.bf16.gmra.mrb[4].mxu1 %v3609_v50  ;;  %v1434_v22 = vshrl.u32 %v3644_v63, 16  ;;  %v3289_v23 = vld [vmem:[%s4084_s1 + $0x90] sm:$0xff]  }
  0x32   : > { %2985 = vmatprep.mubr.bf16.mxu1 %v2619_v32 }
  0x33   : > { %2976 = vmatpush3.bf16.msra.mxu1 %v3273_v35  ;;  %v2713_v35 = vcombine.low %v321_v6, %v335_v29  ;;  %v986_v44 = vrot.slane %v985_v40, 4  ;;  %v2802_v6 = vrot.slane %v3644_v63, 9  ;;  %v3692_v29 = vsel %vm3576_vm5, %v2637_v62, %v670_v4  ;;  %v3301_v62 = vld [vmem:[%s4084_s1 + $0xb8] sm:$0xff]  }
  0x34   : > { %2977 = vmatprep.subr.bf16.mxu1 %v3275_v55  ;;  %3072 = vmatpush3.bf16.msra.mxu0 %v3274_v54  ;;  %v3281_v54 = vld [vmem:[%s4084_s1 + $0x38] sm:$0xff]   ;;  %v2741_v40 = vcombine.low %v3664_v1, %v3668_v42  ;;  %v1436_v32 = vrot.slane %v1434_v22, 4  ;;  %v3762_v4 = vcombine.low %v3604_v48, %v3664_v1  ;;  %v3307_v48 = vld [vmem:[%s4084_s1 + $0xd0] sm:$0xff]   ;;  %v3311_v22 = vld [vmem:[%s4084_s1 + $0xe0] sm:$0xff]  }
  0x35   : > { %3061 = vmatprep.mubr.bf16.mxu0 %v2713_v35  ;;  %3073 = vmatprep.subr.bf16.mxu0 %v3276_v16  ;;  %v3616_v31 = vsel %vm3463_vm2, %v986_v44, %v990_v41  ;;  %v3679_v18 = vsel %vm3576_vm5, %v2802_v6, %v1591_v9  ;;  %v2638_v41 = vrot.slane %v3544_v53, 9  ;;  %v647_v44 = vsel %vm3576_vm5, %v2631_v56, %v646_v26  ;;  %v3305_v6 = vld [vmem:[%s4084_s1 + $0xc8] sm:$0xff]  }
  0x36   : > { %v2714_v19 = vcombine.low %v349_v43, %v3616_v31  ;;  %v674_v43 = vrot.slane %v3553_v58, 5  ;;  %v2655_v58 = vcombine.low %v647_v44, %v3598_v45  ;;  %v3306_v9 = vld [vmem:[%s4084_s1 + $0x1c8] sm:$0xff]  }
  0x37   : > { %2978 = vmatpush3.bf16.msra.mxu1 %v3275_v55  ;;  %v3280_v55 = vld [vmem:[%s4084_s1 + $0x170] sm:$0xff]  }
  0x38   : > { %2979 = vmatprep.subr.bf16.mxu1 %v3277_v28  ;;  %3074 = vmatpush3.bf16.msra.mxu0 %v3276_v16  ;;  %v3675_v16 = vsel %vm3576_vm5, %v2723_v11, %v1142_v2  ;;  %v3299_v11 = vld [vmem:[%s4084_s1 + $0x1b0] sm:$0xff]   ;;  %v3303_v2 = vld [vmem:[%s4084_s1 + $0xc0] sm:$0xff]  }
  0x39   : > { %3075 = vmatprep.subr.bf16.mxu0 %v3278_v15  ;;  %3062 = vmatmul.mubr.bf16.gmra.mrb[4].mxu0 %v2714_v19  ;;  %v2819_v35 = vcombine.low %v3675_v16, %v3679_v18 }
  0x3a   : > { %3081 = vmatprep.mubr.bf16.mxu0 %v2740_v20  ;;  %v1443_v20 = vshll.u32 %v218_v5, 16 }
  0x3b   : > { %2980 = vmatpush3.bf16.msra.mxu1 %v3277_v28  ;;  %v3688_v28 = vsel %vm3576_vm5, %v2636_v60, %v666_v61  ;;  %v3298_v60 = vld [vmem:[%s4084_s1 + $0xb0] sm:$0xff]   ;;  %v3296_v61 = vld [vmem:[%s4084_s1 + $0x1a8] sm:$0xff]  }
  0x3c   : > { %2981 = vmatprep.subr.bf16.mxu1 %v3279_v49  ;;  %3076 = vmatpush3.bf16.msra.mxu0 %v3278_v15  ;;  %v3288_v15 = vld [vmem:[%s4084_s1 + $0x188] sm:$0xff]   ;;  %v2742_v19 = vcombine.low %v3688_v28, %v3692_v29  ;;  %v1445_v26 = vrot.slane %v1443_v20, 5  ;;  %v3766_v5 = vcombine.low %v3668_v42, %v3688_v28  ;;  %v3309_v42 = vld [vmem:[%s4084_s1 + $0xd8] sm:$0xff]  }
  0x3d   : > { %3077 = vmatprep.subr.bf16.mxu0 %v3280_v55  ;;  %v3318_v28 = vld [vmem:[%s4084_s1 + $0xf8] sm:$0xff]  }
  0x3f   : > { %2982 = vmatpush3.bf16.msra.mxu1 %v3279_v49  ;;  %v1439_v49 = vrot.slane %v1437_v36, 5  ;;  %v3319_v36 = vld [vmem:[%s4084_s1 + $0x1f8] sm:$0xff]  }
  0x40   : > { %2983 = vmatprep.subr.bf16.mxu1 %v3281_v54  ;;  %3078 = vmatpush3.bf16.msra.mxu0 %v3280_v55  ;;  %v675_v55 = vsel %vm3576_vm5, %v2638_v41, %v674_v43  ;;  %v3326_v41 = vld [vmem:[%s4084_s1 + $0x210] sm:$0xff]  }
  0x41   : > { %3079 = vmatprep.subr.bf16.mxu0 %v3282_v57  ;;  %v1440_v51 = vor.u32 %v1439_v49, %v1436_v32  ;;  %v2743_v56 = vcombine.low %v675_v55, %v3675_v16  ;;  %v3783_v1 = vcombine.low %v3692_v29, %v675_v55  ;;  %v3322_v29 = vld [vmem:[%s4084_s1 + $0x200] sm:$0xff]  }
  0x43   : > { %2984 = vmatpush3.bf16.msra.mxu1 %v3281_v54  ;;  %v3291_v54 = vld [vmem:[%s4084_s1 + $0x98] sm:$0xff]   ;;  %v1441_v12 = vrot.slane %v1440_v51, 4 }
  0x44   : > { %2993 = vmatprep.subr.bf16.mxu1 %v3284_v59  ;;  %3080 = vmatpush3.bf16.msra.mxu0 %v3282_v57 }
  0x45   : > { %3089 = vmatprep.subr.bf16.mxu0 %v3285_v14  ;;  %v1446_v45 = vsel %vm3463_vm2, %v1441_v12, %v1445_v26  ;;  %v3874_v26 = vld [vmem:[%s4085_s2] ss:$0 sm:$0xff] }
  0x46   : > { %2986 = vmatmul.mubr.bf16.vlgmr.msra.gmra.mrb[0].mxu1 %v3650_v3  ;;  %v3727_v57 = vcombine.low %v3616_v31, %v1446_v45  ;;  %v3294_v31 = vld [vmem:[%s4084_s1 + $0x1a0] sm:$0xff]  }
  0x47   : > { %2994 = vmatpush3.bf16.msra.mxu1 %v3284_v59  ;;  %2989 = vmatprep.mubr.bf16.mxu1 %v3660_v8  ;;  %v3292_v59 = vld [vmem:[%s4084_s1 + $0x198] sm:$0xff]  }
  0x48   : > { %2995 = vmatprep.subr.bf16.mxu1 %v3287_v27  ;;  %3082 = vmatmul.mubr.bf16.vlgmr.msra.gmra.mrb[0].mxu0 %v2741_v40  ;;  %v3323_v40 = vld [vmem:[%s4084_s1 + $0x208] sm:$0xff]  }
  0x49   : > { %3090 = vmatpush3.bf16.msra.mxu0 %v3285_v14  ;;  %3085 = vmatprep.mubr.bf16.mxu0 %v2742_v19  ;;  %v3308_v14 = vld [vmem:[%s4084_s1 + $0x1d0] sm:$0xff]  }
  0x4a   : > { %3091 = vmatprep.subr.bf16.mxu0 %v3288_v15 }
  0x4b   : > { %2996 = vmatpush3.bf16.msra.mxu1 %v3287_v27  ;;  %v3304_v27 = vld [vmem:[%s4084_s1 + $0x1c0] sm:$0xff]  }
  0x4c   : > { %2997 = vmatprep.subr.bf16.mxu1 %v3289_v23 }
  0x4d   : > { %3092 = vmatpush3.bf16.msra.mxu0 %v3288_v15 }
  0x4e   : > { %2990 = vmatmul.mubr.bf16.gmra.mrb[4].mxu1 %v3711_v46  ;;  %3093 = vmatprep.subr.bf16.mxu0 %v3290_v34 }
  0x4f   : > { %2998 = vmatpush3.bf16.msra.mxu1 %v3289_v23  ;;  %3009 = vmatprep.mubr.bf16.mxu1 %v2655_v58  ;;  %v3310_v23 = vld [vmem:[%s4084_s1 + $0x1d8] sm:$0xff]   ;;  %v1784_v58 = vlaneseq }
  0x50   : > { %2999 = vmatprep.subr.bf16.mxu1 %v3291_v54  ;;  %3086 = vmatmul.mubr.bf16.gmra.mrb[4].mxu0 %v2743_v56  ;;  %v3879_v56 = vld [vmem:[%s4086_s3] ss:$0 sm:$0xff] }
  0x51   : > { %3094 = vmatpush3.bf16.msra.mxu0 %v3290_v34  ;;  %3105 = vmatprep.mubr.bf16.mxu0 %v3650_v3  ;;  %v3302_v3 = vld [vmem:[%s4084_s1 + $0x1b8] sm:$0xff]   ;;  %v1785_v12 = vshrl.u32 %v1784_v58, 7 }
  0x52   : > { %3095 = vmatprep.subr.bf16.mxu0 %v3292_v59 }
  0x53   : > { %3000 = vmatpush3.bf16.msra.mxu1 %v3291_v54 }
  0x54   : > { %3001 = vmatprep.subr.bf16.mxu1 %v3293_v24 }
  0x55   : > { %3096 = vmatpush3.bf16.msra.mxu0 %v3292_v59 }
  0x56   : > { %3097 = vmatprep.subr.bf16.mxu0 %v3294_v31 }
  0x57   : > { %3002 = vmatpush3.bf16.msra.mxu1 %v3293_v24 }
  0x58   : > { %3003 = vmatprep.subr.bf16.mxu1 %v3295_v39 }
  0x59   : > { %3098 = vmatpush3.bf16.msra.mxu0 %v3294_v31 }
  0x5a   : > { %3099 = vmatprep.subr.bf16.mxu0 %v3296_v61 }
  0x5b   : > { %3004 = vmatpush3.bf16.msra.mxu1 %v3295_v39 }
  0x5c   : > { %3005 = vmatprep.subr.bf16.mxu1 %v3298_v60 }
  0x5d   : > { %3100 = vmatpush3.bf16.msra.mxu0 %v3296_v61 }
  0x5e   : > { %3101 = vmatprep.subr.bf16.mxu0 %v3299_v11 }
  0x5f   : > { %3006 = vmatpush3.bf16.msra.mxu1 %v3298_v60 }
  0x60   : > { %3007 = vmatprep.subr.bf16.mxu1 %v3301_v62 }
  0x61   : > { %3102 = vmatpush3.bf16.msra.mxu0 %v3299_v11 }
  0x62   : > { %3103 = vmatprep.subr.bf16.mxu0 %v3302_v3 }
  0x63   : > { %3008 = vmatpush3.bf16.msra.mxu1 %v3301_v62 }
  0x64   : > { %3017 = vmatprep.subr.bf16.mxu1 %v3303_v2 }
  0x65   : > { %3104 = vmatpush3.bf16.msra.mxu0 %v3302_v3 }
  0x66   : > { %3010 = vmatmul.mubr.bf16.vlgmr.msra.gmra.mrb[0].mxu1 %v3762_v4  ;;  %3113 = vmatprep.subr.bf16.mxu0 %v3304_v27 }
  0x67   : > { %3018 = vmatpush3.bf16.msra.mxu1 %v3303_v2  ;;  %3013 = vmatprep.mubr.bf16.mxu1 %v3766_v5 }
  0x68   : > { %3019 = vmatprep.subr.bf16.mxu1 %v3305_v6  ;;  %3106 = vmatmul.mubr.bf16.vlgmr.msra.gmra.mrb[0].mxu0 %v3660_v8  ;;  %v2768_v8 = vcombine.low %v3559_v0, %v3644_v63  ;;  %v3314_v63 = vld [vmem:[%s4084_s1 + $0x1e8] sm:$0xff]  }
  0x69   : > { %3114 = vmatpush3.bf16.msra.mxu0 %v3304_v27  ;;  %3109 = vmatprep.mubr.bf16.mxu0 %v3711_v46 }
  0x6a   : > { %3115 = vmatprep.subr.bf16.mxu0 %v3306_v9 }
  0x6b   : > { %3020 = vmatpush3.bf16.msra.mxu1 %v3305_v6 }
  0x6c   : > { %3021 = vmatprep.subr.bf16.mxu1 %v3307_v48 }
  0x6d   : > { %3116 = vmatpush3.bf16.msra.mxu0 %v3306_v9 }
  0x6e   : > { %3014 = vmatmul.mubr.bf16.gmra.mrb[4].mxu1 %v3783_v1  ;;  %3117 = vmatprep.subr.bf16.mxu0 %v3308_v14 }
  0x6f   : > { %3022 = vmatpush3.bf16.msra.mxu1 %v3307_v48  ;;  %3033 = vmatprep.mubr.bf16.mxu1 %v2683_v37  ;;  %v3315_v37 = vld [vmem:[%s4084_s1 + $0xf0] sm:$0xff]  }
  0x70   : > { %3023 = vmatprep.subr.bf16.mxu1 %v3309_v42  ;;  %3110 = vmatmul.mubr.bf16.gmra.mrb[4].mxu0 %v2768_v8 }
  0x71   : > { %3118 = vmatpush3.bf16.msra.mxu0 %v3308_v14  ;;  %3129 = vmatprep.mubr.bf16.mxu0 %v3499_v10  ;;  %v3317_v10 = vld [vmem:[%s4084_s1 + $0x1f0] sm:$0xff]  }
  0x72   : > { %3119 = vmatprep.subr.bf16.mxu0 %v3310_v23 }
  0x73   : > { %3024 = vmatpush3.bf16.msra.mxu1 %v3309_v42 }
  0x74   : > { %3025 = vmatprep.subr.bf16.mxu1 %v3311_v22 }
  0x75   : > { %3120 = vmatpush3.bf16.msra.mxu0 %v3310_v23 }
  0x76   : > { %3121 = vmatprep.subr.bf16.mxu0 %v3312_v30 }
  0x77   : > { %3026 = vmatpush3.bf16.msra.mxu1 %v3311_v22 }
  0x78   : > { %3027 = vmatprep.subr.bf16.mxu1 %v3313_v13 }
  0x79   : > { %3122 = vmatpush3.bf16.msra.mxu0 %v3312_v30 }
  0x7a   : > { %3123 = vmatprep.subr.bf16.mxu0 %v3314_v63 }
  0x7b   : > { %3028 = vmatpush3.bf16.msra.mxu1 %v3313_v13 }
  0x7c   : > { %3029 = vmatprep.subr.bf16.mxu1 %v3315_v37 }
  0x7d   : > { %3124 = vmatpush3.bf16.msra.mxu0 %v3314_v63 }
  0x7e   : > { %3125 = vmatprep.subr.bf16.mxu0 %v3317_v10 }
  0x7f   : > { %3030 = vmatpush3.bf16.msra.mxu1 %v3315_v37 }
  0x80   : > { %3031 = vmatprep.subr.bf16.mxu1 %v3318_v28 }
  0x81   : > { %3126 = vmatpush3.bf16.msra.mxu0 %v3317_v10 }
  0x82   : > { %3127 = vmatprep.subr.bf16.mxu0 %v3319_v36 }
  0x83   : > { %3032 = vmatpush3.bf16.msra.mxu1 %v3318_v28 }
  0x84   : > { %3161 = vmatprep.subr.bf16.mxu1 %v3322_v29 }
  0x85   : > { %3128 = vmatpush3.bf16.msra.mxu0 %v3319_v36 }
  0x86   : > { %3034 = vmatmul.mubr.bf16.vlgmr.msra.gmra.mrb[0].mxu1 %v2684_v7  ;;  %3137 = vmatprep.subr.bf16.mxu0 %v3322_v29  ;;  %v3329_v7 = vld [vmem:[%s4084_s1 + $0x228] sm:$0xff]  }
  0x87   : > { %3169 = vmatpush3.bf16.msra.mxu1 %v3322_v29  ;;  %3037 = vmatprep.mubr.bf16.mxu1 %v2685_v47 }
  0x88   : > { %3162 = vmatprep.subr.bf16.mxu1 %v3323_v40  ;;  %3130 = vmatmul.mubr.bf16.vlgmr.msra.gmra.mrb[0].mxu0 %v3572_v17 }
  0x89   : > { %3138 = vmatpush3.bf16.msra.mxu0 %v3322_v29  ;;  %3133 = vmatprep.mubr.bf16.mxu0 %v3609_v50 }
  0x8a   : > { %3139 = vmatprep.subr.bf16.mxu0 %v3323_v40 }
  0x8b   : > { %3170 = vmatpush3.bf16.msra.mxu1 %v3323_v40 }
  0x8c   : > { %3163 = vmatprep.subr.bf16.mxu1 %v3326_v41 }
  0x8d   : > { %3140 = vmatpush3.bf16.msra.mxu0 %v3323_v40 }
  0x8e   : > { %3038 = vmatmul.mubr.bf16.gmra.mrb[4].mxu1 %v2686_v21  ;;  %3141 = vmatprep.subr.bf16.mxu0 %v3326_v41 }
  0x8f   : > { %3171 = vmatpush3.bf16.msra.mxu1 %v3326_v41  ;;  %3157 = vmatprep.mubr.bf16.mxu1 %v3783_v1 }
  0x90   : > { %3164 = vmatprep.subr.bf16.mxu1 %v3327_v33  ;;  %3134 = vmatmul.mubr.bf16.gmra.mrb[4].mxu0 %v3727_v57 }
  0x91   : > { %3142 = vmatpush3.bf16.msra.mxu0 %v3326_v41  ;;  %3153 = vmatprep.mubr.bf16.mxu0 %v3762_v4 }
  0x92   : > { %3143 = vmatprep.subr.bf16.mxu0 %v3327_v33 }
  0x93   : > { %3172 = vmatpush3.bf16.msra.mxu1 %v3327_v33 }
  0x94   : > { %3165 = vmatprep.subr.bf16.mxu1 %v3328_v52 }
  0x95   : > { %3144 = vmatpush3.bf16.msra.mxu0 %v3327_v33 }
  0x96   : > { %3145 = vmatprep.subr.bf16.mxu0 %v3328_v52 }
  0x97   : > { %3173 = vmatpush3.bf16.msra.mxu1 %v3328_v52 }
  0x98   : > { %3166 = vmatprep.subr.bf16.mxu1 %v3329_v7 }
  0x99   : > { %3146 = vmatpush3.bf16.msra.mxu0 %v3328_v52 }
  0x9a   : > { %3147 = vmatprep.subr.bf16.mxu0 %v3329_v7 }
  0x9b   : > { %3174 = vmatpush3.bf16.msra.mxu1 %v3329_v7 }
  0x9c   : > { %3167 = vmatprep.subr.bf16.mxu1 %v3330_v25 }
  0x9d   : > { %3148 = vmatpush3.bf16.msra.mxu0 %v3329_v7 }
  0x9e   : > { %3149 = vmatprep.subr.bf16.mxu0 %v3330_v25 }
  0x9f   : > { %3175 = vmatpush3.bf16.msra.mxu1 %v3330_v25 }
  0xa0   : > { %3168 = vmatprep.subr.bf16.mxu1 %v3331_v38 }
  0xa1   : > { %3150 = vmatpush3.bf16.msra.mxu0 %v3330_v25 }
  0xa2   : > { %3151 = vmatprep.subr.bf16.mxu0 %v3331_v38 }
  0xa3   : > { %3176 = vmatpush3.bf16.msra.mxu1 %v3331_v38 }
  0xa5   : > { %3152 = vmatpush3.bf16.msra.mxu0 %v3331_v38 }
  0xa6   : > { %3158 = vmatmul.mubr.bf16.vlgmr.msra.gmra.mrb[8].mxu1 %v2819_v35  ;;  %v3340_v35 = vmov 1983009808  }
  0xa7   : > { %v1782_v51 = vunpack.c.l.s4 %v3340_v35 }
  0xa8   : > { %3154 = vmatmul.mubr.bf16.vlgmr.msra.gmra.mrb[0].mxu0 %v3766_v5 }
  0xa9   : > { %v1783_v55 = vunpack.c.0.s8 %v1782_v51 }
  0xab   : > { %v3883_v11 = vsub.s32 %v1783_v55, %v1785_v12 }
 0x159   : > { %v3035_v47 = vpop.f32.mrb[0].mxu1 }
 0x15a   : > { %v939_v53 = vpop.f32.mrb[1].mxu1 }
 0x15b   : > { %v3036_v0 = vpop.f32.mrb[2].mxu1 }
 0x15c   : > { %v3869_v17 = vpop.f32.mrb[3].mxu1 }
 0x161   : > { %v3039_v21 = vpop.f32.mrb[4].mxu1 }
 0x162   : > { %v955_v50 = vpop.f32.mrb[5].mxu1 }
 0x163   : > { %v3040_v32 = vpop.f32.mrb[6].mxu1  ;;  %v3135_v44 = vpop.f32.mrb[4].mxu0 }
 0x164   : > { %v958_v43 = vpop.f32.mrb[7].mxu1  ;;  %v3181_v49 = vadd.f32 %v3135_v44, %v3039_v21  ;;  %v1565_v15 = vpop.f32.mrb[5].mxu0 }
 0x165   : > { %v3183_v19 = vadd.f32 %v1565_v15, %v955_v50  ;;  %v3136_v20 = vpop.f32.mrb[6].mxu0 }
 0x166   : > { %v3185_v46 = vadd.f32 %v3136_v20, %v3040_v32  ;;  %v1568_v16 = vpop.f32.mrb[7].mxu0 }
 0x167   : > { %v3187_v18 = vadd.f32 %v1568_v16, %v958_v43 }
 0x179   : > { %v3159_v54 = vpop.f32.mrb[8].mxu1 }
 0x17a   : > { %v3182_v34 = vadd.f32 %v3181_v49, %v3159_v54  ;;  %v1711_v45 = vpop.f32.mrb[9].mxu1 }
 0x17b   : > { %v3184_v57 = vadd.f32 %v3183_v19, %v1711_v45  ;;  %v3160_v24 = vpop.f32.mrb[10].mxu1  ;;  %v3155_v62 = vpop.f32.mrb[0].mxu0 }
 0x17c   : > { %v1747_v59 = vmul.f32 %v3182_v34, %v3874_v26  ;;  %v3186_v39 = vadd.f32 %v3185_v46, %v3160_v24  ;;  %v1714_v31 = vpop.f32.mrb[11].mxu1  ;;  %v3177_v4 = vadd.f32 %v3155_v62, %v3035_v47  ;;  %v1695_v5 = vpop.f32.mrb[1].mxu0 }
 0x17d   : > { %v1745_v60 = vmul.f32 %v3184_v57, %v3874_v26  ;;  %v3188_v61 = vadd.f32 %v3187_v18, %v1714_v31  ;;  %v3178_v9 = vadd.f32 %v1695_v5, %v939_v53  ;;  %v3156_v1 = vpop.f32.mrb[2].mxu0 }
 0x17e   : > { %v1762_v2 = vadd.f32 %v3879_v56, %v1747_v59  ;;  %v1748_v3 = vmul.f32 %v3186_v39, %v3874_v26  ;;  %v1743_v14 = vmul.f32 %v3177_v4, %v3874_v26  ;;  %v3179_v22 = vadd.f32 %v3156_v1, %v3036_v0  ;;  %v3891_v23 = vpop.f32.mrb[3].mxu0 }
 0x17f   : > { %v1760_v6 = vadd.f32 %v3879_v56, %v1745_v60  ;;  %v1746_v27 = vmul.f32 %v3188_v61, %v3874_v26  ;;  %v1741_v63 = vmul.f32 %v3178_v9, %v3874_v26 }
 0x180   : > { %v1770_v48 = vmax.f32 %v1762_v2, 0.0  ;;  %v1763_v42 = vadd.f32 %v3879_v56, %v1748_v3  ;;  %v1758_v10 = vadd.f32 %v3879_v56, %v1743_v14  ;;  %v3905_v40 = vmul.f32 %v3179_v22, %v3874_v26 }
 0x181   : > { %v1768_v8 = vmax.f32 %v1760_v6, 0.0  ;;  %v3894_v13 = vadd.f32 %v3879_v56, %v1746_v27  ;;  %v1756_v7 = vadd.f32 %v3879_v56, %v1741_v63 }
 0x182   : > { %v1882_v30 = vcombine.high %v1770_v48, %v1770_v48  ;;  %v1889_v37 = vrot.slane %v1770_v48, %v3883_v11  ;;  %v3898_v28 = vmax.f32 %v1763_v42, 0.0  ;;  %v1766_v25 = vmax.f32 %v1758_v10, 0.0 }
 0x183   : > { %v1848_v29 = vcombine.high %v1768_v8, %v1768_v8  ;;  %v3902_v36 = vrot.slane %v1768_v8, %v3883_v11  ;;  %v1764_v32 = vmax.f32 %v1756_v7, 0.0 }
 0x184   : > { %v1896_v41 = vrot.slane %v1882_v30, %v3883_v11  ;;  %v1897_v33 = vcombine.high %v1889_v37, %v1889_v37  ;;  %v2117_v52 = vsel %vm1948_vm6, %v1889_v37, -inf  ;;  %v1814_v43 = vcombine.high %v1766_v25, %v1766_v25 }
 0x185   : > { %v2118_v38 = vrot.slane %v2117_v52, 4  ;;  %v3911_v47 = vrot.slane %v1848_v29, %v3883_v11  ;;  %v1863_v53 = vcombine.high %v3902_v36, %v3902_v36  ;;  %v1821_v44 = vrot.slane %v1766_v25, %v3883_v11 }
 0x186   : > { %v1898_v0 = vcombine.high %v1896_v41, %v1896_v41  ;;  %v2124_v21 = vsel %vm1948_vm6, %v1897_v33, -inf  ;;  %v2131_v50 = vsel %vm1948_vm6, %v1896_v41, -inf  ;;  %v1780_v46 = vcombine.high %v1764_v32, %v1764_v32 }
 0x187   : > { %v2119_v49 = vmax.f32 %v2117_v52, %v2118_v38  ;;  %v2125_v15 = vrot.slane %v2124_v21, 4  ;;  %v2132_v19 = vrot.slane %v2131_v50, 4  ;;  %v1787_v16 = vrot.slane %v1764_v32, %v3883_v11 }
 0x188   : > { %v2138_v20 = vsel %vm1948_vm6, %v1898_v0, -inf  ;;  %v1828_v18 = vrot.slane %v1814_v43, %v3883_v11  ;;  %v1829_v35 = vcombine.high %v1821_v44, %v1821_v44  ;;  %v2005_v51 = vsel %vm1948_vm6, %v1821_v44, -inf }
 0x189   : > { %v2120_v58 = vrot.slane %v2119_v49, 2  ;;  %v2006_v54 = vrot.slane %v2005_v51, 4  ;;  %v2126_v55 = vmax.f32 %v2124_v21, %v2125_v15  ;;  %v2133_v12 = vmax.f32 %v2131_v50, %v2132_v19 }
 0x18a   : > { %v2139_v34 = vrot.slane %v2138_v20, 4  ;;  %v1830_v45 = vcombine.high %v1828_v18, %v1828_v18  ;;  %v2012_v57 = vsel %vm1948_vm6, %v1829_v35, -inf  ;;  %v2019_v24 = vsel %vm1948_vm6, %v1828_v18, -inf }
 0x18b   : > { %v2121_v59 = vmax.f32 %v2119_v49, %v2120_v58  ;;  %v2007_v39 = vmax.f32 %v2005_v51, %v2006_v54  ;;  %v2013_v31 = vrot.slane %v2012_v57, 4  ;;  %v2020_v60 = vrot.slane %v2019_v24, 4 }
 0x18c   : > { %v2127_v61 = vrot.slane %v2126_v55, 2  ;;  %v2026_v62 = vsel %vm1948_vm6, %v1830_v45, -inf  ;;  %v2134_v3 = vrot.slane %v2133_v12, 2  ;;  %v2140_v4 = vmax.f32 %v2138_v20, %v2139_v34 }
 0x18d   : > { %v2122_v2 = vrot.slane %v2121_v59, 1  ;;  %v2008_v5 = vrot.slane %v2007_v39, 2  ;;  %v2014_v6 = vmax.f32 %v2012_v57, %v2013_v31  ;;  %v2021_v27 = vmax.f32 %v2019_v24, %v2020_v60 }
 0x18e   : > { %v2027_v48 = vrot.slane %v2026_v62, 4  ;;  %v2128_v1 = vmax.f32 %v2126_v55, %v2127_v61  ;;  %v2135_v42 = vmax.f32 %v2133_v12, %v2134_v3  ;;  %v2141_v14 = vrot.slane %v2140_v4, 2 }
 0x18f   : > { %v3925_v9 = vmax.f32 %v2121_v59, %v2122_v2  ;;  %v2009_v8 = vmax.f32 %v2007_v39, %v2008_v5  ;;  %v2015_v22 = vrot.slane %v2014_v6, 2  ;;  %v2022_v30 = vrot.slane %v2021_v27, 2 }
 0x190   : > { %v2028_v37 = vmax.f32 %v2026_v62, %v2027_v48  ;;  %v2129_v63 = vrot.slane %v2128_v1, 1  ;;  %v2136_v10 = vrot.slane %v2135_v42, 1  ;;  %v2142_v29 = vmax.f32 %v2140_v4, %v2141_v14 }
 0x191   : > { %v1794_v41 = vrot.slane %v1780_v46, %v3883_v11  ;;  %v2010_v33 = vrot.slane %v2009_v8, 1  ;;  %v2016_v52 = vmax.f32 %v2014_v6, %v2015_v22  ;;  %v2023_v7 = vmax.f32 %v2021_v27, %v2022_v30 }
 0x192   : > { %v2029_v25 = vrot.slane %v2028_v37, 2  ;;  %v3928_v38 = vmax.f32 %v2128_v1, %v2129_v63  ;;  %v3930_v0 = vmax.f32 %v2135_v42, %v2136_v10  ;;  %v2143_v21 = vrot.slane %v2142_v29, 1 }
 0x193   : > { %v1795_v50 = vcombine.high %v1787_v16, %v1787_v16  ;;  %v3932_v32 = vmax.f32 %v2009_v8, %v2010_v33  ;;  %v2017_v43 = vrot.slane %v2016_v52, 1  ;;  %v2024_v44 = vrot.slane %v2023_v7, 1 }
 0x194   : > { %v2030_v49 = vmax.f32 %v2028_v37, %v2029_v25  ;;  %v3934_v15 = vmax.f32 %v2142_v29, %v2143_v21  ;;  %v1796_v19 = vcombine.high %v1794_v41, %v1794_v41  ;;  %v1949_v20 = vsel %vm1948_vm6, %v1787_v16, -inf }
 0x195   : > { %v1956_v46 = vsel %vm1948_vm6, %v1795_v50, -inf  ;;  %v3938_v18 = vmax.f32 %v2016_v52, %v2017_v43  ;;  %v3940_v35 = vmax.f32 %v2023_v7, %v2024_v44  ;;  %v1950_v58 = vrot.slane %v1949_v20, 4 }
 0x196   : > { %v2031_v51 = vrot.slane %v2030_v49, 1  ;;  %v1957_v54 = vrot.slane %v1956_v46, 4  ;;  %v1963_v55 = vsel %vm1948_vm6, %v1794_v41, -inf  ;;  %v1970_v12 = vsel %vm1948_vm6, %v1796_v19, -inf }
 0x197   : > { %v1864_v34 = vcombine.high %v3911_v47, %v3911_v47  ;;  %v1951_v57 = vmax.f32 %v1949_v20, %v1950_v58  ;;  %v1964_v16 = vrot.slane %v1963_v55, 4  ;;  %v1971_v24 = vrot.slane %v1970_v12, 4 }
 0x198   : > { %v3946_v45 = vmax.f32 %v2030_v49, %v2031_v51  ;;  %v1958_v59 = vmax.f32 %v1956_v46, %v1957_v54  ;;  %v2061_v39 = vsel %vm1948_vm6, %v3902_v36, -inf  ;;  %v2068_v31 = vsel %vm1948_vm6, %v1863_v53, -inf }
 0x199   : > { %v2075_v60 = vsel %vm1948_vm6, %v3911_v47, -inf  ;;  %v1952_v61 = vrot.slane %v1951_v57, 2  ;;  %v1965_v62 = vmax.f32 %v1963_v55, %v1964_v16  ;;  %v1972_v2 = vmax.f32 %v1970_v12, %v1971_v24 }
 0x19a   : > { %v2062_v3 = vrot.slane %v2061_v39, 4  ;;  %v1959_v4 = vrot.slane %v1958_v59, 2  ;;  %v2069_v5 = vrot.slane %v2068_v31, 4  ;;  %v2076_v6 = vrot.slane %v2075_v60, 4 }
 0x19b   : > { %v2082_v27 = vsel %vm1948_vm6, %v1864_v34, -inf  ;;  %v1953_v48 = vmax.f32 %v1951_v57, %v1952_v61  ;;  %v1966_v1 = vrot.slane %v1965_v62, 2  ;;  %v1973_v42 = vrot.slane %v1972_v2, 2 }
 0x19c   : > { %v2063_v14 = vmax.f32 %v2061_v39, %v2062_v3  ;;  %v1960_v8 = vmax.f32 %v1958_v59, %v1959_v4  ;;  %v2070_v36 = vmax.f32 %v2068_v31, %v2069_v5  ;;  %v2077_v22 = vmax.f32 %v2075_v60, %v2076_v6 }
 0x19d   : > { %v2083_v53 = vrot.slane %v2082_v27, 4  ;;  %v1954_v30 = vrot.slane %v1953_v48, 1  ;;  %v1967_v37 = vmax.f32 %v1965_v62, %v1966_v1  ;;  %v1974_v47 = vmax.f32 %v1972_v2, %v1973_v42 }
 0x19e   : > { %v2064_v63 = vrot.slane %v2063_v14, 2  ;;  %v1961_v10 = vrot.slane %v1960_v8, 1  ;;  %v2071_v29 = vrot.slane %v2070_v36, 2  ;;  %v2078_v41 = vrot.slane %v2077_v22, 2 }
 0x19f   : > { %v2084_v33 = vmax.f32 %v2082_v27, %v2083_v53  ;;  %v3957_v52 = vmax.f32 %v1953_v48, %v1954_v30  ;;  %v1968_v7 = vrot.slane %v1967_v37, 1  ;;  %v1975_v25 = vrot.slane %v1974_v47, 1 }
 0x1a0   : > { %v2065_v21 = vmax.f32 %v2063_v14, %v2064_v63  ;;  %v3959_v50 = vmax.f32 %v1960_v8, %v1961_v10  ;;  %v2072_v43 = vmax.f32 %v2070_v36, %v2071_v29  ;;  %v2079_v44 = vmax.f32 %v2077_v22, %v2078_v41 }
 0x1a1   : > { %v2085_v49 = vrot.slane %v2084_v33, 2  ;;  %v3961_v19 = vmax.f32 %v1967_v37, %v1968_v7  ;;  %v3963_v20 = vmax.f32 %v1974_v47, %v1975_v25  ;;  %v1759_v51 = vadd.f32 %v3879_v56, %v3905_v40 }
 0x1a2   : > { %v2066_v46 = vrot.slane %v2065_v21, 1  ;;  %v2073_v58 = vrot.slane %v2072_v43, 1  ;;  %v2080_v54 = vrot.slane %v2079_v44, 1  ;;  %v1899_v12 = vcombine.high %v3898_v28, %v3898_v28 }
 0x1a3   : > { %v2086_v55 = vmax.f32 %v2084_v33, %v2085_v49  ;;  %v1767_v57 = vmax.f32 %v1759_v51, 0.0  ;;  %v1906_v16 = vrot.slane %v3898_v28, %v3883_v11  ;;  %v3975_v24 = vadd.f32 %v3891_v23, %v3869_v17 }
 0x1a4   : > { %v3969_v34 = vmax.f32 %v2065_v21, %v2066_v46  ;;  %v3977_v59 = vmax.f32 %v2072_v43, %v2073_v58  ;;  %v3979_v39 = vmax.f32 %v2079_v44, %v2080_v54  ;;  %v1913_v31 = vrot.slane %v1899_v12, %v3883_v11 }
 0x1a5   : > { %v2087_v40 = vrot.slane %v2086_v55, 1  ;;  %v1831_v60 = vcombine.high %v1767_v57, %v1767_v57  ;;  %v1838_v61 = vrot.slane %v1767_v57, %v3883_v11  ;;  %v1914_v62 = vcombine.high %v1906_v16, %v1906_v16 }
 0x1a6   : > { %v2145_v2 = vsel %vm1948_vm6, %v1906_v16, -inf  ;;  %v1915_v28 = vcombine.high %v1913_v31, %v1913_v31  ;;  %v2159_v17 = vsel %vm1948_vm6, %v1913_v31, -inf }
 0x1a7   : > { %v3984_v3 = vmax.f32 %v2086_v55, %v2087_v40  ;;  %v2146_v4 = vrot.slane %v2145_v2, 4  ;;  %v1845_v23 = vrot.slane %v1831_v60, %v3883_v11  ;;  %v1846_v5 = vcombine.high %v1838_v61, %v1838_v61 }
 0x1a8   : > { %v2033_v6 = vsel %vm1948_vm6, %v1838_v61, -inf  ;;  %v2152_v27 = vsel %vm1948_vm6, %v1914_v62, -inf  ;;  %v2160_v14 = vrot.slane %v2159_v17, 4  ;;  %v2166_v53 = vsel %vm1948_vm6, %v1915_v28, -inf }
 0x1a9   : > { %v2034_v48 = vrot.slane %v2033_v6, 4  ;;  %v2147_v1 = vmax.f32 %v2145_v2, %v2146_v4  ;;  %v2153_v42 = vrot.slane %v2152_v27, 4  ;;  %v1847_v8 = vcombine.high %v1845_v23, %v1845_v23 }
 0x1aa   : > { %v2040_v36 = vsel %vm1948_vm6, %v1846_v5, -inf  ;;  %v2047_v22 = vsel %vm1948_vm6, %v1845_v23, -inf  ;;  %v2161_v41 = vmax.f32 %v2159_v17, %v2160_v14  ;;  %v2167_v33 = vrot.slane %v2166_v53, 4 }
 0x1ab   : > { %v2035_v30 = vmax.f32 %v2033_v6, %v2034_v48  ;;  %v2041_v37 = vrot.slane %v2040_v36, 4  ;;  %v2048_v47 = vrot.slane %v2047_v22, 4  ;;  %v2148_v63 = vrot.slane %v2147_v1, 2 }
 0x1ac   : > { %v2054_v10 = vsel %vm1948_vm6, %v1847_v8, -inf  ;;  %v2154_v29 = vmax.f32 %v2152_v27, %v2153_v42  ;;  %v2162_v46 = vrot.slane %v2161_v41, 2  ;;  %v2168_v51 = vmax.f32 %v2166_v53, %v2167_v33 }
 0x1ad   : > { %v2036_v7 = vrot.slane %v2035_v30, 2  ;;  %v2042_v25 = vmax.f32 %v2040_v36, %v2041_v37  ;;  %v2049_v21 = vmax.f32 %v2047_v22, %v2048_v47  ;;  %v2055_v43 = vrot.slane %v2054_v10, 4 }
 0x1ae   : > { %v2149_v44 = vmax.f32 %v2147_v1, %v2148_v63  ;;  %v2155_v49 = vrot.slane %v2154_v29, 2  ;;  %v2163_v40 = vmax.f32 %v2161_v41, %v2162_v46  ;;  %v2169_v31 = vrot.slane %v2168_v51, 2 }
 0x1af   : > { %v2037_v58 = vmax.f32 %v2035_v30, %v2036_v7  ;;  %v2043_v54 = vrot.slane %v2042_v25, 2  ;;  %v2050_v55 = vrot.slane %v2049_v21, 2  ;;  %v2056_v12 = vmax.f32 %v2054_v10, %v2055_v43 }
 0x1b0   : > { %v2150_v57 = vrot.slane %v2149_v44, 1  ;;  %v2156_v16 = vmax.f32 %v2154_v29, %v2155_v49  ;;  %v2164_v17 = vrot.slane %v2163_v40, 1  ;;  %v2170_v23 = vmax.f32 %v2168_v51, %v2169_v31 }
 0x1b1   : > { %v2038_v60 = vrot.slane %v2037_v58, 1  ;;  %v2044_v61 = vmax.f32 %v2042_v25, %v2043_v54  ;;  %v2051_v62 = vmax.f32 %v2049_v21, %v2050_v55  ;;  %v2057_v2 = vrot.slane %v2056_v12, 2 }
 0x1b2   : > { %v2151_v28 = vmax.f32 %v2149_v44, %v2150_v57  ;;  %v2157_v4 = vrot.slane %v2156_v16, 1  ;;  %v2165_v42 = vmax.f32 %v2163_v40, %v2164_v17  ;;  %v2171_v14 = vrot.slane %v2170_v23, 1 }
 0x1b3   : > { %v2039_v5 = vmax.f32 %v2037_v58, %v2038_v60  ;;  %v2045_v6 = vrot.slane %v2044_v61, 1  ;;  %v2052_v27 = vrot.slane %v2051_v62, 1  ;;  %v2058_v48 = vmax.f32 %v2056_v12, %v2057_v2 }
 0x1b4   : > { %v2158_v1 = vmax.f32 %v2156_v16, %v2157_v4  ;;  %v2185_v8 = vmax.f32 %v3925_v9, %v2151_v28  ;;  %v2172_v37 = vmax.f32 %v2170_v23, %v2171_v14  ;;  %v2187_v63 = vmax.f32 %v3930_v0, %v2165_v42 }
 0x1b5   : > { %v2046_v36 = vmax.f32 %v2044_v61, %v2045_v6  ;;  %v2053_v22 = vmax.f32 %v2051_v62, %v2052_v27  ;;  %v2059_v53 = vrot.slane %v2058_v48, 1  ;;  %v2177_v30 = vmax.f32 %v3932_v32, %v2039_v5 }
 0x1b6   : > { %v2186_v47 = vmax.f32 %v3928_v38, %v2158_v1  ;;  %v2201_v10 = vpack.c.bf16 %v2185_v8, %v2185_v8  ;;  %v2188_v9 = vmax.f32 %v3934_v15, %v2172_v37  ;;  %v2203_v21 = vpack.c.bf16 %v2187_v63, %v2187_v63 }
 0x1b7   : > { %v2060_v29 = vmax.f32 %v2058_v48, %v2059_v53  ;;  %v2178_v41 = vmax.f32 %v3938_v18, %v2046_v36  ;;  %v2179_v33 = vmax.f32 %v3940_v35, %v2053_v22  ;;  %v2193_v7 = vpack.c.bf16 %v2177_v30, %v2177_v30 }
 0x1b8   : > { %v2202_v25 = vpack.c.bf16 %v2186_v47, %v2186_v47  ;;  %v2311_v32 = vrot.slane %v2201_v10, %v3883_v11  ;;  %v2204_v49 = vpack.c.bf16 %v2188_v9, %v2188_v9  ;;  %v2325_v35 = vrot.slane %v2203_v21, %v3883_v11 }
 0x1b9   : > { %v2180_v43 = vmax.f32 %v3946_v45, %v2060_v29  ;;  %v2194_v38 = vpack.c.bf16 %v2178_v41, %v2178_v41  ;;  %v2195_v44 = vpack.c.bf16 %v2179_v33, %v2179_v33  ;;  %v2255_v0 = vrot.slane %v2193_v7, %v3883_v11 }
 0x1ba   : > { %v2318_v18 = vrot.slane %v2202_v25, %v3883_v11  ;;  %v2423_v46 = vrot.slane %v2311_v32, %v3883_v11  ;;  %v2332_v45 = vrot.slane %v2204_v49, %v3883_v11  ;;  %v2437_v12 = vrot.slane %v2325_v35, %v3883_v11 }
 0x1bb   : > { %v2196_v51 = vpack.c.bf16 %v2180_v43, %v2180_v43  ;;  %v2262_v15 = vrot.slane %v2194_v38, %v3883_v11  ;;  %v2269_v58 = vrot.slane %v2195_v44, %v3883_v11  ;;  %v2367_v54 = vrot.slane %v2255_v0, %v3883_v11 }
 0x1bc   : > { %v2430_v55 = vrot.slane %v2318_v18, %v3883_v11  ;;  %v2457_v57 = vunpack.c.l.b16 %v2423_v46  ;;  %v2444_v61 = vrot.slane %v2332_v45, %v3883_v11  ;;  %v2459_v2 = vunpack.c.l.b16 %v2437_v12 }
 0x1bd   : > { %v2276_v16 = vrot.slane %v2196_v51, %v3883_v11  ;;  %v2374_v40 = vrot.slane %v2262_v15, %v3883_v11  ;;  %v2381_v31 = vrot.slane %v2269_v58, %v3883_v11  ;;  %v2449_v60 = vunpack.c.l.b16 %v2367_v54 }
 0x1be   : > { %v2458_v62 = vunpack.c.l.b16 %v2430_v55  ;;  %v1742_v28 = vmul.f32 %v3975_v24, %v3874_v26  ;;  %v1769_v5 = vmax.f32 %v3894_v13, 0.0  ;;  %v2460_v6 = vunpack.c.l.b16 %v2444_v61 }
 0x1bf   : > { %v2388_v4 = vrot.slane %v2276_v16, %v3883_v11  ;;  %v2450_v17 = vunpack.c.l.b16 %v2374_v40  ;;  %v2451_v23 = vunpack.c.l.b16 %v2381_v31  ;;  %v2484_v48 = vrot.slane %v2459_v2, 6 }
 0x1c0   : > { %v2482_v27 = vrot.slane %v2458_v62, 7  ;;  %v1757_v1 = vadd.f32 %v3879_v56, %v1742_v28  ;;  %v1865_v36 = vcombine.high %v1769_v5, %v1769_v5  ;;  %v2486_v53 = vrot.slane %v2460_v6, 5 }
 0x1c1   : > { %v2452_v42 = vunpack.c.l.b16 %v2388_v4  ;;  %v2470_v14 = vrot.slane %v2450_v17, 7  ;;  %v2472_v8 = vrot.slane %v2451_v23, 6  ;;  %v1872_v24 = vrot.slane %v1769_v5, %v3883_v11 }
 0x1c2   : > { %v2483_v22 = vsel %vm2462_vm7, %v2482_v27, %v2457_v57  ;;  %v1765_v26 = vmax.f32 %v1757_v1, 0.0  ;;  %v1879_v47 = vrot.slane %v1865_v36, %v3883_v11 }
 0x1c3   : > { %v2471_v30 = vsel %vm2462_vm7, %v2470_v14, %v2449_v60  ;;  %v2474_v37 = vrot.slane %v2452_v42, 5  ;;  %v2485_v13 = vsel %vm2465_vm8, %v2484_v48, %v2483_v22  ;;  %v1880_v7 = vcombine.high %v1872_v24, %v1872_v24 }
 0x1c4   : > { %v2473_v56 = vsel %vm2465_vm8, %v2472_v8, %v2471_v30  ;;  %v2487_v63 = vsel %vm2468_vm9, %v2486_v53, %v2485_v13  ;;  %v1797_v10 = vcombine.high %v1765_v26, %v1765_v26  ;;  %v1804_v29 = vrot.slane %v1765_v26, %v3883_v11 }
 0x1c5   : > { %v2475_v41 = vsel %vm2468_vm9, %v2474_v37, %v2473_v56  ;;  %v2491_v33 = vpack.c.b16 %v2487_v63, %v2487_v63  ;;  %v1881_v9 = vcombine.high %v1879_v47, %v1879_v47  ;;  %v2089_v44 = vsel %vm1948_vm6, %v1872_v24, -inf }
 0x1c6   : > { %v2489_v25 = vpack.c.b16 %v2475_v41, %v2475_v41  ;;  %v1811_v21 = vrot.slane %v1797_v10, %v3883_v11  ;;  %v1812_v32 = vcombine.high %v1804_v29, %v1804_v29  ;;  %v1977_v43 = vsel %vm1948_vm6, %v1804_v29, -inf }
 0x1c7   : > { %2833 = vst.sshfl [vmem:[%s4031_s16 + $0x6] sm:$0x3 pattern:$0x76325410] %v2491_v33  ;;  %v1978_v38 = vrot.slane %v1977_v43, 4  ;;  %v2096_v0 = vsel %vm1948_vm6, %v1880_v7, -inf }
 0x1c8   : > { %v2103_v49 = vsel %vm1948_vm6, %v1879_v47, -inf  ;;  %2831 = vst.sshfl [vmem:[%s4031_s16 + $0x2] sm:$0x3 pattern:$0x76325410] %v2489_v25  ;;  %v1813_v18 = vcombine.high %v1811_v21, %v1811_v21  ;;  %v1984_v35 = vsel %vm1948_vm6, %v1812_v32, -inf }
 0x1c9   : > { %v1991_v46 = vsel %vm1948_vm6, %v1811_v21, -inf  ;;  %v2090_v51 = vrot.slane %v2089_v44, 4  ;;  %v1979_v15 = vmax.f32 %v1977_v43, %v1978_v38  ;;  %v1985_v58 = vrot.slane %v1984_v35, 4 }
 0x1ca   : > { %v1992_v54 = vrot.slane %v1991_v46, 4  ;;  %v2097_v45 = vrot.slane %v2096_v0, 4  ;;  %v1998_v55 = vsel %vm1948_vm6, %v1813_v18, -inf  ;;  %v2104_v57 = vrot.slane %v2103_v49, 4 }
 0x1cb   : > { %v2091_v12 = vmax.f32 %v2089_v44, %v2090_v51  ;;  %v2110_v16 = vsel %vm1948_vm6, %v1881_v9, -inf  ;;  %v1980_v40 = vrot.slane %v1979_v15, 2  ;;  %v1986_v31 = vmax.f32 %v1984_v35, %v1985_v58 }
 0x1cc   : > { %v1993_v60 = vmax.f32 %v1991_v46, %v1992_v54  ;;  %v1999_v61 = vrot.slane %v1998_v55, 4  ;;  %v2098_v2 = vmax.f32 %v2096_v0, %v2097_v45  ;;  %v2105_v28 = vmax.f32 %v2103_v49, %v2104_v57 }
 0x1cd   : > { %v2092_v62 = vrot.slane %v2091_v12, 2  ;;  %v2111_v4 = vrot.slane %v2110_v16, 4  ;;  %v1981_v17 = vmax.f32 %v1979_v15, %v1980_v40  ;;  %v1987_v23 = vrot.slane %v1986_v31, 2 }
 0x1ce   : > { %v1994_v5 = vrot.slane %v1993_v60, 2  ;;  %v2000_v6 = vmax.f32 %v1998_v55, %v1999_v61  ;;  %v2099_v48 = vrot.slane %v2098_v2, 2  ;;  %v2106_v1 = vrot.slane %v2105_v28, 2 }
 0x1cf   : > { %v2093_v27 = vmax.f32 %v2091_v12, %v2092_v62  ;;  %v2112_v42 = vmax.f32 %v2110_v16, %v2111_v4  ;;  %v1982_v14 = vrot.slane %v1981_v17, 1  ;;  %v1988_v8 = vmax.f32 %v1986_v31, %v1987_v23 }
 0x1d0   : > { %v1995_v36 = vmax.f32 %v1993_v60, %v1994_v5  ;;  %v2001_v22 = vrot.slane %v2000_v6, 2  ;;  %v2100_v26 = vmax.f32 %v2098_v2, %v2099_v48  ;;  %v2107_v24 = vmax.f32 %v2105_v28, %v2106_v1 }
 0x1d1   : > { %v2094_v53 = vrot.slane %v2093_v27, 1  ;;  %v2113_v30 = vrot.slane %v2112_v42, 2  ;;  %v1983_v37 = vmax.f32 %v1981_v17, %v1982_v14  ;;  %v1989_v13 = vrot.slane %v1988_v8, 1 }
 0x1d2   : > { %v1996_v47 = vrot.slane %v1995_v36, 1  ;;  %v2002_v56 = vmax.f32 %v2000_v6, %v2001_v22  ;;  %v2101_v10 = vrot.slane %v2100_v26, 1  ;;  %v2108_v29 = vrot.slane %v2107_v24, 1 }
 0x1d3   : > { %v2095_v63 = vmax.f32 %v2093_v27, %v2094_v53  ;;  %v2114_v41 = vmax.f32 %v2112_v42, %v2113_v30  ;;  %v1990_v33 = vmax.f32 %v1988_v8, %v1989_v13  ;;  %v2173_v25 = vmax.f32 %v3957_v52, %v1983_v37 }
 0x1d4   : > { %v1997_v7 = vmax.f32 %v1995_v36, %v1996_v47  ;;  %v2003_v9 = vrot.slane %v2002_v56, 1  ;;  %v2102_v21 = vmax.f32 %v2100_v26, %v2101_v10  ;;  %v2109_v32 = vmax.f32 %v2107_v24, %v2108_v29 }
 0x1d5   : > { %v2115_v43 = vrot.slane %v2114_v41, 1  ;;  %v2181_v38 = vmax.f32 %v3969_v34, %v2095_v63  ;;  %v2174_v0 = vmax.f32 %v3959_v50, %v1990_v33  ;;  %v2189_v18 = vpack.c.bf16 %v2173_v25, %v2173_v25 }
 0x1d6   : > { %v2004_v44 = vmax.f32 %v2002_v56, %v2003_v9  ;;  %v2175_v49 = vmax.f32 %v3961_v19, %v1997_v7  ;;  %v2182_v46 = vmax.f32 %v3977_v59, %v2102_v21  ;;  %v2183_v51 = vmax.f32 %v3979_v39, %v2109_v32 }
 0x1d7   : > { %v2116_v35 = vmax.f32 %v2114_v41, %v2115_v43  ;;  %v2197_v15 = vpack.c.bf16 %v2181_v38, %v2181_v38  ;;  %v2190_v52 = vpack.c.bf16 %v2174_v0, %v2174_v0  ;;  %v2227_v45 = vrot.slane %v2189_v18, %v3883_v11 }
 0x1d8   : > { %v2176_v58 = vmax.f32 %v3963_v20, %v2004_v44  ;;  %v2191_v54 = vpack.c.bf16 %v2175_v49, %v2175_v49  ;;  %v2198_v55 = vpack.c.bf16 %v2182_v46, %v2182_v46  ;;  %v2199_v12 = vpack.c.bf16 %v2183_v51, %v2183_v51 }
 0x1d9   : > { %v2184_v34 = vmax.f32 %v3984_v3, %v2116_v35  ;;  %v2283_v50 = vrot.slane %v2197_v15, %v3883_v11  ;;  %v2234_v57 = vrot.slane %v2190_v52, %v3883_v11  ;;  %v2339_v31 = vrot.slane %v2227_v45, %v3883_v11 }
 0x1da   : > { %v2192_v19 = vpack.c.bf16 %v2176_v58, %v2176_v58  ;;  %v2241_v59 = vrot.slane %v2191_v54, %v3883_v11  ;;  %v2290_v39 = vrot.slane %v2198_v55, %v3883_v11  ;;  %v2297_v20 = vrot.slane %v2199_v12, %v3883_v11 }
 0x1db   : > { %v2200_v16 = vpack.c.bf16 %v2184_v34, %v2184_v34  ;;  %v2346_v3 = vrot.slane %v2234_v57, %v3883_v11  ;;  %v2395_v62 = vrot.slane %v2283_v50, %v3883_v11  ;;  %v2445_v48 = vunpack.c.l.b16 %v2339_v31 }
 0x1dc   : > { %v2248_v40 = vrot.slane %v2192_v19, %v3883_v11  ;;  %v2353_v60 = vrot.slane %v2241_v59, %v3883_v11  ;;  %v2402_v2 = vrot.slane %v2290_v39, %v3883_v11  ;;  %v2409_v28 = vrot.slane %v2297_v20, %v3883_v11 }
 0x1dd   : > { %v2304_v61 = vrot.slane %v2200_v16, %v3883_v11  ;;  %v2446_v17 = vunpack.c.l.b16 %v2346_v3  ;;  %v2453_v8 = vunpack.c.l.b16 %v2395_v62 }
 0x1de   : > { %v2360_v4 = vrot.slane %v2248_v40, %v3883_v11  ;;  %v2447_v23 = vunpack.c.l.b16 %v2353_v60  ;;  %v2454_v6 = vunpack.c.l.b16 %v2402_v2  ;;  %v2455_v27 = vunpack.c.l.b16 %v2409_v28 }
 0x1df   : > { %v2416_v5 = vrot.slane %v2304_v61, %v3883_v11  ;;  %v2461_v42 = vrot.slane %v2446_v17, 7 }
 0x1e0   : > { %v2448_v1 = vunpack.c.l.b16 %v2360_v4  ;;  %v2464_v14 = vrot.slane %v2447_v23, 6  ;;  %v2476_v22 = vrot.slane %v2454_v6, 7  ;;  %v2478_v53 = vrot.slane %v2455_v27, 6 }
 0x1e1   : > { %v2456_v36 = vunpack.c.l.b16 %v2416_v5  ;;  %v2463_v26 = vsel %vm2462_vm7, %v2461_v42, %v2445_v48 }
 0x1e2   : > { %v2467_v24 = vrot.slane %v2448_v1, 5  ;;  %v2466_v30 = vsel %vm2465_vm8, %v2464_v14, %v2463_v26  ;;  %v2477_v37 = vsel %vm2462_vm7, %v2476_v22, %v2453_v8 }
 0x1e3   : > { %v2480_v11 = vrot.slane %v2456_v36, 5  ;;  %v2479_v47 = vsel %vm2465_vm8, %v2478_v53, %v2477_v37 }
 0x1e4   : > { %v2469_v13 = vsel %vm2468_vm9, %v2467_v24, %v2466_v30 }
 0x1e5   : > { %v2488_v56 = vpack.c.b16 %v2469_v13, %v2469_v13  ;;  %v2481_v63 = vsel %vm2468_vm9, %v2480_v11, %v2479_v47 }
 0x1e6   : > { %v2490_v10 = vpack.c.b16 %v2481_v63, %v2481_v63 }
 0x1e7   : > { %2830 = vst.sshfl [vmem:[%s4031_s16] sm:$0x3 pattern:$0x76325410] %v2488_v56 }
 0x1e8   : > { %2832 = vst.sshfl [vmem:[%s4031_s16 + $0x4] sm:$0x3 pattern:$0x76325410] %v2490_v10 }
 0x1e9 PF: > { %s14_s15 = sadd.s32 1, %s3338_s15  }
 0x1ea   : > { %p11_p4 = scmp.ge.s32.totalorder %s14_s15, 4  }
 0x1ec   :  { %13 = sbr.rel (!%p11_p4) target bundleno = 1 (0x1), region = 74 }

// kernel: simplenet2d_forward.6
= control target key start
LH: loop header
LB: loop body
LE: loop exit
PB: predicated region body
PF: predicated region fallthrough
CT: control target
= control target key end

     0   :  { %s5123_s15 = smov 0   ;;  %s6480_s0 = inlined_call_operand.vmem [shape: bf16[2,6,6,128], index: 0, kind: input, shape index: {}]   ;;  %s6481_s1 = inlined_call_operand.vmem [shape: bf16[9,128,512], index: 1, kind: input, shape index: {}]   ;;  %s6482_s2 = inlined_call_operand.vmem [shape: f32[1,512], index: 2, kind: input, shape index: {}]   ;;  %s6483_s3 = inlined_call_operand.vmem [shape: f32[1,512], index: 3, kind: input, shape index: {}]   ;;  %s6484_s4 = inlined_call_operand.vmem [shape: bf16[2,2,2,512], index: 4, kind: output, shape index: {}]  }
   0x1 LB: > { %s3994_s16 = sadd.s32 4294967295, %s5092_s15   ;;  %p3998_p0 = scmp.ge.s32.totalorder %s5092_s15, 1  ;;  %s5092_s15 = sphi %s5123_s15, %s14_s15  }
   0x2   : > { %p162_p1 = scmp.lt.s32.totalorder %s5092_s15, 3 }
   0x4   : > { %p163_p2 = pnand %p3998_p0, %p162_p1 }
   0x5   : > { %v4648_v0 = vld [vmem:[%s6481_s1 + $0x104] ss:$16 sps:$4 sm:$0xff] (!%p163_p2)   ;;  %v4650_v1 = vld [vmem:[%s6481_s1 + $0x10c] ss:$16 sps:$4 sm:$0xff] (!%p163_p2)   ;;  %v5094_v2 = vmov (!%p163_p2), 0   ;;  %p187_p3 = scmp.lt.s32.totalorder (!%p163_p2), %s3994_s16, 1  ;;  %v242_v21 = vlaneseq (!%p163_p2) }
   0x6   : > { %166 = sbr.rel (%p163_p2) target bundleno = 639 (0x27f), region = 36  ;;  %577 = vmatprep.mubr.bf16.mxu0 (!%p163_p2), %v5094_v2  ;;  %620 = vmatprep.mubr.bf16.mxu1 (!%p163_p2), %v5094_v2  ;;  %v4652_v3 = vld [vmem:[%s6481_s1 + $0x100] ss:$16 sps:$4 sm:$0xff] (!%p163_p2)   ;;  %v4653_v4 = vld [vmem:[%s6481_s1 + $0x108] ss:$16 sps:$4 sm:$0xff] (!%p163_p2)   ;;  %vm895_vm3 = vcmask (!%p163_p2), 1040384  }
   0x7   : > { %545 = vmatprep.subr.bf16.mxu0 (!%p163_p2), %v4648_v0  ;;  %588 = vmatprep.subr.bf16.mxu1 (!%p163_p2), %v4650_v1  ;;  %v4654_v5 = vld [vmem:[%s6481_s1 + $0x124] ss:$16 sps:$4 sm:$0xff] (!%p163_p2)   ;;  %v4656_v6 = vld [vmem:[%s6481_s1 + $0x12c] ss:$16 sps:$4 sm:$0xff] (!%p163_p2)   ;;  %v4658_v7 = vld [vmem:[%s6481_s1 + $0x120] ss:$16 sps:$4 sm:$0xff] (!%p163_p2)  }
   0x8   : > { %546 = vmatpush1.bf16.msra.mxu0 (!%p163_p2), %v4652_v3  ;;  %589 = vmatpush1.bf16.msra.mxu1 (!%p163_p2), %v4653_v4  ;;  %v4659_v8 = vld [vmem:[%s6481_s1 + $0x128] ss:$16 sps:$4 sm:$0xff] (!%p163_p2)   ;;  %v4660_v9 = vld [vmem:[%s6481_s1 + $0x144] ss:$16 sps:$4 sm:$0xff] (!%p163_p2)   ;;  %v4662_v10 = vld [vmem:[%s6481_s1 + $0x14c] ss:$16 sps:$4 sm:$0xff] (!%p163_p2)  }
   0x9   : > { %547 = vmatprep.subr.bf16.mxu0 (!%p163_p2), %v4654_v5  ;;  %590 = vmatprep.subr.bf16.mxu1 (!%p163_p2), %v4656_v6  ;;  %v4664_v11 = vld [vmem:[%s6481_s1 + $0x140] ss:$16 sps:$4 sm:$0xff] (!%p163_p2)   ;;  %v4665_v12 = vld [vmem:[%s6481_s1 + $0x148] ss:$16 sps:$4 sm:$0xff] (!%p163_p2)   ;;  %v4666_v13 = vld [vmem:[%s6481_s1 + $0x164] ss:$16 sps:$4 sm:$0xff] (!%p163_p2)  }
   0xa   : > { %v4668_v14 = vld [vmem:[%s6481_s1 + $0x16c] ss:$16 sps:$4 sm:$0xff] (!%p163_p2)   ;;  %v4670_v15 = vld [vmem:[%s6481_s1 + $0x160] ss:$16 sps:$4 sm:$0xff] (!%p163_p2)   ;;  %v4671_v16 = vld [vmem:[%s6481_s1 + $0x168] ss:$16 sps:$4 sm:$0xff] (!%p163_p2)  }
   0xb   : > { %v4672_v17 = vld [vmem:[%s6481_s1 + $0x184] ss:$16 sps:$4 sm:$0xff] (!%p163_p2)   ;;  %v4674_v18 = vld [vmem:[%s6481_s1 + $0x18c] ss:$16 sps:$4 sm:$0xff] (!%p163_p2)   ;;  %v5095_v19 = vmov (!%p163_p2), 1983009808  }
   0xc   : > { %548 = vmatpush1.bf16.msra.mxu0 (!%p163_p2), %v4658_v7  ;;  %591 = vmatpush1.bf16.msra.mxu1 (!%p163_p2), %v4659_v8  ;;  %v240_v20 = vunpack.c.l.s4 (!%p163_p2), %v5095_v19  ;;  %v4676_v22 = vld [vmem:[%s6481_s1 + $0x180] ss:$16 sps:$4 sm:$0xff] (!%p163_p2)   ;;  %v4677_v23 = vld [vmem:[%s6481_s1 + $0x188] ss:$16 sps:$4 sm:$0xff] (!%p163_p2)   ;;  %v4678_v24 = vld [vmem:[%s6481_s1 + $0x1a4] ss:$16 sps:$4 sm:$0xff] (!%p163_p2)  }
   0xd   : > { %549 = vmatprep.subr.bf16.mxu0 %v4660_v9  ;;  %592 = vmatprep.subr.bf16.mxu1 %v4662_v10  ;;  %s6494_s16 = smov (!%p187_p3, %s3994_s16), 1  ;;  %v4680_v25 = vld [vmem:[%s6481_s1 + $0x1ac] ss:$16 sps:$4 sm:$0xff]   ;;  %v5206_v27 = vshrl.u32 %v242_v21, 7  ;;  %v4682_v28 = vld [vmem:[%s6481_s1 + $0x1a0] ss:$16 sps:$4 sm:$0xff]  }
   0xe   : > { %s4635_s11 = smul.u32 24, %s6494_s16  ;;  %v241_v26 = vunpack.c.0.s8 %v240_v20  ;;  %vm271_vm0 = vsmask.f32 1280  ;;  %v4683_v29 = vld [vmem:[%s6481_s1 + $0x1a8] ss:$16 sps:$4 sm:$0xff]   ;;  %vm896_vm4 = vcmask 1042434  }
   0xf   : > { %v4684_v30 = vld [vmem:[%s6481_s1 + $0x1c4] ss:$16 sps:$4 sm:$0xff]   ;;  %v4686_v31 = vld [vmem:[%s6481_s1 + $0x1cc] ss:$16 sps:$4 sm:$0xff]   ;;  %vm272_vm1 = vsmask.f32 3336  ;;  %vm897_vm10 = vmor %vm895_vm3, %vm896_vm4 }
  0x10   : > { %550 = vmatpush1.bf16.msra.mxu0 %v4664_v11  ;;  %593 = vmatpush1.bf16.msra.mxu1 %v4665_v12  ;;  %s5223_s24 = scalar_lea.vmem %s6480_s0, %s4635_s11  ;;  %v5226_v32 = vsub.s32 %v241_v26, %v5206_v27  ;;  %v4688_v33 = vld [vmem:[%s6481_s1 + $0x1c0] ss:$16 sps:$4 sm:$0xff]   ;;  %vm274_vm2 = vsmask.f32 5392  ;;  %v4689_v34 = vld [vmem:[%s6481_s1 + $0x1c8] ss:$16 sps:$4 sm:$0xff]   ;;  %vm5298_vm6 = vmor %vm271_vm0, %vm272_vm1 }
  0x11   : > { %551 = vmatprep.subr.bf16.mxu0 %v4666_v13  ;;  %594 = vmatprep.subr.bf16.mxu1 %v4668_v14  ;;  %v4690_v35 = vld [vmem:[%s6481_s1 + $0x1e4] ss:$16 sps:$4 sm:$0xff]   ;;  %v5238_v36 = vld [vmem:[%s5223_s24] sm:$0x7]  ;;  %v5244_v38 = vld [vmem:[%s5223_s24 + $0x8] sm:$0x7] }
  0x12   : > { %v5241_v37 = vld [vmem:[%s5223_s24 + $0x4] sm:$0x7]  ;;  %v4692_v39 = vld [vmem:[%s6481_s1 + $0x1ec] ss:$16 sps:$4 sm:$0xff]   ;;  %v5253_v41 = vld [vmem:[%s5223_s24 + $0x10] sm:$0x7]  ;;  %v5257_v42 = vrot.slane %v5238_v36, %v5226_v32  ;;  %v5265_v44 = vrot.slane %v5244_v38, %v5226_v32 }
  0x13   : > { %v5250_v40 = vld [vmem:[%s5223_s24 + $0xc] sm:$0x7]  ;;  %v5261_v43 = vrot.slane %v5241_v37, %v5226_v32  ;;  %v4694_v45 = vld [vmem:[%s6481_s1 + $0x1e0] ss:$16 sps:$4 sm:$0xff]   ;;  %vm276_vm5 = vsmask.f32 7448  ;;  %v5276_v47 = vrot.slane %v5253_v41, %v5226_v32  ;;  %vm5319_vm8 = vmor %vm5298_vm6, %vm274_vm2 }
  0x14   : > { %552 = vmatpush1.bf16.msra.mxu0 %v4670_v15  ;;  %595 = vmatpush1.bf16.msra.mxu1 %v4671_v16  ;;  %v5272_v46 = vrot.slane %v5250_v40, %v5226_v32  ;;  %v4695_v48 = vld [vmem:[%s6481_s1 + $0x1e8] ss:$16 sps:$4 sm:$0xff]   ;;  %v4698_v49 = vld [vmem:[%s6481_s1 + $0x4] ss:$16 sps:$4 sm:$0xff]   ;;  %v5286_v50 = vcombine.high %v5257_v42, %v5257_v42  ;;  %v5294_v52 = vcombine.high %v5265_v44, %v5265_v44  ;;  %v279_v54 = vshrl.u32 %v5257_v42, 16  ;;  %vm5329_vm9 = vmor %vm5319_vm8, %vm276_vm5  ;;  %s4000_s17 = sshll.u32 %s6494_s16, 3 }
  0x15   : > { %553 = vmatprep.subr.bf16.mxu0 %v4672_v17  ;;  %596 = vmatprep.subr.bf16.mxu1 %v4674_v18  ;;  %v5290_v51 = vcombine.high %v5261_v43, %v5261_v43  ;;  %vm898_vm7 = vcmask 1044484   ;;  %v282_v56 = vshll.u32 %v5257_v42, 16  ;;  %v293_v57 = vshrl.u32 %v5261_v43, 16  ;;  %v4701_v59 = vld [vmem:[%s6481_s1 + $0xc] ss:$16 sps:$4 sm:$0xff]   ;;  %s6428_s16 = scalar_lea.vmem %s6484_s4, %s4000_s17 }
  0x16   : > { %v5305_v55 = vcombine.high %v5272_v46, %v5272_v46  ;;  %v296_v58 = vshll.u32 %v5261_v43, 16  ;;  %v281_v60 = vrot.slane %v279_v54, 6  ;;  %v288_v61 = vshll.u32 %v5286_v50, 16  ;;  %vm899_vm11 = vmor %vm897_vm10, %vm898_vm7  ;;  %v5028_v14 = vld [vmem:[%s6481_s1 + $0x7c8] ss:$16 sps:$4 sm:$0xff]  }
  0x17   : > { %v302_v62 = vshll.u32 %v5290_v51, 16  ;;  %v307_v63 = vshrl.u32 %v5265_v44, 16  ;;  %v284_v1 = vrot.slane %v282_v56, 7  ;;  %v295_v3 = vrot.slane %v293_v57, 6 }
  0x18   : > { %554 = vmatpush1.bf16.msra.mxu0 %v4676_v22  ;;  %597 = vmatpush1.bf16.msra.mxu1 %v4677_v23  ;;  %v298_v4 = vrot.slane %v296_v58, 7  ;;  %v310_v5 = vshll.u32 %v5265_v44, 16  ;;  %v290_v6 = vrot.slane %v288_v61, 7  ;;  %v316_v9 = vshll.u32 %v5294_v52, 16 }
  0x19   : > { %555 = vmatprep.subr.bf16.mxu0 %v4678_v24  ;;  %598 = vmatprep.subr.bf16.mxu1 %v4680_v25  ;;  %v304_v7 = vrot.slane %v302_v62, 7  ;;  %v309_v8 = vrot.slane %v307_v63, 6  ;;  %v285_v10 = vor.u32 %v284_v1, %v281_v60  ;;  %v321_v13 = vshrl.u32 %v5272_v46, 16  ;;  %v5076_v62 = vld [vmem:[%s6481_s1 + $0x8c8] ss:$16 sps:$4 sm:$0xff]  }
  0x1a   : > { %v299_v11 = vor.u32 %v298_v4, %v295_v3  ;;  %v312_v12 = vrot.slane %v310_v5, 7  ;;  %v318_v15 = vrot.slane %v316_v9, 7  ;;  %v324_v16 = vshll.u32 %v5272_v46, 16 }
  0x1b   : > { %v330_v17 = vshll.u32 %v5305_v55, 16  ;;  %v5337_v18 = vcombine.high %v5276_v47, %v5276_v47  ;;  %v286_v19 = vrot.slane %v285_v10, 2  ;;  %v323_v22 = vrot.slane %v321_v13, 6  ;;  %v4707_v13 = vld [vmem:[%s6481_s1 + $0x2c] ss:$16 sps:$4 sm:$0xff]  }
  0x1c   : > { %556 = vmatpush1.bf16.msra.mxu0 %v4682_v28  ;;  %599 = vmatpush1.bf16.msra.mxu1 %v4683_v29  ;;  %v300_v20 = vrot.slane %v299_v11, 2  ;;  %v313_v21 = vor.u32 %v312_v12, %v309_v8  ;;  %v326_v23 = vrot.slane %v324_v16, 7  ;;  %v1538_v25 = vshrl.u32 %v5276_v47, 16 }
  0x1d   : > { %557 = vmatprep.subr.bf16.mxu0 %v4684_v30  ;;  %600 = vmatprep.subr.bf16.mxu1 %v4686_v31  ;;  %v332_v24 = vrot.slane %v330_v17, 7  ;;  %v1541_v26 = vshll.u32 %v5276_v47, 16  ;;  %v291_v28 = vsel %vm5329_vm9, %v286_v19, %v290_v6  ;;  %v1547_v31 = vshll.u32 %v5337_v18, 16  ;;  %v4696_v6 = vld [vmem:[%s6481_s1] ss:$16 sps:$4 sm:$0xff]  }
  0x1e   : > { %v305_v29 = vsel %vm5329_vm9, %v300_v20, %v304_v7  ;;  %v314_v30 = vrot.slane %v313_v21, 2  ;;  %vm900_vm12 = vcmask 1046534   ;;  %v4097_v56 = vrot.slane %v5257_v42, 9  ;;  %v4702_v19 = vld [vmem:[%s6481_s1 + $0x20] ss:$16 sps:$4 sm:$0xff]  }
  0x1f   : > { %v1549_v53 = vrot.slane %v1547_v31, 7  ;;  %v1257_v57 = vcombine.low %v5241_v37, %v5244_v38  ;;  %v1258_v58 = vcombine.low %v5250_v40, %v5253_v41  ;;  %vm5359_vm13 = vmor %vm899_vm11, %vm900_vm12  ;;  %v904_v0 = vrot.slane %v5286_v50, 7  ;;  %v4710_v21 = vld [vmem:[%s6481_s1 + $0x44] ss:$16 sps:$4 sm:$0xff]   ;;  %v4717_v31 = vld [vmem:[%s6481_s1 + $0x68] ss:$16 sps:$4 sm:$0xff]  }
  0x20   : > { %558 = vmatpush1.bf16.msra.mxu0 %v4688_v33  ;;  %601 = vmatpush1.bf16.msra.mxu1 %v4689_v34  ;;  %v327_v33 = vor.u32 %v326_v23, %v323_v22  ;;  %v367_v34 = vcombine.low %v291_v28, %v305_v29  ;;  %v4098_v42 = vrot.slane %v5261_v43, 9  ;;  %v908_v3 = vrot.slane %v5290_v51, 7  ;;  %v4704_v51 = vld [vmem:[%s6481_s1 + $0x24] ss:$16 sps:$4 sm:$0xff]  }
  0x21   : > { %559 = vmatprep.subr.bf16.mxu0 %v4690_v35  ;;  %602 = vmatprep.subr.bf16.mxu1 %v4692_v39  ;;  %v1540_v35 = vrot.slane %v1538_v25, 6  ;;  %v1543_v39 = vrot.slane %v1541_v26, 7  ;;  %v1265_v1 = vrot.slane %v1257_v57, %v5226_v32  ;;  %v4099_v4 = vrot.slane %v5265_v44, 9  ;;  %v4699_v44 = vld [vmem:[%s6481_s1 + $0x8] ss:$16 sps:$4 sm:$0xff]  }
  0x22   : > { %v375_v60 = vrot.slane %v367_v34, %v5226_v32  ;;  %v1272_v5 = vrot.slane %v1258_v58, %v5226_v32  ;;  %v5382_v7 = vsel %vm5359_vm13, %v4097_v56, %v904_v0  ;;  %v912_v8 = vrot.slane %v5294_v52, 7  ;;  %v4708_v25 = vld [vmem:[%s6481_s1 + $0x40] ss:$16 sps:$4 sm:$0xff]   ;;  %v4711_v26 = vld [vmem:[%s6481_s1 + $0x48] ss:$16 sps:$4 sm:$0xff]  }
  0x23   : > { %v5393_v9 = vsel %vm5359_vm13, %v4098_v42, %v908_v3  ;;  %v4100_v10 = vrot.slane %v5272_v46, 9  ;;  %v916_v16 = vrot.slane %v5305_v55, 7  ;;  %v4705_v55 = vld [vmem:[%s6481_s1 + $0x28] ss:$16 sps:$4 sm:$0xff]   ;;  %v4716_v28 = vld [vmem:[%s6481_s1 + $0x64] ss:$16 sps:$4 sm:$0xff]   ;;  %v631_v58 = vcombine.low %v5238_v36, %v5241_v37 }
  0x24   : > { %560 = vmatpush1.bf16.msra.mxu0 %v4694_v45  ;;  %603 = vmatpush1.bf16.msra.mxu1 %v4695_v48  ;;  %v319_v45 = vsel %vm5329_vm9, %v314_v30, %v318_v15  ;;  %v328_v48 = vrot.slane %v327_v33, 2  ;;  %v5396_v11 = vcombine.low %v1265_v1, %v1272_v5  ;;  %v5405_v15 = vsel %vm5359_vm13, %v4099_v4, %v912_v8  ;;  %v4714_v30 = vld [vmem:[%s6481_s1 + $0x60] ss:$16 sps:$4 sm:$0xff]   ;;  %v4722_v33 = vld [vmem:[%s6481_s1 + $0x84] ss:$16 sps:$4 sm:$0xff]  }
  0x25   : > { %809 = vmatprep.subr.bf16.mxu0 %v4698_v49  ;;  %852 = vmatprep.subr.bf16.mxu1 %v4701_v59  ;;  %v1544_v49 = vor.u32 %v1543_v39, %v1540_v35  ;;  %v1584_v54 = vcombine.low %v305_v29, %v319_v45  ;;  %v951_v17 = vcombine.low %v5382_v7, %v5393_v9  ;;  %v4719_v29 = vld [vmem:[%s6481_s1 + $0x6c] ss:$16 sps:$4 sm:$0xff]   ;;  %v4720_v35 = vld [vmem:[%s6481_s1 + $0x80] ss:$16 sps:$4 sm:$0xff]   ;;  %v4723_v39 = vld [vmem:[%s6481_s1 + $0x88] ss:$16 sps:$4 sm:$0xff]  }
  0x26   : > { %v333_v59 = vsel %vm5329_vm9, %v328_v48, %v332_v24  ;;  %v5416_v20 = vsel %vm5359_vm13, %v4100_v10, %v916_v16  ;;  %v4713_v24 = vld [vmem:[%s6481_s1 + $0x4c] ss:$16 sps:$4 sm:$0xff]   ;;  %v4732_v57 = vld [vmem:[%s6481_s1 + $0xc0] ss:$16 sps:$4 sm:$0xff]   ;;  %v639_v37 = vrot.slane %v631_v58, %v5226_v32  ;;  %v4741_v0 = vld [vmem:[%s6481_s1 + $0xe8] ss:$16 sps:$4 sm:$0xff]   ;;  %v1893_v4 = vcombine.low %v5393_v9, %v5405_v15 }
  0x27   : > { %v1545_v61 = vrot.slane %v1544_v49, 2  ;;  %v368_v63 = vcombine.low %v319_v45, %v333_v59  ;;  %v1592_v12 = vrot.slane %v1584_v54, %v5226_v32  ;;  %v952_v22 = vcombine.low %v5405_v15, %v5416_v20  ;;  %v4725_v34 = vld [vmem:[%s6481_s1 + $0x8c] ss:$16 sps:$4 sm:$0xff]   ;;  %v4728_v45 = vld [vmem:[%s6481_s1 + $0xa4] ss:$16 sps:$4 sm:$0xff]  }
  0x28   : > { %v4731_v48 = vld [vmem:[%s6481_s1 + $0xac] ss:$16 sps:$4 sm:$0xff]   ;;  %v4726_v49 = vld [vmem:[%s6481_s1 + $0xa0] ss:$16 sps:$4 sm:$0xff]   ;;  %v4734_v54 = vld [vmem:[%s6481_s1 + $0xc4] ss:$16 sps:$4 sm:$0xff]   ;;  %v959_v58 = vrot.slane %v951_v17, %v5226_v32 }
  0x29   : > { %v5368_v41 = vsel %vm5329_vm9, %v1545_v61, %v1549_v53  ;;  %v5377_v50 = vrot.slane %v368_v63, %v5226_v32  ;;  %v4729_v53 = vld [vmem:[%s6481_s1 + $0xa8] ss:$16 sps:$4 sm:$0xff]   ;;  %v4737_v56 = vld [vmem:[%s6481_s1 + $0xcc] ss:$16 sps:$4 sm:$0xff]   ;;  %v4740_v61 = vld [vmem:[%s6481_s1 + $0xe4] ss:$16 sps:$4 sm:$0xff]  }
  0x2a   : > { %v1585_v43 = vcombine.low %v333_v59, %v5368_v41  ;;  %v632_v59 = vcombine.low %v5244_v38, %v5250_v40  ;;  %v4743_v63 = vld [vmem:[%s6481_s1 + $0xec] ss:$16 sps:$4 sm:$0xff]   ;;  %v4738_v36 = vld [vmem:[%s6481_s1 + $0xe0] ss:$16 sps:$4 sm:$0xff]   ;;  %v4293_v40 = vrot.slane %v5276_v47, 9  ;;  %v1858_v1 = vrot.slane %v5337_v18, 7 }
  0x2b   : > { %v383_v52 = vcombine.low %v375_v60, %v5377_v50  ;;  %v4735_v60 = vld [vmem:[%s6481_s1 + $0xc8] ss:$16 sps:$4 sm:$0xff]   ;;  %v4746_v42 = vld [vmem:[%s6481_s1 + $0x204] ss:$16 sps:$4 sm:$0xff]   ;;  %v4749_v3 = vld [vmem:[%s6481_s1 + $0x20c] ss:$16 sps:$4 sm:$0xff]  }
  0x2c   : > { %v1599_v46 = vrot.slane %v1585_v43, %v5226_v32  ;;  %v5502_v38 = vrot.slane %v632_v59, %v5226_v32  ;;  %v5517_v47 = vsel %vm5359_vm13, %v4293_v40, %v1858_v1  ;;  %v4744_v5 = vld [vmem:[%s6481_s1 + $0x200] ss:$16 sps:$4 sm:$0xff]   ;;  %v4747_v43 = vld [vmem:[%s6481_s1 + $0x208] ss:$16 sps:$4 sm:$0xff]   ;;  %v4754_v8 = vld [vmem:[%s6481_s1 + $0x224] ss:$16 sps:$4 sm:$0xff]   ;;  %v5625_v59 = vrot.slane %v952_v22, %v5226_v32 }
  0x2d   : > { %578 = vmatmul.mubr.bf16.vlgmr.msra.gmra.mrb[0].mxu0 %v383_v52  ;;  %621 = vmatmul.mubr.bf16.vlgmr.msra.gmra.mrb[0].mxu1 %v383_v52  ;;  %v1894_v18 = vcombine.low %v5416_v20, %v5517_v47  ;;  %v4760_v16 = vld [vmem:[%s6481_s1 + $0x244] ss:$16 sps:$4 sm:$0xff]   ;;  %v4799_v7 = vld [vmem:[%s6481_s1 + $0x30c] ss:$16 sps:$4 sm:$0xff]   ;;  %v4794_v9 = vld [vmem:[%s6481_s1 + $0x300] ss:$16 sps:$4 sm:$0xff]  }
  0x2e   : > { %810 = vmatpush1.bf16.msra.mxu0 %v4696_v6  ;;  %853 = vmatpush1.bf16.msra.mxu1 %v4699_v44  ;;  %v5426_v23 = vcombine.low %v1592_v12, %v1599_v46  ;;  %v647_v6 = vcombine.low %v639_v37, %v5502_v38  ;;  %v1901_v44 = vrot.slane %v1893_v4, %v5226_v32  ;;  %v4752_v12 = vld [vmem:[%s6481_s1 + $0x220] ss:$16 sps:$4 sm:$0xff]   ;;  %v4763_v46 = vld [vmem:[%s6481_s1 + $0x24c] ss:$16 sps:$4 sm:$0xff]   ;;  %v4797_v17 = vld [vmem:[%s6481_s1 + $0x308] ss:$16 sps:$4 sm:$0xff]  }
  0x2f   : > { %811 = vmatprep.subr.bf16.mxu0 %v4704_v51  ;;  %854 = vmatprep.subr.bf16.mxu1 %v4707_v13  ;;  %v4757_v51 = vld [vmem:[%s6481_s1 + $0x22c] ss:$16 sps:$4 sm:$0xff]   ;;  %v1908_v10 = vrot.slane %v1894_v18, %v5226_v32  ;;  %v4755_v13 = vld [vmem:[%s6481_s1 + $0x228] ss:$16 sps:$4 sm:$0xff]   ;;  %v967_v15 = vcombine.low %v959_v58, %v5625_v59  ;;  %v4802_v20 = vld [vmem:[%s6481_s1 + $0x324] ss:$16 sps:$4 sm:$0xff]  }
  0x30   : > { %841 = vmatprep.mubr.bf16.mxu0 %v5094_v2  ;;  %884 = vmatprep.mubr.bf16.mxu1 %v5094_v2  ;;  %v4805_v22 = vld [vmem:[%s6481_s1 + $0x32c] ss:$16 sps:$4 sm:$0xff]   ;;  %v4808_v37 = vld [vmem:[%s6481_s1 + $0x344] ss:$16 sps:$4 sm:$0xff]   ;;  %v4812_v4 = vld [vmem:[%s6481_s1 + $0x360] ss:$16 sps:$4 sm:$0xff]  }
  0x31   : > { %v5541_v52 = vcombine.low %v1901_v44, %v1908_v10  ;;  %v4811_v40 = vld [vmem:[%s6481_s1 + $0x34c] ss:$16 sps:$4 sm:$0xff]   ;;  %v4814_v1 = vld [vmem:[%s6481_s1 + $0x364] ss:$16 sps:$4 sm:$0xff]   ;;  %v4824_v10 = vld [vmem:[%s6481_s1 + $0x3a0] ss:$16 sps:$4 sm:$0xff]  }
  0x32   : > { %812 = vmatpush1.bf16.msra.mxu0 %v4702_v19  ;;  %855 = vmatpush1.bf16.msra.mxu1 %v4705_v55  ;;  %v4758_v19 = vld [vmem:[%s6481_s1 + $0x240] ss:$16 sps:$4 sm:$0xff]   ;;  %v4761_v55 = vld [vmem:[%s6481_s1 + $0x248] ss:$16 sps:$4 sm:$0xff]   ;;  %v4823_v18 = vld [vmem:[%s6481_s1 + $0x38c] ss:$16 sps:$4 sm:$0xff]  }
  0x33   : > { %813 = vmatprep.subr.bf16.mxu0 %v4710_v21  ;;  %856 = vmatprep.subr.bf16.mxu1 %v4713_v24  ;;  %v4766_v21 = vld [vmem:[%s6481_s1 + $0x264] ss:$16 sps:$4 sm:$0xff]   ;;  %v4769_v24 = vld [vmem:[%s6481_s1 + $0x26c] ss:$16 sps:$4 sm:$0xff]   ;;  %vm3399_vm14 = vcmask 1041408   ;;  %vm3873_vm15 = vcmask 1041409  }
  0x34   : > { %v4826_v44 = vld [vmem:[%s6481_s1 + $0x3a4] ss:$16 sps:$4 sm:$0xff]   ;;  %v4873_v58 = vld [vmem:[%s6481_s1 + $0x48c] ss:$16 sps:$4 sm:$0xff]  }
  0x36   : > { %814 = vmatpush1.bf16.msra.mxu0 %v4708_v25  ;;  %857 = vmatpush1.bf16.msra.mxu1 %v4711_v26  ;;  %v4764_v25 = vld [vmem:[%s6481_s1 + $0x260] ss:$16 sps:$4 sm:$0xff]   ;;  %v4767_v26 = vld [vmem:[%s6481_s1 + $0x268] ss:$16 sps:$4 sm:$0xff]  }
  0x37   : > { %815 = vmatprep.subr.bf16.mxu0 %v4716_v28  ;;  %858 = vmatprep.subr.bf16.mxu1 %v4719_v29  ;;  %v4772_v28 = vld [vmem:[%s6481_s1 + $0x284] ss:$16 sps:$4 sm:$0xff]   ;;  %v4775_v29 = vld [vmem:[%s6481_s1 + $0x28c] ss:$16 sps:$4 sm:$0xff]  }
  0x3a   : > { %816 = vmatpush1.bf16.msra.mxu0 %v4714_v30  ;;  %859 = vmatpush1.bf16.msra.mxu1 %v4717_v31  ;;  %v4770_v30 = vld [vmem:[%s6481_s1 + $0x280] ss:$16 sps:$4 sm:$0xff]   ;;  %v4773_v31 = vld [vmem:[%s6481_s1 + $0x288] ss:$16 sps:$4 sm:$0xff]  }
  0x3b   : > { %817 = vmatprep.subr.bf16.mxu0 %v4722_v33  ;;  %860 = vmatprep.subr.bf16.mxu1 %v4725_v34  ;;  %v4778_v33 = vld [vmem:[%s6481_s1 + $0x2a4] ss:$16 sps:$4 sm:$0xff]   ;;  %v4781_v34 = vld [vmem:[%s6481_s1 + $0x2ac] ss:$16 sps:$4 sm:$0xff]  }
  0x3e   : > { %818 = vmatpush1.bf16.msra.mxu0 %v4720_v35  ;;  %861 = vmatpush1.bf16.msra.mxu1 %v4723_v39  ;;  %v4776_v35 = vld [vmem:[%s6481_s1 + $0x2a0] ss:$16 sps:$4 sm:$0xff]   ;;  %v4779_v39 = vld [vmem:[%s6481_s1 + $0x2a8] ss:$16 sps:$4 sm:$0xff]  }
  0x3f   : > { %819 = vmatprep.subr.bf16.mxu0 %v4728_v45  ;;  %862 = vmatprep.subr.bf16.mxu1 %v4731_v48  ;;  %v4784_v45 = vld [vmem:[%s6481_s1 + $0x2c4] ss:$16 sps:$4 sm:$0xff]   ;;  %v4787_v48 = vld [vmem:[%s6481_s1 + $0x2cc] ss:$16 sps:$4 sm:$0xff]  }
  0x42   : > { %820 = vmatpush1.bf16.msra.mxu0 %v4726_v49  ;;  %863 = vmatpush1.bf16.msra.mxu1 %v4729_v53  ;;  %v4782_v49 = vld [vmem:[%s6481_s1 + $0x2c0] ss:$16 sps:$4 sm:$0xff]   ;;  %v4785_v53 = vld [vmem:[%s6481_s1 + $0x2c8] ss:$16 sps:$4 sm:$0xff]  }
  0x43   : > { %821 = vmatprep.subr.bf16.mxu0 %v4734_v54  ;;  %864 = vmatprep.subr.bf16.mxu1 %v4737_v56  ;;  %v4790_v54 = vld [vmem:[%s6481_s1 + $0x2e4] ss:$16 sps:$4 sm:$0xff]   ;;  %v4793_v56 = vld [vmem:[%s6481_s1 + $0x2ec] ss:$16 sps:$4 sm:$0xff]  }
  0x46   : > { %822 = vmatpush1.bf16.msra.mxu0 %v4732_v57  ;;  %865 = vmatpush1.bf16.msra.mxu1 %v4735_v60  ;;  %v4788_v57 = vld [vmem:[%s6481_s1 + $0x2e0] ss:$16 sps:$4 sm:$0xff]   ;;  %v4791_v60 = vld [vmem:[%s6481_s1 + $0x2e8] ss:$16 sps:$4 sm:$0xff]  }
  0x47   : > { %823 = vmatprep.subr.bf16.mxu0 %v4740_v61  ;;  %866 = vmatprep.subr.bf16.mxu1 %v4743_v63  ;;  %v4796_v61 = vld [vmem:[%s6481_s1 + $0x304] ss:$16 sps:$4 sm:$0xff]   ;;  %v4800_v63 = vld [vmem:[%s6481_s1 + $0x320] ss:$16 sps:$4 sm:$0xff]  }
  0x4a   : > { %824 = vmatpush1.bf16.msra.mxu0 %v4738_v36  ;;  %867 = vmatpush1.bf16.msra.mxu1 %v4741_v0  ;;  %v4803_v36 = vld [vmem:[%s6481_s1 + $0x328] ss:$16 sps:$4 sm:$0xff]   ;;  %v4806_v0 = vld [vmem:[%s6481_s1 + $0x340] ss:$16 sps:$4 sm:$0xff]  }
  0x4b   : > { %1129 = vmatprep.subr.bf16.mxu0 %v4746_v42  ;;  %1172 = vmatprep.subr.bf16.mxu1 %v4749_v3  ;;  %v4809_v42 = vld [vmem:[%s6481_s1 + $0x348] ss:$16 sps:$4 sm:$0xff]   ;;  %v4817_v3 = vld [vmem:[%s6481_s1 + $0x36c] ss:$16 sps:$4 sm:$0xff]  }
  0x4d   : > { %842 = vmatmul.mubr.bf16.vlgmr.msra.gmra.mrb[0].mxu0 %v647_v6  ;;  %885 = vmatmul.mubr.bf16.vlgmr.msra.gmra.mrb[0].mxu1 %v647_v6  ;;  %v4820_v6 = vld [vmem:[%s6481_s1 + $0x384] ss:$16 sps:$4 sm:$0xff]  }
  0x4e   : > { %1130 = vmatpush1.bf16.msra.mxu0 %v4744_v5  ;;  %1173 = vmatpush1.bf16.msra.mxu1 %v4747_v43  ;;  %v4815_v5 = vld [vmem:[%s6481_s1 + $0x368] ss:$16 sps:$4 sm:$0xff]   ;;  %v4818_v43 = vld [vmem:[%s6481_s1 + $0x380] ss:$16 sps:$4 sm:$0xff]  }
  0x4f   : > { %1131 = vmatprep.subr.bf16.mxu0 %v4754_v8  ;;  %1174 = vmatprep.subr.bf16.mxu1 %v4757_v51  ;;  %v4821_v8 = vld [vmem:[%s6481_s1 + $0x388] ss:$16 sps:$4 sm:$0xff]   ;;  %v4829_v51 = vld [vmem:[%s6481_s1 + $0x3ac] ss:$16 sps:$4 sm:$0xff]  }
  0x50   : > { %1161 = vmatprep.mubr.bf16.mxu0 %v5094_v2  ;;  %1204 = vmatprep.mubr.bf16.mxu1 %v5094_v2 }
  0x52   : > { %1132 = vmatpush1.bf16.msra.mxu0 %v4752_v12  ;;  %1175 = vmatpush1.bf16.msra.mxu1 %v4755_v13  ;;  %v4827_v12 = vld [vmem:[%s6481_s1 + $0x3a8] ss:$16 sps:$4 sm:$0xff]   ;;  %v4832_v13 = vld [vmem:[%s6481_s1 + $0x3c4] ss:$16 sps:$4 sm:$0xff]  }
  0x53   : > { %1133 = vmatprep.subr.bf16.mxu0 %v4760_v16  ;;  %1176 = vmatprep.subr.bf16.mxu1 %v4763_v46  ;;  %v4835_v16 = vld [vmem:[%s6481_s1 + $0x3cc] ss:$16 sps:$4 sm:$0xff]   ;;  %v4830_v46 = vld [vmem:[%s6481_s1 + $0x3c0] ss:$16 sps:$4 sm:$0xff]  }
  0x56   : > { %1134 = vmatpush1.bf16.msra.mxu0 %v4758_v19  ;;  %1177 = vmatpush1.bf16.msra.mxu1 %v4761_v55  ;;  %v4833_v19 = vld [vmem:[%s6481_s1 + $0x3c8] ss:$16 sps:$4 sm:$0xff]   ;;  %v4838_v55 = vld [vmem:[%s6481_s1 + $0x3e4] ss:$16 sps:$4 sm:$0xff]  }
  0x57   : > { %1135 = vmatprep.subr.bf16.mxu0 %v4766_v21  ;;  %1178 = vmatprep.subr.bf16.mxu1 %v4769_v24  ;;  %v4841_v21 = vld [vmem:[%s6481_s1 + $0x3ec] ss:$16 sps:$4 sm:$0xff]   ;;  %v4836_v24 = vld [vmem:[%s6481_s1 + $0x3e0] ss:$16 sps:$4 sm:$0xff]  }
  0x5a   : > { %1136 = vmatpush1.bf16.msra.mxu0 %v4764_v25  ;;  %1179 = vmatpush1.bf16.msra.mxu1 %v4767_v26  ;;  %v4839_v25 = vld [vmem:[%s6481_s1 + $0x3e8] ss:$16 sps:$4 sm:$0xff]   ;;  %v4844_v26 = vld [vmem:[%s6481_s1 + $0x404] ss:$16 sps:$4 sm:$0xff]  }
  0x5b   : > { %1137 = vmatprep.subr.bf16.mxu0 %v4772_v28  ;;  %1180 = vmatprep.subr.bf16.mxu1 %v4775_v29  ;;  %v4847_v28 = vld [vmem:[%s6481_s1 + $0x40c] ss:$16 sps:$4 sm:$0xff]   ;;  %v4842_v29 = vld [vmem:[%s6481_s1 + $0x400] ss:$16 sps:$4 sm:$0xff]  }
  0x5e   : > { %1138 = vmatpush1.bf16.msra.mxu0 %v4770_v30  ;;  %1181 = vmatpush1.bf16.msra.mxu1 %v4773_v31  ;;  %v4845_v30 = vld [vmem:[%s6481_s1 + $0x408] ss:$16 sps:$4 sm:$0xff]   ;;  %v4852_v31 = vld [vmem:[%s6481_s1 + $0x424] ss:$16 sps:$4 sm:$0xff]  }
  0x5f   : > { %1139 = vmatprep.subr.bf16.mxu0 %v4778_v33  ;;  %1182 = vmatprep.subr.bf16.mxu1 %v4781_v34  ;;  %v4855_v33 = vld [vmem:[%s6481_s1 + $0x42c] ss:$16 sps:$4 sm:$0xff]   ;;  %v4850_v34 = vld [vmem:[%s6481_s1 + $0x420] ss:$16 sps:$4 sm:$0xff]  }
  0x62   : > { %1140 = vmatpush1.bf16.msra.mxu0 %v4776_v35  ;;  %1183 = vmatpush1.bf16.msra.mxu1 %v4779_v39  ;;  %v4853_v35 = vld [vmem:[%s6481_s1 + $0x428] ss:$16 sps:$4 sm:$0xff]   ;;  %v4858_v39 = vld [vmem:[%s6481_s1 + $0x444] ss:$16 sps:$4 sm:$0xff]  }
  0x63   : > { %1141 = vmatprep.subr.bf16.mxu0 %v4784_v45  ;;  %1184 = vmatprep.subr.bf16.mxu1 %v4787_v48  ;;  %v4856_v45 = vld [vmem:[%s6481_s1 + $0x440] ss:$16 sps:$4 sm:$0xff]   ;;  %v4859_v48 = vld [vmem:[%s6481_s1 + $0x448] ss:$16 sps:$4 sm:$0xff]  }
  0x66   : > { %1142 = vmatpush1.bf16.msra.mxu0 %v4782_v49  ;;  %1185 = vmatpush1.bf16.msra.mxu1 %v4785_v53  ;;  %v4864_v49 = vld [vmem:[%s6481_s1 + $0x464] ss:$16 sps:$4 sm:$0xff]   ;;  %v4867_v53 = vld [vmem:[%s6481_s1 + $0x46c] ss:$16 sps:$4 sm:$0xff]  }
  0x67   : > { %1143 = vmatprep.subr.bf16.mxu0 %v4790_v54  ;;  %1186 = vmatprep.subr.bf16.mxu1 %v4793_v56  ;;  %v4862_v54 = vld [vmem:[%s6481_s1 + $0x460] ss:$16 sps:$4 sm:$0xff]   ;;  %v4865_v56 = vld [vmem:[%s6481_s1 + $0x468] ss:$16 sps:$4 sm:$0xff]  }
  0x6a   : > { %1144 = vmatpush1.bf16.msra.mxu0 %v4788_v57  ;;  %1187 = vmatpush1.bf16.msra.mxu1 %v4791_v60  ;;  %v4870_v57 = vld [vmem:[%s6481_s1 + $0x484] ss:$16 sps:$4 sm:$0xff]   ;;  %v4868_v60 = vld [vmem:[%s6481_s1 + $0x480] ss:$16 sps:$4 sm:$0xff]  }
  0x6b   : > { %1435 = vmatprep.subr.bf16.mxu0 %v4796_v61  ;;  %1478 = vmatprep.subr.bf16.mxu1 %v4799_v7  ;;  %v4871_v61 = vld [vmem:[%s6481_s1 + $0x488] ss:$16 sps:$4 sm:$0xff]   ;;  %v4876_v7 = vld [vmem:[%s6481_s1 + $0x4a4] ss:$16 sps:$4 sm:$0xff]  }
  0x6d   : > { %1162 = vmatmul.mubr.bf16.vlgmr.msra.gmra.mrb[0].mxu0 %v967_v15  ;;  %1205 = vmatmul.mubr.bf16.vlgmr.msra.gmra.mrb[0].mxu1 %v967_v15  ;;  %v4874_v15 = vld [vmem:[%s6481_s1 + $0x4a0] ss:$16 sps:$4 sm:$0xff]  }
  0x6e   : > { %1436 = vmatpush1.bf16.msra.mxu0 %v4794_v9  ;;  %1479 = vmatpush1.bf16.msra.mxu1 %v4797_v17  ;;  %v4879_v9 = vld [vmem:[%s6481_s1 + $0x4ac] ss:$16 sps:$4 sm:$0xff]   ;;  %v4877_v17 = vld [vmem:[%s6481_s1 + $0x4a8] ss:$16 sps:$4 sm:$0xff]  }
  0x6f   : > { %1437 = vmatprep.subr.bf16.mxu0 %v4802_v20  ;;  %1480 = vmatprep.subr.bf16.mxu1 %v4805_v22  ;;  %v4882_v20 = vld [vmem:[%s6481_s1 + $0x4c4] ss:$16 sps:$4 sm:$0xff]   ;;  %v4885_v22 = vld [vmem:[%s6481_s1 + $0x4cc] ss:$16 sps:$4 sm:$0xff]  }
  0x70   : > { %1467 = vmatprep.mubr.bf16.mxu0 %v5094_v2  ;;  %1510 = vmatprep.mubr.bf16.mxu1 %v5094_v2 }
  0x72   : > { %1438 = vmatpush1.bf16.msra.mxu0 %v4800_v63  ;;  %1481 = vmatpush1.bf16.msra.mxu1 %v4803_v36  ;;  %v4880_v63 = vld [vmem:[%s6481_s1 + $0x4c0] ss:$16 sps:$4 sm:$0xff]   ;;  %v4883_v36 = vld [vmem:[%s6481_s1 + $0x4c8] ss:$16 sps:$4 sm:$0xff]  }
  0x73   : > { %1439 = vmatprep.subr.bf16.mxu0 %v4808_v37  ;;  %1482 = vmatprep.subr.bf16.mxu1 %v4811_v40  ;;  %v4888_v37 = vld [vmem:[%s6481_s1 + $0x4e4] ss:$16 sps:$4 sm:$0xff]   ;;  %v4891_v40 = vld [vmem:[%s6481_s1 + $0x4ec] ss:$16 sps:$4 sm:$0xff]  }
  0x76   : > { %1440 = vmatpush1.bf16.msra.mxu0 %v4806_v0  ;;  %1483 = vmatpush1.bf16.msra.mxu1 %v4809_v42  ;;  %v4886_v0 = vld [vmem:[%s6481_s1 + $0x4e0] ss:$16 sps:$4 sm:$0xff]   ;;  %v4889_v42 = vld [vmem:[%s6481_s1 + $0x4e8] ss:$16 sps:$4 sm:$0xff]  }
  0x77   : > { %1441 = vmatprep.subr.bf16.mxu0 %v4814_v1  ;;  %1484 = vmatprep.subr.bf16.mxu1 %v4817_v3  ;;  %v4894_v1 = vld [vmem:[%s6481_s1 + $0x504] ss:$16 sps:$4 sm:$0xff]   ;;  %v4897_v3 = vld [vmem:[%s6481_s1 + $0x50c] ss:$16 sps:$4 sm:$0xff]  }
  0x7a   : > { %1442 = vmatpush1.bf16.msra.mxu0 %v4812_v4  ;;  %1485 = vmatpush1.bf16.msra.mxu1 %v4815_v5  ;;  %v4892_v4 = vld [vmem:[%s6481_s1 + $0x500] ss:$16 sps:$4 sm:$0xff]   ;;  %v4895_v5 = vld [vmem:[%s6481_s1 + $0x508] ss:$16 sps:$4 sm:$0xff]  }
  0x7b   : > { %1443 = vmatprep.subr.bf16.mxu0 %v4820_v6  ;;  %1486 = vmatprep.subr.bf16.mxu1 %v4823_v18  ;;  %v4900_v6 = vld [vmem:[%s6481_s1 + $0x524] ss:$16 sps:$4 sm:$0xff]   ;;  %v4903_v18 = vld [vmem:[%s6481_s1 + $0x52c] ss:$16 sps:$4 sm:$0xff]  }
  0x7e   : > { %1444 = vmatpush1.bf16.msra.mxu0 %v4818_v43  ;;  %1487 = vmatpush1.bf16.msra.mxu1 %v4821_v8  ;;  %v4898_v43 = vld [vmem:[%s6481_s1 + $0x520] ss:$16 sps:$4 sm:$0xff]   ;;  %v4901_v8 = vld [vmem:[%s6481_s1 + $0x528] ss:$16 sps:$4 sm:$0xff]  }
  0x7f   : > { %1445 = vmatprep.subr.bf16.mxu0 %v4826_v44  ;;  %1488 = vmatprep.subr.bf16.mxu1 %v4829_v51  ;;  %v4906_v44 = vld [vmem:[%s6481_s1 + $0x544] ss:$16 sps:$4 sm:$0xff]   ;;  %v4904_v51 = vld [vmem:[%s6481_s1 + $0x540] ss:$16 sps:$4 sm:$0xff]  }
  0x82   : > { %1446 = vmatpush1.bf16.msra.mxu0 %v4824_v10  ;;  %1489 = vmatpush1.bf16.msra.mxu1 %v4827_v12  ;;  %v4907_v10 = vld [vmem:[%s6481_s1 + $0x548] ss:$16 sps:$4 sm:$0xff]   ;;  %v4912_v12 = vld [vmem:[%s6481_s1 + $0x564] ss:$16 sps:$4 sm:$0xff]  }
  0x83   : > { %1447 = vmatprep.subr.bf16.mxu0 %v4832_v13  ;;  %1490 = vmatprep.subr.bf16.mxu1 %v4835_v16  ;;  %v4915_v13 = vld [vmem:[%s6481_s1 + $0x56c] ss:$16 sps:$4 sm:$0xff]   ;;  %v4910_v16 = vld [vmem:[%s6481_s1 + $0x560] ss:$16 sps:$4 sm:$0xff]  }
  0x86   : > { %1448 = vmatpush1.bf16.msra.mxu0 %v4830_v46  ;;  %1491 = vmatpush1.bf16.msra.mxu1 %v4833_v19  ;;  %v4913_v46 = vld [vmem:[%s6481_s1 + $0x568] ss:$16 sps:$4 sm:$0xff]   ;;  %v4918_v19 = vld [vmem:[%s6481_s1 + $0x584] ss:$16 sps:$4 sm:$0xff]  }
  0x87   : > { %1449 = vmatprep.subr.bf16.mxu0 %v4838_v55  ;;  %1492 = vmatprep.subr.bf16.mxu1 %v4841_v21  ;;  %v4921_v55 = vld [vmem:[%s6481_s1 + $0x58c] ss:$16 sps:$4 sm:$0xff]   ;;  %v4916_v21 = vld [vmem:[%s6481_s1 + $0x580] ss:$16 sps:$4 sm:$0xff]  }
  0x8a   : > { %1450 = vmatpush1.bf16.msra.mxu0 %v4836_v24  ;;  %1493 = vmatpush1.bf16.msra.mxu1 %v4839_v25  ;;  %v4919_v24 = vld [vmem:[%s6481_s1 + $0x588] ss:$16 sps:$4 sm:$0xff]   ;;  %v4924_v25 = vld [vmem:[%s6481_s1 + $0x5a4] ss:$16 sps:$4 sm:$0xff]  }
  0x8b   : > { %1762 = vmatprep.subr.bf16.mxu0 %v4844_v26  ;;  %1805 = vmatprep.subr.bf16.mxu1 %v4847_v28  ;;  %v4927_v26 = vld [vmem:[%s6481_s1 + $0x5ac] ss:$16 sps:$4 sm:$0xff]   ;;  %v4922_v28 = vld [vmem:[%s6481_s1 + $0x5a0] ss:$16 sps:$4 sm:$0xff]  }
  0x8d   : > { %1468 = vmatmul.mubr.bf16.vlgmr.msra.gmra.mrb[0].mxu0 %v5396_v11  ;;  %1511 = vmatmul.mubr.bf16.vlgmr.msra.gmra.mrb[0].mxu1 %v5396_v11  ;;  %v4861_v11 = vld [vmem:[%s6481_s1 + $0x44c] ss:$16 sps:$4 sm:$0xff]  }
  0x8e   : > { %1763 = vmatpush1.bf16.msra.mxu0 %v4842_v29  ;;  %1806 = vmatpush1.bf16.msra.mxu1 %v4845_v30  ;;  %v4925_v29 = vld [vmem:[%s6481_s1 + $0x5a8] ss:$16 sps:$4 sm:$0xff]   ;;  %v4930_v30 = vld [vmem:[%s6481_s1 + $0x5c4] ss:$16 sps:$4 sm:$0xff]  }
  0x8f   : > { %1764 = vmatprep.subr.bf16.mxu0 %v4852_v31  ;;  %1807 = vmatprep.subr.bf16.mxu1 %v4855_v33  ;;  %v4933_v31 = vld [vmem:[%s6481_s1 + $0x5cc] ss:$16 sps:$4 sm:$0xff]   ;;  %v4928_v33 = vld [vmem:[%s6481_s1 + $0x5c0] ss:$16 sps:$4 sm:$0xff]  }
  0x90   : > { %1794 = vmatprep.mubr.bf16.mxu0 %v5094_v2  ;;  %1837 = vmatprep.mubr.bf16.mxu1 %v5094_v2 }
  0x92   : > { %1765 = vmatpush1.bf16.msra.mxu0 %v4850_v34  ;;  %1808 = vmatpush1.bf16.msra.mxu1 %v4853_v35  ;;  %v4931_v34 = vld [vmem:[%s6481_s1 + $0x5c8] ss:$16 sps:$4 sm:$0xff]   ;;  %v4936_v35 = vld [vmem:[%s6481_s1 + $0x5e4] ss:$16 sps:$4 sm:$0xff]  }
  0x93   : > { %1766 = vmatprep.subr.bf16.mxu0 %v4858_v39  ;;  %1809 = vmatprep.subr.bf16.mxu1 %v4861_v11  ;;  %v4939_v39 = vld [vmem:[%s6481_s1 + $0x5ec] ss:$16 sps:$4 sm:$0xff]   ;;  %v4934_v11 = vld [vmem:[%s6481_s1 + $0x5e0] ss:$16 sps:$4 sm:$0xff]  }
  0x96   : > { %1767 = vmatpush1.bf16.msra.mxu0 %v4856_v45  ;;  %1810 = vmatpush1.bf16.msra.mxu1 %v4859_v48  ;;  %v4937_v45 = vld [vmem:[%s6481_s1 + $0x5e8] ss:$16 sps:$4 sm:$0xff]   ;;  %v4942_v48 = vld [vmem:[%s6481_s1 + $0x604] ss:$16 sps:$4 sm:$0xff]  }
  0x97   : > { %1768 = vmatprep.subr.bf16.mxu0 %v4864_v49  ;;  %1811 = vmatprep.subr.bf16.mxu1 %v4867_v53  ;;  %v4945_v49 = vld [vmem:[%s6481_s1 + $0x60c] ss:$16 sps:$4 sm:$0xff]   ;;  %v4940_v53 = vld [vmem:[%s6481_s1 + $0x600] ss:$16 sps:$4 sm:$0xff]  }
  0x9a   : > { %1769 = vmatpush1.bf16.msra.mxu0 %v4862_v54  ;;  %1812 = vmatpush1.bf16.msra.mxu1 %v4865_v56  ;;  %v4943_v54 = vld [vmem:[%s6481_s1 + $0x608] ss:$16 sps:$4 sm:$0xff]   ;;  %v4948_v56 = vld [vmem:[%s6481_s1 + $0x624] ss:$16 sps:$4 sm:$0xff]  }
  0x9b   : > { %1770 = vmatprep.subr.bf16.mxu0 %v4870_v57  ;;  %1813 = vmatprep.subr.bf16.mxu1 %v4873_v58  ;;  %v4951_v57 = vld [vmem:[%s6481_s1 + $0x62c] ss:$16 sps:$4 sm:$0xff]   ;;  %v4946_v58 = vld [vmem:[%s6481_s1 + $0x620] ss:$16 sps:$4 sm:$0xff]  }
  0x9e   : > { %1771 = vmatpush1.bf16.msra.mxu0 %v4868_v60  ;;  %1814 = vmatpush1.bf16.msra.mxu1 %v4871_v61  ;;  %v4949_v60 = vld [vmem:[%s6481_s1 + $0x628] ss:$16 sps:$4 sm:$0xff]   ;;  %v4954_v61 = vld [vmem:[%s6481_s1 + $0x644] ss:$16 sps:$4 sm:$0xff]  }
  0x9f   : > { %1772 = vmatprep.subr.bf16.mxu0 %v4876_v7  ;;  %1815 = vmatprep.subr.bf16.mxu1 %v4879_v9  ;;  %v4952_v7 = vld [vmem:[%s6481_s1 + $0x640] ss:$16 sps:$4 sm:$0xff]   ;;  %v4955_v9 = vld [vmem:[%s6481_s1 + $0x648] ss:$16 sps:$4 sm:$0xff]  }
  0xa2   : > { %1773 = vmatpush1.bf16.msra.mxu0 %v4874_v15  ;;  %1816 = vmatpush1.bf16.msra.mxu1 %v4877_v17  ;;  %v4960_v15 = vld [vmem:[%s6481_s1 + $0x664] ss:$16 sps:$4 sm:$0xff]   ;;  %v4963_v17 = vld [vmem:[%s6481_s1 + $0x66c] ss:$16 sps:$4 sm:$0xff]  }
  0xa3   : > { %1774 = vmatprep.subr.bf16.mxu0 %v4882_v20  ;;  %1817 = vmatprep.subr.bf16.mxu1 %v4885_v22  ;;  %v4958_v20 = vld [vmem:[%s6481_s1 + $0x660] ss:$16 sps:$4 sm:$0xff]   ;;  %v4961_v22 = vld [vmem:[%s6481_s1 + $0x668] ss:$16 sps:$4 sm:$0xff]  }
  0xa6   : > { %1775 = vmatpush1.bf16.msra.mxu0 %v4880_v63  ;;  %1818 = vmatpush1.bf16.msra.mxu1 %v4883_v36  ;;  %v4966_v63 = vld [vmem:[%s6481_s1 + $0x684] ss:$16 sps:$4 sm:$0xff]   ;;  %v4969_v36 = vld [vmem:[%s6481_s1 + $0x68c] ss:$16 sps:$4 sm:$0xff]  }
  0xa7   : > { %1776 = vmatprep.subr.bf16.mxu0 %v4888_v37  ;;  %1819 = vmatprep.subr.bf16.mxu1 %v4891_v40  ;;  %v4964_v37 = vld [vmem:[%s6481_s1 + $0x680] ss:$16 sps:$4 sm:$0xff]   ;;  %v4967_v40 = vld [vmem:[%s6481_s1 + $0x688] ss:$16 sps:$4 sm:$0xff]  }
  0xaa   : > { %1777 = vmatpush1.bf16.msra.mxu0 %v4886_v0  ;;  %1820 = vmatpush1.bf16.msra.mxu1 %v4889_v42  ;;  %v4972_v0 = vld [vmem:[%s6481_s1 + $0x6a4] ss:$16 sps:$4 sm:$0xff]   ;;  %v4975_v42 = vld [vmem:[%s6481_s1 + $0x6ac] ss:$16 sps:$4 sm:$0xff]  }
  0xab   : > { %2071 = vmatprep.subr.bf16.mxu0 %v4894_v1  ;;  %2114 = vmatprep.subr.bf16.mxu1 %v4897_v3  ;;  %v4970_v1 = vld [vmem:[%s6481_s1 + $0x6a0] ss:$16 sps:$4 sm:$0xff]   ;;  %v4973_v3 = vld [vmem:[%s6481_s1 + $0x6a8] ss:$16 sps:$4 sm:$0xff]  }
  0xad   : > { %1795 = vmatmul.mubr.bf16.vlgmr.msra.gmra.mrb[0].mxu0 %v5426_v23  ;;  %1838 = vmatmul.mubr.bf16.vlgmr.msra.gmra.mrb[0].mxu1 %v5426_v23  ;;  %v4909_v23 = vld [vmem:[%s6481_s1 + $0x54c] ss:$16 sps:$4 sm:$0xff]  }
  0xae   : > { %2072 = vmatpush1.bf16.msra.mxu0 %v4892_v4  ;;  %2115 = vmatpush1.bf16.msra.mxu1 %v4895_v5  ;;  %v202_v4 = vld [vmem:[%s5223_s24 + $0x14] sm:$0x7] }
  0xaf   : > { %2073 = vmatprep.subr.bf16.mxu0 %v4900_v6  ;;  %2116 = vmatprep.subr.bf16.mxu1 %v4903_v18  ;;  %v4978_v5 = vld [vmem:[%s6481_s1 + $0x6c4] ss:$16 sps:$4 sm:$0xff]   ;;  %v4981_v6 = vld [vmem:[%s6481_s1 + $0x6cc] ss:$16 sps:$4 sm:$0xff]   ;;  %v5085_v18 = vld [vmem:[%s5223_s24 + $0x10] sm:$0x7] }
  0xb0   : > { %2103 = vmatprep.mubr.bf16.mxu0 %v5094_v2  ;;  %2146 = vmatprep.mubr.bf16.mxu1 %v5094_v2 }
  0xb2   : > { %2074 = vmatpush1.bf16.msra.mxu0 %v4898_v43  ;;  %2117 = vmatpush1.bf16.msra.mxu1 %v4901_v8  ;;  %v2199_v43 = vcombine.low %v5085_v18, %v202_v4  ;;  %v4976_v8 = vld [vmem:[%s6481_s1 + $0x6c0] ss:$16 sps:$4 sm:$0xff]  }
  0xb3   : > { %2075 = vmatprep.subr.bf16.mxu0 %v4906_v44  ;;  %2118 = vmatprep.subr.bf16.mxu1 %v4909_v23  ;;  %v4979_v44 = vld [vmem:[%s6481_s1 + $0x6c8] ss:$16 sps:$4 sm:$0xff]   ;;  %v4984_v23 = vld [vmem:[%s6481_s1 + $0x6e4] ss:$16 sps:$4 sm:$0xff]  }
  0xb6   : > { %2076 = vmatpush1.bf16.msra.mxu0 %v4904_v51  ;;  %2119 = vmatpush1.bf16.msra.mxu1 %v4907_v10  ;;  %v4987_v51 = vld [vmem:[%s6481_s1 + $0x6ec] ss:$16 sps:$4 sm:$0xff]   ;;  %v2206_v10 = vrot.slane %v2199_v43, %v5226_v32  ;;  %v5037_v43 = vld [vmem:[%s6481_s1 + $0x800] ss:$16 sps:$4 sm:$0xff]  }
  0xb7   : > { %2077 = vmatprep.subr.bf16.mxu0 %v4912_v12  ;;  %2120 = vmatprep.subr.bf16.mxu1 %v4915_v13  ;;  %v4982_v12 = vld [vmem:[%s6481_s1 + $0x6e0] ss:$16 sps:$4 sm:$0xff]   ;;  %v4985_v13 = vld [vmem:[%s6481_s1 + $0x6e8] ss:$16 sps:$4 sm:$0xff]  }
  0xba   : > { %2078 = vmatpush1.bf16.msra.mxu0 %v4910_v16  ;;  %2121 = vmatpush1.bf16.msra.mxu1 %v4913_v46  ;;  %v4990_v16 = vld [vmem:[%s6481_s1 + $0x704] ss:$16 sps:$4 sm:$0xff]   ;;  %v4993_v46 = vld [vmem:[%s6481_s1 + $0x70c] ss:$16 sps:$4 sm:$0xff]  }
  0xbb   : > { %2079 = vmatprep.subr.bf16.mxu0 %v4918_v19  ;;  %2122 = vmatprep.subr.bf16.mxu1 %v4921_v55  ;;  %v2207_v19 = vcombine.low %v5502_v38, %v2206_v10  ;;  %v4988_v55 = vld [vmem:[%s6481_s1 + $0x700] ss:$16 sps:$4 sm:$0xff]   ;;  %v5000_v38 = vld [vmem:[%s6481_s1 + $0x72c] ss:$16 sps:$4 sm:$0xff]   ;;  %v5051_v10 = vld [vmem:[%s6481_s1 + $0x844] ss:$16 sps:$4 sm:$0xff]  }
  0xbe   : > { %2080 = vmatpush1.bf16.msra.mxu0 %v4916_v21  ;;  %2123 = vmatpush1.bf16.msra.mxu1 %v4919_v24  ;;  %v4991_v21 = vld [vmem:[%s6481_s1 + $0x708] ss:$16 sps:$4 sm:$0xff]   ;;  %v6046_v24 = vrot.slane %v202_v4, %v5226_v32 }
  0xbf   : > { %2081 = vmatprep.subr.bf16.mxu0 %v4924_v25  ;;  %2124 = vmatprep.subr.bf16.mxu1 %v4927_v26  ;;  %v4997_v25 = vld [vmem:[%s6481_s1 + $0x724] ss:$16 sps:$4 sm:$0xff]   ;;  %v4995_v26 = vld [vmem:[%s6481_s1 + $0x720] ss:$16 sps:$4 sm:$0xff]   ;;  %v5034_v4 = vld [vmem:[%s6481_s1 + $0x7e8] ss:$16 sps:$4 sm:$0xff]  }
  0xc2   : > { %2082 = vmatpush1.bf16.msra.mxu0 %v4922_v28  ;;  %2125 = vmatpush1.bf16.msra.mxu1 %v4925_v29  ;;  %v4998_v28 = vld [vmem:[%s6481_s1 + $0x728] ss:$16 sps:$4 sm:$0xff]   ;;  %v2472_v29 = vshrl.u32 %v6046_v24, 16 }
  0xc3   : > { %2083 = vmatprep.subr.bf16.mxu0 %v4930_v30  ;;  %2126 = vmatprep.subr.bf16.mxu1 %v4933_v31  ;;  %v2475_v30 = vshll.u32 %v6046_v24, 16  ;;  %v5003_v31 = vld [vmem:[%s6481_s1 + $0x744] ss:$16 sps:$4 sm:$0xff]  }
  0xc6   : > { %2084 = vmatpush1.bf16.msra.mxu0 %v4928_v33  ;;  %2127 = vmatpush1.bf16.msra.mxu1 %v4931_v34  ;;  %v5006_v33 = vld [vmem:[%s6481_s1 + $0x74c] ss:$16 sps:$4 sm:$0xff]   ;;  %v5001_v34 = vld [vmem:[%s6481_s1 + $0x740] ss:$16 sps:$4 sm:$0xff]  }
  0xc7   : > { %2085 = vmatprep.subr.bf16.mxu0 %v4936_v35  ;;  %2128 = vmatprep.subr.bf16.mxu1 %v4939_v39  ;;  %v5004_v35 = vld [vmem:[%s6481_s1 + $0x748] ss:$16 sps:$4 sm:$0xff]   ;;  %v6078_v39 = vcombine.high %v6046_v24, %v6046_v24 }
  0xca   : > { %2086 = vmatpush1.bf16.msra.mxu0 %v4934_v11  ;;  %2129 = vmatpush1.bf16.msra.mxu1 %v4937_v45  ;;  %v2474_v11 = vrot.slane %v2472_v29, 6  ;;  %v2477_v45 = vrot.slane %v2475_v30, 7  ;;  %v2784_v29 = vrot.slane %v6078_v39, 7  ;;  %v5069_v30 = vld [vmem:[%s6481_s1 + $0x8a4] ss:$16 sps:$4 sm:$0xff]  }
  0xcb   : > { %2369 = vmatprep.subr.bf16.mxu0 %v4942_v48  ;;  %2412 = vmatprep.subr.bf16.mxu1 %v4945_v49  ;;  %v5009_v48 = vld [vmem:[%s6481_s1 + $0x764] ss:$16 sps:$4 sm:$0xff]   ;;  %v5012_v49 = vld [vmem:[%s6481_s1 + $0x76c] ss:$16 sps:$4 sm:$0xff]  }
  0xcd   : > { %2104 = vmatmul.mubr.bf16.vlgmr.msra.gmra.mrb[0].mxu0 %v5541_v52  ;;  %2147 = vmatmul.mubr.bf16.vlgmr.msra.gmra.mrb[0].mxu1 %v5541_v52  ;;  %v4957_v52 = vld [vmem:[%s6481_s1 + $0x64c] ss:$16 sps:$4 sm:$0xff]  }
  0xce   : > { %2370 = vmatpush1.bf16.msra.mxu0 %v4940_v53  ;;  %2413 = vmatpush1.bf16.msra.mxu1 %v4943_v54  ;;  %v5007_v53 = vld [vmem:[%s6481_s1 + $0x760] ss:$16 sps:$4 sm:$0xff]   ;;  %v5010_v54 = vld [vmem:[%s6481_s1 + $0x768] ss:$16 sps:$4 sm:$0xff]  }
  0xcf   : > { %2371 = vmatprep.subr.bf16.mxu0 %v4948_v56  ;;  %2414 = vmatprep.subr.bf16.mxu1 %v4951_v57  ;;  %v2478_v56 = vor.u32 %v2477_v45, %v2474_v11  ;;  %v2481_v57 = vshll.u32 %v6078_v39, 16  ;;  %v5078_v39 = vld [vmem:[%s6481_s1 + $0x8cc] ss:$16 sps:$4 sm:$0xff]   ;;  %v5073_v45 = vld [vmem:[%s6481_s1 + $0x8c0] ss:$16 sps:$4 sm:$0xff]  }
  0xd0   : > { %2401 = vmatprep.mubr.bf16.mxu0 %v5094_v2  ;;  %2444 = vmatprep.mubr.bf16.mxu1 %v5094_v2 }
  0xd2   : > { %2372 = vmatpush1.bf16.msra.mxu0 %v4946_v58  ;;  %2415 = vmatpush1.bf16.msra.mxu1 %v4949_v60  ;;  %v5015_v58 = vld [vmem:[%s6481_s1 + $0x784] ss:$16 sps:$4 sm:$0xff]   ;;  %v5018_v60 = vld [vmem:[%s6481_s1 + $0x78c] ss:$16 sps:$4 sm:$0xff]  }
  0xd3   : > { %2373 = vmatprep.subr.bf16.mxu0 %v4954_v61  ;;  %2416 = vmatprep.subr.bf16.mxu1 %v4957_v52  ;;  %v5013_v61 = vld [vmem:[%s6481_s1 + $0x780] ss:$16 sps:$4 sm:$0xff]   ;;  %v5016_v52 = vld [vmem:[%s6481_s1 + $0x788] ss:$16 sps:$4 sm:$0xff]  }
  0xd6   : > { %2374 = vmatpush1.bf16.msra.mxu0 %v4952_v7  ;;  %2417 = vmatpush1.bf16.msra.mxu1 %v4955_v9  ;;  %v2479_v7 = vrot.slane %v2478_v56, 2  ;;  %v2483_v9 = vrot.slane %v2481_v57, 7  ;;  %v3087_v57 = vsub.s32 0, %v5206_v27 }
  0xd7   : > { %2375 = vmatprep.subr.bf16.mxu0 %v4960_v15  ;;  %2418 = vmatprep.subr.bf16.mxu1 %v4963_v17  ;;  %v5021_v15 = vld [vmem:[%s6481_s1 + $0x7a4] ss:$16 sps:$4 sm:$0xff]   ;;  %v5024_v17 = vld [vmem:[%s6481_s1 + $0x7ac] ss:$16 sps:$4 sm:$0xff]  }
  0xda   : > { %2376 = vmatpush1.bf16.msra.mxu0 %v4958_v20  ;;  %2419 = vmatpush1.bf16.msra.mxu1 %v4961_v22  ;;  %v5019_v20 = vld [vmem:[%s6481_s1 + $0x7a0] ss:$16 sps:$4 sm:$0xff]   ;;  %v5022_v22 = vld [vmem:[%s6481_s1 + $0x7a8] ss:$16 sps:$4 sm:$0xff]  }
  0xdb   : > { %2377 = vmatprep.subr.bf16.mxu0 %v4966_v63  ;;  %2420 = vmatprep.subr.bf16.mxu1 %v4969_v36  ;;  %v2484_v63 = vsel %vm5329_vm9, %v2479_v7, %v2483_v9  ;;  %v5027_v36 = vld [vmem:[%s6481_s1 + $0x7c4] ss:$16 sps:$4 sm:$0xff]  }
  0xde   : > { %2378 = vmatpush1.bf16.msra.mxu0 %v4964_v37  ;;  %2421 = vmatpush1.bf16.msra.mxu1 %v4967_v40  ;;  %v5030_v37 = vld [vmem:[%s6481_s1 + $0x7cc] ss:$16 sps:$4 sm:$0xff]   ;;  %v2518_v40 = vcombine.low %v5368_v41, %v2484_v63 }
  0xdf   : > { %2379 = vmatprep.subr.bf16.mxu0 %v4972_v0  ;;  %2422 = vmatprep.subr.bf16.mxu1 %v4975_v42  ;;  %v5025_v0 = vld [vmem:[%s6481_s1 + $0x7c0] ss:$16 sps:$4 sm:$0xff]   ;;  %v5033_v42 = vld [vmem:[%s6481_s1 + $0x7e4] ss:$16 sps:$4 sm:$0xff]   ;;  %v5036_v41 = vld [vmem:[%s6481_s1 + $0x7ec] ss:$16 sps:$4 sm:$0xff]  }
  0xe2   : > { %2380 = vmatpush1.bf16.msra.mxu0 %v4970_v1  ;;  %2423 = vmatpush1.bf16.msra.mxu1 %v4973_v3  ;;  %v2525_v1 = vrot.slane %v2518_v40, %v5226_v32  ;;  %v5031_v3 = vld [vmem:[%s6481_s1 + $0x7e0] ss:$16 sps:$4 sm:$0xff]  }
  0xe3   : > { %2381 = vmatprep.subr.bf16.mxu0 %v4978_v5  ;;  %2424 = vmatprep.subr.bf16.mxu1 %v4981_v6  ;;  %v5039_v5 = vld [vmem:[%s6481_s1 + $0x804] ss:$16 sps:$4 sm:$0xff]   ;;  %v5042_v6 = vld [vmem:[%s6481_s1 + $0x80c] ss:$16 sps:$4 sm:$0xff]  }
  0xe4   : > { %v2526_v18 = vcombine.low %v5377_v50, %v2525_v1  ;;  %v5048_v50 = vld [vmem:[%s6481_s1 + $0x82c] ss:$16 sps:$4 sm:$0xff]  }
  0xe6   : > { %2382 = vmatpush1.bf16.msra.mxu0 %v4976_v8  ;;  %2425 = vmatpush1.bf16.msra.mxu1 %v4979_v44  ;;  %v5040_v8 = vld [vmem:[%s6481_s1 + $0x808] ss:$16 sps:$4 sm:$0xff]   ;;  %v5045_v44 = vld [vmem:[%s6481_s1 + $0x824] ss:$16 sps:$4 sm:$0xff]  }
  0xe7   : > { %2383 = vmatprep.subr.bf16.mxu0 %v4984_v23  ;;  %2426 = vmatprep.subr.bf16.mxu1 %v4987_v51  ;;  %v5043_v23 = vld [vmem:[%s6481_s1 + $0x820] ss:$16 sps:$4 sm:$0xff]   ;;  %v5046_v51 = vld [vmem:[%s6481_s1 + $0x828] ss:$16 sps:$4 sm:$0xff]  }
  0xea   : > { %2384 = vmatpush1.bf16.msra.mxu0 %v4982_v12  ;;  %2427 = vmatpush1.bf16.msra.mxu1 %v4985_v13  ;;  %v5054_v12 = vld [vmem:[%s6481_s1 + $0x84c] ss:$16 sps:$4 sm:$0xff]   ;;  %v5049_v13 = vld [vmem:[%s6481_s1 + $0x840] ss:$16 sps:$4 sm:$0xff]  }
  0xeb   : > { %2688 = vmatprep.subr.bf16.mxu0 %v4990_v16  ;;  %2731 = vmatprep.subr.bf16.mxu1 %v4993_v46  ;;  %v5052_v16 = vld [vmem:[%s6481_s1 + $0x848] ss:$16 sps:$4 sm:$0xff]   ;;  %v5057_v46 = vld [vmem:[%s6481_s1 + $0x864] ss:$16 sps:$4 sm:$0xff]  }
  0xed   : > { %2402 = vmatmul.mubr.bf16.vlgmr.msra.gmra.mrb[0].mxu0 %v2207_v19  ;;  %2445 = vmatmul.mubr.bf16.vlgmr.msra.gmra.mrb[0].mxu1 %v2207_v19  ;;  %v5055_v19 = vld [vmem:[%s6481_s1 + $0x860] ss:$16 sps:$4 sm:$0xff]  }
  0xee   : > { %2689 = vmatpush1.bf16.msra.mxu0 %v4988_v55  ;;  %2732 = vmatpush1.bf16.msra.mxu1 %v4991_v21  ;;  %v5058_v55 = vld [vmem:[%s6481_s1 + $0x868] ss:$16 sps:$4 sm:$0xff]   ;;  %v5063_v21 = vld [vmem:[%s6481_s1 + $0x884] ss:$16 sps:$4 sm:$0xff]  }
  0xef   : > { %2690 = vmatprep.subr.bf16.mxu0 %v4997_v25  ;;  %2733 = vmatprep.subr.bf16.mxu1 %v5000_v38  ;;  %v5066_v25 = vld [vmem:[%s6481_s1 + $0x88c] ss:$16 sps:$4 sm:$0xff]   ;;  %v5061_v38 = vld [vmem:[%s6481_s1 + $0x880] ss:$16 sps:$4 sm:$0xff]  }
  0xf0   : > { %2720 = vmatprep.mubr.bf16.mxu0 %v5094_v2  ;;  %2763 = vmatprep.mubr.bf16.mxu1 %v5094_v2 }
  0xf2   : > { %2691 = vmatpush1.bf16.msra.mxu0 %v4995_v26  ;;  %2734 = vmatpush1.bf16.msra.mxu1 %v4998_v28  ;;  %v5064_v26 = vld [vmem:[%s6481_s1 + $0x888] ss:$16 sps:$4 sm:$0xff]   ;;  %v4486_v28 = vrot.slane %v6046_v24, 9 }
  0xf3   : > { %2692 = vmatprep.subr.bf16.mxu0 %v5003_v31  ;;  %2735 = vmatprep.subr.bf16.mxu1 %v5006_v33  ;;  %v5072_v31 = vld [vmem:[%s6481_s1 + $0x8ac] ss:$16 sps:$4 sm:$0xff]   ;;  %v5067_v33 = vld [vmem:[%s6481_s1 + $0x8a0] ss:$16 sps:$4 sm:$0xff]   ;;  %v5070_v24 = vld [vmem:[%s6481_s1 + $0x8a8] ss:$16 sps:$4 sm:$0xff]  }
  0xf6   : > { %2693 = vmatpush1.bf16.msra.mxu0 %v5001_v34  ;;  %2736 = vmatpush1.bf16.msra.mxu1 %v5004_v35  ;;  %v2785_v34 = vsel %vm5359_vm13, %v4486_v28, %v2784_v29  ;;  %v5075_v35 = vld [vmem:[%s6481_s1 + $0x8c4] ss:$16 sps:$4 sm:$0xff]  }
  0xf7   : > { %2694 = vmatprep.subr.bf16.mxu0 %v5009_v48  ;;  %2737 = vmatprep.subr.bf16.mxu1 %v5012_v49  ;;  %v2819_v11 = vcombine.low %v5517_v47, %v2785_v34  ;;  %v5081_v48 = vld [vmem:[%s6481_s1 + $0x8e4] ss:$16 sps:$4 sm:$0xff]   ;;  %v5084_v47 = vld [vmem:[%s6481_s1 + $0x8ec] ss:$16 sps:$4 sm:$0xff]  }
  0xf9   : > { %v2826_v49 = vrot.slane %v2819_v11, %v5226_v32 }
  0xfa   : > { %2695 = vmatpush1.bf16.msra.mxu0 %v5007_v53  ;;  %2738 = vmatpush1.bf16.msra.mxu1 %v5010_v54  ;;  %v5079_v53 = vld [vmem:[%s6481_s1 + $0x8e0] ss:$16 sps:$4 sm:$0xff]   ;;  %v5082_v54 = vld [vmem:[%s6481_s1 + $0x8e8] ss:$16 sps:$4 sm:$0xff]  }
  0xfb   : > { %2696 = vmatprep.subr.bf16.mxu0 %v5015_v58  ;;  %2739 = vmatprep.subr.bf16.mxu1 %v5018_v60  ;;  %v2827_v56 = vcombine.low %v5625_v59, %v2826_v49  ;;  %v3095_v58 = vsub.s32 2, %v5206_v27  ;;  %v3083_v60 = vld [vmem:[%s6482_s2] sm:$0xf] }
  0xfc   : > { %v3113_v59 = vld [vmem:[%s6483_s3] sm:$0xf]  ;;  %v3088_v7 = vrot.slane %v3083_v60, %v3087_v57 }
  0xfd   : > { %v3096_v9 = vrot.slane %v3083_v60, %v3095_v58  ;;  %v3118_v63 = vrot.slane %v3113_v59, %v3087_v57 }
  0xfe   : > { %2697 = vmatpush1.bf16.msra.mxu0 %v5013_v61  ;;  %2740 = vmatpush1.bf16.msra.mxu1 %v5016_v52  ;;  %v3091_v61 = vsub.s32 1, %v5206_v27  ;;  %v3099_v52 = vsub.s32 3, %v5206_v27 }
  0xff   : > { %2698 = vmatprep.subr.bf16.mxu0 %v5021_v15  ;;  %2741 = vmatprep.subr.bf16.mxu1 %v5024_v17 }
 0x100   : > { %v3092_v15 = vrot.slane %v3083_v60, %v3091_v61  ;;  %v3100_v17 = vrot.slane %v3083_v60, %v3099_v52 }
 0x102   : > { %2699 = vmatpush1.bf16.msra.mxu0 %v5019_v20  ;;  %2742 = vmatpush1.bf16.msra.mxu1 %v5022_v22  ;;  %v5096_v20 = vmov 1966171168  }
 0x103   : > { %2700 = vmatprep.subr.bf16.mxu0 %v5027_v36  ;;  %2743 = vmatprep.subr.bf16.mxu1 %v5030_v37  ;;  %v3675_v22 = vunpack.c.l.s4 %v5096_v20  ;;  %v3126_v36 = vrot.slane %v3113_v59, %v3095_v58 }
 0x106   : > { %2701 = vmatpush1.bf16.msra.mxu0 %v5025_v0  ;;  %2744 = vmatpush1.bf16.msra.mxu1 %v5028_v14  ;;  %v3122_v0 = vrot.slane %v3113_v59, %v3091_v61  ;;  %v3130_v14 = vrot.slane %v3113_v59, %v3099_v52 }
 0x107   : > { %2702 = vmatprep.subr.bf16.mxu0 %v5033_v42  ;;  %2745 = vmatprep.subr.bf16.mxu1 %v5036_v41 }
 0x10a   : > { %2703 = vmatpush1.bf16.msra.mxu0 %v5031_v3  ;;  %2746 = vmatpush1.bf16.msra.mxu1 %v5034_v4 }
 0x10b   : > { %2989 = vmatprep.subr.bf16.mxu0 %v5039_v5  ;;  %3032 = vmatprep.subr.bf16.mxu1 %v5042_v6  ;;  %v3676_v6 = vunpack.c.0.s8 %v3675_v22 }
 0x10d   : > { %2721 = vmatmul.mubr.bf16.vlgmr.msra.gmra.mrb[0].mxu0 %v2526_v18  ;;  %2764 = vmatmul.mubr.bf16.vlgmr.msra.gmra.mrb[0].mxu1 %v2526_v18  ;;  %v5097_v18 = vmov 1935823168   ;;  %v6264_v11 = vsub.s32 %v3676_v6, %v5206_v27 }
 0x10e   : > { %2990 = vmatpush1.bf16.msra.mxu0 %v5037_v43  ;;  %3033 = vmatpush1.bf16.msra.mxu1 %v5040_v8  ;;  %v6261_v43 = vunpack.c.l.s4 %v5097_v18 }
 0x10f   : > { %2991 = vmatprep.subr.bf16.mxu0 %v5045_v44  ;;  %3034 = vmatprep.subr.bf16.mxu1 %v5048_v50 }
 0x110   : > { %3021 = vmatprep.mubr.bf16.mxu0 %v5094_v2  ;;  %3064 = vmatprep.mubr.bf16.mxu1 %v5094_v2  ;;  %v5060_v2 = vld [vmem:[%s6481_s1 + $0x86c] ss:$16 sps:$4 sm:$0xff]  }
 0x112   : > { %2992 = vmatpush1.bf16.msra.mxu0 %v5043_v23  ;;  %3035 = vmatpush1.bf16.msra.mxu1 %v5046_v51 }
 0x113   : > { %2993 = vmatprep.subr.bf16.mxu0 %v5051_v10  ;;  %3036 = vmatprep.subr.bf16.mxu1 %v5054_v12 }
 0x116   : > { %2994 = vmatpush1.bf16.msra.mxu0 %v5049_v13  ;;  %3037 = vmatpush1.bf16.msra.mxu1 %v5052_v16 }
 0x117   : > { %2995 = vmatprep.subr.bf16.mxu0 %v5057_v46  ;;  %3038 = vmatprep.subr.bf16.mxu1 %v5060_v2 }
 0x11a   : > { %2996 = vmatpush1.bf16.msra.mxu0 %v5055_v19  ;;  %3039 = vmatpush1.bf16.msra.mxu1 %v5058_v55 }
 0x11b   : > { %2997 = vmatprep.subr.bf16.mxu0 %v5063_v21  ;;  %3040 = vmatprep.subr.bf16.mxu1 %v5066_v25 }
 0x11e   : > { %2998 = vmatpush1.bf16.msra.mxu0 %v5061_v38  ;;  %3041 = vmatpush1.bf16.msra.mxu1 %v5064_v26 }
 0x11f   : > { %2999 = vmatprep.subr.bf16.mxu0 %v5069_v30  ;;  %3042 = vmatprep.subr.bf16.mxu1 %v5072_v31 }
 0x122   : > { %3000 = vmatpush1.bf16.msra.mxu0 %v5067_v33  ;;  %3043 = vmatpush1.bf16.msra.mxu1 %v5070_v24 }
 0x123   : > { %3001 = vmatprep.subr.bf16.mxu0 %v5075_v35  ;;  %3044 = vmatprep.subr.bf16.mxu1 %v5078_v39 }
 0x126   : > { %3002 = vmatpush1.bf16.msra.mxu0 %v5073_v45  ;;  %3045 = vmatpush1.bf16.msra.mxu1 %v5076_v62  ;;  %v3770_v45 = vunpack.c.0.s8 %v6261_v43 }
 0x127   : > { %3003 = vmatprep.subr.bf16.mxu0 %v5081_v48  ;;  %3046 = vmatprep.subr.bf16.mxu1 %v5084_v47 }
 0x12a   : > { %3004 = vmatpush1.bf16.msra.mxu0 %v5079_v53  ;;  %3047 = vmatpush1.bf16.msra.mxu1 %v5082_v54 }
 0x12d   : > { %3022 = vmatmul.mubr.bf16.vlgmr.msra.gmra.mrb[0].mxu0 %v2827_v56  ;;  %3065 = vmatmul.mubr.bf16.vlgmr.msra.gmra.mrb[0].mxu1 %v2827_v56 }
 0x200   : > { %v3023_v37 = vpop.f32.mrb[0].mxu0  ;;  %v3066_v40 = vpop.f32.mrb[0].mxu1 }
 0x201   : > { %v3105_v42 = vmul.f32 %v3088_v7, %v3023_v37  ;;  %v3107_v41 = vmul.f32 %v3096_v9, %v3066_v40  ;;  %v3025_v1 = vpop.f32.mrb[1].mxu0  ;;  %v3068_v3 = vpop.f32.mrb[1].mxu1 }
 0x202   : > { %v3106_v4 = vmul.f32 %v3092_v15, %v3025_v1  ;;  %v3108_v5 = vmul.f32 %v3100_v17, %v3068_v3  ;;  %v3027_v8 = vpop.f32.mrb[2].mxu0  ;;  %v3070_v44 = vpop.f32.mrb[2].mxu1 }
 0x203   : > { %v3135_v50 = vadd.f32 %v3118_v63, %v3105_v42  ;;  %v3137_v23 = vadd.f32 %v3126_v36, %v3107_v41  ;;  %v3109_v51 = vmul.f32 %v3088_v7, %v3027_v8  ;;  %v3111_v10 = vmul.f32 %v3096_v9, %v3070_v44  ;;  %v3029_v12 = vpop.f32.mrb[3].mxu0  ;;  %v3072_v13 = vpop.f32.mrb[3].mxu1 }
 0x204   : > { %v3136_v16 = vadd.f32 %v3122_v0, %v3106_v4  ;;  %v3138_v46 = vadd.f32 %v3130_v14, %v3108_v5  ;;  %v3110_v2 = vmul.f32 %v3092_v15, %v3029_v12  ;;  %v3112_v19 = vmul.f32 %v3100_v17, %v3072_v13 }
 0x205   : > { %v3143_v55 = vmax.f32 %v3135_v50, 0.0  ;;  %v3145_v21 = vmax.f32 %v3137_v23, 0.0  ;;  %v3139_v25 = vadd.f32 %v3118_v63, %v3109_v51  ;;  %v3141_v38 = vadd.f32 %v3126_v36, %v3111_v10 }
 0x206   : > { %v3144_v26 = vmax.f32 %v3136_v16, 0.0  ;;  %v3146_v28 = vmax.f32 %v3138_v46, 0.0  ;;  %v3140_v29 = vadd.f32 %v3122_v0, %v3110_v2  ;;  %v3142_v30 = vadd.f32 %v3130_v14, %v3112_v19 }
 0x207   : > { %v3147_v31 = vmax.f32 %v3139_v25, 0.0  ;;  %v3149_v33 = vmax.f32 %v3141_v38, 0.0 }
 0x208   : > { %v3159_v24 = vcombine.low %v3143_v55, %v3144_v26  ;;  %v3160_v34 = vcombine.high %v3143_v55, %v3144_v26  ;;  %v3161_v35 = vcombine.low %v3145_v21, %v3146_v28  ;;  %v3162_v39 = vcombine.high %v3145_v21, %v3146_v28 }
 0x209   : > { %v3148_v62 = vmax.f32 %v3140_v29, 0.0  ;;  %v3150_v48 = vmax.f32 %v3142_v30, 0.0 }
 0x20a   : > { %v3169_v47 = vrot.slane %v3159_v24, %v5226_v32  ;;  %v3176_v49 = vrot.slane %v3160_v34, %v5226_v32  ;;  %v3183_v53 = vrot.slane %v3161_v35, %v5226_v32  ;;  %v3190_v54 = vrot.slane %v3162_v39, %v5226_v32 }
 0x20b   : > { %v6271_v56 = vcombine.low %v3147_v31, %v3148_v62  ;;  %v6273_v57 = vcombine.high %v3147_v31, %v3148_v62  ;;  %v6275_v58 = vcombine.low %v3149_v33, %v3150_v48  ;;  %v6277_v60 = vcombine.high %v3149_v33, %v3150_v48 }
 0x20c   : > { %v3191_v61 = vcombine.low %v3169_v47, %v3183_v53  ;;  %v3192_v52 = vcombine.high %v3169_v47, %v3183_v53  ;;  %v3193_v59 = vcombine.low %v3176_v49, %v3190_v54  ;;  %v3194_v7 = vcombine.high %v3176_v49, %v3190_v54 }
 0x20d   : > { %v4551_v9 = vcombine.low %v3183_v53, %v3183_v53  ;;  %v4552_v15 = vcombine.high %v3183_v53, %v3183_v53  ;;  %v4553_v17 = vcombine.low %v3190_v54, %v3190_v54  ;;  %v4554_v20 = vcombine.high %v3190_v54, %v3190_v54 }
 0x20e   : > { %v3238_v22 = vrot.slane %v3191_v61, %v5226_v32  ;;  %v3255_v63 = vrot.slane %v3192_v52, %v5226_v32  ;;  %v6282_v36 = vrot.slane %v3193_v59, %v5226_v32  ;;  %v6285_v37 = vrot.slane %v3194_v7, %v5226_v32 }
 0x20f   : > { %v3245_v40 = vrot.slane %v4551_v9, %v5226_v32  ;;  %v3262_v0 = vrot.slane %v4552_v15, %v5226_v32  ;;  %v6290_v14 = vrot.slane %v4553_v17, %v5226_v32  ;;  %v6293_v42 = vrot.slane %v4554_v20, %v5226_v32 }
 0x210   : > { %v3246_v41 = vcombine.high %v3238_v22, %v3238_v22  ;;  %v3263_v1 = vcombine.high %v3255_v63, %v3255_v63  ;;  %v3280_v3 = vcombine.high %v6282_v36, %v6282_v36  ;;  %v3297_v4 = vcombine.high %v6285_v37, %v6285_v37 }
 0x211   : > { %v3247_v5 = vcombine.high %v3245_v40, %v3245_v40  ;;  %v3264_v6 = vcombine.high %v3262_v0, %v3262_v0  ;;  %v3281_v18 = vcombine.high %v6290_v14, %v6290_v14  ;;  %v3298_v8 = vcombine.high %v6293_v42, %v6293_v42 }
 0x212   : > { %v3400_v44 = vsel %vm3399_vm14, %v3238_v22, -inf  ;;  %v3407_v50 = vsel %vm3399_vm14, %v3246_v41, -inf  ;;  %v3414_v23 = vsel %vm3399_vm14, %v3245_v40, -inf  ;;  %v3428_v51 = vsel %vm3399_vm14, %v3255_v63, -inf }
 0x213   : > { %v3401_v10 = vrot.slane %v3400_v44, 4  ;;  %v3408_v12 = vrot.slane %v3407_v50, 4  ;;  %v3415_v13 = vrot.slane %v3414_v23, 4  ;;  %v3421_v16 = vsel %vm3399_vm14, %v3247_v5, -inf }
 0x214   : > { %v3422_v46 = vrot.slane %v3421_v16, 4  ;;  %v3429_v2 = vrot.slane %v3428_v51, 4  ;;  %v3435_v19 = vsel %vm3399_vm14, %v3263_v1, -inf  ;;  %v3442_v55 = vsel %vm3399_vm14, %v3262_v0, -inf }
 0x215   : > { %v3402_v21 = vmax.f32 %v3400_v44, %v3401_v10  ;;  %v3409_v25 = vmax.f32 %v3407_v50, %v3408_v12  ;;  %v3416_v38 = vmax.f32 %v3414_v23, %v3415_v13  ;;  %v3436_v26 = vrot.slane %v3435_v19, 4 }
 0x216   : > { %v3423_v28 = vmax.f32 %v3421_v16, %v3422_v46  ;;  %v3430_v29 = vmax.f32 %v3428_v51, %v3429_v2  ;;  %v3443_v30 = vrot.slane %v3442_v55, 4  ;;  %v3449_v31 = vsel %vm3399_vm14, %v3264_v6, -inf }
 0x217   : > { %v3403_v33 = vrot.slane %v3402_v21, 2  ;;  %v3410_v24 = vrot.slane %v3409_v25, 2  ;;  %v3417_v34 = vrot.slane %v3416_v38, 2  ;;  %v3437_v35 = vmax.f32 %v3435_v19, %v3436_v26 }
 0x218   : > { %v3424_v39 = vrot.slane %v3423_v28, 2  ;;  %v3431_v62 = vrot.slane %v3430_v29, 2  ;;  %v3444_v48 = vmax.f32 %v3442_v55, %v3443_v30  ;;  %v3450_v47 = vrot.slane %v3449_v31, 4 }
 0x219   : > { %v3404_v49 = vmax.f32 %v3402_v21, %v3403_v33  ;;  %v3411_v53 = vmax.f32 %v3409_v25, %v3410_v24  ;;  %v3418_v54 = vmax.f32 %v3416_v38, %v3417_v34  ;;  %v3438_v61 = vrot.slane %v3437_v35, 2 }
 0x21a   : > { %v3425_v52 = vmax.f32 %v3423_v28, %v3424_v39  ;;  %v3432_v59 = vmax.f32 %v3430_v29, %v3431_v62  ;;  %v3445_v7 = vrot.slane %v3444_v48, 2  ;;  %v3451_v9 = vmax.f32 %v3449_v31, %v3450_v47 }
 0x21b   : > { %v3405_v15 = vrot.slane %v3404_v49, 1  ;;  %v3412_v17 = vrot.slane %v3411_v53, 1  ;;  %v3419_v20 = vrot.slane %v3418_v54, 1  ;;  %v3439_v22 = vmax.f32 %v3437_v35, %v3438_v61 }
 0x21c   : > { %v3426_v63 = vrot.slane %v3425_v52, 1  ;;  %v3433_v40 = vrot.slane %v3432_v59, 1  ;;  %v3446_v0 = vmax.f32 %v3444_v48, %v3445_v7  ;;  %v3452_v41 = vrot.slane %v3451_v9, 2 }
 0x21d   : > { %v6311_v1 = vmax.f32 %v3404_v49, %v3405_v15  ;;  %v6313_v5 = vmax.f32 %v3411_v53, %v3412_v17  ;;  %v6315_v6 = vmax.f32 %v3418_v54, %v3419_v20  ;;  %v3440_v44 = vrot.slane %v3439_v22, 1 }
 0x21e   : > { %v6317_v50 = vmax.f32 %v3425_v52, %v3426_v63  ;;  %v6319_v23 = vmax.f32 %v3432_v59, %v3433_v40  ;;  %v3447_v51 = vrot.slane %v3446_v0, 1  ;;  %v3453_v10 = vmax.f32 %v3451_v9, %v3452_v41 }
 0x21f   : > { %v6321_v12 = vmax.f32 %v3439_v22, %v3440_v44  ;;  %v3456_v13 = vsel %vm3399_vm14, %v6282_v36, -inf  ;;  %v3463_v16 = vsel %vm3399_vm14, %v3280_v3, -inf  ;;  %v3470_v46 = vsel %vm3399_vm14, %v6290_v14, -inf }
 0x220   : > { %v6328_v2 = vmax.f32 %v3446_v0, %v3447_v51  ;;  %v3454_v19 = vrot.slane %v3453_v10, 1  ;;  %v3457_v55 = vrot.slane %v3456_v13, 4  ;;  %v3464_v21 = vrot.slane %v3463_v16, 4 }
 0x221   : > { %v3471_v25 = vrot.slane %v3470_v46, 4  ;;  %v3477_v38 = vsel %vm3399_vm14, %v3281_v18, -inf  ;;  %v3484_v26 = vsel %vm3399_vm14, %v6285_v37, -inf  ;;  %v3491_v36 = vsel %vm3399_vm14, %v3297_v4, -inf }
 0x222   : > { %v6340_v3 = vmax.f32 %v3453_v10, %v3454_v19  ;;  %v3458_v28 = vmax.f32 %v3456_v13, %v3457_v55  ;;  %v3465_v29 = vmax.f32 %v3463_v16, %v3464_v21  ;;  %v3478_v30 = vrot.slane %v3477_v38, 4 }
 0x223   : > { %v3472_v31 = vmax.f32 %v3470_v46, %v3471_v25  ;;  %v3485_v33 = vrot.slane %v3484_v26, 4  ;;  %v3492_v24 = vrot.slane %v3491_v36, 4  ;;  %v3498_v14 = vsel %vm3399_vm14, %v6293_v42, -inf }
 0x224   : > { %v3459_v18 = vrot.slane %v3458_v28, 2  ;;  %v3466_v34 = vrot.slane %v3465_v29, 2  ;;  %v3479_v35 = vmax.f32 %v3477_v38, %v3478_v30  ;;  %v3499_v39 = vrot.slane %v3498_v14, 4 }
 0x225   : > { %v3473_v62 = vrot.slane %v3472_v31, 2  ;;  %v3486_v48 = vmax.f32 %v3484_v26, %v3485_v33  ;;  %v3493_v37 = vmax.f32 %v3491_v36, %v3492_v24  ;;  %v3505_v4 = vsel %vm3399_vm14, %v3298_v8, -inf }
 0x226   : > { %v3460_v47 = vmax.f32 %v3458_v28, %v3459_v18  ;;  %v3467_v49 = vmax.f32 %v3465_v29, %v3466_v34  ;;  %v3480_v53 = vrot.slane %v3479_v35, 2  ;;  %v3500_v54 = vmax.f32 %v3498_v14, %v3499_v39 }
 0x227   : > { %v3474_v61 = vmax.f32 %v3472_v31, %v3473_v62  ;;  %v3487_v52 = vrot.slane %v3486_v48, 2  ;;  %v3494_v59 = vrot.slane %v3493_v37, 2  ;;  %v3506_v7 = vrot.slane %v3505_v4, 4 }
 0x228   : > { %v3461_v9 = vrot.slane %v3460_v47, 1  ;;  %v3468_v15 = vrot.slane %v3467_v49, 1  ;;  %v3481_v17 = vmax.f32 %v3479_v35, %v3480_v53  ;;  %v3501_v20 = vrot.slane %v3500_v54, 2 }
 0x229   : > { %v3475_v22 = vrot.slane %v3474_v61, 1  ;;  %v3488_v63 = vmax.f32 %v3486_v48, %v3487_v52  ;;  %v3495_v40 = vmax.f32 %v3493_v37, %v3494_v59  ;;  %v3507_v0 = vmax.f32 %v3505_v4, %v3506_v7 }
 0x22a   : > { %v3462_v41 = vmax.f32 %v3460_v47, %v3461_v9  ;;  %v3469_v42 = vmax.f32 %v3467_v49, %v3468_v15  ;;  %v3482_v44 = vrot.slane %v3481_v17, 1  ;;  %v3502_v8 = vmax.f32 %v3500_v54, %v3501_v20 }
 0x22b   : > { %v3476_v51 = vmax.f32 %v3474_v61, %v3475_v22  ;;  %v3489_v10 = vrot.slane %v3488_v63, 1  ;;  %v3496_v13 = vrot.slane %v3495_v40, 1  ;;  %v3508_v16 = vrot.slane %v3507_v0, 2 }
 0x22c   : > { %v3483_v46 = vmax.f32 %v3481_v17, %v3482_v44  ;;  %v3503_v19 = vrot.slane %v3502_v8, 1  ;;  %v3624_v55 = vmax.f32 %v6311_v1, %v3462_v41  ;;  %v3625_v21 = vmax.f32 %v6313_v5, %v3469_v42 }
 0x22d   : > { %v3490_v25 = vmax.f32 %v3488_v63, %v3489_v10  ;;  %v3497_v38 = vmax.f32 %v3495_v40, %v3496_v13  ;;  %v3509_v26 = vmax.f32 %v3507_v0, %v3508_v16  ;;  %v3626_v36 = vmax.f32 %v6315_v6, %v3476_v51 }
 0x22e   : > { %v3504_v28 = vmax.f32 %v3502_v8, %v3503_v19  ;;  %v3627_v29 = vmax.f32 %v6317_v50, %v3483_v46  ;;  %v4559_v30 = vpack.c.bf16 %v3625_v21, %v3624_v55  ;;  %v3205_v31 = vrot.slane %v6271_v56, %v5226_v32 }
 0x22f   : > { %v3510_v33 = vrot.slane %v3509_v26, 1  ;;  %v3628_v24 = vmax.f32 %v6319_v23, %v3490_v25  ;;  %v3629_v14 = vmax.f32 %v6321_v12, %v3497_v38  ;;  %v3212_v1 = vrot.slane %v6273_v57, %v5226_v32 }
 0x230   : > { %v3630_v5 = vmax.f32 %v6328_v2, %v3504_v28  ;;  %v4560_v18 = vpack.c.bf16 %v3627_v29, %v3626_v36  ;;  %v3680_v6 = vrot.slane %v4559_v30, %v6264_v11  ;;  %v3219_v50 = vrot.slane %v6275_v58, %v5226_v32 }
 0x231   : > { %v3511_v34 = vmax.f32 %v3509_v26, %v3510_v33  ;;  %v4561_v35 = vpack.c.bf16 %v3629_v14, %v3628_v24  ;;  %v3226_v56 = vrot.slane %v6277_v60, %v5226_v32  ;;  %v6369_v2 = vsub.s32 %v3770_v45, %v5206_v27 }
 0x232   : > { %v3687_v23 = vrot.slane %v4560_v18, %v6264_v11  ;;  %v3227_v39 = vcombine.low %v3205_v31, %v3219_v50  ;;  %v3228_v12 = vcombine.high %v3205_v31, %v3219_v50  ;;  %v4555_v62 = vcombine.low %v3219_v50, %v3219_v50 }
 0x233   : > { %v3631_v57 = vmax.f32 %v6340_v3, %v3511_v34  ;;  %v3229_v48 = vcombine.low %v3212_v1, %v3226_v56  ;;  %v3230_v37 = vcombine.high %v3212_v1, %v3226_v56  ;;  %v4556_v60 = vcombine.high %v3219_v50, %v3219_v50 }
 0x234   : > { %v3688_v58 = vcombine.low %v3680_v6, %v3687_v23  ;;  %v3306_v4 = vrot.slane %v3227_v39, %v5226_v32  ;;  %v3313_v47 = vrot.slane %v4555_v62, %v5226_v32  ;;  %v3704_v53 = vrot.slane %v4561_v35, %v6264_v11 }
 0x235   : > { %v4562_v49 = vpack.c.bf16 %v3631_v57, %v3630_v5  ;;  %v3323_v54 = vrot.slane %v3228_v12, %v5226_v32  ;;  %v4557_v61 = vcombine.low %v3226_v56, %v3226_v56  ;;  %v6377_v27 = vrot.slane %v3229_v48, %v5226_v32 }
 0x236   : > { %v3695_v3 = vrot.slane %v3688_v58, %v6264_v11  ;;  %v3314_v52 = vcombine.high %v3306_v4, %v3306_v4  ;;  %v3315_v59 = vcombine.high %v3313_v47, %v3313_v47  ;;  %v6382_v7 = vrot.slane %v4556_v60, %v5226_v32 }
 0x237   : > { %v3711_v43 = vrot.slane %v4562_v49, %v6264_v11  ;;  %v6385_v9 = vrot.slane %v4557_v61, %v5226_v32  ;;  %v3331_v17 = vcombine.high %v3323_v54, %v3323_v54  ;;  %v3512_v20 = vsel %vm3399_vm14, %v3306_v4, -inf }
 0x238   : > { %v3774_v45 = vrot.slane %v3695_v3, %v6369_v2  ;;  %v3519_v22 = vsel %vm3399_vm14, %v3314_v52, -inf  ;;  %v3348_v0 = vcombine.high %v6377_v27, %v6377_v27  ;;  %v4558_v41 = vcombine.high %v3226_v56, %v3226_v56 }
 0x239   : > { %v3712_v15 = vcombine.low %v3704_v53, %v3711_v43  ;;  %v3513_v44 = vrot.slane %v3512_v20, 4  ;;  %v3520_v8 = vrot.slane %v3519_v22, 4  ;;  %v3526_v51 = vsel %vm3399_vm14, %v3313_v47, -inf }
 0x23a   : > { %v3775_v63 = vcombine.high %v3774_v45, %v3774_v45  ;;  %v3782_v40 = vrot.slane %v3774_v45, %v6369_v2  ;;  %v3332_v13 = vcombine.high %v6382_v7, %v6382_v7  ;;  %v3349_v16 = vcombine.high %v6385_v9, %v6385_v9 }
 0x23b   : > { %v3719_v42 = vrot.slane %v3712_v15, %v6264_v11  ;;  %v6400_v46 = vrot.slane %v3230_v37, %v5226_v32  ;;  %v3514_v55 = vmax.f32 %v3512_v20, %v3513_v44  ;;  %v3521_v21 = vmax.f32 %v3519_v22, %v3520_v8 }
 0x23c   : > { %v3789_v10 = vrot.slane %v3775_v63, %v6369_v2  ;;  %v3527_v25 = vrot.slane %v3526_v51, 4  ;;  %v3856_v38 = vunpack.c.l.b16 %v3782_v40  ;;  %v6404_v26 = vrot.slane %v4558_v41, %v5226_v32 }
 0x23d   : > { %v3796_v19 = vrot.slane %v3719_v42, %v6369_v2  ;;  %v3533_v36 = vsel %vm3399_vm14, %v3315_v59, -inf  ;;  %v3540_v28 = vsel %vm3399_vm14, %v3323_v54, -inf  ;;  %v3857_v31 = vunpack.c.h.b16 %v3782_v40 }
 0x23e   : > { %v3515_v33 = vrot.slane %v3514_v55, 2  ;;  %v3522_v24 = vrot.slane %v3521_v21, 2  ;;  %v3528_v14 = vmax.f32 %v3526_v51, %v3527_v25  ;;  %v3534_v1 = vrot.slane %v3533_v36, 4 }
 0x23f   : > { %v3797_v29 = vcombine.high %v3796_v19, %v3796_v19  ;;  %v3804_v30 = vrot.slane %v3796_v19, %v6369_v2  ;;  %v3541_v5 = vrot.slane %v3540_v28, 4  ;;  %v3858_v6 = vunpack.c.l.b16 %v3789_v10 }
 0x240   : > { %v3516_v32 = vmax.f32 %v3514_v55, %v3515_v33  ;;  %v3529_v35 = vrot.slane %v3528_v14, 2  ;;  %v3535_v56 = vmax.f32 %v3533_v36, %v3534_v1  ;;  %v3859_v48 = vunpack.c.h.b16 %v3789_v10 }
 0x241   : > { %v3811_v18 = vrot.slane %v3797_v29, %v6369_v2  ;;  %v3860_v50 = vunpack.c.l.b16 %v3804_v30  ;;  %v3861_v34 = vunpack.c.h.b16 %v3804_v30  ;;  %v3542_v23 = vmax.f32 %v3540_v28, %v3541_v5 }
 0x242   : > { %v3523_v37 = vmax.f32 %v3521_v21, %v3522_v24  ;;  %v3536_v58 = vrot.slane %v3535_v56, 2  ;;  %v3547_v4 = vsel %vm3399_vm14, %v3331_v17, -inf  ;;  %v3365_v61 = vcombine.high %v6400_v46, %v6400_v46 }
 0x243   : > { %v3862_v39 = vunpack.c.l.b16 %v3811_v18  ;;  %v3863_v12 = vunpack.c.h.b16 %v3811_v18  ;;  %v3872_v62 = vrot.slane %v3860_v50, 7  ;;  %v3875_v57 = vrot.slane %v3861_v34, 7 }
 0x244   : > { %v3366_v3 = vcombine.high %v6404_v26, %v6404_v26  ;;  %v3517_v52 = vrot.slane %v3516_v32, 1  ;;  %v3530_v59 = vmax.f32 %v3528_v14, %v3529_v35  ;;  %v3543_v15 = vrot.slane %v3542_v23, 2 }
 0x245   : > { %v3874_v47 = vsel %vm3873_vm15, %v3872_v62, %v3856_v38  ;;  %v3876_v60 = vsel %vm3873_vm15, %v3875_v57, %v3857_v31  ;;  %v3877_v49 = vrot.slane %v3862_v39, 7  ;;  %v3879_v53 = vrot.slane %v3863_v12, 7 }
 0x246   : > { %v3889_v54 = vpack.c.b16 %v3876_v60, %v3874_v47  ;;  %v3524_v20 = vrot.slane %v3523_v37, 1  ;;  %v3537_v22 = vmax.f32 %v3535_v56, %v3536_v58  ;;  %v3548_v63 = vrot.slane %v3547_v4, 4 }
 0x247   : > { %v3878_v43 = vsel %vm3873_vm15, %v3877_v49, %v3858_v6  ;;  %v3880_v45 = vsel %vm3873_vm15, %v3879_v53, %v3859_v48  ;;  %v3544_v41 = vmax.f32 %v3542_v23, %v3543_v15  ;;  %v3554_v42 = vsel %vm3399_vm14, %v6382_v7, -inf }
 0x248   : > { %v3890_v17 = vpack.c.b16 %v3880_v45, %v3878_v43  ;;  %v3899_v40 = vrot.slane %v3889_v54, %v6264_v11  ;;  %v3561_v44 = vsel %vm3399_vm14, %v3332_v13, -inf  ;;  %v3549_v51 = vmax.f32 %v3547_v4, %v3548_v63 }
 0x249   : > { %v3555_v10 = vrot.slane %v3554_v42, 4  ;;  %v3562_v19 = vrot.slane %v3561_v44, 4  ;;  %v6430_v55 = vmax.f32 %v3516_v32, %v3517_v52  ;;  %v3531_v21 = vrot.slane %v3530_v59, 1 }
 0x24a   : > { %v3906_v8 = vrot.slane %v3890_v17, %v6264_v11  ;;  %v3568_v25 = vsel %vm3399_vm14, %v6377_v27, -inf  ;;  %v3575_v7 = vsel %vm3399_vm14, %v3348_v0, -inf  ;;  %v3550_v38 = vrot.slane %v3549_v51, 2 }
 0x24b   : > { %v3556_v36 = vmax.f32 %v3554_v42, %v3555_v10  ;;  %v3563_v28 = vmax.f32 %v3561_v44, %v3562_v19  ;;  %v3525_v29 = vmax.f32 %v3523_v37, %v3524_v20  ;;  %v3569_v30 = vrot.slane %v3568_v25, 4 }
 0x24c   : > { %v3907_v13 = vcombine.low %v3899_v40, %v3906_v8  ;;  %v3576_v31 = vrot.slane %v3575_v7, 4  ;;  %v3582_v33 = vsel %vm3399_vm14, %v6385_v9, -inf  ;;  %v3538_v24 = vrot.slane %v3537_v22, 1 }
 0x24d   : > { %v3545_v14 = vrot.slane %v3544_v41, 1  ;;  %v3551_v1 = vmax.f32 %v3549_v51, %v3550_v38  ;;  %v3583_v5 = vrot.slane %v3582_v33, 4  ;;  %v3570_v18 = vmax.f32 %v3568_v25, %v3569_v30 }
 0x24e   : > { %4567 = vst.sshfl [vmem:[%s6428_s16] sm:$0x55 pattern:$0x73625140] %v3907_v13  ;;  %v3577_v6 = vmax.f32 %v3575_v7, %v3576_v31  ;;  %v3589_v27 = vsel %vm3399_vm14, %v3349_v16, -inf  ;;  %v3596_v0 = vsel %vm3399_vm14, %v6400_v46, -inf  ;;  %v3532_v50 = vmax.f32 %v3530_v59, %v3531_v21 }
 0x24f   : > { %v3557_v34 = vrot.slane %v3556_v36, 2  ;;  %v3564_v32 = vrot.slane %v3563_v28, 2  ;;  %v3584_v35 = vmax.f32 %v3582_v33, %v3583_v5  ;;  %v3571_v56 = vrot.slane %v3570_v18, 2 }
 0x250   : > { %v3578_v23 = vrot.slane %v3577_v6, 2  ;;  %v3590_v39 = vrot.slane %v3589_v27, 4  ;;  %v3597_v12 = vrot.slane %v3596_v0, 4  ;;  %v3539_v62 = vmax.f32 %v3537_v22, %v3538_v24 }
 0x251   : > { %v6447_v57 = vmax.f32 %v3544_v41, %v3545_v14  ;;  %v3552_v48 = vrot.slane %v3551_v1, 1  ;;  %v3585_v37 = vrot.slane %v3584_v35, 2  ;;  %v3572_v58 = vmax.f32 %v3570_v18, %v3571_v56 }
 0x252   : > { %v3579_v9 = vmax.f32 %v3577_v6, %v3578_v23  ;;  %v3591_v4 = vmax.f32 %v3589_v27, %v3590_v39  ;;  %v3598_v16 = vmax.f32 %v3596_v0, %v3597_v12  ;;  %v3558_v47 = vmax.f32 %v3556_v36, %v3557_v34 }
 0x253   : > { %v3565_v60 = vmax.f32 %v3563_v28, %v3564_v32  ;;  %v3586_v46 = vmax.f32 %v3584_v35, %v3585_v37  ;;  %v3603_v49 = vsel %vm3399_vm14, %v3365_v61, -inf  ;;  %v3573_v53 = vrot.slane %v3572_v58, 1 }
 0x254   : > { %v3580_v54 = vrot.slane %v3579_v9, 1  ;;  %v3592_v52 = vrot.slane %v3591_v4, 2  ;;  %v3599_v43 = vrot.slane %v3598_v16, 2  ;;  %v3604_v59 = vrot.slane %v3603_v49, 4 }
 0x255   : > { %v3587_v45 = vrot.slane %v3586_v46, 1  ;;  %v3610_v15 = vsel %vm3399_vm14, %v6404_v26, -inf  ;;  %v3617_v17 = vsel %vm3399_vm14, %v3366_v3, -inf  ;;  %v3574_v20 = vmax.f32 %v3572_v58, %v3573_v53 }
 0x256   : > { %v3581_v22 = vmax.f32 %v3579_v9, %v3580_v54  ;;  %v3593_v63 = vmax.f32 %v3591_v4, %v3592_v52  ;;  %v3600_v40 = vmax.f32 %v3598_v16, %v3599_v43  ;;  %v3605_v61 = vmax.f32 %v3603_v49, %v3604_v59 }
 0x257   : > { %v3588_v41 = vmax.f32 %v3586_v46, %v3587_v45  ;;  %v3611_v42 = vrot.slane %v3610_v15, 4  ;;  %v3618_v44 = vrot.slane %v3617_v17, 4  ;;  %v3632_v10 = vmax.f32 %v6430_v55, %v3574_v20 }
 0x258   : > { %v3594_v8 = vrot.slane %v3593_v63, 1  ;;  %v3601_v51 = vrot.slane %v3600_v40, 1  ;;  %v3633_v19 = vmax.f32 %v3525_v29, %v3581_v22  ;;  %v3606_v21 = vrot.slane %v3605_v61, 2 }
 0x259   : > { %v3612_v25 = vmax.f32 %v3610_v15, %v3611_v42  ;;  %v3619_v7 = vmax.f32 %v3617_v17, %v3618_v44  ;;  %v3634_v13 = vmax.f32 %v3532_v50, %v3588_v41  ;;  %v3559_v26 = vrot.slane %v3558_v47, 1 }
 0x25a   : > { %v3595_v38 = vmax.f32 %v3593_v63, %v3594_v8  ;;  %v3602_v3 = vmax.f32 %v3600_v40, %v3601_v51  ;;  %v4563_v36 = vpack.c.bf16 %v3633_v19, %v3632_v10  ;;  %v3566_v28 = vrot.slane %v3565_v60, 1 }
 0x25b   : > { %v3607_v30 = vmax.f32 %v3605_v61, %v3606_v21  ;;  %v3613_v31 = vrot.slane %v3612_v25, 2  ;;  %v3620_v33 = vrot.slane %v3619_v7, 2  ;;  %v3553_v5 = vmax.f32 %v3551_v1, %v3552_v48 }
 0x25c   : > { %v3635_v24 = vmax.f32 %v3539_v62, %v3595_v38  ;;  %v3636_v14 = vmax.f32 %v6447_v57, %v3602_v3  ;;  %v3560_v29 = vmax.f32 %v3558_v47, %v3559_v26  ;;  %v3728_v0 = vrot.slane %v4563_v36, %v6264_v11 }
 0x25d   : > { %v3608_v18 = vrot.slane %v3607_v30, 1  ;;  %v3614_v6 = vmax.f32 %v3612_v25, %v3613_v31  ;;  %v3621_v55 = vmax.f32 %v3619_v7, %v3620_v33  ;;  %v3567_v50 = vmax.f32 %v3565_v60, %v3566_v28 }
 0x25e   : > { %v4564_v27 = vpack.c.bf16 %v3635_v24, %v3634_v13 }
 0x25f   : > { %v3609_v34 = vmax.f32 %v3607_v30, %v3608_v18  ;;  %v3615_v32 = vrot.slane %v3614_v6, 1  ;;  %v3622_v35 = vrot.slane %v3621_v55, 1 }
 0x260   : > { %v3735_v56 = vrot.slane %v4564_v27, %v6264_v11 }
 0x261   : > { %v3616_v23 = vmax.f32 %v3614_v6, %v3615_v32  ;;  %v3623_v39 = vmax.f32 %v3621_v55, %v3622_v35  ;;  %v3637_v12 = vmax.f32 %v3553_v5, %v3609_v34 }
 0x262   : > { %v3736_v62 = vcombine.low %v3728_v0, %v3735_v56 }
 0x263   : > { %v3638_v37 = vmax.f32 %v3560_v29, %v3616_v23  ;;  %v3639_v57 = vmax.f32 %v3567_v50, %v3623_v39  ;;  %v4565_v1 = vpack.c.bf16 %v3637_v12, %v3636_v14 }
 0x264   : > { %v3743_v48 = vrot.slane %v3736_v62, %v6264_v11 }
 0x265   : > { %v4566_v58 = vpack.c.bf16 %v3639_v57, %v3638_v37  ;;  %v3752_v9 = vrot.slane %v4565_v1, %v6264_v11 }
 0x266   : > { %v3818_v16 = vrot.slane %v3743_v48, %v6369_v2 }
 0x267   : > { %v3759_v4 = vrot.slane %v4566_v58, %v6264_v11 }
 0x268   : > { %v3819_v46 = vcombine.high %v3818_v16, %v3818_v16  ;;  %v3826_v53 = vrot.slane %v3818_v16, %v6369_v2 }
 0x269   : > { %v3760_v47 = vcombine.low %v3752_v9, %v3759_v4 }
 0x26a   : > { %v3833_v43 = vrot.slane %v3819_v46, %v6369_v2  ;;  %v3864_v17 = vunpack.c.l.b16 %v3826_v53  ;;  %v3865_v20 = vunpack.c.h.b16 %v3826_v53 }
 0x26b   : > { %v3767_v60 = vrot.slane %v3760_v47, %v6264_v11 }
 0x26c   : > { %v3866_v61 = vunpack.c.l.b16 %v3833_v43  ;;  %v3867_v42 = vunpack.c.h.b16 %v3833_v43 }
 0x26d   : > { %v3840_v49 = vrot.slane %v3767_v60, %v6369_v2 }
 0x26f   : > { %v3841_v54 = vcombine.high %v3840_v49, %v3840_v49  ;;  %v3848_v52 = vrot.slane %v3840_v49, %v6369_v2 }
 0x271   : > { %v3855_v45 = vrot.slane %v3841_v54, %v6369_v2  ;;  %v3868_v59 = vunpack.c.l.b16 %v3848_v52  ;;  %v3869_v15 = vunpack.c.h.b16 %v3848_v52 }
 0x273   : > { %v3870_v22 = vunpack.c.l.b16 %v3855_v45  ;;  %v3871_v63 = vunpack.c.h.b16 %v3855_v45  ;;  %v3881_v40 = vrot.slane %v3868_v59, 7  ;;  %v3883_v41 = vrot.slane %v3869_v15, 7 }
 0x275   : > { %v3882_v44 = vsel %vm3873_vm15, %v3881_v40, %v3864_v17  ;;  %v3884_v8 = vsel %vm3873_vm15, %v3883_v41, %v3865_v20  ;;  %v3885_v51 = vrot.slane %v3870_v22, 7  ;;  %v3887_v10 = vrot.slane %v3871_v63, 7 }
 0x276   : > { %v3891_v19 = vpack.c.b16 %v3884_v8, %v3882_v44 }
 0x277   : > { %v3886_v2 = vsel %vm3873_vm15, %v3885_v51, %v3866_v61  ;;  %v3888_v21 = vsel %vm3873_vm15, %v3887_v10, %v3867_v42 }
 0x278   : > { %v3892_v25 = vpack.c.b16 %v3888_v21, %v3886_v2  ;;  %v3921_v7 = vrot.slane %v3891_v19, %v6264_v11 }
 0x27a   : > { %v3928_v13 = vrot.slane %v3892_v25, %v6264_v11 }
 0x27c   : > { %v3929_v26 = vcombine.low %v3921_v7, %v3928_v13 }
 0x27e   : > { %4568 = vst.sshfl [vmem:[%s6428_s16 + $0x4] sm:$0x55 pattern:$0x73625140] %v3929_v26 }
 0x27f PF: > { %s14_s15 = sadd.s32 1, %s5092_s15  }
 0x280   : > { %p11_p4 = scmp.ge.s32.totalorder %s14_s15, 4  }
 0x282   :  { %13 = sbr.rel (!%p11_p4) target bundleno = 1 (0x1), region = 74 }

// kernel: simplenet2d_forward.4
= control target key start
LH: loop header
LB: loop body
LE: loop exit
PB: predicated region body
PF: predicated region fallthrough
CT: control target
= control target key end

     0   :  { %s7069_s15 = smov 0   ;;  %s8757_s0 = inlined_call_operand.vmem [shape: bf16[2,18,18,128], index: 0, kind: input, shape index: {}]   ;;  %s8758_s1 = inlined_call_operand.vmem [shape: bf16[9,128,128], index: 1, kind: input, shape index: {}]   ;;  %s8759_s2 = inlined_call_operand.vmem [shape: f32[1,128], index: 2, kind: input, shape index: {}]   ;;  %s8760_s3 = inlined_call_operand.vmem [shape: f32[1,128], index: 3, kind: input, shape index: {}]   ;;  %s8761_s4 = inlined_call_operand.vmem [shape: bf16[2,8,8,128], index: 4, kind: output, shape index: {}]  }
   0x1 LB: > { %s5581_s16 = sadd.s32 4294967295, %s7041_s15   ;;  %p5585_p0 = scmp.ge.s32.totalorder %s7041_s15, 1  ;;  %s7041_s15 = sphi %s7069_s15, %s14_s15  }
   0x2   : > { %p162_p1 = scmp.lt.s32.totalorder %s7041_s15, 3 }
   0x4   : > { %p163_p2 = pnand %p5585_p0, %p162_p1 }
   0x6   : > { %166 = sbr.rel (%p163_p2) target bundleno = 869 (0x365), region = 36 }
   0xd   : > { %v6924_v0 = vld [vmem:[%s8758_s1 + $0x40] sm:$0xff]   ;;  %p188_p3 = scmp.lt.s32.totalorder %s5581_s16, 1  ;;  %v6926_v2 = vld [vmem:[%s8758_s1 + $0x48] sm:$0xff]   ;;  %v6928_v4 = vld [vmem:[%s8758_s1 + $0x50] sm:$0xff]   ;;  %vm269_vm0 = vsmask.f32 3328 }
   0xe   : > { %v6925_v1 = vld [vmem:[%s8758_s1 + $0x100] sm:$0xff]   ;;  %6210 = vmatprep.subr.bf16.mxu1 %v6924_v0  ;;  %v6927_v3 = vld [vmem:[%s8758_s1 + $0x108] sm:$0xff]   ;;  %v6929_v5 = vld [vmem:[%s8758_s1 + $0x110] sm:$0xff]   ;;  %vm270_vm1 = vsmask.f32 7440  ;;  %vm1267_vm3 = vcmask 1042432  }
   0xf   : > { %6402 = vmatprep.subr.bf16.mxu0 %v6925_v1  ;;  %6211 = vmatpush3.bf16.msra.mxu1 %v6924_v0  ;;  %s8810_s16 = smov (!%p188_p3, %s5581_s16), 1  ;;  %v6930_v6 = vld [vmem:[%s8758_s1 + $0x58] sm:$0xff]   ;;  %v6932_v8 = vld [vmem:[%s8758_s1 + $0x60] sm:$0xff]   ;;  %v6934_v10 = vld [vmem:[%s8758_s1 + $0x68] sm:$0xff]   ;;  %vm1268_vm4 = vcmask 1046532   ;;  %vm4158_vm6 = vcmask 1041408  }
  0x10   : > { %6403 = vmatpush3.bf16.msra.mxu0 %v6925_v1  ;;  %6212 = vmatprep.subr.bf16.mxu1 %v6926_v2  ;;  %v6931_v7 = vld [vmem:[%s8758_s1 + $0x118] sm:$0xff]   ;;  %s6914_s7 = smul.u32 216, %s8810_s16  ;;  %v6933_v9 = vld [vmem:[%s8758_s1 + $0x120] sm:$0xff]   ;;  %v6935_v11 = vld [vmem:[%s8758_s1 + $0x128] sm:$0xff]   ;;  %vm5439_vm7 = vcmask 1041409   ;;  %vm5441_vm8 = vcmask 1042434  }
  0x11   : > { %6404 = vmatprep.subr.bf16.mxu0 %v6927_v3  ;;  %v6936_v17 = vld [vmem:[%s8758_s1 + $0x70] sm:$0xff]   ;;  %v6938_v36 = vld [vmem:[%s8758_s1 + $0x78] sm:$0xff]   ;;  %vm7158_vm2 = vmor %vm269_vm0, %vm270_vm1  ;;  %vm5443_vm9 = vcmask 1043459   ;;  %vm5445_vm10 = vcmask 1044484   ;;  %vm5447_vm11 = vcmask 1045509   ;;  %vm5449_vm12 = vcmask 1046534  }
  0x12   : > { %s7113_s14 = scalar_lea.vmem %s8757_s0, %s6914_s7  ;;  %v6937_v31 = vld [vmem:[%s8758_s1 + $0x130] sm:$0xff]   ;;  %v6939_v53 = vld [vmem:[%s8758_s1 + $0x138] sm:$0xff]   ;;  %v6940_v1 = vld [vmem:[%s8758_s1] sm:$0xff]   ;;  %vm5451_vm13 = vcmask 1047559   ;;  %s5929_s22 = sshll.u32 %s8810_s16, 5 }
  0x13   : > { %6213 = vmatpush3.bf16.msra.mxu1 %v6926_v2  ;;  %v7122_v12 = vld [vmem:[%s7113_s14] sm:$0xf]  ;;  %v7125_v13 = vld [vmem:[%s7113_s14 + $0x4] sm:$0xf]  ;;  %v201_v14 = vld [vmem:[%s7113_s14 + $0x8] sm:$0x1]  ;;  %s8211_s24 = scalar_lea.vmem %s8761_s4, %s5929_s22 }
  0x14   : > { %6405 = vmatpush3.bf16.msra.mxu0 %v6927_v3  ;;  %6214 = vmatprep.subr.bf16.mxu1 %v6928_v4  ;;  %v273_v15 = vshrl.u32 %v7122_v12, 16  ;;  %v276_v16 = vshll.u32 %v7122_v12, 16  ;;  %v282_v18 = vshll.u32 %v7125_v13, 16  ;;  %v286_v19 = vshrl.u32 %v7125_v13, 16  ;;  %v7136_v21 = vld [vmem:[%s7113_s14 + $0xc] sm:$0xf]  ;;  %vm7365_vm5 = vmor %vm1267_vm3, %vm1268_vm4 }
  0x15   : > { %6406 = vmatprep.subr.bf16.mxu0 %v6929_v5  ;;  %v292_v20 = vshll.u32 %v201_v14, 16  ;;  %v7139_v24 = vld [vmem:[%s7113_s14 + $0x10] sm:$0xf]  ;;  %v7142_v25 = vld [vmem:[%s7113_s14 + $0x14] sm:$0x1]  ;;  %v297_v30 = vshrl.u32 %v7136_v21, 16 }
  0x16   : > { %v275_v22 = vrot.slane %v273_v15, 4  ;;  %v278_v23 = vrot.slane %v276_v16, 5  ;;  %v284_v27 = vrot.slane %v282_v18, 5  ;;  %v288_v28 = vrot.slane %v286_v19, 4  ;;  %v7164_v41 = vld [vmem:[%s7113_s14 + $0x18] sm:$0xf] }
  0x17   : > { %6215 = vmatpush3.bf16.msra.mxu1 %v6928_v4  ;;  %v294_v29 = vrot.slane %v292_v20, 5  ;;  %v300_v33 = vshll.u32 %v7136_v21, 16  ;;  %v306_v34 = vshll.u32 %v7139_v24, 16  ;;  %v310_v35 = vshrl.u32 %v7139_v24, 16  ;;  %v7167_v42 = vld [vmem:[%s7113_s14 + $0x1c] sm:$0xf] }
  0x18   : > { %6407 = vmatpush3.bf16.msra.mxu0 %v6929_v5  ;;  %6216 = vmatprep.subr.bf16.mxu1 %v6930_v6  ;;  %v279_v32 = vor.u32 %v278_v23, %v275_v22  ;;  %v289_v38 = vor.u32 %v288_v28, %v284_v27  ;;  %v299_v39 = vrot.slane %v297_v30, 4  ;;  %v316_v40 = vshll.u32 %v7142_v25, 16  ;;  %v7174_v48 = vld [vmem:[%s7113_s14 + $0x20] sm:$0x1]  ;;  %v7191_v3 = vld [vmem:[%s7113_s14 + $0x24] sm:$0xf] }
  0x19   : > { %6408 = vmatprep.subr.bf16.mxu0 %v6931_v7  ;;  %v7171_v43 = vcombine.low %v7136_v21, %v7139_v24  ;;  %v302_v45 = vrot.slane %v300_v33, 5  ;;  %v308_v46 = vrot.slane %v306_v34, 5  ;;  %v312_v47 = vrot.slane %v310_v35, 4  ;;  %v7206_v14 = vld [vmem:[%s7113_s14 + $0x2c] sm:$0x1]  ;;  %v7030_v37 = vld [vmem:[%s8758_s1 + $0x138] sm:$0xff]  }
  0x1a   : > { %v280_v44 = vrot.slane %v279_v32, 4  ;;  %v290_v49 = vrot.slane %v289_v38, 4  ;;  %v318_v50 = vrot.slane %v316_v40, 5  ;;  %v321_v51 = vshrl.u32 %v7164_v41, 16  ;;  %v7211_v22 = vld [vmem:[%s7113_s14 + $0x30] sm:$0xf] }
  0x1b   : > { %6217 = vmatpush3.bf16.msra.mxu1 %v6930_v6  ;;  %v324_v52 = vshll.u32 %v7164_v41, 16  ;;  %v303_v55 = vor.u32 %v302_v45, %v299_v39  ;;  %v313_v56 = vor.u32 %v312_v47, %v308_v46  ;;  %v330_v57 = vshll.u32 %v7167_v42, 16  ;;  %v7216_v30 = vld [vmem:[%s7113_s14 + $0x34] sm:$0xf]  ;;  %v6943_v34 = vld [vmem:[%s8758_s1 + $0x8] sm:$0xff]  }
  0x1c   : > { %6409 = vmatpush3.bf16.msra.mxu0 %v6931_v7  ;;  %6218 = vmatprep.subr.bf16.mxu1 %v6932_v8  ;;  %v285_v54 = vsel %vm7158_vm2, %v280_v44, %v284_v27  ;;  %v295_v58 = vsel %vm7158_vm2, %v290_v49, %v294_v29  ;;  %v323_v59 = vrot.slane %v321_v51, 4  ;;  %v334_v61 = vshrl.u32 %v7167_v42, 16  ;;  %v7225_v35 = vld [vmem:[%s7113_s14 + $0x38] sm:$0x1] }
  0x1d   : > { %6410 = vmatprep.subr.bf16.mxu0 %v6933_v9  ;;  %v326_v60 = vrot.slane %v324_v52, 5  ;;  %v5605_v62 = vcombine.low %v285_v54, %v295_v58  ;;  %v304_v63 = vrot.slane %v303_v55, 4  ;;  %v314_v0 = vrot.slane %v313_v56, 4  ;;  %v7240_v58 = vld [vmem:[%s7113_s14 + $0x3c] sm:$0xf] }
  0x1e   : > { %v332_v2 = vrot.slane %v330_v57, 5  ;;  %v336_v5 = vrot.slane %v334_v61, 4  ;;  %v340_v6 = vshll.u32 %v7174_v48, 16  ;;  %v1289_v7 = vrot.slane %v7174_v48, 5 }
  0x1f   : > { %6219 = vmatpush3.bf16.msra.mxu1 %v6932_v8  ;;  %v327_v4 = vor.u32 %v326_v60, %v323_v59  ;;  %v6941_v8 = vld [vmem:[%s8758_s1 + $0x140] sm:$0xff]   ;;  %6226 = vmatprep.mubr.bf16.mxu1 %v5605_v62  ;;  %v345_v15 = vshrl.u32 %v7191_v3, 16  ;;  %v348_v16 = vshll.u32 %v7191_v3, 16  ;;  %v364_v33 = vshll.u32 %v7206_v14, 16  ;;  %v6946_v59 = vld [vmem:[%s8758_s1 + $0x10] sm:$0xff]  }
  0x20   : > { %6411 = vmatpush3.bf16.msra.mxu0 %v6933_v9  ;;  %6220 = vmatprep.subr.bf16.mxu1 %v6934_v10  ;;  %v7199_v9 = vld [vmem:[%s7113_s14 + $0x28] sm:$0xf]  ;;  %v337_v19 = vor.u32 %v336_v5, %v332_v2  ;;  %v342_v20 = vrot.slane %v340_v6, 5  ;;  %v372_v44 = vshll.u32 %v7211_v22, 16  ;;  %v382_v56 = vshrl.u32 %v7216_v30, 16 }
  0x21   : > { %6412 = vmatprep.subr.bf16.mxu0 %v6935_v11  ;;  %v328_v18 = vrot.slane %v327_v4, 4  ;;  %v347_v23 = vrot.slane %v345_v15, 4  ;;  %v350_v27 = vrot.slane %v348_v16, 5  ;;  %v354_v28 = vshll.u32 %v7199_v9, 16  ;;  %v6944_v16 = vld [vmem:[%s8758_s1 + $0x150] sm:$0xff]  }
  0x22   : > { %v358_v29 = vshrl.u32 %v7199_v9, 16  ;;  %v338_v32 = vrot.slane %v337_v19, 4  ;;  %v366_v47 = vrot.slane %v364_v33, 5  ;;  %v374_v54 = vrot.slane %v372_v44, 5  ;;  %v7280_v33 = vld [vmem:[%s7113_s14 + $0x50] sm:$0x1] }
  0x23   : > { %6221 = vmatpush3.bf16.msra.mxu1 %v6934_v10  ;;  %v309_v10 = vsel %vm7158_vm2, %v304_v63, %v308_v46  ;;  %v351_v38 = vor.u32 %v350_v27, %v347_v23  ;;  %v356_v39 = vrot.slane %v354_v28, 5  ;;  %v6942_v46 = vld [vmem:[%s8758_s1 + $0x148] sm:$0xff]   ;;  %v388_v57 = vshll.u32 %v7225_v35, 16 }
  0x24   : > { %6413 = vmatpush3.bf16.msra.mxu0 %v6935_v11  ;;  %6222 = vmatprep.subr.bf16.mxu1 %v6936_v17  ;;  %v319_v11 = vsel %vm7158_vm2, %v314_v0, %v318_v50  ;;  %v360_v40 = vrot.slane %v358_v29, 4  ;;  %v343_v45 = vsel %vm7158_vm2, %v338_v32, %v342_v20  ;;  %v378_v50 = vshll.u32 %v7216_v30, 16  ;;  %v7254_v0 = vld [vmem:[%s7113_s14 + $0x40] sm:$0xf]  ;;  %v7271_v27 = vld [vmem:[%s7113_s14 + $0x48] sm:$0xf] }
  0x25   : > { %6414 = vmatprep.subr.bf16.mxu0 %v6937_v31  ;;  %v352_v52 = vrot.slane %v351_v38, 4  ;;  %v7247_v60 = vcombine.low %v7164_v41, %v7167_v42  ;;  %v384_v4 = vrot.slane %v382_v56, 4  ;;  %v390_v5 = vrot.slane %v388_v57, 5  ;;  %v7274_v28 = vld [vmem:[%s7113_s14 + $0x4c] sm:$0xf] }
  0x26   : > { %v380_v55 = vrot.slane %v378_v50, 5  ;;  %v396_v6 = vshll.u32 %v7240_v58, 16  ;;  %v426_v44 = vshll.u32 %v7274_v28, 16  ;;  %v430_v50 = vshrl.u32 %v7274_v28, 16 }
  0x27   : > { %6223 = vmatpush3.bf16.msra.mxu1 %v6936_v17  ;;  %v5606_v17 = vcombine.low %v309_v10, %v319_v11  ;;  %v357_v61 = vsel %vm7158_vm2, %v352_v52, %v356_v39  ;;  %v402_v10 = vshll.u32 %v7254_v0, 16 }
  0x28   : > { %6415 = vmatpush3.bf16.msra.mxu0 %v6937_v31  ;;  %6224 = vmatprep.subr.bf16.mxu1 %v6938_v36  ;;  %v333_v31 = vsel %vm7158_vm2, %v328_v18, %v332_v2  ;;  %v393_v2 = vshrl.u32 %v7240_v58, 16  ;;  %v385_v19 = vor.u32 %v384_v4, %v380_v55  ;;  %v398_v20 = vrot.slane %v396_v6, 5  ;;  %v7311_v6 = vld [vmem:[%s7113_s14 + $0x58] sm:$0xf] }
  0x29   : > { %6416 = vmatprep.subr.bf16.mxu0 %v6939_v53  ;;  %6418 = vmatprep.mubr.bf16.mxu0 %v5606_v17  ;;  %v7235_v51 = vcombine.low %v333_v31, %v343_v45  ;;  %v404_v23 = vrot.slane %v402_v10, 5  ;;  %v6945_v45 = vld [vmem:[%s8758_s1 + $0x158] sm:$0xff]  }
  0x2a   : > { %v386_v38 = vrot.slane %v385_v19, 4  ;;  %v7314_v10 = vld [vmem:[%s7113_s14 + $0x5c] sm:$0x1] }
  0x2b   : > { %6225 = vmatpush3.bf16.msra.mxu1 %v6938_v36  ;;  %v369_v36 = vshrl.u32 %v7211_v22, 16 }
  0x2c   : > { %6417 = vmatpush3.bf16.msra.mxu0 %v6939_v53  ;;  %6258 = vmatprep.subr.bf16.mxu1 %v6940_v1  ;;  %v361_v53 = vor.u32 %v360_v40, %v356_v39  ;;  %v420_v40 = vshll.u32 %v7271_v27, 16  ;;  %v391_v52 = vsel %vm7158_vm2, %v386_v38, %v390_v5  ;;  %v7308_v5 = vld [vmem:[%s7113_s14 + $0x54] sm:$0xf] }
  0x2d   : > { %6450 = vmatprep.subr.bf16.mxu0 %v6941_v8  ;;  %v371_v49 = vrot.slane %v369_v36, 4  ;;  %v6949_v36 = vld [vmem:[%s8758_s1 + $0x18] sm:$0xff]   ;;  %v441_v19 = vshrl.u32 %v7308_v5, 16 }
  0x2e   : > { %6227 = vmatmul.mubr.bf16.vlgmr.msra.gmra.mrb[0].mxu1 %v5606_v17  ;;  %v362_v62 = vrot.slane %v361_v53, 4  ;;  %v406_v17 = vshrl.u32 %v7254_v0, 16 }
  0x2f   : > { %6259 = vmatpush3.bf16.msra.mxu1 %v6940_v1  ;;  %6419 = vmatmul.mubr.bf16.vlgmr.msra.gmra.mrb[0].mxu0 %v7235_v51  ;;  %v375_v63 = vor.u32 %v374_v54, %v371_v49  ;;  %v7257_v1 = vld [vmem:[%s7113_s14 + $0x44] sm:$0x1]  ;;  %v422_v54 = vrot.slane %v420_v40, 5  ;;  %v454_v40 = vshrl.u32 %v7311_v6, 16 }
  0x30   : > { %6260 = vmatprep.subr.bf16.mxu1 %v6943_v34  ;;  %6230 = vmatprep.mubr.bf16.mxu1 %v7235_v51  ;;  %v367_v11 = vsel %vm7158_vm2, %v362_v62, %v366_v47  ;;  %v408_v31 = vrot.slane %v406_v17, 4  ;;  %v412_v32 = vshll.u32 %v7257_v1, 16  ;;  %v436_v62 = vshll.u32 %v7280_v33, 16 }
  0x31   : > { %6451 = vmatpush3.bf16.msra.mxu0 %v6941_v8  ;;  %v376_v15 = vrot.slane %v375_v63, 4  ;;  %v395_v8 = vrot.slane %v393_v2, 4  ;;  %v7268_v18 = vcombine.low %v357_v61, %v367_v11  ;;  %v432_v61 = vrot.slane %v430_v50, 4  ;;  %v6947_v63 = vld [vmem:[%s8758_s1 + $0x160] sm:$0xff]   ;;  %v7348_v50 = vld [vmem:[%s7113_s14 + $0x68] sm:$0x1] }
  0x32   : > { %6452 = vmatprep.subr.bf16.mxu0 %v6942_v46  ;;  %v409_v47 = vor.u32 %v408_v31, %v404_v23  ;;  %v414_v49 = vrot.slane %v412_v32, 5  ;;  %v6952_v2 = vld [vmem:[%s8758_s1 + $0x20] sm:$0xff]   ;;  %v7318_v11 = vcombine.low %v7191_v3, %v7199_v9  ;;  %v438_v17 = vrot.slane %v436_v62, 5 }
  0x33   : > { %6261 = vmatpush3.bf16.msra.mxu1 %v6943_v34  ;;  %8780 = vst [vmem:[#allocation2_spill] sm:$0xff] %v7268_v18  ;;  %v381_v29 = vsel %vm7158_vm2, %v376_v15, %v380_v55  ;;  %v417_v34 = vshrl.u32 %v7271_v27, 16  ;;  %6422 = vmatprep.mubr.bf16.mxu0 %v7268_v18  ;;  %v399_v39 = vor.u32 %v398_v20, %v395_v8  ;;  %v428_v55 = vrot.slane %v426_v44, 5  ;;  %v7334_v32 = vld [vmem:[%s7113_s14 + $0x60] sm:$0xf] }
  0x34   : > { %6262 = vmatprep.subr.bf16.mxu1 %v6946_v59  ;;  %v7296_v56 = vcombine.low %v381_v29, %v391_v52  ;;  %v410_v57 = vrot.slane %v409_v47, 4  ;;  %v7322_v15 = vcombine.low %v7211_v22, %v7216_v30  ;;  %v444_v29 = vshll.u32 %v7308_v5, 16  ;;  %v7342_v47 = vld [vmem:[%s7113_s14 + $0x64] sm:$0xf] }
  0x35   : > { %6453 = vmatpush3.bf16.msra.mxu0 %v6942_v46  ;;  %v419_v46 = vrot.slane %v417_v34, 4  ;;  %v400_v53 = vrot.slane %v399_v39, 4  ;;  %v433_v8 = vor.u32 %v432_v61, %v428_v55  ;;  %v450_v31 = vshll.u32 %v7311_v6, 16  ;;  %v6954_v34 = vld [vmem:[%s8758_s1 + $0x28] sm:$0xff]  }
  0x36   : > { %6231 = vmatmul.mubr.bf16.gmra.mrb[4].mxu1 %v7268_v18  ;;  %6454 = vmatprep.subr.bf16.mxu0 %v6944_v16  ;;  %8781 = vst [vmem:[#allocation3_spill] sm:$0xff] %v7296_v56  ;;  %v443_v39 = vrot.slane %v441_v19, 4  ;;  %v460_v44 = vshll.u32 %v7314_v10, 16  ;;  %v465_v52 = vshrl.u32 %v7334_v32, 16  ;;  %v484_v19 = vshll.u32 %v7348_v50, 16 }
  0x37   : > { %6263 = vmatpush3.bf16.msra.mxu1 %v6946_v59  ;;  %v405_v4 = vsel %vm7158_vm2, %v400_v53, %v404_v23  ;;  %v423_v59 = vor.u32 %v422_v54, %v419_v46  ;;  %6423 = vmatmul.mubr.bf16.gmra.mrb[4].mxu0 %v7296_v56  ;;  %v434_v38 = vrot.slane %v433_v8, 4  ;;  %v452_v46 = vrot.slane %v450_v31, 5 }
  0x38   : > { %6264 = vmatprep.subr.bf16.mxu1 %v6949_v36  ;;  %6234 = vmatprep.mubr.bf16.mxu1 %v7296_v56  ;;  %v456_v54 = vrot.slane %v454_v40, 4  ;;  %v7376_v40 = vld [vmem:[%s7113_s14 + $0x6c] sm:$0xf] }
  0x39   : > { %6455 = vmatpush3.bf16.msra.mxu0 %v6944_v16  ;;  %v415_v16 = vsel %vm7158_vm2, %v410_v57, %v414_v49  ;;  %v424_v23 = vrot.slane %v423_v59, 4  ;;  %v439_v53 = vsel %vm7158_vm2, %v434_v38, %v438_v17  ;;  %v462_v57 = vrot.slane %v460_v44, 5 }
  0x3a   : > { %6456 = vmatprep.subr.bf16.mxu0 %v6945_v45  ;;  %v7329_v20 = vcombine.low %v405_v4, %v415_v16  ;;  %v467_v4 = vrot.slane %v465_v52, 4  ;;  %v474_v59 = vshll.u32 %v7342_v47, 16  ;;  %v457_v16 = vor.u32 %v456_v54, %v452_v46 }
  0x3b   : > { %6265 = vmatpush3.bf16.msra.mxu1 %v6949_v36  ;;  %v429_v49 = vsel %vm7158_vm2, %v424_v23, %v428_v55  ;;  %v446_v36 = vrot.slane %v444_v29, 5  ;;  %v468_v55 = vshll.u32 %v7334_v32, 16  ;;  %v478_v17 = vshrl.u32 %v7342_v47, 16  ;;  %v6956_v29 = vld [vmem:[%s8758_s1 + $0x30] sm:$0xff]  }
  0x3c   : > { %8782 = vst [vmem:[#allocation4_spill] sm:$0xff] %v7329_v20  ;;  %6266 = vmatprep.subr.bf16.mxu1 %v6952_v2  ;;  %6426 = vmatprep.mubr.bf16.mxu0 %v7329_v20  ;;  %v7358_v61 = vcombine.low %v429_v49, %v439_v53  ;;  %v476_v31 = vrot.slane %v474_v59, 5  ;;  %v5654_v38 = vrot.slane %v7136_v21, 9  ;;  %v458_v44 = vrot.slane %v457_v16, 4  ;;  %v7383_v53 = vld [vmem:[%s7113_s14 + $0x70] sm:$0xf] }
  0x3d   : > { %6457 = vmatpush3.bf16.msra.mxu0 %v6945_v45  ;;  %v6948_v45 = vld [vmem:[%s8758_s1 + $0x168] sm:$0xff]   ;;  %v447_v62 = vor.u32 %v446_v36, %v443_v39  ;;  %v470_v8 = vrot.slane %v468_v55, 5  ;;  %v1279_v39 = vrot.slane %v7139_v24, 5  ;;  %v480_v36 = vrot.slane %v478_v17, 4 }
  0x3e   : > { %6235 = vmatmul.mubr.bf16.gmra.mrb[8].mxu1 %v7329_v20  ;;  %6458 = vmatprep.subr.bf16.mxu0 %v6947_v63  ;;  %8783 = vst [vmem:[#allocation5_spill] sm:$0xff] %v7358_v61  ;;  %v486_v52 = vrot.slane %v484_v19, 5  ;;  %v1282_v55 = vrot.slane %v7142_v25, 5  ;;  %v463_v59 = vsel %vm7158_vm2, %v458_v44, %v462_v57  ;;  %v498_v19 = vshll.u32 %v7383_v53, 16 }
  0x3f   : > { %6267 = vmatpush3.bf16.msra.mxu1 %v6952_v2  ;;  %6238 = vmatprep.mubr.bf16.mxu1 %v7358_v61  ;;  %v448_v2 = vrot.slane %v447_v62, 4  ;;  %v471_v49 = vor.u32 %v470_v8, %v467_v4  ;;  %v1280_v24 = vsel %vm7365_vm5, %v5654_v38, %v1279_v39  ;;  %v1281_v54 = vrot.slane %v1279_v39, 4  ;;  %v7391_v62 = vld [vmem:[%s7113_s14 + $0x74] sm:$0x1]  ;;  %v6958_v4 = vld [vmem:[%s8758_s1 + $0x38] sm:$0xff]  }
  0x40   : > { %6268 = vmatprep.subr.bf16.mxu1 %v6954_v34  ;;  %6427 = vmatmul.mubr.bf16.gmra.mrb[8].mxu0 %v7358_v61  ;;  %v481_v8 = vor.u32 %v480_v36, %v476_v31  ;;  %v500_v36 = vrot.slane %v498_v19, 5  ;;  %v1300_v20 = vrot.slane %v7216_v30, 5 }
  0x41   : > { %6459 = vmatpush3.bf16.msra.mxu0 %v6947_v63  ;;  %v6950_v63 = vld [vmem:[%s8758_s1 + $0x170] sm:$0xff]   ;;  %v453_v21 = vsel %vm7158_vm2, %v448_v2, %v452_v46  ;;  %v472_v16 = vrot.slane %v471_v49, 4  ;;  %v489_v46 = vshrl.u32 %v7376_v40, 16  ;;  %v1283_v25 = vsel %vm7365_vm5, %v1281_v54, %v1282_v55  ;;  %v7406_v2 = vld [vmem:[%s7113_s14 + $0x78] sm:$0xf] }
  0x42   : > { %6460 = vmatprep.subr.bf16.mxu0 %v6948_v45  ;;  %v7399_v17 = vcombine.low %v453_v21, %v463_v59  ;;  %v482_v38 = vrot.slane %v481_v8, 4  ;;  %v7413_v39 = vcombine.low %v1280_v24, %v1283_v25  ;;  %v502_v21 = vshrl.u32 %v7383_v53, 16  ;;  %v7420_v54 = vld [vmem:[%s7113_s14 + $0x7c] sm:$0xf] }
  0x43   : > { %6269 = vmatpush3.bf16.msra.mxu1 %v6954_v34  ;;  %v492_v34 = vshll.u32 %v7376_v40, 16  ;;  %v477_v57 = vsel %vm7158_vm2, %v472_v16, %v476_v31  ;;  %v491_v44 = vrot.slane %v489_v46, 4  ;;  %v508_v31 = vshll.u32 %v7391_v62, 16  ;;  %v7427_v16 = vld [vmem:[%s7113_s14 + $0x80] sm:$0x1] }
  0x44   : > { %6270 = vmatprep.subr.bf16.mxu1 %v6956_v29  ;;  %8786 = vst [vmem:[#allocation6_spill] sm:$0xff] %v7399_v17  ;;  %6430 = vmatprep.mubr.bf16.mxu0 %v7399_v17  ;;  %v487_v55 = vsel %vm7158_vm2, %v482_v38, %v486_v52  ;;  %v5655_v59 = vrot.slane %v7164_v41, 9  ;;  %v1286_v24 = vrot.slane %v7167_v42, 5  ;;  %v513_v8 = vshrl.u32 %v7406_v2, 16  ;;  %v7435_v52 = vld [vmem:[%s8758_s1 + $0x80] sm:$0xff]  }
  0x45   : > { %6461 = vmatpush3.bf16.msra.mxu0 %v6948_v45  ;;  %v6951_v45 = vld [vmem:[%s8758_s1 + $0x178] sm:$0xff]   ;;  %v494_v49 = vrot.slane %v492_v34, 5  ;;  %v7430_v46 = vcombine.low %v477_v57, %v487_v55  ;;  %v504_v34 = vrot.slane %v502_v21, 4  ;;  %v510_v19 = vrot.slane %v508_v31, 5  ;;  %v7444_v38 = vld [vmem:[%s7113_s14 + $0x84] sm:$0xf] }
  0x46   : > { %6462 = vmatprep.subr.bf16.mxu0 %v6950_v63  ;;  %6239 = vmatmul.mubr.bf16.gmra.mrb[12].mxu1 %v7399_v17  ;;  %v1287_v41 = vsel %vm7365_vm5, %v5655_v59, %v1286_v24  ;;  %v1288_v42 = vrot.slane %v1286_v24, 4  ;;  %v515_v57 = vrot.slane %v513_v8, 4  ;;  %v522_v21 = vshll.u32 %v7420_v54, 16 }
  0x47   : > { %6271 = vmatpush3.bf16.msra.mxu1 %v6956_v29  ;;  %8787 = vst [vmem:[#allocation7_spill] sm:$0xff] %v7430_v46  ;;  %v495_v25 = vor.u32 %v494_v49, %v491_v44  ;;  %v6953_v29 = vld [vmem:[%s8758_s1 + $0x180] sm:$0xff]   ;;  %6242 = vmatprep.mubr.bf16.mxu1 %v7430_v46  ;;  %v505_v49 = vor.u32 %v504_v34, %v500_v36  ;;  %v526_v31 = vshrl.u32 %v7420_v54, 16  ;;  %v532_v24 = vshll.u32 %v7427_v16, 16 }
  0x48   : > { %6272 = vmatprep.subr.bf16.mxu1 %v6958_v4  ;;  %6431 = vmatmul.mubr.bf16.gmra.mrb[12].mxu0 %v7430_v46  ;;  %v1290_v55 = vsel %vm7365_vm5, %v1288_v42, %v1289_v7  ;;  %v5656_v8 = vrot.slane %v7191_v3, 9  ;;  %v524_v46 = vrot.slane %v522_v21, 5  ;;  %v7464_v3 = vld [vmem:[%s7113_s14 + $0x88] sm:$0xf] }
  0x49   : > { %6463 = vmatpush3.bf16.msra.mxu0 %v6950_v63  ;;  %v516_v63 = vshll.u32 %v7406_v2, 16  ;;  %v496_v44 = vrot.slane %v495_v25, 4  ;;  %6466 = vmatprep.mubr.bf16.mxu0 %v7413_v39  ;;  %v506_v34 = vrot.slane %v505_v49, 4  ;;  %v7459_v26 = vcombine.low %v1287_v41, %v1290_v55 }
  0x4a   : > { %6464 = vmatprep.subr.bf16.mxu0 %v6951_v45  ;;  %v528_v7 = vrot.slane %v526_v31, 4  ;;  %v534_v42 = vrot.slane %v532_v24, 5  ;;  %v537_v41 = vshrl.u32 %v7444_v38, 16  ;;  %v6955_v31 = vld [vmem:[%s8758_s1 + $0x188] sm:$0xff]   ;;  %v7483_v24 = vld [vmem:[%s7113_s14 + $0x90] sm:$0xf] }
  0x4b   : > { %v518_v59 = vrot.slane %v516_v63, 5  ;;  %6273 = vmatpush3.bf16.msra.mxu1 %v6958_v4  ;;  %v501_v25 = vsel %vm7158_vm2, %v496_v44, %v500_v36  ;;  %v1293_v63 = vrot.slane %v7199_v9, 5  ;;  %v511_v4 = vsel %vm7158_vm2, %v506_v34, %v510_v19  ;;  %v7470_v36 = vld [vmem:[%s7113_s14 + $0x8c] sm:$0x1]  ;;  %v7486_v34 = vld [vmem:[%s7113_s14 + $0x94] sm:$0xf] }
  0x4c   : > { %6306 = vmatprep.subr.bf16.mxu1 %v7435_v52  ;;  %v540_v44 = vshll.u32 %v7444_v38, 16  ;;  %v529_v21 = vor.u32 %v528_v7, %v524_v46  ;;  %v539_v55 = vrot.slane %v537_v41, 4  ;;  %v556_v7 = vshll.u32 %v7470_v36, 16 }
  0x4d   : > { %6465 = vmatpush3.bf16.msra.mxu0 %v6951_v45  ;;  %v519_v48 = vor.u32 %v518_v59, %v515_v57  ;;  %v1296_v45 = vrot.slane %v7206_v14, 5  ;;  %v7474_v57 = vcombine.low %v501_v25, %v511_v4  ;;  %v1294_v9 = vsel %vm7365_vm5, %v5656_v8, %v1293_v63 }
  0x4e   : > { %6498 = vmatprep.subr.bf16.mxu0 %v6953_v29  ;;  %v1295_v19 = vrot.slane %v1293_v63, 4  ;;  %v542_v14 = vrot.slane %v540_v44, 5  ;;  %v546_v59 = vshll.u32 %v7464_v3, 16  ;;  %v550_v8 = vshrl.u32 %v7464_v3, 16 }
  0x4f   : > { %8788 = vst [vmem:[#allocation8_spill] sm:$0xff] %v7474_v57  ;;  %v520_v49 = vrot.slane %v519_v48, 4  ;;  %6243 = vmatmul.mubr.bf16.gmra.mrb[16].mxu1 %v7474_v57  ;;  %v530_v48 = vrot.slane %v529_v21, 4  ;;  %v5657_v44 = vrot.slane %v7211_v22, 9  ;;  %v558_v21 = vrot.slane %v556_v7, 5  ;;  %v6957_v22 = vld [vmem:[%s8758_s1 + $0x190] sm:$0xff]  }
  0x50   : > { %6467 = vmatmul.mubr.bf16.vlgmr.msra.gmra.mrb[0].mxu0 %v7459_v26  ;;  %v1297_v63 = vsel %vm7365_vm5, %v1295_v19, %v1296_v45  ;;  %v543_v4 = vor.u32 %v542_v14, %v539_v55  ;;  %v548_v41 = vrot.slane %v546_v59, 5  ;;  %v1303_v45 = vrot.slane %v7225_v35, 5  ;;  %v7522_v59 = vld [vmem:[%s7113_s14 + $0x9c] sm:$0xf] }
  0x51   : > { %v525_v25 = vsel %vm7158_vm2, %v520_v49, %v524_v46  ;;  %6499 = vmatpush3.bf16.msra.mxu0 %v6953_v29  ;;  %v535_v57 = vsel %vm7158_vm2, %v530_v48, %v534_v42  ;;  %v7499_v46 = vcombine.low %v1294_v9, %v1297_v63  ;;  %v552_v49 = vrot.slane %v550_v8, 4  ;;  %v7510_v42 = vld [vmem:[%s7113_s14 + $0x98] sm:$0x1]  ;;  %v7525_v63 = vld [vmem:[%s7113_s14 + $0xa0] sm:$0xf] }
  0x52   : > { %v7501_v17 = vcombine.low %v525_v25, %v535_v57  ;;  %v544_v61 = vrot.slane %v543_v4, 4  ;;  %6500 = vmatprep.subr.bf16.mxu0 %v6955_v31  ;;  %v561_v57 = vshrl.u32 %v7483_v24, 16  ;;  %v564_v9 = vshll.u32 %v7483_v24, 16 }
  0x53   : > { %6470 = vmatprep.mubr.bf16.mxu0 %v7499_v46  ;;  %v553_v29 = vor.u32 %v552_v49, %v548_v41  ;;  %v570_v19 = vshll.u32 %v7486_v34, 16  ;;  %v1301_v35 = vsel %vm7365_vm5, %v5657_v44, %v1300_v20  ;;  %v1302_v55 = vrot.slane %v1300_v20, 4  ;;  %v7532_v20 = vld [vmem:[%s7113_s14 + $0xa4] sm:$0x1] }
  0x54   : > { %8789 = vst [vmem:[#allocation9_spill] sm:$0xff] %v7501_v17  ;;  %6246 = vmatprep.mubr.bf16.mxu1 %v7501_v17  ;;  %v549_v30 = vsel %vm7158_vm2, %v544_v61, %v548_v41  ;;  %v574_v14 = vshrl.u32 %v7486_v34, 16  ;;  %v563_v48 = vrot.slane %v561_v57, 4  ;;  %v566_v8 = vrot.slane %v564_v9, 5 }
  0x55   : > { %v554_v25 = vrot.slane %v553_v29, 4  ;;  %6501 = vmatpush3.bf16.msra.mxu0 %v6955_v31  ;;  %v572_v7 = vrot.slane %v570_v19, 5  ;;  %v1304_v4 = vsel %vm7365_vm5, %v1302_v55, %v1303_v45  ;;  %v580_v61 = vshll.u32 %v7510_v42, 16  ;;  %v6959_v45 = vld [vmem:[%s8758_s1 + $0x198] sm:$0xff]  }
  0x56   : > { %v576_v49 = vrot.slane %v574_v14, 4  ;;  %v5658_v41 = vrot.slane %v7240_v58, 9  ;;  %6502 = vmatprep.subr.bf16.mxu0 %v6957_v22  ;;  %v7536_v44 = vcombine.low %v1301_v35, %v1304_v4  ;;  %v567_v29 = vor.u32 %v566_v8, %v563_v48 }
  0x57   : > { %v559_v31 = vsel %vm7158_vm2, %v554_v25, %v558_v21  ;;  %v1307_v57 = vrot.slane %v7254_v0, 5  ;;  %v582_v58 = vrot.slane %v580_v61, 5  ;;  %v1310_v55 = vrot.slane %v7257_v1, 5  ;;  %v7550_v25 = vld [vmem:[%s7113_s14 + $0xa8] sm:$0xf] }
  0x58   : > { %v7542_v9 = vcombine.low %v549_v30, %v559_v31  ;;  %v577_v19 = vor.u32 %v576_v49, %v572_v7  ;;  %6471 = vmatmul.mubr.bf16.gmra.mrb[4].mxu0 %v7536_v44  ;;  %v568_v14 = vrot.slane %v567_v29, 4  ;;  %v585_v0 = vshrl.u32 %v7522_v59, 16  ;;  %v6963_v30 = vld [vmem:[%s8758_s1 + $0x1a0] sm:$0xff]   ;;  %v7560_v49 = vld [vmem:[%s7113_s14 + $0xac] sm:$0xf] }
  0x59   : > { %v1308_v21 = vsel %vm7365_vm5, %v5658_v41, %v1307_v57  ;;  %v1309_v35 = vrot.slane %v1307_v57, 4  ;;  %v588_v1 = vshll.u32 %v7522_v59, 16  ;;  %v594_v8 = vshll.u32 %v7525_v63, 16  ;;  %6503 = vmatpush3.bf16.msra.mxu0 %v6957_v22 }
  0x5a   : > { %8790 = vst [vmem:[#allocation10_spill] sm:$0xff] %v7542_v9  ;;  %6247 = vmatmul.mubr.bf16.gmra.mrb[20].mxu1 %v7542_v9  ;;  %v578_v48 = vrot.slane %v577_v19, 4  ;;  %v598_v4 = vshrl.u32 %v7525_v63, 16  ;;  %v573_v61 = vsel %vm7158_vm2, %v568_v14, %v572_v7  ;;  %v587_v31 = vrot.slane %v585_v0, 4  ;;  %6504 = vmatprep.subr.bf16.mxu0 %v6959_v45  ;;  %v7575_v14 = vld [vmem:[%s7113_s14 + $0xb0] sm:$0x1] }
  0x5b   : > { %v1311_v41 = vsel %vm7365_vm5, %v1309_v35, %v1310_v55  ;;  %v604_v29 = vshll.u32 %v7532_v20, 16  ;;  %v590_v9 = vrot.slane %v588_v1, 5  ;;  %v596_v17 = vrot.slane %v594_v8, 5 }
  0x5c   : > { %v583_v57 = vsel %vm7158_vm2, %v578_v48, %v582_v58  ;;  %v7569_v19 = vcombine.low %v1308_v21, %v1311_v41  ;;  %v600_v56 = vrot.slane %v598_v4, 4  ;;  %v5659_v7 = vrot.slane %v7271_v27, 9 }
  0x5d   : > { %v7571_v22 = vcombine.low %v573_v61, %v583_v57  ;;  %v606_v18 = vrot.slane %v604_v29, 5  ;;  %v591_v55 = vor.u32 %v590_v9, %v587_v31  ;;  %v1314_v35 = vrot.slane %v7274_v28, 5  ;;  %6505 = vmatpush3.bf16.msra.mxu0 %v6959_v45  ;;  %v6967_v28 = vld [vmem:[%s8758_s1 + $0x1a8] sm:$0xff]  }
  0x5e   : > { %6474 = vmatprep.mubr.bf16.mxu0 %v7569_v19  ;;  %v1317_v0 = vrot.slane %v7280_v33, 5  ;;  %v609_v58 = vshrl.u32 %v7550_v25, 16  ;;  %v601_v21 = vor.u32 %v600_v56, %v596_v17  ;;  %v612_v48 = vshll.u32 %v7550_v25, 16  ;;  %6506 = vmatprep.subr.bf16.mxu0 %v6963_v30 }
  0x5f   : > { %8791 = vst [vmem:[#allocation11_spill] sm:$0xff] %v7571_v22  ;;  %6250 = vmatprep.mubr.bf16.mxu1 %v7571_v22  ;;  %v618_v1 = vshll.u32 %v7560_v49, 16  ;;  %v622_v27 = vshrl.u32 %v7560_v49, 16  ;;  %v592_v9 = vrot.slane %v591_v55, 4  ;;  %v1315_v33 = vsel %vm7365_vm5, %v5659_v7, %v1314_v35  ;;  %v7597_v22 = vld [vmem:[%s7113_s14 + $0xb4] sm:$0xf] }
  0x60   : > { %v1316_v45 = vrot.slane %v1314_v35, 4  ;;  %v611_v8 = vrot.slane %v609_v58, 4  ;;  %v602_v56 = vrot.slane %v601_v21, 4  ;;  %v614_v4 = vrot.slane %v612_v48, 5  ;;  %v7604_v48 = vld [vmem:[%s7113_s14 + $0xb8] sm:$0xf] }
  0x61   : > { %v620_v61 = vrot.slane %v618_v1, 5  ;;  %v624_v41 = vrot.slane %v622_v27, 4  ;;  %v597_v31 = vsel %vm7158_vm2, %v592_v9, %v596_v17  ;;  %v628_v57 = vshll.u32 %v7575_v14, 16  ;;  %6507 = vmatpush3.bf16.msra.mxu0 %v6963_v30  ;;  %v6971_v17 = vld [vmem:[%s8758_s1 + $0x1b0] sm:$0xff]   ;;  %v7614_v27 = vld [vmem:[%s7113_s14 + $0xbc] sm:$0x1] }
  0x62   : > { %v1318_v29 = vsel %vm7365_vm5, %v1316_v45, %v1317_v0  ;;  %v5660_v55 = vrot.slane %v7308_v5, 9  ;;  %v607_v7 = vsel %vm7158_vm2, %v602_v56, %v606_v18  ;;  %v615_v58 = vor.u32 %v614_v4, %v611_v8  ;;  %6508 = vmatprep.subr.bf16.mxu0 %v6967_v28  ;;  %v6975_v4 = vld [vmem:[%s8758_s1 + $0x1b8] sm:$0xff]  }
  0x63   : > { %v7601_v35 = vcombine.low %v1315_v33, %v1318_v29  ;;  %v625_v21 = vor.u32 %v624_v41, %v620_v61  ;;  %v7609_v0 = vcombine.low %v597_v31, %v607_v7  ;;  %v630_v5 = vrot.slane %v628_v57, 5 }
  0x64   : > { %v1321_v1 = vrot.slane %v7311_v6, 5  ;;  %v1324_v30 = vrot.slane %v7314_v10, 5  ;;  %v616_v18 = vrot.slane %v615_v58, 4  ;;  %v633_v33 = vshrl.u32 %v7597_v22, 16 }
  0x65   : > { %8792 = vst [vmem:[#allocation12_spill] sm:$0xff] %v7609_v0  ;;  %6475 = vmatmul.mubr.bf16.gmra.mrb[8].mxu0 %v7601_v35  ;;  %v626_v9 = vrot.slane %v625_v21, 4  ;;  %v636_v45 = vshll.u32 %v7597_v22, 16  ;;  %6251 = vmatmul.mubr.bf16.gmra.mrb[24].mxu1 %v7609_v0  ;;  %v642_v6 = vshll.u32 %v7604_v48, 16  ;;  %v646_v10 = vshrl.u32 %v7604_v48, 16 }
  0x66   : > { %v1322_v8 = vsel %vm7365_vm5, %v5660_v55, %v1321_v1  ;;  %v1323_v56 = vrot.slane %v1321_v1, 4  ;;  %6509 = vmatpush3.bf16.msra.mxu0 %v6967_v28  ;;  %v621_v41 = vsel %vm7158_vm2, %v616_v18, %v620_v61  ;;  %v635_v29 = vrot.slane %v633_v33, 4 }
  0x67   : > { %v631_v31 = vsel %vm7158_vm2, %v626_v9, %v630_v5  ;;  %v638_v57 = vrot.slane %v636_v45, 5  ;;  %6510 = vmatprep.subr.bf16.mxu0 %v6971_v17  ;;  %v644_v58 = vrot.slane %v642_v6, 5  ;;  %v648_v28 = vrot.slane %v646_v10, 4 }
  0x68   : > { %v7631_v55 = vcombine.low %v621_v41, %v631_v31  ;;  %v1325_v7 = vsel %vm7365_vm5, %v1323_v56, %v1324_v30  ;;  %v652_v0 = vshll.u32 %v7614_v27, 16  ;;  %v5661_v61 = vrot.slane %v7334_v32, 9  ;;  %v7646_v30 = vld [vmem:[%s8758_s1 + $0x1c0] sm:$0xff]  }
  0x69   : > { %v7635_v21 = vcombine.low %v1322_v8, %v1325_v7  ;;  %v639_v1 = vor.u32 %v638_v57, %v635_v29  ;;  %v649_v5 = vor.u32 %v648_v28, %v644_v58  ;;  %v1328_v18 = vrot.slane %v7342_v47, 5 }
  0x6a   : > { %6254 = vmatprep.mubr.bf16.mxu1 %v7631_v55  ;;  %v1331_v9 = vrot.slane %v7348_v50, 5  ;;  %v5662_v33 = vrot.slane %v7376_v40, 9  ;;  %6511 = vmatpush3.bf16.msra.mxu0 %v6971_v17  ;;  %v654_v8 = vrot.slane %v652_v0, 5  ;;  %v1335_v56 = vrot.slane %v7383_v53, 5 }
  0x6b   : > { %6478 = vmatprep.mubr.bf16.mxu0 %v7635_v21  ;;  %v640_v45 = vrot.slane %v639_v1, 4  ;;  %v1338_v6 = vrot.slane %v7391_v62, 5  ;;  %6512 = vmatprep.subr.bf16.mxu0 %v6975_v4  ;;  %v650_v10 = vrot.slane %v649_v5, 4  ;;  %v1329_v50 = vsel %vm7365_vm5, %v5661_v61, %v1328_v18 }
  0x6c   : > { %v1330_v41 = vrot.slane %v1328_v18, 4  ;;  %v5663_v17 = vrot.slane %v7406_v2, 9  ;;  %v1336_v29 = vsel %vm7365_vm5, %v5662_v33, %v1335_v56  ;;  %v1337_v57 = vrot.slane %v1335_v56, 4 }
  0x6d   : > { %v645_v31 = vsel %vm7158_vm2, %v640_v45, %v644_v58  ;;  %v1342_v0 = vrot.slane %v7420_v54, 5  ;;  %v655_v62 = vsel %vm7158_vm2, %v650_v10, %v654_v8  ;;  %v1345_v28 = vrot.slane %v7427_v16, 5 }
  0x6e   : > { %v1332_v7 = vsel %vm7365_vm5, %v1330_v41, %v1331_v9  ;;  %v5664_v1 = vrot.slane %v7444_v38, 9  ;;  %6513 = vmatpush3.bf16.msra.mxu0 %v6975_v4  ;;  %v7665_v61 = vcombine.low %v645_v31, %v655_v62  ;;  %v1339_v5 = vsel %vm7365_vm5, %v1337_v57, %v1338_v6  ;;  %v6966_v57 = vld [vmem:[%s8758_s1 + $0x88] sm:$0xff]  }
  0x6f   : > { %v7667_v58 = vcombine.low %v1329_v50, %v1332_v7  ;;  %6546 = vmatprep.subr.bf16.mxu0 %v7646_v30  ;;  %v7672_v18 = vcombine.low %v1336_v29, %v1339_v5  ;;  %v1344_v33 = vrot.slane %v1342_v0, 4  ;;  %v1349_v45 = vrot.slane %v7464_v3, 5 }
  0x70   : > { %v1352_v9 = vrot.slane %v7470_v36, 5  ;;  %6255 = vmatmul.mubr.bf16.gmra.mrb[28].mxu1 %v7665_v61  ;;  %v8793_v16 = vcombine.low %v7122_v12, %v7125_v13  ;;  %v1343_v4 = vsel %vm7365_vm5, %v5663_v17, %v1342_v0  ;;  %v1356_v6 = vrot.slane %v7486_v34, 5 }
  0x71   : > { %6479 = vmatmul.mubr.bf16.gmra.mrb[12].mxu0 %v7667_v58  ;;  %v1346_v8 = vsel %vm7365_vm5, %v1344_v33, %v1345_v28  ;;  %v1351_v56 = vrot.slane %v1349_v45, 4  ;;  %v1363_v36 = vrot.slane %v7525_v63, 5  ;;  %v1350_v10 = vsel %vm7365_vm5, %v5664_v1, %v1349_v45 }
  0x72   : > { %6274 = vmatprep.mubr.bf16.mxu1 %v8793_v16  ;;  %6482 = vmatprep.mubr.bf16.mxu0 %v7672_v18  ;;  %v7692_v13 = vcombine.low %v1343_v4, %v1346_v8  ;;  %v5665_v50 = vrot.slane %v7483_v24, 9  ;;  %v1359_v41 = vrot.slane %v7510_v42, 5  ;;  %v1358_v17 = vrot.slane %v1356_v6, 4 }
  0x73   : > { %v1353_v12 = vsel %vm7365_vm5, %v1351_v56, %v1352_v9  ;;  %v5666_v31 = vrot.slane %v7522_v59, 9  ;;  %v1365_v0 = vrot.slane %v1363_v36, 4  ;;  %v1366_v62 = vrot.slane %v7532_v20, 5 }
  0x74   : > { %v7697_v29 = vcombine.low %v1350_v10, %v1353_v12  ;;  %v1357_v7 = vsel %vm7365_vm5, %v5665_v50, %v1356_v6  ;;  %v1370_v42 = vrot.slane %v7560_v49, 5  ;;  %v7710_v28 = vcombine.low %v7334_v32, %v7342_v47  ;;  %v6970_v47 = vld [vmem:[%s8758_s1 + $0x90] sm:$0xff]   ;;  %v249_v6 = vld [vmem:[%s7113_s14 + $0xc8] sm:$0x1]  ;;  %v7015_v10 = vld [vmem:[%s7113_s14 + $0x40] sm:$0xf] }
  0x75   : > { %v1360_v20 = vsel %vm7365_vm5, %v1358_v17, %v1359_v41  ;;  %v1364_v1 = vsel %vm7365_vm5, %v5666_v31, %v1363_v36  ;;  %v5667_v5 = vrot.slane %v7550_v25, 9  ;;  %v7721_v33 = vcombine.low %v7376_v40, %v7383_v53  ;;  %v7014_v36 = vld [vmem:[%s7113_s14 + $0x3c] sm:$0xf]  ;;  %v7016_v41 = vld [vmem:[%s7113_s14 + $0x48] sm:$0xf] }
  0x76   : > { %v1367_v32 = vsel %vm7365_vm5, %v1365_v0, %v1366_v62  ;;  %v7732_v45 = vcombine.low %v7406_v2, %v7420_v54  ;;  %v7736_v40 = vcombine.low %v7444_v38, %v7464_v3  ;;  %v7740_v53 = vcombine.low %v7483_v24, %v7486_v34  ;;  %v7760_v24 = vld [vmem:[%s7113_s14 + $0xc4] sm:$0xf]  ;;  %v7017_v17 = vld [vmem:[%s7113_s14 + $0x4c] sm:$0xf] }
  0x77   : > { %v7744_v9 = vcombine.low %v7522_v59, %v7525_v63  ;;  %v7748_v16 = vcombine.low %v7550_v25, %v7560_v49  ;;  %v7750_v4 = vcombine.low %v1357_v7, %v1360_v20  ;;  %v1372_v2 = vrot.slane %v1370_v42, 4  ;;  %v6974_v25 = vld [vmem:[%s8758_s1 + $0x98] sm:$0xff]  }
  0x78   : > { %6275 = vmatmul.mubr.bf16.vlgmr.msra.gmra.mrb[0].mxu1 %v7171_v43  ;;  %v1373_v54 = vrot.slane %v7575_v14, 5  ;;  %v7755_v38 = vcombine.low %v7597_v22, %v7604_v48  ;;  %v7757_v3 = vcombine.low %v1364_v1, %v1367_v32  ;;  %v5668_v34 = vrot.slane %v7597_v22, 9  ;;  %v7774_v14 = vld [vmem:[%s7113_s14 + $0xc0] sm:$0xf] }
  0x79   : > { %6483 = vmatmul.mubr.bf16.gmra.mrb[16].mxu0 %v7692_v13  ;;  %6307 = vmatpush3.bf16.msra.mxu1 %v7435_v52  ;;  %v1377_v52 = vrot.slane %v7604_v48, 5  ;;  %v1380_v63 = vrot.slane %v7614_v27, 5  ;;  %v1371_v49 = vsel %vm7365_vm5, %v5667_v5, %v1370_v42  ;;  %v2257_v48 = vrot.slane %v7760_v24, 5  ;;  %v6978_v27 = vld [vmem:[%s8758_s1 + $0xa0] sm:$0xff]  }
  0x7a   : > { %6278 = vmatprep.mubr.bf16.mxu1 %v7247_v60  ;;  %6486 = vmatprep.mubr.bf16.mxu0 %v7697_v29  ;;  %v1374_v22 = vsel %vm7365_vm5, %v1372_v2, %v1373_v54  ;;  %v7789_v12 = vcombine.low %v7014_v36, %v7015_v10  ;;  %v7795_v31 = vcombine.low %v7016_v41, %v7017_v17  ;;  %v1972_v0 = vshll.u32 %v7774_v14, 16  ;;  %v6982_v54 = vld [vmem:[%s8758_s1 + $0xa8] sm:$0xff]   ;;  %v6986_v36 = vld [vmem:[%s8758_s1 + $0xb0] sm:$0xff]   ;;  %v7019_v10 = vld [vmem:[%s7113_s14 + $0x58] sm:$0xf] }
  0x7b   : > { %6308 = vmatprep.subr.bf16.mxu1 %v6966_v57  ;;  %v1379_v59 = vrot.slane %v1377_v52, 4  ;;  %v1378_v8 = vsel %vm7365_vm5, %v5668_v34, %v1377_v52  ;;  %v7791_v50 = vcombine.low %v1371_v49, %v1374_v22  ;;  %v1978_v62 = vshll.u32 %v7760_v24, 16 }
  0x7c   : > { %v1982_v7 = vshrl.u32 %v7760_v24, 16  ;;  %v5759_v20 = vrot.slane %v7774_v14, 9  ;;  %v2259_v1 = vrot.slane %v2257_v48, 4  ;;  %v2260_v5 = vrot.slane %v249_v6, 5 }
  0x7d   : > { %6309 = vmatpush3.bf16.msra.mxu1 %v6966_v57  ;;  %v1381_v56 = vsel %vm7365_vm5, %v1379_v59, %v1380_v63  ;;  %v1969_v57 = vshrl.u32 %v7774_v14, 16  ;;  %v1980_v52 = vrot.slane %v1978_v62, 5  ;;  %v1988_v63 = vshll.u32 %v249_v6, 16  ;;  %v7018_v6 = vld [vmem:[%s7113_s14 + $0x54] sm:$0xf]  ;;  %v6992_v62 = vld [vmem:[%s8758_s1 + $0xc0] sm:$0xff]  }
  0x7e   : > { %6310 = vmatprep.subr.bf16.mxu1 %v6970_v47  ;;  %v7801_v42 = vcombine.low %v1378_v8, %v1381_v56  ;;  %v1984_v2 = vrot.slane %v1982_v7, 4  ;;  %v2261_v49 = vsel %vm7365_vm5, %v2259_v1, %v2260_v5  ;;  %v7820_v41 = vcombine.low %v7018_v6, %v7019_v10  ;;  %v6983_v7 = vld [vmem:[%s8758_s1 + $0x1c8] sm:$0xff]   ;;  %v6991_v1 = vld [vmem:[%s8758_s1 + $0x1d8] sm:$0xff]   ;;  %v6996_v6 = vld [vmem:[%s8758_s1 + $0xd0] sm:$0xff]  }
  0x7f   : > { %v1971_v32 = vrot.slane %v1969_v57, 4  ;;  %v1990_v56 = vrot.slane %v1988_v63, 5  ;;  %v6999_v10 = vld [vmem:[%s8758_s1 + $0xd8] sm:$0xff]  }
  0x80   : > { %6279 = vmatmul.mubr.bf16.gmra.mrb[4].mxu1 %v7318_v11  ;;  %v1985_v59 = vor.u32 %v1984_v2, %v1980_v52  ;;  %v7022_v2 = vld [vmem:[%s7113_s14] sm:$0xf] }
  0x81   : > { %6487 = vmatmul.mubr.bf16.gmra.mrb[20].mxu0 %v7750_v4  ;;  %6282 = vmatprep.mubr.bf16.mxu1 %v7322_v15 }
  0x82   : > { %6490 = vmatprep.mubr.bf16.mxu0 %v7757_v3  ;;  %6311 = vmatpush3.bf16.msra.mxu1 %v6970_v47  ;;  %v1974_v47 = vrot.slane %v1972_v0, 5  ;;  %v1986_v8 = vrot.slane %v1985_v59, 4  ;;  %v6990_v0 = vld [vmem:[%s8758_s1 + $0xb8] sm:$0xff]   ;;  %v6995_v59 = vld [vmem:[%s8758_s1 + $0x1e8] sm:$0xff]  }
  0x83   : > { %6312 = vmatprep.subr.bf16.mxu1 %v6974_v25 }
  0x84   : > { %v1975_v34 = vor.u32 %v1974_v47, %v1971_v32  ;;  %v6993_v32 = vld [vmem:[%s8758_s1 + $0x1e0] sm:$0xff]   ;;  %v7021_v47 = vld [vmem:[%s7113_s14 + $0x8] sm:$0x1] }
  0x86   : > { %6313 = vmatpush3.bf16.msra.mxu1 %v6974_v25  ;;  %v2258_v25 = vsel %vm7365_vm5, %v5759_v20, %v2257_v48  ;;  %v1976_v22 = vrot.slane %v1975_v34, 4  ;;  %v6987_v20 = vld [vmem:[%s8758_s1 + $0x1d0] sm:$0xff]  }
  0x87   : > { %6314 = vmatprep.subr.bf16.mxu1 %v6978_v27  ;;  %v7822_v17 = vcombine.low %v2258_v25, %v2261_v49  ;;  %v6997_v49 = vld [vmem:[%s8758_s1 + $0x1f0] sm:$0xff]  }
  0x88   : > { %6283 = vmatmul.mubr.bf16.gmra.mrb[8].mxu1 %v7789_v12  ;;  %v1981_v48 = vsel %vm7158_vm2, %v1976_v22, %v1980_v52  ;;  %v1275_v52 = vrot.slane %v7021_v47, 5  ;;  %v8796_v47 = vld [vmem:[#allocation4_spill] sm:$0xff] }
  0x89   : > { %6491 = vmatmul.mubr.bf16.gmra.mrb[24].mxu0 %v7791_v50  ;;  %6286 = vmatprep.mubr.bf16.mxu1 %v7795_v31 }
  0x8a   : > { %6494 = vmatprep.mubr.bf16.mxu0 %v7801_v42  ;;  %6315 = vmatpush3.bf16.msra.mxu1 %v6978_v27  ;;  %v1991_v27 = vsel %vm7158_vm2, %v1986_v8, %v1990_v56  ;;  %v7001_v8 = vld [vmem:[%s8758_s1 + $0x1f8] sm:$0xff]   ;;  %v7003_v56 = vld [vmem:[%s8758_s1 + $0x200] sm:$0xff]  }
  0x8b   : > { %6316 = vmatprep.subr.bf16.mxu1 %v6982_v54  ;;  %v7828_v57 = vcombine.low %v1981_v48, %v1991_v27  ;;  %v7909_v48 = vcombine.low %v7774_v14, %v7760_v24  ;;  %v7004_v27 = vld [vmem:[%s8758_s1 + $0xe8] sm:$0xff]   ;;  %v7006_v24 = vld [vmem:[%s8758_s1 + $0xf0] sm:$0xff]  }
  0x8e   : > { %6317 = vmatpush3.bf16.msra.mxu1 %v6982_v54  ;;  %v5653_v54 = vrot.slane %v7022_v2, 9  ;;  %v7010_v2 = vld [vmem:[%s8758_s1 + $0x220] sm:$0xff]  }
  0x8f   : > { %6318 = vmatprep.subr.bf16.mxu1 %v6986_v36 }
  0x90   : > { %6287 = vmatmul.mubr.bf16.gmra.mrb[12].mxu1 %v7820_v41 }
  0x91   : > { %6495 = vmatmul.mubr.bf16.gmra.mrb[28].mxu0 %v7822_v17  ;;  %6290 = vmatprep.mubr.bf16.mxu1 %v7710_v28 }
  0x92   : > { %6514 = vmatprep.mubr.bf16.mxu0 %v7247_v60  ;;  %6319 = vmatpush3.bf16.msra.mxu1 %v6986_v36  ;;  %v6994_v36 = vld [vmem:[%s8758_s1 + $0xc8] sm:$0xff]  }
  0x93   : > { %6320 = vmatprep.subr.bf16.mxu1 %v6990_v0 }
  0x96   : > { %6321 = vmatpush3.bf16.msra.mxu1 %v6990_v0  ;;  %v7919_v0 = vld [vmem:[%s7113_s14 + $0xcc] sm:$0xf] }
  0x97   : > { %6354 = vmatprep.subr.bf16.mxu1 %v6992_v62 }
  0x98   : > { %6291 = vmatmul.mubr.bf16.gmra.mrb[16].mxu1 %v7721_v33 }
  0x99   : > { %6515 = vmatmul.mubr.bf16.vlgmr.msra.gmra.mrb[0].mxu0 %v7318_v11  ;;  %6294 = vmatprep.mubr.bf16.mxu1 %v7732_v45 }
  0x9a   : > { %6547 = vmatpush3.bf16.msra.mxu0 %v7646_v30  ;;  %6518 = vmatprep.mubr.bf16.mxu0 %v7322_v15  ;;  %v7020_v30 = vld [vmem:[%s7113_s14 + $0x4] sm:$0xf] }
  0x9b   : > { %6548 = vmatprep.subr.bf16.mxu0 %v6983_v7  ;;  %v1272_v5 = vrot.slane %v7020_v30, 5  ;;  %v8794_v30 = vld [vmem:[#allocation2_spill] sm:$0xff] }
  0x9d   : > { %v1274_v34 = vrot.slane %v1272_v5, 4  ;;  %v1273_v63 = vsel %vm7365_vm5, %v5653_v54, %v1272_v5  ;;  %v7007_v5 = vld [vmem:[%s8758_s1 + $0x210] sm:$0xff]   ;;  %v7011_v54 = vld [vmem:[%s8758_s1 + $0x228] sm:$0xff]  }
  0x9e   : > { %6549 = vmatpush3.bf16.msra.mxu0 %v6983_v7  ;;  %v7008_v7 = vld [vmem:[%s8758_s1 + $0xf8] sm:$0xff]  }
  0x9f   : > { %6550 = vmatprep.subr.bf16.mxu0 %v6987_v20  ;;  %v1276_v25 = vsel %vm7365_vm5, %v1274_v34, %v1275_v52  ;;  %v8797_v52 = vld [vmem:[#allocation5_spill] sm:$0xff]  ;;  %v8798_v34 = vld [vmem:[#allocation6_spill] sm:$0xff] }
  0xa0   : > { %6295 = vmatmul.mubr.bf16.gmra.mrb[20].mxu1 %v7736_v40  ;;  %v5685_v22 = vcombine.low %v1273_v63, %v1276_v25  ;;  %v7012_v63 = vld [vmem:[%s8758_s1 + $0x230] sm:$0xff]   ;;  %v7013_v25 = vld [vmem:[%s8758_s1 + $0x238] sm:$0xff]  }
  0xa1   : > { %6519 = vmatmul.mubr.bf16.gmra.mrb[4].mxu0 %v7789_v12  ;;  %6298 = vmatprep.mubr.bf16.mxu1 %v7740_v53 }
  0xa2   : > { %6522 = vmatprep.mubr.bf16.mxu0 %v7795_v31  ;;  %6551 = vmatpush3.bf16.msra.mxu0 %v6987_v20  ;;  %v7005_v20 = vld [vmem:[%s8758_s1 + $0x208] sm:$0xff]  }
  0xa3   : > { %6552 = vmatprep.subr.bf16.mxu0 %v6991_v1 }
  0xa6   : > { %6553 = vmatpush3.bf16.msra.mxu0 %v6991_v1  ;;  %v7023_v1 = vld [vmem:[%s8758_s1 + $0x100] sm:$0xff]  }
  0xa7   : > { %6554 = vmatprep.subr.bf16.mxu0 %v6993_v32 }
  0xa8   : > { %6299 = vmatmul.mubr.bf16.gmra.mrb[24].mxu1 %v7744_v9 }
  0xa9   : > { %6523 = vmatmul.mubr.bf16.gmra.mrb[8].mxu0 %v7820_v41  ;;  %6302 = vmatprep.mubr.bf16.mxu1 %v7748_v16 }
  0xaa   : > { %6526 = vmatprep.mubr.bf16.mxu0 %v7710_v28  ;;  %6555 = vmatpush3.bf16.msra.mxu0 %v6993_v32  ;;  %v7009_v32 = vld [vmem:[%s8758_s1 + $0x218] sm:$0xff]  }
  0xab   : > { %6556 = vmatprep.subr.bf16.mxu0 %v6995_v59 }
  0xae   : > { %6557 = vmatpush3.bf16.msra.mxu0 %v6995_v59  ;;  %v8799_v59 = vld [vmem:[#allocation7_spill] sm:$0xff] }
  0xaf   : > { %6558 = vmatprep.subr.bf16.mxu0 %v6997_v49 }
  0xb0   : > { %6303 = vmatmul.mubr.bf16.gmra.mrb[28].mxu1 %v7755_v38 }
  0xb1   : > { %6527 = vmatmul.mubr.bf16.gmra.mrb[12].mxu0 %v7721_v33  ;;  %6322 = vmatprep.mubr.bf16.mxu1 %v5685_v22  ;;  %v8801_v22 = vld [vmem:[#allocation9_spill] sm:$0xff] }
  0xb2   : > { %6530 = vmatprep.mubr.bf16.mxu0 %v7732_v45  ;;  %6559 = vmatpush3.bf16.msra.mxu0 %v6997_v49  ;;  %v8800_v49 = vld [vmem:[#allocation8_spill] sm:$0xff] }
  0xb3   : > { %6560 = vmatprep.subr.bf16.mxu0 %v7001_v8 }
  0xb6   : > { %6561 = vmatpush3.bf16.msra.mxu0 %v7001_v8  ;;  %v8802_v8 = vld [vmem:[#allocation10_spill] sm:$0xff] }
  0xb7   : > { %6594 = vmatprep.subr.bf16.mxu0 %v7003_v56 }
  0xb8   : > { %6323 = vmatmul.mubr.bf16.vlgmr.msra.gmra.mrb[0].mxu1 %v7413_v39  ;;  %v7002_v39 = vld [vmem:[%s8758_s1 + $0xe0] sm:$0xff]  }
  0xb9   : > { %6531 = vmatmul.mubr.bf16.gmra.mrb[16].mxu0 %v7736_v40  ;;  %6355 = vmatpush3.bf16.msra.mxu1 %v6992_v62  ;;  %v7922_v62 = vld [vmem:[%s7113_s14 + $0xd0] sm:$0xf] }
  0xba   : > { %6326 = vmatprep.mubr.bf16.mxu1 %v7459_v26  ;;  %6534 = vmatprep.mubr.bf16.mxu0 %v7740_v53  ;;  %v5801_v14 = vcombine.low %v7919_v0, %v7922_v62 }
  0xbb   : > { %6356 = vmatprep.subr.bf16.mxu1 %v6994_v36 }
  0xbd   : > { %6357 = vmatpush3.bf16.msra.mxu1 %v6994_v36  ;;  %v2792_v36 = vshll.u32 %v7919_v0, 16 }
  0xbe   : > { %6358 = vmatprep.subr.bf16.mxu1 %v6996_v6 }
  0xc0   : > { %6327 = vmatmul.mubr.bf16.gmra.mrb[4].mxu1 %v7499_v46 }
  0xc1   : > { %6535 = vmatmul.mubr.bf16.gmra.mrb[20].mxu0 %v7744_v9  ;;  %6330 = vmatprep.mubr.bf16.mxu1 %v7536_v44 }
  0xc2   : > { %6538 = vmatprep.mubr.bf16.mxu0 %v7748_v16  ;;  %6359 = vmatpush3.bf16.msra.mxu1 %v6996_v6  ;;  %v2802_v6 = vshrl.u32 %v7922_v62, 16 }
  0xc3   : > { %6360 = vmatprep.subr.bf16.mxu1 %v6999_v10 }
  0xc6   : > { %6361 = vmatpush3.bf16.msra.mxu1 %v6999_v10  ;;  %v8803_v10 = vld [vmem:[#allocation11_spill] sm:$0xff] }
  0xc7   : > { %6362 = vmatprep.subr.bf16.mxu1 %v7002_v39 }
  0xc8   : > { %6331 = vmatmul.mubr.bf16.gmra.mrb[8].mxu1 %v7569_v19 }
  0xc9   : > { %6539 = vmatmul.mubr.bf16.gmra.mrb[24].mxu0 %v7755_v38  ;;  %6334 = vmatprep.mubr.bf16.mxu1 %v7601_v35 }
  0xca   : > { %6542 = vmatprep.mubr.bf16.mxu0 %v7909_v48  ;;  %6363 = vmatpush3.bf16.msra.mxu1 %v7002_v39 }
  0xcb   : > { %6364 = vmatprep.subr.bf16.mxu1 %v7004_v27 }
  0xce   : > { %6365 = vmatpush3.bf16.msra.mxu1 %v7004_v27  ;;  %v2794_v27 = vrot.slane %v2792_v36, 5 }
  0xcf   : > { %6366 = vmatprep.subr.bf16.mxu1 %v7006_v24 }
  0xd0   : > { %6335 = vmatmul.mubr.bf16.gmra.mrb[12].mxu1 %v7635_v21 }
  0xd1   : > { %6543 = vmatmul.mubr.bf16.gmra.mrb[28].mxu0 %v5801_v14  ;;  %6338 = vmatprep.mubr.bf16.mxu1 %v7667_v58  ;;  %v2804_v14 = vrot.slane %v2802_v6, 4 }
  0xd2   : > { %6562 = vmatprep.mubr.bf16.mxu0 %v7235_v51  ;;  %6367 = vmatpush3.bf16.msra.mxu1 %v7006_v24  ;;  %v8795_v51 = vld [vmem:[#allocation3_spill] sm:$0xff] }
  0xd3   : > { %6368 = vmatprep.subr.bf16.mxu1 %v7008_v7 }
  0xd6   : > { %6369 = vmatpush3.bf16.msra.mxu1 %v7008_v7  ;;  %v7025_v7 = vld [vmem:[%s8758_s1 + $0x110] sm:$0xff]  }
  0xd7   : > { %6642 = vmatprep.subr.bf16.mxu1 %v7023_v1 }
  0xd8   : > { %6339 = vmatmul.mubr.bf16.gmra.mrb[16].mxu1 %v7672_v18 }
  0xd9   : > { %6563 = vmatmul.mubr.bf16.vlgmr.msra.gmra.mrb[0].mxu0 %v8794_v30  ;;  %6342 = vmatprep.mubr.bf16.mxu1 %v7692_v13 }
  0xda   : > { %6595 = vmatpush3.bf16.msra.mxu0 %v7003_v56  ;;  %6566 = vmatprep.mubr.bf16.mxu0 %v8795_v51  ;;  %v2789_v56 = vshrl.u32 %v7919_v0, 16 }
  0xdb   : > { %6596 = vmatprep.subr.bf16.mxu0 %v7005_v20 }
  0xdc   : > { %v2791_v39 = vrot.slane %v2789_v56, 4 }
  0xde   : > { %6597 = vmatpush3.bf16.msra.mxu0 %v7005_v20  ;;  %v8804_v20 = vld [vmem:[#allocation12_spill] sm:$0xff] }
  0xdf   : > { %6598 = vmatprep.subr.bf16.mxu0 %v7007_v5 }
  0xe0   : > { %6343 = vmatmul.mubr.bf16.gmra.mrb[20].mxu1 %v7697_v29 }
  0xe1   : > { %6567 = vmatmul.mubr.bf16.gmra.mrb[4].mxu0 %v8796_v47  ;;  %6346 = vmatprep.mubr.bf16.mxu1 %v7750_v4 }
  0xe2   : > { %6570 = vmatprep.mubr.bf16.mxu0 %v8797_v52  ;;  %6599 = vmatpush3.bf16.msra.mxu0 %v7007_v5  ;;  %v7026_v5 = vld [vmem:[%s8758_s1 + $0x118] sm:$0xff]  }
  0xe3   : > { %6600 = vmatprep.subr.bf16.mxu0 %v7009_v32 }
  0xe6   : > { %6601 = vmatpush3.bf16.msra.mxu0 %v7009_v32 }
  0xe7   : > { %6602 = vmatprep.subr.bf16.mxu0 %v7010_v2 }
  0xe8   : > { %6347 = vmatmul.mubr.bf16.gmra.mrb[24].mxu1 %v7757_v3 }
  0xe9   : > { %6571 = vmatmul.mubr.bf16.gmra.mrb[8].mxu0 %v8798_v34  ;;  %6350 = vmatprep.mubr.bf16.mxu1 %v7791_v50 }
  0xea   : > { %6574 = vmatprep.mubr.bf16.mxu0 %v8799_v59  ;;  %6603 = vmatpush3.bf16.msra.mxu0 %v7010_v2 }
  0xeb   : > { %6604 = vmatprep.subr.bf16.mxu0 %v7011_v54 }
  0xee   : > { %6605 = vmatpush3.bf16.msra.mxu0 %v7011_v54  ;;  %v7028_v54 = vld [vmem:[%s8758_s1 + $0x128] sm:$0xff]  }
  0xef   : > { %6606 = vmatprep.subr.bf16.mxu0 %v7012_v63 }
  0xf0   : > { %6351 = vmatmul.mubr.bf16.gmra.mrb[28].mxu1 %v7801_v42 }
  0xf1   : > { %6575 = vmatmul.mubr.bf16.gmra.mrb[12].mxu0 %v8800_v49  ;;  %6370 = vmatprep.mubr.bf16.mxu1 %v7171_v43  ;;  %v2798_v43 = vshll.u32 %v7922_v62, 16 }
  0xf2   : > { %6578 = vmatprep.mubr.bf16.mxu0 %v8801_v22  ;;  %6607 = vmatpush3.bf16.msra.mxu0 %v7012_v63  ;;  %v8087_v63 = vld [vmem:[%s8760_s3] ss:$0 sm:$0xff] }
  0xf3   : > { %6608 = vmatprep.subr.bf16.mxu0 %v7013_v25  ;;  %v2800_v24 = vrot.slane %v2798_v43, 5 }
  0xf5   : > { %v2805_v30 = vor.u32 %v2804_v14, %v2800_v24 }
  0xf6   : > { %6609 = vmatpush3.bf16.msra.mxu0 %v7013_v25 }
  0xf7   : > { %v2806_v47 = vrot.slane %v2805_v30, 4 }
  0xf8   : > { %6371 = vmatmul.mubr.bf16.vlgmr.msra.gmra.mrb[0].mxu1 %v7247_v60  ;;  %v7024_v60 = vld [vmem:[%s8758_s1 + $0x108] sm:$0xff]  }
  0xf9   : > { %6579 = vmatmul.mubr.bf16.gmra.mrb[16].mxu0 %v8802_v8  ;;  %6650 = vmatpush3.bf16.msra.mxu1 %v7023_v1  ;;  %v2795_v1 = vor.u32 %v2794_v27, %v2791_v39 }
  0xfa   : > { %6374 = vmatprep.mubr.bf16.mxu1 %v7318_v11  ;;  %6582 = vmatprep.mubr.bf16.mxu0 %v8803_v10  ;;  %v7990_v11 = vld [vmem:[%s7113_s14 + $0xd4] sm:$0x1] }
  0xfb   : > { %6643 = vmatprep.subr.bf16.mxu1 %v7024_v60  ;;  %v2808_v51 = vshll.u32 %v7990_v11, 16  ;;  %v2796_v32 = vrot.slane %v2795_v1, 4 }
  0xfd   : > { %6651 = vmatpush3.bf16.msra.mxu1 %v7024_v60  ;;  %v2810_v52 = vrot.slane %v2808_v51, 5 }
  0xfe   : > { %6644 = vmatprep.subr.bf16.mxu1 %v7025_v7 }
  0xff   : > { %v2811_v2 = vsel %vm7158_vm2, %v2806_v47, %v2810_v52 }
 0x100   : > { %6375 = vmatmul.mubr.bf16.gmra.mrb[4].mxu1 %v7322_v15  ;;  %v7027_v15 = vld [vmem:[%s8758_s1 + $0x120] sm:$0xff]  }
 0x101   : > { %6583 = vmatmul.mubr.bf16.gmra.mrb[20].mxu0 %v8804_v20  ;;  %6378 = vmatprep.mubr.bf16.mxu1 %v7789_v12  ;;  %v2801_v12 = vsel %vm7158_vm2, %v2796_v32, %v2800_v24 }
 0x102   : > { %6586 = vmatprep.mubr.bf16.mxu0 %v7631_v55  ;;  %6652 = vmatpush3.bf16.msra.mxu1 %v7025_v7  ;;  %v5826_v34 = vcombine.low %v2801_v12, %v2811_v2 }
 0x103   : > { %6645 = vmatprep.subr.bf16.mxu1 %v7026_v5 }
 0x106   : > { %6653 = vmatpush3.bf16.msra.mxu1 %v7026_v5 }
 0x107   : > { %6646 = vmatprep.subr.bf16.mxu1 %v7027_v15 }
 0x108   : > { %6379 = vmatmul.mubr.bf16.gmra.mrb[8].mxu1 %v7795_v31  ;;  %v7029_v31 = vld [vmem:[%s8758_s1 + $0x130] sm:$0xff]  }
 0x109   : > { %6587 = vmatmul.mubr.bf16.gmra.mrb[24].mxu0 %v7665_v61  ;;  %6382 = vmatprep.mubr.bf16.mxu1 %v7820_v41  ;;  %v3490_v41 = vlaneseq }
 0x10a   : > { %6590 = vmatprep.mubr.bf16.mxu0 %v7828_v57  ;;  %6654 = vmatpush3.bf16.msra.mxu1 %v7027_v15 }
 0x10b   : > { %6647 = vmatprep.subr.bf16.mxu1 %v7028_v54 }
 0x10e   : > { %6655 = vmatpush3.bf16.msra.mxu1 %v7028_v54 }
 0x10f   : > { %6648 = vmatprep.subr.bf16.mxu1 %v7029_v31 }
 0x110   : > { %6383 = vmatmul.mubr.bf16.gmra.mrb[12].mxu1 %v7710_v28 }
 0x111   : > { %6591 = vmatmul.mubr.bf16.gmra.mrb[28].mxu0 %v5826_v34  ;;  %6386 = vmatprep.mubr.bf16.mxu1 %v7721_v33 }
 0x112   : > { %6610 = vmatprep.mubr.bf16.mxu0 %v7459_v26  ;;  %6656 = vmatpush3.bf16.msra.mxu1 %v7029_v31  ;;  %v3077_v26 = vrot.slane %v7922_v62, 5  ;;  %v3491_v62 = vshrl.u32 %v3490_v41, 7 }
 0x113   : > { %6649 = vmatprep.subr.bf16.mxu1 %v7030_v37 }
 0x116   : > { %6657 = vmatpush3.bf16.msra.mxu1 %v7030_v37 }
 0x118   : > { %6387 = vmatmul.mubr.bf16.gmra.mrb[16].mxu1 %v7732_v45 }
 0x119   : > { %6611 = vmatmul.mubr.bf16.vlgmr.msra.gmra.mrb[0].mxu0 %v7499_v46  ;;  %6390 = vmatprep.mubr.bf16.mxu1 %v7736_v40  ;;  %v5835_v46 = vrot.slane %v7919_v0, 9 }
 0x11a   : > { %6614 = vmatprep.mubr.bf16.mxu0 %v7536_v44  ;;  %v3079_v44 = vrot.slane %v3077_v26, 4 }
 0x120   : > { %6391 = vmatmul.mubr.bf16.gmra.mrb[20].mxu1 %v7740_v53 }
 0x121   : > { %6615 = vmatmul.mubr.bf16.gmra.mrb[4].mxu0 %v7569_v19  ;;  %6394 = vmatprep.mubr.bf16.mxu1 %v7744_v9  ;;  %v3080_v19 = vrot.slane %v7990_v11, 5 }
 0x122   : > { %6618 = vmatprep.mubr.bf16.mxu0 %v7601_v35  ;;  %v3078_v35 = vsel %vm7365_vm5, %v5835_v46, %v3077_v26 }
 0x128   : > { %6395 = vmatmul.mubr.bf16.gmra.mrb[24].mxu1 %v7748_v16 }
 0x129   : > { %6619 = vmatmul.mubr.bf16.gmra.mrb[8].mxu0 %v7635_v21  ;;  %6398 = vmatprep.mubr.bf16.mxu1 %v7755_v38  ;;  %v3081_v21 = vsel %vm7365_vm5, %v3079_v44, %v3080_v19 }
 0x12a   : > { %6622 = vmatprep.mubr.bf16.mxu0 %v7667_v58  ;;  %v5852_v58 = vcombine.low %v3078_v35, %v3081_v21 }
 0x130   : > { %6399 = vmatmul.mubr.bf16.gmra.mrb[28].mxu1 %v7909_v48 }
 0x131   : > { %6623 = vmatmul.mubr.bf16.gmra.mrb[12].mxu0 %v7672_v18  ;;  %6434 = vmatprep.mubr.bf16.mxu1 %v8800_v49 }
 0x132   : > { %6626 = vmatprep.mubr.bf16.mxu0 %v7692_v13 }
 0x138   : > { %6435 = vmatmul.mubr.bf16.vlgmr.msra.gmra.mrb[16].mxu1 %v8801_v22 }
 0x139   : > { %6627 = vmatmul.mubr.bf16.gmra.mrb[16].mxu0 %v7697_v29  ;;  %6438 = vmatprep.mubr.bf16.mxu1 %v8802_v8 }
 0x13a   : > { %6630 = vmatprep.mubr.bf16.mxu0 %v7750_v4 }
 0x140   : > { %6439 = vmatmul.mubr.bf16.gmra.mrb[20].mxu1 %v8803_v10 }
 0x141   : > { %6631 = vmatmul.mubr.bf16.gmra.mrb[20].mxu0 %v7757_v3  ;;  %6442 = vmatprep.mubr.bf16.mxu1 %v8804_v20 }
 0x142   : > { %6634 = vmatprep.mubr.bf16.mxu0 %v7791_v50  ;;  %v7043_v50 = vmov 1983009808  }
 0x148   : > { %6443 = vmatmul.mubr.bf16.gmra.mrb[24].mxu1 %v7631_v55 }
 0x149   : > { %6635 = vmatmul.mubr.bf16.gmra.mrb[24].mxu0 %v7801_v42  ;;  %6446 = vmatprep.mubr.bf16.mxu1 %v7665_v61  ;;  %v3488_v42 = vunpack.c.l.s4 %v7043_v50 }
 0x14a   : > { %6638 = vmatprep.mubr.bf16.mxu0 %v7822_v17 }
 0x14b   : > { %v3489_v0 = vunpack.c.0.s8 %v3488_v42 }
 0x14d   : > { %v8092_v10 = vsub.s32 %v3489_v0, %v3491_v62 }
 0x150   : > { %6447 = vmatmul.mubr.bf16.gmra.mrb[28].mxu1 %v7828_v57  ;;  %v8082_v57 = vld [vmem:[%s8759_s2] ss:$0 sm:$0xff] }
 0x151   : > { %6639 = vmatmul.mubr.bf16.gmra.mrb[28].mxu0 %v5852_v58 }
 0x1cb   : > { %v6372_v18 = vpop.f32.mrb[0].mxu1 }
 0x1cc   : > { %v1809_v13 = vpop.f32.mrb[1].mxu1 }
 0x1cd   : > { %v6373_v29 = vpop.f32.mrb[2].mxu1 }
 0x1ce   : > { %v1812_v55 = vpop.f32.mrb[3].mxu1 }
 0x1d3   : > { %v6376_v28 = vpop.f32.mrb[4].mxu1 }
 0x1d4   : > { %v1825_v33 = vpop.f32.mrb[5].mxu1 }
 0x1d5   : > { %v8059_v45 = vpop.f32.mrb[6].mxu1 }
 0x1d6   : > { %v8061_v61 = vpop.f32.mrb[7].mxu1 }
 0x1db   : > { %v8063_v40 = vpop.f32.mrb[8].mxu1 }
 0x1dc   : > { %v8065_v53 = vpop.f32.mrb[9].mxu1 }
 0x1dd   : > { %v8067_v23 = vpop.f32.mrb[10].mxu1 }
 0x1de   : > { %v8069_v9 = vpop.f32.mrb[11].mxu1 }
 0x1e3   : > { %v8071_v16 = vpop.f32.mrb[12].mxu1 }
 0x1e4   : > { %v8073_v4 = vpop.f32.mrb[13].mxu1 }
 0x1e5   : > { %v8075_v38 = vpop.f32.mrb[14].mxu1 }
 0x1e6   : > { %v8077_v3 = vpop.f32.mrb[15].mxu1 }
 0x1ec   : > { %v6612_v17 = vpop.f32.mrb[0].mxu0 }
 0x1ed   : > { %v6658_v48 = vadd.f32 %v6612_v17, %v6372_v18  ;;  %v3185_v59 = vpop.f32.mrb[1].mxu0 }
 0x1ee   : > { %v6659_v25 = vadd.f32 %v3185_v59, %v1809_v13  ;;  %v6613_v49 = vpop.f32.mrb[2].mxu0 }
 0x1ef   : > { %v3353_v22 = vmul.f32 %v6658_v48, %v8082_v57  ;;  %v6660_v8 = vadd.f32 %v6613_v49, %v6373_v29  ;;  %v3188_v56 = vpop.f32.mrb[3].mxu0 }
 0x1f0   : > { %v3351_v36 = vmul.f32 %v6659_v25, %v8082_v57  ;;  %v6661_v6 = vadd.f32 %v3188_v56, %v1812_v55 }
 0x1f1   : > { %v3392_v43 = vadd.f32 %v8087_v63, %v3353_v22  ;;  %v3354_v60 = vmul.f32 %v6660_v8, %v8082_v57 }
 0x1f2   : > { %v3390_v39 = vadd.f32 %v8087_v63, %v3351_v36  ;;  %v3352_v27 = vmul.f32 %v6661_v6, %v8082_v57 }
 0x1f3   : > { %v3424_v24 = vmax.f32 %v3392_v43, 0.0  ;;  %v3393_v14 = vadd.f32 %v8087_v63, %v3354_v60 }
 0x1f4   : > { %v3422_v7 = vmax.f32 %v3390_v39, 0.0  ;;  %v3391_v11 = vadd.f32 %v8087_v63, %v3352_v27  ;;  %v6616_v20 = vpop.f32.mrb[4].mxu0 }
 0x1f5   : > { %v3520_v1 = vcombine.high %v3424_v24, %v3424_v24  ;;  %v3527_v30 = vrot.slane %v3424_v24, %v8092_v10  ;;  %v8100_v51 = vmax.f32 %v3393_v14, 0.0  ;;  %v8102_v5 = vadd.f32 %v6616_v20, %v6376_v28  ;;  %v3201_v32 = vpop.f32.mrb[5].mxu0 }
 0x1f6   : > { %v3486_v47 = vcombine.high %v3422_v7, %v3422_v7  ;;  %v3493_v52 = vrot.slane %v3422_v7, %v8092_v10  ;;  %v8105_v15 = vmax.f32 %v3391_v11, 0.0  ;;  %v8107_v12 = vadd.f32 %v3201_v32, %v1825_v33  ;;  %v8109_v2 = vpop.f32.mrb[6].mxu0 }
 0x1f7   : > { %v3534_v54 = vrot.slane %v3520_v1, %v8092_v10  ;;  %v3535_v34 = vcombine.high %v3527_v30, %v3527_v30  ;;  %v4215_v31 = vsel %vm4158_vm6, %v3527_v30, -inf  ;;  %v3537_v37 = vcombine.high %v8100_v51, %v8100_v51  ;;  %v8115_v26 = vpop.f32.mrb[7].mxu0 }
 0x1f8   : > { %v4216_v46 = vrot.slane %v4215_v31, 4  ;;  %v3500_v44 = vrot.slane %v3486_v47, %v8092_v10  ;;  %v3501_v19 = vcombine.high %v3493_v52, %v3493_v52  ;;  %v4159_v35 = vsel %vm4158_vm6, %v3493_v52, -inf }
 0x1f9   : > { %v3536_v21 = vcombine.high %v3534_v54, %v3534_v54  ;;  %v4222_v58 = vsel %vm4158_vm6, %v3535_v34, -inf  ;;  %v4229_v18 = vsel %vm4158_vm6, %v3534_v54, -inf  ;;  %v4160_v13 = vrot.slane %v4159_v35, 4 }
 0x1fa   : > { %v4217_v29 = vmax.f32 %v4215_v31, %v4216_v46  ;;  %v4223_v55 = vrot.slane %v4222_v58, 4  ;;  %v4230_v28 = vrot.slane %v4229_v18, 4  ;;  %v3502_v33 = vcombine.high %v3500_v44, %v3500_v44 }
 0x1fb   : > { %v4236_v50 = vsel %vm4158_vm6, %v3536_v21, -inf  ;;  %v4161_v42 = vmax.f32 %v4159_v35, %v4160_v13  ;;  %v4166_v41 = vsel %vm4158_vm6, %v3501_v19, -inf  ;;  %v4173_v17 = vsel %vm4158_vm6, %v3500_v44, -inf }
 0x1fc   : > { %v4218_v48 = vrot.slane %v4217_v29, 2  ;;  %v4224_v0 = vmax.f32 %v4222_v58, %v4223_v55  ;;  %v4231_v62 = vmax.f32 %v4229_v18, %v4230_v28  ;;  %v4237_v59 = vrot.slane %v4236_v50, 4  ;;  %v8124_v25 = vpop.f32.mrb[8].mxu0 }
 0x1fd   : > { %v4162_v49 = vrot.slane %v4161_v42, 2  ;;  %v4167_v22 = vrot.slane %v4166_v41, 4  ;;  %v4174_v8 = vrot.slane %v4173_v17, 4  ;;  %v4180_v56 = vsel %vm4158_vm6, %v3502_v33, -inf  ;;  %v8127_v36 = vpop.f32.mrb[9].mxu0 }
 0x1fe   : > { %v4219_v6 = vmax.f32 %v4217_v29, %v4218_v48  ;;  %v4225_v43 = vrot.slane %v4224_v0, 2  ;;  %v4232_v60 = vrot.slane %v4231_v62, 2  ;;  %v4238_v39 = vmax.f32 %v4236_v50, %v4237_v59  ;;  %v8129_v27 = vpop.f32.mrb[10].mxu0 }
 0x1ff   : > { %v4163_v24 = vmax.f32 %v4161_v42, %v4162_v49  ;;  %v4168_v14 = vmax.f32 %v4166_v41, %v4167_v22  ;;  %v4175_v7 = vmax.f32 %v4173_v17, %v4174_v8  ;;  %v4181_v11 = vrot.slane %v4180_v56, 4  ;;  %v8131_v20 = vpop.f32.mrb[11].mxu0 }
 0x200   : > { %v4220_v1 = vrot.slane %v4219_v6, 1  ;;  %v4226_v30 = vmax.f32 %v4224_v0, %v4225_v43  ;;  %v4233_v32 = vmax.f32 %v4231_v62, %v4232_v60  ;;  %v4239_v47 = vrot.slane %v4238_v39, 2 }
 0x201   : > { %v4164_v52 = vrot.slane %v4163_v24, 1  ;;  %v4169_v54 = vrot.slane %v4168_v14, 2  ;;  %v4176_v34 = vrot.slane %v4175_v7, 2  ;;  %v4182_v31 = vmax.f32 %v4180_v56, %v4181_v11 }
 0x202   : > { %v4221_v46 = vmax.f32 %v4219_v6, %v4220_v1  ;;  %v4227_v44 = vrot.slane %v4226_v30, 1  ;;  %v4234_v19 = vrot.slane %v4233_v32, 1  ;;  %v4240_v35 = vmax.f32 %v4238_v39, %v4239_v47 }
 0x203   : > { %v4165_v21 = vmax.f32 %v4163_v24, %v4164_v52  ;;  %v4170_v58 = vmax.f32 %v4168_v14, %v4169_v54  ;;  %v4177_v18 = vmax.f32 %v4175_v7, %v4176_v34  ;;  %v4183_v13 = vrot.slane %v4182_v31, 2 }
 0x204   : > { %v4228_v29 = vmax.f32 %v4226_v30, %v4227_v44  ;;  %v4235_v55 = vmax.f32 %v4233_v32, %v4234_v19  ;;  %v4241_v28 = vrot.slane %v4240_v35, 1  ;;  %v3544_v33 = vrot.slane %v8100_v51, %v8092_v10  ;;  %v8135_v50 = vpop.f32.mrb[12].mxu0 }
 0x205   : > { %v4171_v42 = vrot.slane %v4170_v58, 1  ;;  %v4178_v41 = vrot.slane %v4177_v18, 1  ;;  %v4184_v17 = vmax.f32 %v4182_v31, %v4183_v13  ;;  %v5055_v48 = vmax.f32 %v4165_v21, %v4221_v46  ;;  %v8137_v0 = vpop.f32.mrb[13].mxu0 }
 0x206   : > { %v4242_v62 = vmax.f32 %v4240_v35, %v4241_v28  ;;  %v3551_v59 = vrot.slane %v3537_v37, %v8092_v10  ;;  %v3552_v49 = vcombine.high %v3544_v33, %v3544_v33  ;;  %v4243_v22 = vsel %vm4158_vm6, %v3544_v33, -inf  ;;  %v8144_v8 = vpop.f32.mrb[14].mxu0 }
 0x207   : > { %v4172_v56 = vmax.f32 %v4170_v58, %v4171_v42  ;;  %v4179_v6 = vmax.f32 %v4177_v18, %v4178_v41  ;;  %v4185_v43 = vrot.slane %v4184_v17, 1  ;;  %v5930_v60 = vpack.c.bf16 %v5055_v48, %v5055_v48  ;;  %v8146_v39 = vpop.f32.mrb[15].mxu0 }
 0x208   : > { %v3553_v24 = vcombine.high %v3551_v59, %v3551_v59  ;;  %v4244_v14 = vrot.slane %v4243_v22, 4  ;;  %v4250_v7 = vsel %vm4158_vm6, %v3552_v49, -inf  ;;  %v4257_v11 = vsel %vm4158_vm6, %v3551_v59, -inf }
 0x209   : > { %v4186_v1 = vmax.f32 %v4184_v17, %v4185_v43  ;;  %v5056_v51 = vmax.f32 %v4172_v56, %v4228_v29  ;;  %v5057_v37 = vmax.f32 %v4179_v6, %v4235_v55  ;;  %v5375_v30 = vunpack.c.l.b16 %v5930_v60 }
 0x20a   : > { %v4245_v32 = vmax.f32 %v4243_v22, %v4244_v14  ;;  %v4251_v47 = vrot.slane %v4250_v7, 4  ;;  %v4258_v52 = vrot.slane %v4257_v11, 4  ;;  %v4264_v54 = vsel %vm4158_vm6, %v3553_v24, -inf }
 0x20b   : > { %v5058_v34 = vmax.f32 %v4186_v1, %v4242_v62  ;;  %v5931_v31 = vpack.c.bf16 %v5056_v51, %v5056_v51  ;;  %v5932_v46 = vpack.c.bf16 %v5057_v37, %v5057_v37  ;;  %v4265_v44 = vrot.slane %v4264_v54, 4 }
 0x20c   : > { %v4246_v19 = vrot.slane %v4245_v32, 2  ;;  %v4252_v35 = vmax.f32 %v4250_v7, %v4251_v47  ;;  %v4259_v21 = vmax.f32 %v4257_v11, %v4258_v52  ;;  %v3503_v58 = vcombine.high %v8105_v15, %v8105_v15 }
 0x20d   : > { %v5933_v18 = vpack.c.bf16 %v5058_v34, %v5058_v34  ;;  %v5376_v13 = vunpack.c.l.b16 %v5931_v31  ;;  %v5377_v29 = vunpack.c.l.b16 %v5932_v46  ;;  %v4266_v55 = vmax.f32 %v4264_v54, %v4265_v44  ;;  %v8162_v31 = vpop.f32.mrb[16].mxu1  ;;  %v8164_v46 = vpop.f32.mrb[16].mxu0 }
 0x20e   : > { %v4247_v28 = vmax.f32 %v4245_v32, %v4246_v19  ;;  %v4253_v33 = vrot.slane %v4252_v35, 2  ;;  %v4260_v42 = vrot.slane %v4259_v21, 2  ;;  %v3510_v41 = vrot.slane %v8105_v15, %v8092_v10 }
 0x20f   : > { %v5378_v17 = vunpack.c.l.b16 %v5933_v18  ;;  %v5440_v48 = vsel %vm5439_vm7, %v5376_v13, %v5375_v30  ;;  %v4267_v62 = vrot.slane %v4266_v55, 2  ;;  %v3517_v59 = vrot.slane %v3503_v58, %v8092_v10 }
 0x210   : > { %v5442_v49 = vsel %vm5441_vm8, %v5377_v29, %v5440_v48  ;;  %v4248_v22 = vrot.slane %v4247_v28, 1  ;;  %v4254_v56 = vmax.f32 %v4252_v35, %v4253_v33  ;;  %v4261_v6 = vmax.f32 %v4259_v21, %v4260_v42 }
 0x211   : > { %v4268_v43 = vmax.f32 %v4266_v55, %v4267_v62  ;;  %v3518_v60 = vcombine.high %v3510_v41, %v3510_v41  ;;  %v3519_v24 = vcombine.high %v3517_v59, %v3517_v59  ;;  %v4187_v14 = vsel %vm4158_vm6, %v3510_v41, -inf }
 0x212   : > { %v4249_v7 = vmax.f32 %v4247_v28, %v4248_v22  ;;  %v4255_v11 = vrot.slane %v4254_v56, 1  ;;  %v4262_v1 = vrot.slane %v4261_v6, 1  ;;  %v4188_v15 = vrot.slane %v4187_v14, 4 }
 0x213   : > { %v4269_v51 = vrot.slane %v4268_v43, 1  ;;  %v4194_v37 = vsel %vm4158_vm6, %v3518_v60, -inf  ;;  %v4201_v30 = vsel %vm4158_vm6, %v3517_v59, -inf  ;;  %v4208_v32 = vsel %vm4158_vm6, %v3519_v24, -inf  ;;  %v8187_v60 = vpop.f32.mrb[17].mxu1  ;;  %v8189_v24 = vpop.f32.mrb[17].mxu0 }
 0x214   : > { %v4256_v47 = vmax.f32 %v4254_v56, %v4255_v11  ;;  %v4263_v52 = vmax.f32 %v4261_v6, %v4262_v1  ;;  %v4189_v54 = vmax.f32 %v4187_v14, %v4188_v15  ;;  %v4195_v34 = vrot.slane %v4194_v37, 4 }
 0x215   : > { %v4270_v44 = vmax.f32 %v4268_v43, %v4269_v51  ;;  %v4202_v19 = vrot.slane %v4201_v30, 4  ;;  %v4209_v35 = vrot.slane %v4208_v32, 4  ;;  %v8167_v21 = vsel %vm5443_vm9, %v5378_v17, %v5442_v49 }
 0x216   : > { %v4190_v58 = vrot.slane %v4189_v54, 2  ;;  %v4196_v18 = vmax.f32 %v4194_v37, %v4195_v34  ;;  %v3357_v13 = vmul.f32 %v8102_v5, %v8082_v57  ;;  %v3355_v29 = vmul.f32 %v8107_v12, %v8082_v57 }
 0x217   : > { %v4203_v55 = vmax.f32 %v4201_v30, %v4202_v19  ;;  %v4210_v28 = vmax.f32 %v4208_v32, %v4209_v35  ;;  %v6664_v33 = vadd.f32 %v8109_v2, %v8059_v45  ;;  %v6665_v42 = vadd.f32 %v8115_v26, %v8061_v61 }
 0x218   : > { %v4191_v41 = vmax.f32 %v4189_v54, %v4190_v58  ;;  %v4197_v48 = vrot.slane %v4196_v18, 2  ;;  %v3396_v17 = vadd.f32 %v8087_v63, %v3357_v13  ;;  %v3394_v62 = vadd.f32 %v8087_v63, %v3355_v29 }
 0x219   : > { %v4204_v59 = vrot.slane %v4203_v55, 2  ;;  %v4211_v49 = vrot.slane %v4210_v28, 2  ;;  %v3358_v5 = vmul.f32 %v6664_v33, %v8082_v57  ;;  %v3356_v12 = vmul.f32 %v6665_v42, %v8082_v57 }
 0x21a   : > { %v4192_v22 = vrot.slane %v4191_v41, 1  ;;  %v4198_v56 = vmax.f32 %v4196_v18, %v4197_v48  ;;  %v3428_v6 = vmax.f32 %v3396_v17, 0.0  ;;  %v3426_v45 = vmax.f32 %v3394_v62, 0.0 }
 0x21b   : > { %v4205_v2 = vmax.f32 %v4203_v55, %v4204_v59  ;;  %v4212_v43 = vmax.f32 %v4210_v28, %v4211_v49  ;;  %v8182_v61 = vadd.f32 %v8087_v63, %v3358_v5  ;;  %v8185_v26 = vadd.f32 %v8087_v63, %v3356_v12 }
 0x21c   : > { %v4193_v14 = vmax.f32 %v4191_v41, %v4192_v22  ;;  %v4199_v11 = vrot.slane %v4198_v56, 1  ;;  %v3588_v1 = vcombine.high %v3428_v6, %v3428_v6  ;;  %v3595_v15 = vrot.slane %v3428_v6, %v8092_v10 }
 0x21d   : > { %v4206_v51 = vrot.slane %v4205_v2, 1  ;;  %v4213_v37 = vrot.slane %v4212_v43, 1  ;;  %v3554_v30 = vcombine.high %v3426_v45, %v3426_v45  ;;  %v3561_v32 = vrot.slane %v3426_v45, %v8092_v10 }
 0x21e   : > { %v4200_v54 = vmax.f32 %v4198_v56, %v4199_v11  ;;  %v5059_v34 = vmax.f32 %v4193_v14, %v4249_v7  ;;  %v3602_v19 = vrot.slane %v3588_v1, %v8092_v10  ;;  %v3603_v35 = vcombine.high %v3595_v15, %v3595_v15 }
 0x21f   : > { %v4207_v58 = vmax.f32 %v4205_v2, %v4206_v51  ;;  %v4214_v18 = vmax.f32 %v4212_v43, %v4213_v37  ;;  %v4327_v13 = vsel %vm4158_vm6, %v3595_v15, -inf  ;;  %v3568_v29 = vrot.slane %v3554_v30, %v8092_v10 }
 0x220   : > { %v5060_v55 = vmax.f32 %v4200_v54, %v4256_v47  ;;  %v5934_v28 = vpack.c.bf16 %v5059_v34, %v5059_v34  ;;  %v3604_v33 = vcombine.high %v3602_v19, %v3602_v19  ;;  %v4328_v42 = vrot.slane %v4327_v13, 4 }
 0x221   : > { %v5061_v41 = vmax.f32 %v4207_v58, %v4263_v52  ;;  %v5062_v48 = vmax.f32 %v4214_v18, %v4270_v44  ;;  %v4334_v17 = vsel %vm4158_vm6, %v3603_v35, -inf  ;;  %v4341_v7 = vsel %vm4158_vm6, %v3602_v19, -inf  ;;  %v8204_v35 = vpop.f32.mrb[18].mxu1 }
 0x222   : > { %v5935_v62 = vpack.c.bf16 %v5060_v55, %v5060_v55  ;;  %v5379_v59 = vunpack.c.l.b16 %v5934_v28  ;;  %v4329_v49 = vmax.f32 %v4327_v13, %v4328_v42  ;;  %v4335_v5 = vrot.slane %v4334_v17, 4 }
 0x223   : > { %v5936_v12 = vpack.c.bf16 %v5061_v41, %v5061_v41  ;;  %v5937_v22 = vpack.c.bf16 %v5062_v48, %v5062_v48  ;;  %v4342_v56 = vrot.slane %v4341_v7, 4  ;;  %v4348_v6 = vsel %vm4158_vm6, %v3604_v33, -inf }
 0x224   : > { %v5380_v47 = vunpack.c.l.b16 %v5935_v62  ;;  %v5446_v45 = vsel %vm5445_vm10, %v5379_v59, %v8167_v21  ;;  %v4330_v52 = vrot.slane %v4329_v49, 2  ;;  %v4336_v2 = vmax.f32 %v4334_v17, %v4335_v5  ;;  %v8206_v21 = vpop.f32.mrb[18].mxu0 }
 0x225   : > { %v5381_v44 = vunpack.c.l.b16 %v5936_v12  ;;  %v5382_v43 = vunpack.c.l.b16 %v5937_v22  ;;  %v4343_v14 = vmax.f32 %v4341_v7, %v4342_v56  ;;  %v4349_v11 = vrot.slane %v4348_v6, 4 }
 0x226   : > { %v5448_v1 = vsel %vm5447_vm11, %v5380_v47, %v5446_v45  ;;  %v4331_v15 = vmax.f32 %v4329_v49, %v4330_v52  ;;  %v4337_v51 = vrot.slane %v4336_v2, 2  ;;  %v3569_v37 = vcombine.high %v3561_v32, %v3561_v32 }
 0x227   : > { %v5450_v30 = vsel %vm5449_vm12, %v5381_v44, %v5448_v1  ;;  %v4344_v54 = vrot.slane %v4343_v14, 2  ;;  %v4350_v34 = vmax.f32 %v4348_v6, %v4349_v11  ;;  %v3570_v19 = vcombine.high %v3568_v29, %v3568_v29  ;;  %v8221_v11 = vpop.f32.mrb[19].mxu1  ;;  %v8223_v1 = vpop.f32.mrb[19].mxu0 }
 0x228   : > { %v5452_v58 = vsel %vm5451_vm13, %v5382_v43, %v5450_v30  ;;  %v4332_v18 = vrot.slane %v4331_v15, 1  ;;  %v4338_v13 = vmax.f32 %v4336_v2, %v4337_v51  ;;  %v4271_v55 = vsel %vm4158_vm6, %v3561_v32, -inf }
 0x229   : > { %v5502_v28 = vpack.c.b16 %v5452_v58, %v5452_v58  ;;  %v4345_v33 = vmax.f32 %v4343_v14, %v4344_v54  ;;  %v4351_v42 = vrot.slane %v4350_v34, 2  ;;  %v4272_v41 = vrot.slane %v4271_v55, 4 }
 0x22a   : > { %v4333_v48 = vmax.f32 %v4331_v15, %v4332_v18  ;;  %v4339_v17 = vrot.slane %v4338_v13, 1  ;;  %v4278_v7 = vsel %vm4158_vm6, %v3569_v37, -inf  ;;  %v4285_v62 = vsel %vm4158_vm6, %v3568_v29, -inf }
 0x22b   : > { %5518 = vst [vmem:[%s8211_s24] sm:$0xf] %v5502_v28  ;;  %v4346_v59 = vrot.slane %v4345_v33, 1  ;;  %v4352_v49 = vmax.f32 %v4350_v34, %v4351_v42  ;;  %v4273_v5 = vmax.f32 %v4271_v55, %v4272_v41  ;;  %v4279_v12 = vrot.slane %v4278_v7, 4 }
 0x22c   : > { %v4340_v22 = vmax.f32 %v4338_v13, %v4339_v17  ;;  %v4286_v56 = vrot.slane %v4285_v62, 4  ;;  %v4292_v6 = vsel %vm4158_vm6, %v3570_v19, -inf  ;;  %v3429_v32 = vmax.f32 %v8182_v61, 0.0 }
 0x22d   : > { %v4347_v47 = vmax.f32 %v4345_v33, %v4346_v59  ;;  %v4353_v45 = vrot.slane %v4352_v49, 1  ;;  %v4274_v52 = vrot.slane %v4273_v5, 2  ;;  %v4280_v2 = vmax.f32 %v4278_v7, %v4279_v12 }
 0x22e   : > { %v4287_v44 = vmax.f32 %v4285_v62, %v4286_v56  ;;  %v4293_v43 = vrot.slane %v4292_v6, 4  ;;  %v3605_v14 = vcombine.high %v3429_v32, %v3429_v32  ;;  %v3612_v29 = vrot.slane %v3429_v32, %v8092_v10 }
 0x22f   : > { %v4354_v15 = vmax.f32 %v4352_v49, %v4353_v45  ;;  %v4275_v51 = vmax.f32 %v4273_v5, %v4274_v52  ;;  %v4281_v37 = vrot.slane %v4280_v2, 2  ;;  %v3427_v30 = vmax.f32 %v8185_v26, 0.0 }
 0x230   : > { %v4288_v54 = vrot.slane %v4287_v44, 2  ;;  %v4294_v61 = vmax.f32 %v4292_v6, %v4293_v43  ;;  %v3619_v34 = vrot.slane %v3605_v14, %v8092_v10  ;;  %v3620_v19 = vcombine.high %v3612_v29, %v3612_v29 }
 0x231   : > { %v4276_v58 = vrot.slane %v4275_v51, 1  ;;  %v4282_v18 = vmax.f32 %v4280_v2, %v4281_v37  ;;  %v4355_v13 = vsel %vm4158_vm6, %v3612_v29, -inf  ;;  %v3571_v55 = vcombine.high %v3427_v30, %v3427_v30 }
 0x232   : > { %v4289_v28 = vmax.f32 %v4287_v44, %v4288_v54  ;;  %v4295_v33 = vrot.slane %v4294_v61, 2  ;;  %v3621_v42 = vcombine.high %v3619_v34, %v3619_v34  ;;  %v4356_v41 = vrot.slane %v4355_v13, 4 }
 0x233   : > { %v4277_v17 = vmax.f32 %v4275_v51, %v4276_v58  ;;  %v4283_v7 = vrot.slane %v4282_v18, 1  ;;  %v4362_v62 = vsel %vm4158_vm6, %v3620_v19, -inf  ;;  %v4369_v26 = vsel %vm4158_vm6, %v3619_v34, -inf }
 0x234   : > { %v4290_v59 = vrot.slane %v4289_v28, 1  ;;  %v4296_v49 = vmax.f32 %v4294_v61, %v4295_v33  ;;  %v4357_v5 = vmax.f32 %v4355_v13, %v4356_v41  ;;  %v4363_v12 = vrot.slane %v4362_v62, 4 }
 0x235   : > { %v4284_v56 = vmax.f32 %v4282_v18, %v4283_v7  ;;  %v5063_v6 = vmax.f32 %v4277_v17, %v4333_v48  ;;  %v4370_v32 = vrot.slane %v4369_v26, 4  ;;  %v4376_v45 = vsel %vm4158_vm6, %v3621_v42, -inf }
 0x236   : > { %v4291_v52 = vmax.f32 %v4289_v28, %v4290_v59  ;;  %v4297_v2 = vrot.slane %v4296_v49, 1  ;;  %v4358_v44 = vrot.slane %v4357_v5, 2  ;;  %v4364_v43 = vmax.f32 %v4362_v62, %v4363_v12 }
 0x237   : > { %v5064_v14 = vmax.f32 %v4284_v56, %v4340_v22  ;;  %v5938_v29 = vpack.c.bf16 %v5063_v6, %v5063_v6  ;;  %v4371_v51 = vmax.f32 %v4369_v26, %v4370_v32  ;;  %v4377_v37 = vrot.slane %v4376_v45, 4 }
 0x238   : > { %v4298_v54 = vmax.f32 %v4296_v49, %v4297_v2  ;;  %v5065_v19 = vmax.f32 %v4291_v52, %v4347_v47  ;;  %v4359_v34 = vmax.f32 %v4357_v5, %v4358_v44  ;;  %v4365_v58 = vrot.slane %v4364_v43, 2 }
 0x239   : > { %v5939_v61 = vpack.c.bf16 %v5064_v14, %v5064_v14  ;;  %v5383_v13 = vunpack.c.l.b16 %v5938_v29  ;;  %v4372_v33 = vrot.slane %v4371_v51, 2  ;;  %v4378_v18 = vmax.f32 %v4376_v45, %v4377_v37 }
 0x23a   : > { %v5066_v48 = vmax.f32 %v4298_v54, %v4354_v15  ;;  %v5940_v41 = vpack.c.bf16 %v5065_v19, %v5065_v19  ;;  %v4360_v17 = vrot.slane %v4359_v34, 1  ;;  %v4366_v42 = vmax.f32 %v4364_v43, %v4365_v58 }
 0x23b   : > { %v5384_v28 = vunpack.c.l.b16 %v5939_v61  ;;  %v4373_v7 = vmax.f32 %v4371_v51, %v4372_v33  ;;  %v4379_v59 = vrot.slane %v4378_v18, 2  ;;  %v3578_v22 = vrot.slane %v3427_v30, %v8092_v10 }
 0x23c   : > { %v5941_v62 = vpack.c.bf16 %v5066_v48, %v5066_v48  ;;  %v5385_v26 = vunpack.c.l.b16 %v5940_v41  ;;  %v8232_v12 = vmax.f32 %v4359_v34, %v4360_v17  ;;  %v4367_v47 = vrot.slane %v4366_v42, 1  ;;  %v8250_v48 = vpop.f32.mrb[20].mxu0 }
 0x23d   : > { %v5453_v49 = vsel %vm5439_vm7, %v5384_v28, %v5383_v13  ;;  %v4374_v5 = vrot.slane %v4373_v7, 1  ;;  %v4380_v56 = vmax.f32 %v4378_v18, %v4379_v59  ;;  %v3585_v6 = vrot.slane %v3571_v55, %v8092_v10  ;;  %v8248_v18 = vpop.f32.mrb[20].mxu1 }
 0x23e   : > { %v5386_v15 = vunpack.c.l.b16 %v5941_v62  ;;  %v5454_v32 = vsel %vm5441_vm8, %v5385_v26, %v5453_v49  ;;  %v4368_v45 = vmax.f32 %v4366_v42, %v4367_v47  ;;  %v3586_v52 = vcombine.high %v3578_v22, %v3578_v22  ;;  %v8260_v26 = vpop.f32.mrb[21].mxu1  ;;  %v8262_v47 = vpop.f32.mrb[21].mxu0 }
 0x23f   : > { %v4375_v2 = vmax.f32 %v4373_v7, %v4374_v5  ;;  %v4381_v44 = vrot.slane %v4380_v56, 1  ;;  %v3587_v43 = vcombine.high %v3585_v6, %v3585_v6  ;;  %v4299_v30 = vsel %vm4158_vm6, %v3578_v22, -inf }
 0x240   : > { %v4300_v14 = vrot.slane %v4299_v30, 4  ;;  %v4306_v29 = vsel %vm4158_vm6, %v3586_v52, -inf  ;;  %v4313_v51 = vsel %vm4158_vm6, %v3585_v6, -inf  ;;  %v8241_v37 = vsel %vm5443_vm9, %v5386_v15, %v5454_v32 }
 0x241   : > { %v4382_v54 = vmax.f32 %v4380_v56, %v4381_v44  ;;  %v4307_v55 = vrot.slane %v4306_v29, 4  ;;  %v4314_v19 = vrot.slane %v4313_v51, 4  ;;  %v4320_v34 = vsel %vm4158_vm6, %v3587_v43, -inf }
 0x242   : > { %v4301_v58 = vmax.f32 %v4299_v30, %v4300_v14  ;;  %v4321_v61 = vrot.slane %v4320_v34, 4  ;;  %v6666_v13 = vadd.f32 %v8124_v25, %v8063_v40  ;;  %v6667_v33 = vadd.f32 %v8127_v36, %v8065_v53 }
 0x243   : > { %v4308_v41 = vmax.f32 %v4306_v29, %v4307_v55  ;;  %v4315_v17 = vmax.f32 %v4313_v51, %v4314_v19  ;;  %v6668_v42 = vadd.f32 %v8129_v27, %v8067_v23  ;;  %v6669_v28 = vadd.f32 %v8131_v20, %v8069_v9 }
 0x244   : > { %v4302_v7 = vrot.slane %v4301_v58, 2  ;;  %v4322_v59 = vmax.f32 %v4320_v34, %v4321_v61  ;;  %v3361_v22 = vmul.f32 %v6666_v13, %v8082_v57  ;;  %v3359_v40 = vmul.f32 %v6667_v33, %v8082_v57 }
 0x245   : > { %v4309_v25 = vrot.slane %v4308_v41, 2  ;;  %v4316_v53 = vrot.slane %v4315_v17, 2  ;;  %v3362_v36 = vmul.f32 %v6668_v42, %v8082_v57  ;;  %v3360_v62 = vmul.f32 %v6669_v28, %v8082_v57 }
 0x246   : > { %v4303_v23 = vmax.f32 %v4301_v58, %v4302_v7  ;;  %v4323_v27 = vrot.slane %v4322_v59, 2  ;;  %v3400_v9 = vadd.f32 %v8087_v63, %v3361_v22  ;;  %v3398_v20 = vadd.f32 %v8087_v63, %v3359_v40 }
 0x247   : > { %v4310_v49 = vmax.f32 %v4308_v41, %v4309_v25  ;;  %v4317_v5 = vmax.f32 %v4315_v17, %v4316_v53  ;;  %v3401_v56 = vadd.f32 %v8087_v63, %v3362_v36  ;;  %v3399_v6 = vadd.f32 %v8087_v63, %v3360_v62 }
 0x248   : > { %v4304_v15 = vrot.slane %v4303_v23, 1  ;;  %v4324_v32 = vmax.f32 %v4322_v59, %v4323_v27  ;;  %v3432_v52 = vmax.f32 %v3400_v9, 0.0  ;;  %v3430_v57 = vmax.f32 %v3398_v20, 0.0 }
 0x249   : > { %v4311_v44 = vrot.slane %v4310_v49, 1  ;;  %v4318_v43 = vrot.slane %v4317_v5, 1  ;;  %v8268_v30 = vmax.f32 %v3401_v56, 0.0  ;;  %v8270_v14 = vmax.f32 %v3399_v6, 0.0 }
 0x24a   : > { %v4305_v29 = vmax.f32 %v4303_v23, %v4304_v15  ;;  %v4325_v51 = vrot.slane %v4324_v32, 1  ;;  %v3656_v55 = vcombine.high %v3432_v52, %v3432_v52  ;;  %v3663_v19 = vrot.slane %v3432_v52, %v8092_v10 }
 0x24b   : > { %v4312_v34 = vmax.f32 %v4310_v49, %v4311_v44  ;;  %v4319_v58 = vmax.f32 %v4317_v5, %v4318_v43  ;;  %v3622_v61 = vcombine.high %v3430_v57, %v3430_v57  ;;  %v3629_v63 = vrot.slane %v3430_v57, %v8092_v10 }
 0x24c   : > { %v4326_v13 = vmax.f32 %v4324_v32, %v4325_v51  ;;  %v5067_v33 = vmax.f32 %v4305_v29, %v8232_v12  ;;  %v3670_v41 = vrot.slane %v3656_v55, %v8092_v10  ;;  %v3671_v17 = vcombine.high %v3663_v19, %v3663_v19 }
 0x24d   : > { %v5068_v42 = vmax.f32 %v4312_v34, %v4368_v45  ;;  %v5069_v28 = vmax.f32 %v4319_v58, %v4375_v2  ;;  %v4439_v7 = vsel %vm4158_vm6, %v3663_v19, -inf  ;;  %v3636_v59 = vrot.slane %v3622_v61, %v8092_v10 }
 0x24e   : > { %v5070_v22 = vmax.f32 %v4326_v13, %v4382_v54  ;;  %v5942_v40 = vpack.c.bf16 %v5067_v33, %v5067_v33  ;;  %v3672_v25 = vcombine.high %v3670_v41, %v3670_v41  ;;  %v4440_v53 = vrot.slane %v4439_v7, 4 }
 0x24f   : > { %v5943_v36 = vpack.c.bf16 %v5068_v42, %v5068_v42  ;;  %v5944_v62 = vpack.c.bf16 %v5069_v28, %v5069_v28  ;;  %v4446_v23 = vsel %vm4158_vm6, %v3671_v17, -inf  ;;  %v4453_v27 = vsel %vm4158_vm6, %v3670_v41, -inf  ;;  %v8287_v42 = vpop.f32.mrb[22].mxu1  ;;  %v8289_v28 = vpop.f32.mrb[22].mxu0 }
 0x250   : > { %v5945_v12 = vpack.c.bf16 %v5070_v22, %v5070_v22  ;;  %v5387_v9 = vunpack.c.l.b16 %v5942_v40  ;;  %v4441_v20 = vmax.f32 %v4439_v7, %v4440_v53  ;;  %v4447_v49 = vrot.slane %v4446_v23, 4 }
 0x251   : > { %v5388_v45 = vunpack.c.l.b16 %v5943_v36  ;;  %v5389_v2 = vunpack.c.l.b16 %v5944_v62  ;;  %v4454_v5 = vrot.slane %v4453_v27, 4  ;;  %v4460_v56 = vsel %vm4158_vm6, %v3672_v25, -inf }
 0x252   : > { %v5390_v6 = vunpack.c.l.b16 %v5945_v12  ;;  %v5456_v54 = vsel %vm5445_vm10, %v5387_v9, %v8241_v37  ;;  %v4442_v15 = vrot.slane %v4441_v20, 2  ;;  %v4448_v32 = vmax.f32 %v4446_v23, %v4447_v49  ;;  %v8297_v49 = vpop.f32.mrb[23].mxu0 }
 0x253   : > { %v5457_v52 = vsel %vm5447_vm11, %v5388_v45, %v5456_v54  ;;  %v4455_v57 = vmax.f32 %v4453_v27, %v4454_v5  ;;  %v4461_v44 = vrot.slane %v4460_v56, 4  ;;  %v3637_v43 = vcombine.high %v3629_v63, %v3629_v63 }
 0x254   : > { %v5458_v29 = vsel %vm5449_vm12, %v5389_v2, %v5457_v52  ;;  %v4443_v51 = vmax.f32 %v4441_v20, %v4442_v15  ;;  %v4449_v55 = vrot.slane %v4448_v32, 2  ;;  %v3638_v19 = vcombine.high %v3636_v59, %v3636_v59  ;;  %v8295_v20 = vpop.f32.mrb[23].mxu1 }
 0x255   : > { %v5459_v34 = vsel %vm5451_vm13, %v5390_v6, %v5458_v29  ;;  %v4456_v58 = vrot.slane %v4455_v57, 2  ;;  %v4462_v61 = vmax.f32 %v4460_v56, %v4461_v44  ;;  %v4383_v13 = vsel %vm4158_vm6, %v3629_v63, -inf }
 0x256   : > { %v5503_v37 = vpack.c.b16 %v5459_v34, %v5459_v34  ;;  %v4444_v33 = vrot.slane %v4443_v51, 1  ;;  %v4450_v41 = vmax.f32 %v4448_v32, %v4449_v55  ;;  %v4384_v17 = vrot.slane %v4383_v13, 4 }
 0x257   : > { %v4457_v7 = vmax.f32 %v4455_v57, %v4456_v58  ;;  %v4463_v22 = vrot.slane %v4462_v61, 2  ;;  %v4390_v40 = vsel %vm4158_vm6, %v3637_v43, -inf  ;;  %v4397_v25 = vsel %vm4158_vm6, %v3636_v59, -inf }
 0x258   : > { %5519 = vst [vmem:[%s8211_s24 + $0x4] sm:$0xf] %v5503_v37  ;;  %v4445_v53 = vmax.f32 %v4443_v51, %v4444_v33  ;;  %v4451_v36 = vrot.slane %v4450_v41, 1  ;;  %v4385_v62 = vmax.f32 %v4383_v13, %v4384_v17  ;;  %v4391_v23 = vrot.slane %v4390_v40, 4 }
 0x259   : > { %v4458_v63 = vrot.slane %v4457_v7, 1  ;;  %v4464_v27 = vmax.f32 %v4462_v61, %v4463_v22  ;;  %v4398_v12 = vrot.slane %v4397_v25, 4  ;;  %v4404_v9 = vsel %vm4158_vm6, %v3638_v19, -inf }
 0x25a   : > { %v4452_v45 = vmax.f32 %v4450_v41, %v4451_v36  ;;  %v4386_v2 = vrot.slane %v4385_v62, 2  ;;  %v4392_v5 = vmax.f32 %v4390_v40, %v4391_v23  ;;  %v4405_v56 = vrot.slane %v4404_v9, 4 }
 0x25b   : > { %v4459_v6 = vmax.f32 %v4457_v7, %v4458_v63  ;;  %v4465_v59 = vrot.slane %v4464_v27, 1  ;;  %v4399_v54 = vmax.f32 %v4397_v25, %v4398_v12  ;;  %v3673_v15 = vcombine.high %v8268_v30, %v8268_v30 }
 0x25c   : > { %v4387_v32 = vmax.f32 %v4385_v62, %v4386_v2  ;;  %v4393_v52 = vrot.slane %v4392_v5, 2  ;;  %v4406_v57 = vmax.f32 %v4404_v9, %v4405_v56  ;;  %v3680_v44 = vrot.slane %v8268_v30, %v8092_v10 }
 0x25d   : > { %v4466_v43 = vmax.f32 %v4464_v27, %v4465_v59  ;;  %v4400_v29 = vrot.slane %v4399_v54, 2  ;;  %v3687_v51 = vrot.slane %v3673_v15, %v8092_v10  ;;  %v3639_v55 = vcombine.high %v8270_v14, %v8270_v14 }
 0x25e   : > { %v4388_v19 = vrot.slane %v4387_v32, 1  ;;  %v4394_v34 = vmax.f32 %v4392_v5, %v4393_v52  ;;  %v4407_v58 = vrot.slane %v4406_v57, 2  ;;  %v3688_v61 = vcombine.high %v3680_v44, %v3680_v44 }
 0x25f   : > { %v4401_v13 = vmax.f32 %v4399_v54, %v4400_v29  ;;  %v3689_v37 = vcombine.high %v3687_v51, %v3687_v51  ;;  %v4467_v33 = vsel %vm4158_vm6, %v3680_v44, -inf  ;;  %v4481_v41 = vsel %vm4158_vm6, %v3687_v51, -inf }
 0x260   : > { %v4389_v17 = vmax.f32 %v4387_v32, %v4388_v19  ;;  %v4395_v7 = vrot.slane %v4394_v34, 1  ;;  %v4408_v30 = vmax.f32 %v4406_v57, %v4407_v58  ;;  %v4468_v22 = vrot.slane %v4467_v33, 4 }
 0x261   : > { %v4402_v40 = vrot.slane %v4401_v13, 1  ;;  %v4474_v25 = vsel %vm4158_vm6, %v3688_v61, -inf  ;;  %v4482_v36 = vrot.slane %v4481_v41, 4  ;;  %v4488_v62 = vsel %vm4158_vm6, %v3689_v37, -inf }
 0x262   : > { %v4396_v23 = vmax.f32 %v4394_v34, %v4395_v7  ;;  %v4409_v63 = vrot.slane %v4408_v30, 1  ;;  %v5071_v27 = vmax.f32 %v4389_v17, %v4445_v53  ;;  %v4469_v12 = vmax.f32 %v4467_v33, %v4468_v22 }
 0x263   : > { %v4403_v9 = vmax.f32 %v4401_v13, %v4402_v40  ;;  %v4475_v2 = vrot.slane %v4474_v25, 4  ;;  %v4483_v5 = vmax.f32 %v4481_v41, %v4482_v36  ;;  %v4489_v56 = vrot.slane %v4488_v62, 4 }
 0x264   : > { %v4410_v59 = vmax.f32 %v4408_v30, %v4409_v63  ;;  %v5072_v54 = vmax.f32 %v4396_v23, %v4452_v45  ;;  %v5946_v15 = vpack.c.bf16 %v5071_v27, %v5071_v27  ;;  %v4470_v32 = vrot.slane %v4469_v12, 2 }
 0x265   : > { %v5073_v52 = vmax.f32 %v4403_v9, %v4459_v6  ;;  %v4476_v57 = vmax.f32 %v4474_v25, %v4475_v2  ;;  %v4484_v44 = vrot.slane %v4483_v5, 2  ;;  %v4490_v29 = vmax.f32 %v4488_v62, %v4489_v56 }
 0x266   : > { %v5074_v51 = vmax.f32 %v4410_v59, %v4466_v43  ;;  %v5947_v19 = vpack.c.bf16 %v5072_v54, %v5072_v54  ;;  %v5391_v58 = vunpack.c.l.b16 %v5946_v15  ;;  %v4471_v61 = vmax.f32 %v4469_v12, %v4470_v32  ;;  %v8321_v15 = vpop.f32.mrb[24].mxu1  ;;  %v8323_v32 = vpop.f32.mrb[24].mxu0 }
 0x267   : > { %v5948_v34 = vpack.c.bf16 %v5073_v52, %v5073_v52  ;;  %v4477_v37 = vrot.slane %v4476_v57, 2  ;;  %v4485_v53 = vmax.f32 %v4483_v5, %v4484_v44  ;;  %v4491_v33 = vrot.slane %v4490_v29, 2 }
 0x268   : > { %v5949_v13 = vpack.c.bf16 %v5074_v51, %v5074_v51  ;;  %v5392_v17 = vunpack.c.l.b16 %v5947_v19  ;;  %v4472_v41 = vrot.slane %v4471_v61, 1  ;;  %v3646_v45 = vrot.slane %v8270_v14, %v8092_v10 }
 0x269   : > { %v5393_v7 = vunpack.c.l.b16 %v5948_v34  ;;  %v4478_v30 = vmax.f32 %v4476_v57, %v4477_v37  ;;  %v4486_v6 = vrot.slane %v4485_v53, 1  ;;  %v4492_v22 = vmax.f32 %v4490_v29, %v4491_v33 }
 0x26a   : > { %v5394_v40 = vunpack.c.l.b16 %v5949_v13  ;;  %v5460_v43 = vsel %vm5439_vm7, %v5392_v17, %v5391_v58  ;;  %v8313_v25 = vmax.f32 %v4471_v61, %v4472_v41  ;;  %v3653_v36 = vrot.slane %v3639_v55, %v8092_v10  ;;  %v8335_v61 = vld [vmem:[%s8759_s2] ss:$0 sm:$0xff]  ;;  %v8344_v41 = vpop.f32.mrb[25].mxu1 }
 0x26b   : > { %v5461_v62 = vsel %vm5441_vm8, %v5393_v7, %v5460_v43  ;;  %v4479_v23 = vrot.slane %v4478_v30, 1  ;;  %v8317_v63 = vmax.f32 %v4485_v53, %v4486_v6  ;;  %v4493_v27 = vrot.slane %v4492_v22, 1  ;;  %v8351_v7 = vld [vmem:[%s8760_s3] ss:$0 sm:$0xff] }
 0x26c   : > { %v3654_v12 = vcombine.high %v3646_v45, %v3646_v45  ;;  %v3655_v9 = vcombine.high %v3653_v36, %v3653_v36  ;;  %v4411_v14 = vsel %vm4158_vm6, %v3646_v45, -inf  ;;  %v4425_v2 = vsel %vm4158_vm6, %v3653_v36, -inf  ;;  %v8346_v45 = vpop.f32.mrb[25].mxu0 }
 0x26d   : > { %v4480_v5 = vmax.f32 %v4478_v30, %v4479_v23  ;;  %v4494_v56 = vmax.f32 %v4492_v22, %v4493_v27  ;;  %v4412_v59 = vrot.slane %v4411_v14, 4  ;;  %v4426_v54 = vrot.slane %v4425_v2, 4 }
 0x26e   : > { %v4418_v55 = vsel %vm4158_vm6, %v3654_v12, -inf  ;;  %v4432_v52 = vsel %vm4158_vm6, %v3655_v9, -inf  ;;  %v8328_v57 = vsel %vm5443_vm9, %v5394_v40, %v5461_v62  ;;  %v6670_v44 = vadd.f32 %v8135_v50, %v8071_v16 }
 0x26f   : > { %v4413_v29 = vmax.f32 %v4411_v14, %v4412_v59  ;;  %v4419_v51 = vrot.slane %v4418_v55, 4  ;;  %v4427_v19 = vmax.f32 %v4425_v2, %v4426_v54  ;;  %v4433_v58 = vrot.slane %v4432_v52, 4 }
 0x270   : > { %v3365_v34 = vmul.f32 %v8335_v61, %v6670_v44  ;;  %v6671_v37 = vadd.f32 %v8137_v0, %v8073_v4  ;;  %v6672_v53 = vadd.f32 %v8144_v8, %v8075_v38  ;;  %v6673_v16 = vadd.f32 %v8146_v39, %v8077_v3 }
 0x271   : > { %v4414_v50 = vrot.slane %v4413_v29, 2  ;;  %v4420_v33 = vmax.f32 %v4418_v55, %v4419_v51  ;;  %v4428_v13 = vrot.slane %v4427_v19, 2  ;;  %v4434_v17 = vmax.f32 %v4432_v52, %v4433_v58 }
 0x272   : > { %v3404_v4 = vadd.f32 %v8351_v7, %v3365_v34  ;;  %v3363_v38 = vmul.f32 %v8335_v61, %v6671_v37  ;;  %v3366_v0 = vmul.f32 %v8335_v61, %v6672_v53  ;;  %v3364_v3 = vmul.f32 %v8335_v61, %v6673_v16 }
 0x273   : > { %v4415_v8 = vmax.f32 %v4413_v29, %v4414_v50  ;;  %v4421_v39 = vrot.slane %v4420_v33, 2  ;;  %v4429_v30 = vmax.f32 %v4427_v19, %v4428_v13  ;;  %v4435_v6 = vrot.slane %v4434_v17, 2 }
 0x274   : > { %v3436_v22 = vmax.f32 %v3404_v4, 0.0  ;;  %v3402_v40 = vadd.f32 %v8351_v7, %v3363_v38  ;;  %v3405_v43 = vadd.f32 %v8351_v7, %v3366_v0  ;;  %v8360_v36 = vadd.f32 %v8351_v7, %v3364_v3 }
 0x275   : > { %v4416_v62 = vrot.slane %v4415_v8, 1  ;;  %v4422_v23 = vmax.f32 %v4420_v33, %v4421_v39  ;;  %v4430_v27 = vrot.slane %v4429_v30, 1  ;;  %v4436_v12 = vmax.f32 %v4434_v17, %v4435_v6 }
 0x276   : > { %v3724_v9 = vcombine.high %v3436_v22, %v3436_v22  ;;  %v3731_v14 = vrot.slane %v3436_v22, %v8092_v10  ;;  %v3434_v2 = vmax.f32 %v3402_v40, 0.0  ;;  %v8363_v59 = vmax.f32 %v3405_v43, 0.0 }
 0x277   : > { %v4417_v54 = vmax.f32 %v4415_v8, %v4416_v62  ;;  %v4423_v55 = vrot.slane %v4422_v23, 1  ;;  %v4431_v52 = vmax.f32 %v4429_v30, %v4430_v27  ;;  %v4437_v44 = vrot.slane %v4436_v12, 1 }
 0x278   : > { %v3738_v29 = vrot.slane %v3724_v9, %v8092_v10  ;;  %v3739_v51 = vcombine.high %v3731_v14, %v3731_v14  ;;  %v4551_v19 = vsel %vm4158_vm6, %v3731_v14, -inf  ;;  %v3690_v58 = vcombine.high %v3434_v2, %v3434_v2 }
 0x279   : > { %v4424_v34 = vmax.f32 %v4422_v23, %v4423_v55  ;;  %v4438_v37 = vmax.f32 %v4436_v12, %v4437_v44  ;;  %v5075_v53 = vmax.f32 %v4417_v54, %v8313_v25  ;;  %v5077_v16 = vmax.f32 %v4431_v52, %v8317_v63 }
 0x27a   : > { %v3740_v50 = vcombine.high %v3738_v29, %v3738_v29  ;;  %v4552_v33 = vrot.slane %v4551_v19, 4  ;;  %v4558_v13 = vsel %vm4158_vm6, %v3739_v51, -inf  ;;  %v4565_v17 = vsel %vm4158_vm6, %v3738_v29, -inf }
 0x27b   : > { %v5076_v4 = vmax.f32 %v4424_v34, %v4480_v5  ;;  %v5078_v38 = vmax.f32 %v4438_v37, %v4494_v56  ;;  %v5950_v0 = vpack.c.bf16 %v5075_v53, %v5075_v53  ;;  %v5952_v3 = vpack.c.bf16 %v5077_v16, %v5077_v16 }
 0x27c   : > { %v4553_v8 = vmax.f32 %v4551_v19, %v4552_v33  ;;  %v4559_v39 = vrot.slane %v4558_v13, 4  ;;  %v4566_v30 = vrot.slane %v4565_v17, 4  ;;  %v4572_v6 = vsel %vm4158_vm6, %v3740_v50, -inf }
 0x27d   : > { %v5951_v22 = vpack.c.bf16 %v5076_v4, %v5076_v4  ;;  %v5953_v40 = vpack.c.bf16 %v5078_v38, %v5078_v38  ;;  %v5395_v25 = vunpack.c.l.b16 %v5950_v0  ;;  %v5397_v43 = vunpack.c.l.b16 %v5952_v3 }
 0x27e   : > { %v4554_v63 = vrot.slane %v4553_v8, 2  ;;  %v4560_v62 = vmax.f32 %v4558_v13, %v4559_v39  ;;  %v4567_v23 = vmax.f32 %v4565_v17, %v4566_v30  ;;  %v4573_v27 = vrot.slane %v4572_v6, 4  ;;  %v8382_v39 = vpop.f32.mrb[26].mxu1  ;;  %v8384_v30 = vpop.f32.mrb[26].mxu0 }
 0x27f   : > { %v5396_v12 = vunpack.c.l.b16 %v5951_v22  ;;  %v5398_v9 = vunpack.c.l.b16 %v5953_v40  ;;  %v5463_v5 = vsel %vm5445_vm10, %v5395_v25, %v8328_v57  ;;  %v3697_v56 = vrot.slane %v3434_v2, %v8092_v10 }
 0x280   : > { %v4555_v14 = vmax.f32 %v4553_v8, %v4554_v63  ;;  %v4561_v54 = vrot.slane %v4560_v62, 2  ;;  %v4568_v55 = vrot.slane %v4567_v23, 2  ;;  %v4574_v52 = vmax.f32 %v4572_v6, %v4573_v27 }
 0x281   : > { %v5464_v44 = vsel %vm5447_vm11, %v5396_v12, %v5463_v5  ;;  %v3704_v29 = vrot.slane %v3690_v58, %v8092_v10  ;;  %v3705_v51 = vcombine.high %v3697_v56, %v3697_v56  ;;  %v4495_v19 = vsel %vm4158_vm6, %v3697_v56, -inf  ;;  %v8392_v56 = vpop.f32.mrb[27].mxu1 }
 0x282   : > { %v5465_v34 = vsel %vm5449_vm12, %v5397_v43, %v5464_v44  ;;  %v4556_v37 = vrot.slane %v4555_v14, 1  ;;  %v4562_v53 = vmax.f32 %v4560_v62, %v4561_v54  ;;  %v4569_v16 = vmax.f32 %v4567_v23, %v4568_v55 }
 0x283   : > { %v5466_v57 = vsel %vm5451_vm13, %v5398_v9, %v5465_v34  ;;  %v4575_v2 = vrot.slane %v4574_v52, 2  ;;  %v3706_v50 = vcombine.high %v3704_v29, %v3704_v29  ;;  %v4496_v33 = vrot.slane %v4495_v19, 4 }
 0x284   : > { %v5504_v13 = vpack.c.b16 %v5466_v57, %v5466_v57  ;;  %v4557_v17 = vmax.f32 %v4555_v14, %v4556_v37  ;;  %v4563_v4 = vrot.slane %v4562_v53, 1  ;;  %v4570_v38 = vrot.slane %v4569_v16, 1  ;;  %v8394_v14 = vpop.f32.mrb[27].mxu0 }
 0x285   : > { %v4576_v0 = vmax.f32 %v4574_v52, %v4575_v2  ;;  %v4497_v58 = vmax.f32 %v4495_v19, %v4496_v33  ;;  %v4502_v3 = vsel %vm4158_vm6, %v3705_v51, -inf  ;;  %v4509_v8 = vsel %vm4158_vm6, %v3704_v29, -inf  ;;  %8805 = vst [vmem:[#allocation2_spill] sm:$0xff] %v8394_v14 }
 0x286   : > { %5520 = vst [vmem:[%s8211_s24 + $0x8] sm:$0xf] %v5504_v13  ;;  %v4564_v6 = vmax.f32 %v4562_v53, %v4563_v4  ;;  %v4571_v22 = vmax.f32 %v4569_v16, %v4570_v38  ;;  %v4503_v40 = vrot.slane %v4502_v3, 4  ;;  %v4510_v25 = vrot.slane %v4509_v8, 4 }
 0x287   : > { %v4577_v43 = vrot.slane %v4576_v0, 1  ;;  %v4498_v63 = vrot.slane %v4497_v58, 2  ;;  %v4516_v62 = vsel %vm4158_vm6, %v3706_v50, -inf  ;;  %v3741_v23 = vcombine.high %v8363_v59, %v8363_v59 }
 0x288   : > { %v4504_v27 = vmax.f32 %v4502_v3, %v4503_v40  ;;  %v4511_v12 = vmax.f32 %v4509_v8, %v4510_v25  ;;  %v4517_v9 = vrot.slane %v4516_v62, 4  ;;  %v3748_v5 = vrot.slane %v8363_v59, %v8092_v10 }
 0x289   : > { %v4578_v54 = vmax.f32 %v4576_v0, %v4577_v43  ;;  %v4499_v55 = vmax.f32 %v4497_v58, %v4498_v63  ;;  %v3755_v52 = vrot.slane %v3741_v23, %v8092_v10  ;;  %v3435_v44 = vmax.f32 %v8360_v36, 0.0 }
 0x28a   : > { %v4505_v29 = vrot.slane %v4504_v27, 2  ;;  %v4512_v51 = vrot.slane %v4511_v12, 2  ;;  %v4518_v19 = vmax.f32 %v4516_v62, %v4517_v9  ;;  %v3756_v34 = vcombine.high %v3748_v5, %v3748_v5 }
 0x28b   : > { %v4500_v37 = vrot.slane %v4499_v55, 1  ;;  %v3757_v53 = vcombine.high %v3755_v52, %v3755_v52  ;;  %v4579_v16 = vsel %vm4158_vm6, %v3748_v5, -inf  ;;  %v4593_v59 = vsel %vm4158_vm6, %v3755_v52, -inf }
 0x28c   : > { %v4506_v57 = vmax.f32 %v4504_v27, %v4505_v29  ;;  %v4513_v2 = vmax.f32 %v4511_v12, %v4512_v51  ;;  %v4519_v50 = vrot.slane %v4518_v19, 2  ;;  %v4580_v33 = vrot.slane %v4579_v16, 4 }
 0x28d   : > { %v4501_v13 = vmax.f32 %v4499_v55, %v4500_v37  ;;  %v4586_v4 = vsel %vm4158_vm6, %v3756_v34, -inf  ;;  %v4594_v38 = vrot.slane %v4593_v59, 4  ;;  %v4600_v36 = vsel %vm4158_vm6, %v3757_v53, -inf }
 0x28e   : > { %v4507_v0 = vrot.slane %v4506_v57, 1  ;;  %v4514_v58 = vrot.slane %v4513_v2, 1  ;;  %v4520_v3 = vmax.f32 %v4518_v19, %v4519_v50  ;;  %v4581_v8 = vmax.f32 %v4579_v16, %v4580_v33 }
 0x28f   : > { %v5079_v40 = vmax.f32 %v4501_v13, %v4557_v17  ;;  %v4587_v25 = vrot.slane %v4586_v4, 4  ;;  %v4595_v43 = vmax.f32 %v4593_v59, %v4594_v38  ;;  %v4601_v63 = vrot.slane %v4600_v36, 4 }
 0x290   : > { %v4508_v62 = vmax.f32 %v4506_v57, %v4507_v0  ;;  %v4515_v23 = vmax.f32 %v4513_v2, %v4514_v58  ;;  %v4521_v27 = vrot.slane %v4520_v3, 1  ;;  %v4582_v12 = vrot.slane %v4581_v8, 2 }
 0x291   : > { %v5954_v9 = vpack.c.bf16 %v5079_v40, %v5079_v40  ;;  %v4588_v5 = vmax.f32 %v4586_v4, %v4587_v25  ;;  %v4596_v55 = vrot.slane %v4595_v43, 2  ;;  %v4602_v52 = vmax.f32 %v4600_v36, %v4601_v63 }
 0x292   : > { %v4522_v29 = vmax.f32 %v4520_v3, %v4521_v27  ;;  %v5080_v51 = vmax.f32 %v4508_v62, %v4564_v6  ;;  %v5081_v34 = vmax.f32 %v4515_v23, %v4571_v22  ;;  %v4583_v37 = vmax.f32 %v4581_v8, %v4582_v12 }
 0x293   : > { %v5399_v53 = vunpack.c.l.b16 %v5954_v9  ;;  %v4589_v14 = vrot.slane %v4588_v5, 2  ;;  %v4597_v19 = vmax.f32 %v4595_v43, %v4596_v55  ;;  %v4603_v16 = vrot.slane %v4602_v52, 2 }
 0x294   : > { %v5082_v17 = vmax.f32 %v4522_v29, %v4578_v54  ;;  %v5955_v50 = vpack.c.bf16 %v5080_v51, %v5080_v51  ;;  %v5956_v59 = vpack.c.bf16 %v5081_v34, %v5081_v34  ;;  %v4584_v33 = vrot.slane %v4583_v37, 1 }
 0x295   : > { %v4590_v57 = vmax.f32 %v4588_v5, %v4589_v14  ;;  %v4598_v2 = vrot.slane %v4597_v19, 1  ;;  %v4604_v13 = vmax.f32 %v4602_v52, %v4603_v16  ;;  %v3707_v38 = vcombine.high %v3435_v44, %v3435_v44 }
 0x296   : > { %v5957_v0 = vpack.c.bf16 %v5082_v17, %v5082_v17  ;;  %v5400_v4 = vunpack.c.l.b16 %v5955_v50  ;;  %v5401_v58 = vunpack.c.l.b16 %v5956_v59  ;;  %v8402_v36 = vmax.f32 %v4583_v37, %v4584_v33  ;;  %v8429_v17 = vpop.f32.mrb[28].mxu1  ;;  %v8431_v50 = vpop.f32.mrb[28].mxu0 }
 0x297   : > { %v4591_v6 = vrot.slane %v4590_v57, 1  ;;  %v8404_v22 = vmax.f32 %v4597_v19, %v4598_v2  ;;  %v4605_v3 = vrot.slane %v4604_v13, 1  ;;  %v3714_v8 = vrot.slane %v3435_v44, %v8092_v10 }
 0x298   : > { %v5402_v40 = vunpack.c.l.b16 %v5957_v0  ;;  %v5467_v54 = vsel %vm5439_vm7, %v5400_v4, %v5399_v53  ;;  %v3721_v25 = vrot.slane %v3707_v38, %v8092_v10  ;;  %v6674_v14 = vadd.f32 %v8164_v46, %v8162_v31 }
 0x299   : > { %v5468_v43 = vsel %vm5441_vm8, %v5401_v58, %v5467_v54  ;;  %v8412_v63 = vmax.f32 %v4590_v57, %v4591_v6  ;;  %v8414_v62 = vmax.f32 %v4604_v13, %v4605_v3  ;;  %v3722_v23 = vcombine.high %v3714_v8, %v3714_v8  ;;  %v8442_v58 = vpop.f32.mrb[29].mxu1  ;;  %v8444_v6 = vpop.f32.mrb[29].mxu0 }
 0x29a   : > { %v3723_v27 = vcombine.high %v3721_v25, %v3721_v25  ;;  %v4523_v12 = vsel %vm4158_vm6, %v3714_v8, -inf  ;;  %v4537_v44 = vsel %vm4158_vm6, %v3721_v25, -inf  ;;  %v8419_v9 = vsel %vm5443_vm9, %v5402_v40, %v5468_v43 }
 0x29b   : > { %v4524_v5 = vrot.slane %v4523_v12, 4  ;;  %v4530_v55 = vsel %vm4158_vm6, %v3722_v23, -inf  ;;  %v4538_v52 = vrot.slane %v4537_v44, 4  ;;  %v3369_v31 = vmul.f32 %v8335_v61, %v6674_v14 }
 0x29c   : > { %v4531_v46 = vrot.slane %v4530_v55, 4  ;;  %v4544_v29 = vsel %vm4158_vm6, %v3723_v27, -inf  ;;  %v6675_v51 = vadd.f32 %v8189_v24, %v8187_v60  ;;  %v6676_v34 = vadd.f32 %v8206_v21, %v8204_v35 }
 0x29d   : > { %v4525_v37 = vmax.f32 %v4523_v12, %v4524_v5  ;;  %v4539_v53 = vmax.f32 %v4537_v44, %v4538_v52  ;;  %v4545_v19 = vrot.slane %v4544_v29, 4  ;;  %v3408_v16 = vadd.f32 %v8351_v7, %v3369_v31 }
 0x29e   : > { %v4532_v59 = vmax.f32 %v4530_v55, %v4531_v46  ;;  %v3367_v33 = vmul.f32 %v8335_v61, %v6675_v51  ;;  %v3370_v57 = vmul.f32 %v8335_v61, %v6676_v34  ;;  %v6677_v60 = vadd.f32 %v8223_v1, %v8221_v11 }
 0x29f   : > { %v4526_v24 = vrot.slane %v4525_v37, 2  ;;  %v4540_v2 = vrot.slane %v4539_v53, 2  ;;  %v4546_v35 = vmax.f32 %v4544_v29, %v4545_v19  ;;  %v3440_v21 = vmax.f32 %v3408_v16, 0.0 }
 0x2a0   : > { %v4533_v13 = vrot.slane %v4532_v59, 2  ;;  %v3406_v38 = vadd.f32 %v8351_v7, %v3367_v33  ;;  %v3409_v0 = vadd.f32 %v8351_v7, %v3370_v57  ;;  %v8440_v4 = vmul.f32 %v8335_v61, %v6677_v60 }
 0x2a1   : > { %v4527_v3 = vmax.f32 %v4525_v37, %v4526_v24  ;;  %v4541_v8 = vmax.f32 %v4539_v53, %v4540_v2  ;;  %v4547_v40 = vrot.slane %v4546_v35, 2  ;;  %v3792_v11 = vcombine.high %v3440_v21, %v3440_v21 }
 0x2a2   : > { %v4534_v1 = vmax.f32 %v4532_v59, %v4533_v13  ;;  %v3799_v54 = vrot.slane %v3440_v21, %v8092_v10  ;;  %v3438_v25 = vmax.f32 %v3406_v38, 0.0  ;;  %v8447_v14 = vmax.f32 %v3409_v0, 0.0 }
 0x2a3   : > { %v4528_v43 = vrot.slane %v4527_v3, 1  ;;  %v4542_v23 = vrot.slane %v4541_v8, 1  ;;  %v4548_v27 = vmax.f32 %v4546_v35, %v4547_v40  ;;  %v3806_v12 = vrot.slane %v3792_v11, %v8092_v10 }
 0x2a4   : > { %v4535_v44 = vrot.slane %v4534_v1, 1  ;;  %v3807_v5 = vcombine.high %v3799_v54, %v3799_v54  ;;  %v4663_v55 = vsel %vm4158_vm6, %v3799_v54, -inf  ;;  %v3758_v52 = vcombine.high %v3438_v25, %v3438_v25 }
 0x2a5   : > { %v4529_v31 = vmax.f32 %v4527_v3, %v4528_v43  ;;  %v4543_v46 = vmax.f32 %v4541_v8, %v4542_v23  ;;  %v4549_v29 = vrot.slane %v4548_v27, 1  ;;  %v3808_v51 = vcombine.high %v3806_v12, %v3806_v12 }
 0x2a6   : > { %v4536_v34 = vmax.f32 %v4534_v1, %v4535_v44  ;;  %v4664_v37 = vrot.slane %v4663_v55, 4  ;;  %v4670_v53 = vsel %vm4158_vm6, %v3807_v5, -inf  ;;  %v4677_v19 = vsel %vm4158_vm6, %v3806_v12, -inf }
 0x2a7   : > { %v4550_v16 = vmax.f32 %v4548_v27, %v4549_v29  ;;  %v5083_v59 = vmax.f32 %v4529_v31, %v8402_v36  ;;  %v5085_v33 = vmax.f32 %v4543_v46, %v8404_v22  ;;  %v4671_v57 = vrot.slane %v4670_v53, 4 }
 0x2a8   : > { %v5084_v60 = vmax.f32 %v4536_v34, %v8412_v63  ;;  %v4665_v24 = vmax.f32 %v4663_v55, %v4664_v37  ;;  %v4678_v2 = vrot.slane %v4677_v19, 4  ;;  %v4684_v35 = vsel %vm4158_vm6, %v3808_v51, -inf  ;;  %v8462_v51 = vpop.f32.mrb[30].mxu1  ;;  %v8464_v34 = vpop.f32.mrb[30].mxu0 }
 0x2a9   : > { %v5086_v21 = vmax.f32 %v4550_v16, %v8414_v62  ;;  %v5958_v13 = vpack.c.bf16 %v5083_v59, %v5083_v59  ;;  %v5960_v38 = vpack.c.bf16 %v5085_v33, %v5085_v33  ;;  %v4672_v0 = vmax.f32 %v4670_v53, %v4671_v57 }
 0x2aa   : > { %v5959_v3 = vpack.c.bf16 %v5084_v60, %v5084_v60  ;;  %v4666_v8 = vrot.slane %v4665_v24, 2  ;;  %v4679_v40 = vmax.f32 %v4677_v19, %v4678_v2  ;;  %v4685_v11 = vrot.slane %v4684_v35, 4 }
 0x2ab   : > { %v5961_v1 = vpack.c.bf16 %v5086_v21, %v5086_v21  ;;  %v5403_v36 = vunpack.c.l.b16 %v5958_v13  ;;  %v5405_v54 = vunpack.c.l.b16 %v5960_v38  ;;  %v4673_v22 = vrot.slane %v4672_v0, 2 }
 0x2ac   : > { %v5404_v43 = vunpack.c.l.b16 %v5959_v3  ;;  %v4667_v23 = vmax.f32 %v4665_v24, %v4666_v8  ;;  %v4680_v63 = vrot.slane %v4679_v40, 2  ;;  %v4686_v27 = vmax.f32 %v4684_v35, %v4685_v11 }
 0x2ad   : > { %v5406_v12 = vunpack.c.l.b16 %v5961_v1  ;;  %v5470_v44 = vsel %vm5445_vm10, %v5403_v36, %v8419_v9  ;;  %v4674_v62 = vmax.f32 %v4672_v0, %v4673_v22  ;;  %v3765_v5 = vrot.slane %v3438_v25, %v8092_v10 }
 0x2ae   : > { %v5471_v55 = vsel %vm5447_vm11, %v5404_v43, %v5470_v44  ;;  %v4668_v31 = vrot.slane %v4667_v23, 1  ;;  %v4681_v46 = vmax.f32 %v4679_v40, %v4680_v63  ;;  %v4687_v29 = vrot.slane %v4686_v27, 2  ;;  %v8481_v63 = vpop.f32.mrb[31].mxu1 }
 0x2af   : > { %v5472_v37 = vsel %vm5449_vm12, %v5405_v54, %v5471_v55  ;;  %v4675_v53 = vrot.slane %v4674_v62, 1  ;;  %v3772_v19 = vrot.slane %v3758_v52, %v8092_v10  ;;  %v3773_v16 = vcombine.high %v3765_v5, %v3765_v5 }
 0x2b0   : > { %v5473_v9 = vsel %vm5451_vm13, %v5406_v12, %v5472_v37  ;;  %v4669_v59 = vmax.f32 %v4667_v23, %v4668_v31  ;;  %v4682_v25 = vrot.slane %v4681_v46, 1  ;;  %v4688_v33 = vmax.f32 %v4686_v27, %v4687_v29  ;;  %v8483_v27 = vpop.f32.mrb[31].mxu0 }
 0x2b1   : > { %v5505_v57 = vpack.c.b16 %v5473_v9, %v5473_v9  ;;  %v4676_v60 = vmax.f32 %v4674_v62, %v4675_v53  ;;  %v3774_v24 = vcombine.high %v3772_v19, %v3772_v19  ;;  %v4607_v2 = vsel %vm4158_vm6, %v3765_v5, -inf  ;;  %8806 = vst [vmem:[#allocation3_spill] sm:$0xff] %v8483_v27 }
 0x2b2   : > { %v4683_v35 = vmax.f32 %v4681_v46, %v4682_v25  ;;  %v4689_v21 = vrot.slane %v4688_v33, 1  ;;  %v4608_v13 = vrot.slane %v4607_v2, 4  ;;  %v4614_v38 = vsel %vm4158_vm6, %v3773_v16, -inf }
 0x2b3   : > { %5521 = vst [vmem:[%s8211_s24 + $0xc] sm:$0xf] %v5505_v57  ;;  %v4615_v0 = vrot.slane %v4614_v38, 4  ;;  %v4621_v52 = vsel %vm4158_vm6, %v3772_v19, -inf  ;;  %v4628_v3 = vsel %vm4158_vm6, %v3774_v24, -inf  ;;  %v3809_v8 = vcombine.high %v8447_v14, %v8447_v14 }
 0x2b4   : > { %v4690_v40 = vmax.f32 %v4688_v33, %v4689_v21  ;;  %v4609_v11 = vmax.f32 %v4607_v2, %v4608_v13  ;;  %v4622_v1 = vrot.slane %v4621_v52, 4  ;;  %v4629_v36 = vrot.slane %v4628_v3, 4 }
 0x2b5   : > { %v4616_v54 = vmax.f32 %v4614_v38, %v4615_v0  ;;  %v3816_v22 = vrot.slane %v8447_v14, %v8092_v10  ;;  %v3823_v43 = vrot.slane %v3809_v8, %v8092_v10  ;;  %v3407_v23 = vadd.f32 %v8351_v7, %v8440_v4 }
 0x2b6   : > { %v4610_v12 = vrot.slane %v4609_v11, 2  ;;  %v4623_v44 = vmax.f32 %v4621_v52, %v4622_v1  ;;  %v4630_v62 = vmax.f32 %v4628_v3, %v4629_v36  ;;  %v6678_v5 = vadd.f32 %v8250_v48, %v8248_v18 }
 0x2b7   : > { %v4617_v55 = vrot.slane %v4616_v54, 2  ;;  %v3824_v31 = vcombine.high %v3816_v22, %v3816_v22  ;;  %v3825_v46 = vcombine.high %v3823_v43, %v3823_v43  ;;  %v4691_v14 = vsel %vm4158_vm6, %v3816_v22, -inf }
 0x2b8   : > { %v4611_v29 = vmax.f32 %v4609_v11, %v4610_v12  ;;  %v4624_v37 = vrot.slane %v4623_v44, 2  ;;  %v4631_v53 = vrot.slane %v4630_v62, 2  ;;  %v4692_v19 = vrot.slane %v4691_v14, 4 }
 0x2b9   : > { %v4618_v4 = vmax.f32 %v4616_v54, %v4617_v55  ;;  %v4698_v16 = vsel %vm4158_vm6, %v3824_v31, -inf  ;;  %v4705_v9 = vsel %vm4158_vm6, %v3823_v43, -inf  ;;  %v4712_v25 = vsel %vm4158_vm6, %v3825_v46, -inf }
 0x2ba   : > { %v4612_v33 = vrot.slane %v4611_v29, 1  ;;  %v4625_v57 = vmax.f32 %v4623_v44, %v4624_v37  ;;  %v4632_v24 = vmax.f32 %v4630_v62, %v4631_v53  ;;  %v4693_v18 = vmax.f32 %v4691_v14, %v4692_v19 }
 0x2bb   : > { %v4619_v48 = vrot.slane %v4618_v4, 1  ;;  %v4699_v2 = vrot.slane %v4698_v16, 4  ;;  %v4706_v21 = vrot.slane %v4705_v9, 4  ;;  %v4713_v13 = vrot.slane %v4712_v25, 4 }
 0x2bc   : > { %v4613_v38 = vmax.f32 %v4611_v29, %v4612_v33  ;;  %v4626_v0 = vrot.slane %v4625_v57, 1  ;;  %v4633_v52 = vrot.slane %v4632_v24, 1  ;;  %v4694_v3 = vrot.slane %v4693_v18, 2 }
 0x2bd   : > { %v4620_v8 = vmax.f32 %v4618_v4, %v4619_v48  ;;  %v4700_v11 = vmax.f32 %v4698_v16, %v4699_v2  ;;  %v4707_v1 = vmax.f32 %v4705_v9, %v4706_v21  ;;  %v4714_v36 = vmax.f32 %v4712_v25, %v4713_v13 }
 0x2be   : > { %v4627_v54 = vmax.f32 %v4625_v57, %v4626_v0  ;;  %v4634_v22 = vmax.f32 %v4632_v24, %v4633_v52  ;;  %v5087_v43 = vmax.f32 %v4613_v38, %v4669_v59  ;;  %v4695_v12 = vmax.f32 %v4693_v18, %v4694_v3 }
 0x2bf   : > { %v5088_v55 = vmax.f32 %v4620_v8, %v4676_v60  ;;  %v4701_v44 = vrot.slane %v4700_v11, 2  ;;  %v4708_v62 = vrot.slane %v4707_v1, 2  ;;  %v4715_v31 = vrot.slane %v4714_v36, 2 }
 0x2c0   : > { %v5089_v46 = vmax.f32 %v4627_v54, %v4683_v35  ;;  %v5090_v14 = vmax.f32 %v4634_v22, %v4690_v40  ;;  %v5962_v37 = vpack.c.bf16 %v5087_v43, %v5087_v43  ;;  %v4696_v53 = vrot.slane %v4695_v12, 1 }
 0x2c1   : > { %v5963_v29 = vpack.c.bf16 %v5088_v55, %v5088_v55  ;;  %v4702_v19 = vmax.f32 %v4700_v11, %v4701_v44  ;;  %v4709_v33 = vmax.f32 %v4707_v1, %v4708_v62  ;;  %v4716_v27 = vmax.f32 %v4714_v36, %v4715_v31 }
 0x2c2   : > { %v5964_v4 = vpack.c.bf16 %v5089_v46, %v5089_v46  ;;  %v5965_v16 = vpack.c.bf16 %v5090_v14, %v5090_v14  ;;  %v5407_v9 = vunpack.c.l.b16 %v5962_v37  ;;  %v8491_v25 = vmax.f32 %v4695_v12, %v4696_v53 }
 0x2c3   : > { %v5408_v57 = vunpack.c.l.b16 %v5963_v29  ;;  %v4703_v59 = vrot.slane %v4702_v19, 1  ;;  %v4710_v24 = vrot.slane %v4709_v33, 1  ;;  %v4717_v60 = vrot.slane %v4716_v27, 1 }
 0x2c4   : > { %v5409_v18 = vunpack.c.l.b16 %v5964_v4  ;;  %v5410_v48 = vunpack.c.l.b16 %v5965_v16  ;;  %v3439_v2 = vmax.f32 %v3407_v23, 0.0  ;;  %v3373_v35 = vmul.f32 %v8335_v61, %v6678_v5 }
 0x2c5   : > { %v5474_v40 = vsel %vm5439_vm7, %v5408_v57, %v5407_v9  ;;  %v8495_v21 = vmax.f32 %v4702_v19, %v4703_v59  ;;  %v8497_v13 = vmax.f32 %v4709_v33, %v4710_v24  ;;  %v8499_v38 = vmax.f32 %v4716_v27, %v4717_v60 }
 0x2c6   : > { %v5475_v0 = vsel %vm5441_vm8, %v5409_v18, %v5474_v40  ;;  %v3775_v52 = vcombine.high %v3439_v2, %v3439_v2  ;;  %v3782_v3 = vrot.slane %v3439_v2, %v8092_v10  ;;  %v3412_v8 = vadd.f32 %v8351_v7, %v3373_v35 }
 0x2c7   : > { %v8505_v11 = vsel %vm5443_vm9, %v5410_v48, %v5475_v0  ;;  %v6679_v23 = vadd.f32 %v8262_v47, %v8260_v26  ;;  %v6680_v5 = vadd.f32 %v8289_v28, %v8287_v42  ;;  %v6681_v27 = vadd.f32 %v8297_v49, %v8295_v20 }
 0x2c8   : > { %v3789_v1 = vrot.slane %v3775_v52, %v8092_v10  ;;  %v3790_v36 = vcombine.high %v3782_v3, %v3782_v3  ;;  %v4635_v54 = vsel %vm4158_vm6, %v3782_v3, -inf  ;;  %v3444_v22 = vmax.f32 %v3412_v8, 0.0 }
 0x2c9   : > { %v4636_v43 = vrot.slane %v4635_v54, 4  ;;  %v3371_v12 = vmul.f32 %v8335_v61, %v6679_v23  ;;  %v3374_v55 = vmul.f32 %v8335_v61, %v6680_v5  ;;  %v8518_v44 = vmul.f32 %v8335_v61, %v6681_v27 }
 0x2ca   : > { %v3791_v26 = vcombine.high %v3789_v1, %v3789_v1  ;;  %v4642_v47 = vsel %vm4158_vm6, %v3790_v36, -inf  ;;  %v4649_v42 = vsel %vm4158_vm6, %v3789_v1, -inf  ;;  %v3860_v28 = vcombine.high %v3444_v22, %v3444_v22 }
 0x2cb   : > { %v4637_v20 = vmax.f32 %v4635_v54, %v4636_v43  ;;  %v4643_v49 = vrot.slane %v4642_v47, 4  ;;  %v4650_v62 = vrot.slane %v4649_v42, 4  ;;  %v3867_v31 = vrot.slane %v3444_v22, %v8092_v10 }
 0x2cc   : > { %v4656_v46 = vsel %vm4158_vm6, %v3791_v26, -inf  ;;  %v3874_v14 = vrot.slane %v3860_v28, %v8092_v10  ;;  %v8526_v37 = vadd.f32 %v8351_v7, %v3371_v12  ;;  %v8529_v53 = vadd.f32 %v8351_v7, %v3374_v55 }
 0x2cd   : > { %v4638_v29 = vrot.slane %v4637_v20, 2  ;;  %v4644_v19 = vmax.f32 %v4642_v47, %v4643_v49  ;;  %v4651_v33 = vmax.f32 %v4649_v42, %v4650_v62  ;;  %v4657_v4 = vrot.slane %v4656_v46, 4 }
 0x2ce   : > { %v3875_v16 = vcombine.high %v3867_v31, %v3867_v31  ;;  %v3876_v9 = vcombine.high %v3874_v14, %v3874_v14  ;;  %v4775_v57 = vsel %vm4158_vm6, %v3867_v31, -inf  ;;  %v4789_v59 = vsel %vm4158_vm6, %v3874_v14, -inf }
 0x2cf   : > { %v4639_v24 = vmax.f32 %v4637_v20, %v4638_v29  ;;  %v4645_v60 = vrot.slane %v4644_v19, 2  ;;  %v4652_v18 = vrot.slane %v4651_v33, 2  ;;  %v4658_v48 = vmax.f32 %v4656_v46, %v4657_v4 }
 0x2d0   : > { %v4776_v2 = vrot.slane %v4775_v57, 4  ;;  %v4782_v35 = vsel %vm4158_vm6, %v3875_v16, -inf  ;;  %v4790_v40 = vrot.slane %v4789_v59, 4  ;;  %v4796_v0 = vsel %vm4158_vm6, %v3876_v9, -inf }
 0x2d1   : > { %v4640_v52 = vrot.slane %v4639_v24, 1  ;;  %v4646_v3 = vmax.f32 %v4644_v19, %v4645_v60  ;;  %v4653_v8 = vmax.f32 %v4651_v33, %v4652_v18  ;;  %v4659_v23 = vrot.slane %v4658_v48, 2 }
 0x2d2   : > { %v4777_v5 = vmax.f32 %v4775_v57, %v4776_v2  ;;  %v4783_v27 = vrot.slane %v4782_v35, 4  ;;  %v4791_v1 = vmax.f32 %v4789_v59, %v4790_v40  ;;  %v4797_v36 = vrot.slane %v4796_v0, 4 }
 0x2d3   : > { %v4641_v54 = vmax.f32 %v4639_v24, %v4640_v52  ;;  %v4647_v22 = vrot.slane %v4646_v3, 1  ;;  %v4654_v43 = vrot.slane %v4653_v8, 1  ;;  %v4660_v12 = vmax.f32 %v4658_v48, %v4659_v23 }
 0x2d4   : > { %v4778_v55 = vrot.slane %v4777_v5, 2  ;;  %v4784_v26 = vmax.f32 %v4782_v35, %v4783_v27  ;;  %v4792_v47 = vrot.slane %v4791_v1, 2  ;;  %v4798_v42 = vmax.f32 %v4796_v0, %v4797_v36 }
 0x2d5   : > { %v4648_v28 = vmax.f32 %v4646_v3, %v4647_v22  ;;  %v4655_v20 = vmax.f32 %v4653_v8, %v4654_v43  ;;  %v4661_v49 = vrot.slane %v4660_v12, 1  ;;  %v5091_v62 = vmax.f32 %v4641_v54, %v8491_v25 }
 0x2d6   : > { %v4779_v31 = vmax.f32 %v4777_v5, %v4778_v55  ;;  %v4785_v46 = vrot.slane %v4784_v26, 2  ;;  %v4793_v14 = vmax.f32 %v4791_v1, %v4792_v47  ;;  %v4799_v29 = vrot.slane %v4798_v42, 2 }
 0x2d7   : > { %v4662_v19 = vmax.f32 %v4660_v12, %v4661_v49  ;;  %v5092_v33 = vmax.f32 %v4648_v28, %v8495_v21  ;;  %v5093_v4 = vmax.f32 %v4655_v20, %v8497_v13  ;;  %v5966_v16 = vpack.c.bf16 %v5091_v62, %v5091_v62 }
 0x2d8   : > { %v4780_v9 = vrot.slane %v4779_v31, 1  ;;  %v4786_v57 = vmax.f32 %v4784_v26, %v4785_v46  ;;  %v4794_v59 = vrot.slane %v4793_v14, 1  ;;  %v4800_v24 = vmax.f32 %v4798_v42, %v4799_v29 }
 0x2d9   : > { %v5094_v60 = vmax.f32 %v4662_v19, %v8499_v38  ;;  %v5967_v18 = vpack.c.bf16 %v5092_v33, %v5092_v33  ;;  %v5968_v48 = vpack.c.bf16 %v5093_v4, %v5093_v4  ;;  %v5411_v2 = vunpack.c.l.b16 %v5966_v16 }
 0x2da   : > { %v8539_v25 = vmax.f32 %v4779_v31, %v4780_v9  ;;  %v4787_v35 = vrot.slane %v4786_v57, 1  ;;  %v8541_v40 = vmax.f32 %v4793_v14, %v4794_v59  ;;  %v4801_v0 = vrot.slane %v4800_v24, 1 }
 0x2db   : > { %v5969_v52 = vpack.c.bf16 %v5094_v60, %v5094_v60  ;;  %v5412_v21 = vunpack.c.l.b16 %v5967_v18  ;;  %v5413_v3 = vunpack.c.l.b16 %v5968_v48  ;;  %v5477_v13 = vsel %vm5445_vm10, %v5411_v2, %v8505_v11 }
 0x2dc   : > { %v8545_v8 = vmax.f32 %v4786_v57, %v4787_v35  ;;  %v8547_v23 = vmax.f32 %v4800_v24, %v4801_v0  ;;  %v3442_v38 = vmax.f32 %v8526_v37, 0.0  ;;  %v3445_v5 = vmax.f32 %v8529_v53, 0.0 }
 0x2dd   : > { %v5414_v27 = vunpack.c.l.b16 %v5969_v52  ;;  %v5478_v1 = vsel %vm5447_vm11, %v5412_v21, %v5477_v13  ;;  %v3411_v36 = vadd.f32 %v8351_v7, %v8518_v44  ;;  %v6682_v54 = vadd.f32 %v8323_v32, %v8321_v15 }
 0x2de   : > { %v5479_v22 = vsel %vm5449_vm12, %v5413_v3, %v5478_v1  ;;  %v3826_v11 = vcombine.high %v3442_v38, %v3442_v38  ;;  %v3833_v43 = vrot.slane %v3442_v38, %v8092_v10  ;;  %v3877_v12 = vcombine.high %v3445_v5, %v3445_v5 }
 0x2df   : > { %v5480_v37 = vsel %vm5451_vm13, %v5414_v27, %v5479_v22  ;;  %v3884_v53 = vrot.slane %v3445_v5, %v8092_v10  ;;  %v8560_v55 = vmax.f32 %v3411_v36, 0.0  ;;  %v8563_v26 = vmul.f32 %v8335_v61, %v6682_v54 }
 0x2e0   : > { %v5506_v7 = vpack.c.b16 %v5480_v37, %v5480_v37  ;;  %v3840_v44 = vrot.slane %v3826_v11, %v8092_v10  ;;  %v3841_v15 = vcombine.high %v3833_v43, %v3833_v43  ;;  %v4719_v32 = vsel %vm4158_vm6, %v3833_v43, -inf }
 0x2e1   : > { %v4720_v47 = vrot.slane %v4719_v32, 4  ;;  %v3891_v42 = vrot.slane %v3877_v12, %v8092_v10  ;;  %v3892_v28 = vcombine.high %v3884_v53, %v3884_v53  ;;  %v4803_v20 = vsel %vm4158_vm6, %v3884_v53, -inf }
 0x2e2   : > { %5522 = vst [vmem:[%s8211_s24 + $0x10] sm:$0xf] %v5506_v7  ;;  %v3842_v49 = vcombine.high %v3840_v44, %v3840_v44  ;;  %v4726_v62 = vsel %vm4158_vm6, %v3841_v15, -inf  ;;  %v4733_v31 = vsel %vm4158_vm6, %v3840_v44, -inf  ;;  %v4804_v61 = vrot.slane %v4803_v20, 4 }
 0x2e3   : > { %v4721_v46 = vmax.f32 %v4719_v32, %v4720_v47  ;;  %v4727_v14 = vrot.slane %v4726_v62, 4  ;;  %v4734_v29 = vrot.slane %v4733_v31, 4  ;;  %v3893_v19 = vcombine.high %v3891_v42, %v3891_v42 }
 0x2e4   : > { %v4740_v33 = vsel %vm4158_vm6, %v3842_v49, -inf  ;;  %v4805_v4 = vmax.f32 %v4803_v20, %v4804_v61  ;;  %v4810_v16 = vsel %vm4158_vm6, %v3892_v28, -inf  ;;  %v4817_v9 = vsel %vm4158_vm6, %v3891_v42, -inf }
 0x2e5   : > { %v4722_v57 = vrot.slane %v4721_v46, 2  ;;  %v4728_v59 = vmax.f32 %v4726_v62, %v4727_v14  ;;  %v4735_v24 = vmax.f32 %v4733_v31, %v4734_v29  ;;  %v4741_v60 = vrot.slane %v4740_v33, 4 }
 0x2e6   : > { %v4806_v18 = vrot.slane %v4805_v4, 2  ;;  %v4811_v48 = vrot.slane %v4810_v16, 4  ;;  %v4818_v2 = vrot.slane %v4817_v9, 4  ;;  %v4824_v35 = vsel %vm4158_vm6, %v3893_v19, -inf }
 0x2e7   : > { %v4723_v0 = vmax.f32 %v4721_v46, %v4722_v57  ;;  %v4729_v52 = vrot.slane %v4728_v59, 2  ;;  %v4736_v21 = vrot.slane %v4735_v24, 2  ;;  %v4742_v3 = vmax.f32 %v4740_v33, %v4741_v60 }
 0x2e8   : > { %v4807_v13 = vmax.f32 %v4805_v4, %v4806_v18  ;;  %v4812_v38 = vmax.f32 %v4810_v16, %v4811_v48  ;;  %v4819_v5 = vmax.f32 %v4817_v9, %v4818_v2  ;;  %v4825_v27 = vrot.slane %v4824_v35, 4 }
 0x2e9   : > { %v4724_v1 = vrot.slane %v4723_v0, 1  ;;  %v4730_v36 = vmax.f32 %v4728_v59, %v4729_v52  ;;  %v4737_v54 = vmax.f32 %v4735_v24, %v4736_v21  ;;  %v4743_v22 = vrot.slane %v4742_v3, 2 }
 0x2ea   : > { %v4808_v11 = vrot.slane %v4807_v13, 1  ;;  %v4813_v43 = vrot.slane %v4812_v38, 2  ;;  %v4820_v12 = vrot.slane %v4819_v5, 2  ;;  %v4826_v37 = vmax.f32 %v4824_v35, %v4825_v27 }
 0x2eb   : > { %v4725_v53 = vmax.f32 %v4723_v0, %v4724_v1  ;;  %v4731_v7 = vrot.slane %v4730_v36, 1  ;;  %v4738_v44 = vrot.slane %v4737_v54, 1  ;;  %v4744_v15 = vmax.f32 %v4742_v3, %v4743_v22 }
 0x2ec   : > { %v8576_v32 = vmax.f32 %v4807_v13, %v4808_v11  ;;  %v4814_v47 = vmax.f32 %v4812_v38, %v4813_v43  ;;  %v4821_v42 = vmax.f32 %v4819_v5, %v4820_v12  ;;  %v4827_v28 = vrot.slane %v4826_v37, 2 }
 0x2ed   : > { %v4732_v20 = vmax.f32 %v4730_v36, %v4731_v7  ;;  %v4739_v49 = vmax.f32 %v4737_v54, %v4738_v44  ;;  %v4745_v62 = vrot.slane %v4744_v15, 1  ;;  %v5095_v31 = vmax.f32 %v4725_v53, %v8539_v25 }
 0x2ee   : > { %v4815_v61 = vrot.slane %v4814_v47, 1  ;;  %v4822_v46 = vrot.slane %v4821_v42, 1  ;;  %v4828_v14 = vmax.f32 %v4826_v37, %v4827_v28  ;;  %v3843_v29 = vcombine.high %v8560_v55, %v8560_v55 }
 0x2ef   : > { %v4746_v19 = vmax.f32 %v4744_v15, %v4745_v62  ;;  %v5096_v33 = vmax.f32 %v4732_v20, %v8545_v8  ;;  %v5097_v4 = vmax.f32 %v4739_v49, %v8541_v40  ;;  %v5970_v16 = vpack.c.bf16 %v5095_v31, %v5095_v31 }
 0x2f0   : > { %v8583_v9 = vmax.f32 %v4814_v47, %v4815_v61  ;;  %v8585_v57 = vmax.f32 %v4821_v42, %v4822_v46  ;;  %v4829_v59 = vrot.slane %v4828_v14, 1  ;;  %v3850_v25 = vrot.slane %v8560_v55, %v8092_v10 }
 0x2f1   : > { %v5098_v24 = vmax.f32 %v4746_v19, %v8547_v23  ;;  %v5971_v60 = vpack.c.bf16 %v5096_v33, %v5096_v33  ;;  %v5972_v18 = vpack.c.bf16 %v5097_v4, %v5097_v4  ;;  %v5415_v48 = vunpack.c.l.b16 %v5970_v16  ;;  %v8599_v23 = vld [vmem:[%s8760_s3] ss:$0 sm:$0xff] }
 0x2f2   : > { %v8590_v2 = vmax.f32 %v4828_v14, %v4829_v59  ;;  %v3857_v8 = vrot.slane %v3843_v29, %v8092_v10  ;;  %v3858_v35 = vcombine.high %v3850_v25, %v3850_v25  ;;  %v4747_v40 = vsel %vm4158_vm6, %v3850_v25, -inf }
 0x2f3   : > { %v5973_v0 = vpack.c.bf16 %v5098_v24, %v5098_v24  ;;  %v5416_v52 = vunpack.c.l.b16 %v5971_v60  ;;  %v5417_v21 = vunpack.c.l.b16 %v5972_v18  ;;  %v4748_v3 = vrot.slane %v4747_v40, 4 }
 0x2f4   : > { %v3859_v13 = vcombine.high %v3857_v8, %v3857_v8  ;;  %v4754_v38 = vsel %vm4158_vm6, %v3858_v35, -inf  ;;  %v4761_v55 = vsel %vm4158_vm6, %v3857_v8, -inf  ;;  %v3416_v5 = vadd.f32 %v8599_v23, %v8563_v26 }
 0x2f5   : > { %v5418_v27 = vunpack.c.l.b16 %v5973_v0  ;;  %v5481_v1 = vsel %vm5439_vm7, %v5416_v52, %v5415_v48  ;;  %v4749_v36 = vmax.f32 %v4747_v40, %v4748_v3  ;;  %v4755_v54 = vrot.slane %v4754_v38, 4 }
 0x2f6   : > { %v5482_v22 = vsel %vm5441_vm8, %v5417_v21, %v5481_v1  ;;  %v4762_v11 = vrot.slane %v4761_v55, 4  ;;  %v4768_v43 = vsel %vm4158_vm6, %v3859_v13, -inf  ;;  %v3448_v12 = vmax.f32 %v3416_v5, 0.0 }
 0x2f7   : > { %v4750_v37 = vrot.slane %v4749_v36, 2  ;;  %v4756_v53 = vmax.f32 %v4754_v38, %v4755_v54  ;;  %v4769_v7 = vrot.slane %v4768_v43, 4  ;;  %v5483_v44 = vsel %vm5443_vm9, %v5418_v27, %v5482_v22 }
 0x2f8   : > { %v4763_v15 = vmax.f32 %v4761_v55, %v4762_v11  ;;  %v3928_v47 = vcombine.high %v3448_v12, %v3448_v12  ;;  %v3935_v26 = vrot.slane %v3448_v12, %v8092_v10  ;;  %v6683_v42 = vadd.f32 %v8346_v45, %v8344_v41 }
 0x2f9   : > { %v4751_v28 = vmax.f32 %v4749_v36, %v4750_v37  ;;  %v4757_v20 = vrot.slane %v4756_v53, 2  ;;  %v4770_v49 = vmax.f32 %v4768_v43, %v4769_v7  ;;  %v6684_v62 = vadd.f32 %v8384_v30, %v8382_v39 }
 0x2fa   : > { %v4764_v31 = vrot.slane %v4763_v15, 2  ;;  %v3942_v61 = vrot.slane %v3928_v47, %v8092_v10  ;;  %v3943_v46 = vcombine.high %v3935_v26, %v3935_v26  ;;  %v4887_v14 = vsel %vm4158_vm6, %v3935_v26, -inf }
 0x2fb   : > { %v4752_v29 = vrot.slane %v4751_v28, 1  ;;  %v4758_v19 = vmax.f32 %v4756_v53, %v4757_v20  ;;  %v4771_v33 = vrot.slane %v4770_v49, 2  ;;  %v4888_v4 = vrot.slane %v4887_v14, 4 }
 0x2fc   : > { %v4765_v16 = vmax.f32 %v4763_v15, %v4764_v31  ;;  %v3944_v59 = vcombine.high %v3942_v61, %v3942_v61  ;;  %v4894_v41 = vsel %vm4158_vm6, %v3943_v46, -inf  ;;  %v4901_v45 = vsel %vm4158_vm6, %v3942_v61, -inf }
 0x2fd   : > { %v4753_v25 = vmax.f32 %v4751_v28, %v4752_v29  ;;  %v4759_v24 = vrot.slane %v4758_v19, 1  ;;  %v4772_v60 = vmax.f32 %v4770_v49, %v4771_v33  ;;  %v4889_v39 = vmax.f32 %v4887_v14, %v4888_v4 }
 0x2fe   : > { %v4766_v30 = vrot.slane %v4765_v16, 1  ;;  %v4895_v18 = vrot.slane %v4894_v41, 4  ;;  %v4902_v48 = vrot.slane %v4901_v45, 4  ;;  %v4908_v8 = vsel %vm4158_vm6, %v3944_v59, -inf  ;;  %v8807_v59 = vld [vmem:[#allocation2_spill] sm:$0xff] }
 0x2ff   : > { %v4760_v35 = vmax.f32 %v4758_v19, %v4759_v24  ;;  %v4773_v40 = vrot.slane %v4772_v60, 1  ;;  %v5099_v0 = vmax.f32 %v4753_v25, %v8576_v32  ;;  %v4890_v52 = vrot.slane %v4889_v39, 2 }
 0x300   : > { %v4767_v21 = vmax.f32 %v4765_v16, %v4766_v30  ;;  %v4896_v3 = vmax.f32 %v4894_v41, %v4895_v18  ;;  %v4903_v13 = vmax.f32 %v4901_v45, %v4902_v48  ;;  %v4909_v38 = vrot.slane %v4908_v8, 4 }
 0x301   : > { %v4774_v55 = vmax.f32 %v4772_v60, %v4773_v40  ;;  %v5100_v5 = vmax.f32 %v4760_v35, %v8583_v9  ;;  %v5974_v27 = vpack.c.bf16 %v5099_v0, %v5099_v0  ;;  %v4891_v1 = vmax.f32 %v4889_v39, %v4890_v52 }
 0x302   : > { %v5101_v36 = vmax.f32 %v4767_v21, %v8585_v57  ;;  %v4897_v54 = vrot.slane %v4896_v3, 2  ;;  %v4904_v22 = vrot.slane %v4903_v13, 2  ;;  %v4910_v11 = vmax.f32 %v4908_v8, %v4909_v38 }
 0x303   : > { %v5102_v43 = vmax.f32 %v4774_v55, %v8590_v2  ;;  %v5975_v12 = vpack.c.bf16 %v5100_v5, %v5100_v5  ;;  %v5419_v37 = vunpack.c.l.b16 %v5974_v27  ;;  %v4892_v32 = vrot.slane %v4891_v1, 1  ;;  %v8626_v2 = vld [vmem:[%s8759_s2] ss:$0 sm:$0xff] }
 0x304   : > { %v5976_v53 = vpack.c.bf16 %v5101_v36, %v5101_v36  ;;  %v4898_v7 = vmax.f32 %v4896_v3, %v4897_v54  ;;  %v4905_v15 = vmax.f32 %v4903_v13, %v4904_v22  ;;  %v4911_v47 = vrot.slane %v4910_v11, 2 }
 0x305   : > { %v5977_v26 = vpack.c.bf16 %v5102_v43, %v5102_v43  ;;  %v5420_v28 = vunpack.c.l.b16 %v5975_v12  ;;  %v5484_v9 = vsel %vm5445_vm10, %v5419_v37, %v5483_v44  ;;  %v3375_v61 = vmul.f32 %v8626_v2, %v6683_v42 }
 0x306   : > { %v5421_v20 = vunpack.c.l.b16 %v5976_v53  ;;  %v4912_v49 = vmax.f32 %v4910_v11, %v4911_v47  ;;  %v3378_v46 = vmul.f32 %v8626_v2, %v6684_v62  ;;  %v8631_v29 = vmax.f32 %v4891_v1, %v4892_v32 }
 0x307   : > { %v5422_v31 = vunpack.c.l.b16 %v5977_v26  ;;  %v5485_v57 = vsel %vm5447_vm11, %v5420_v28, %v5484_v9  ;;  %v4899_v44 = vrot.slane %v4898_v7, 1  ;;  %v4906_v19 = vrot.slane %v4905_v15, 1 }
 0x308   : > { %v5486_v14 = vsel %vm5449_vm12, %v5421_v20, %v5485_v57  ;;  %v3414_v4 = vadd.f32 %v8599_v23, %v3375_v61  ;;  %v3417_v16 = vadd.f32 %v8599_v23, %v3378_v46  ;;  %v6685_v41 = vadd.f32 %v8807_v59, %v8392_v56 }
 0x309   : > { %v5487_v33 = vsel %vm5451_vm13, %v5422_v31, %v5486_v14  ;;  %v4913_v42 = vrot.slane %v4912_v49, 1  ;;  %v6686_v62 = vadd.f32 %v8431_v50, %v8429_v17  ;;  %v6687_v25 = vadd.f32 %v8444_v6, %v8442_v58  ;;  %v8808_v17 = vld [vmem:[#allocation3_spill] sm:$0xff] }
 0x30a   : > { %v5507_v45 = vpack.c.b16 %v5487_v33, %v5487_v33  ;;  %v3446_v24 = vmax.f32 %v3414_v4, 0.0  ;;  %v3449_v60 = vmax.f32 %v3417_v16, 0.0  ;;  %v3376_v39 = vmul.f32 %v8626_v2, %v6685_v41 }
 0x30b   : > { %v8645_v30 = vadd.f32 %v8464_v34, %v8462_v51  ;;  %v8648_v18 = vmax.f32 %v4898_v7, %v4899_v44  ;;  %v8650_v56 = vmax.f32 %v4905_v15, %v4906_v19  ;;  %v3381_v48 = vmul.f32 %v8626_v2, %v6686_v62 }
 0x30c   : > { %5523 = vst [vmem:[%s8211_s24 + $0x14] sm:$0xf] %v5507_v45  ;;  %v8655_v50 = vadd.f32 %v8808_v17, %v8481_v63  ;;  %v3894_v58 = vcombine.high %v3446_v24, %v3446_v24  ;;  %v3901_v6 = vrot.slane %v3446_v24, %v8092_v10  ;;  %v3945_v8 = vcombine.high %v3449_v60, %v3449_v60 }
 0x30d   : > { %v3952_v35 = vrot.slane %v3449_v60, %v8092_v10  ;;  %v8659_v40 = vmax.f32 %v4912_v49, %v4913_v42  ;;  %v3415_v51 = vadd.f32 %v8599_v23, %v3376_v39  ;;  %v8663_v34 = vadd.f32 %v8599_v23, %v3381_v48 }
 0x30e   : > { %v3379_v0 = vmul.f32 %v8626_v2, %v6687_v25  ;;  %v3908_v52 = vrot.slane %v3894_v58, %v8092_v10  ;;  %v3909_v21 = vcombine.high %v3901_v6, %v3901_v6  ;;  %v4831_v63 = vsel %vm4158_vm6, %v3901_v6, -inf }
 0x30f   : > { %v3959_v3 = vrot.slane %v3945_v8, %v8092_v10  ;;  %v4832_v13 = vrot.slane %v4831_v63, 4  ;;  %v3960_v38 = vcombine.high %v3952_v35, %v3952_v35  ;;  %v4915_v55 = vsel %vm4158_vm6, %v3952_v35, -inf }
 0x310   : > { %v8670_v5 = vmax.f32 %v3415_v51, 0.0  ;;  %v3910_v27 = vcombine.high %v3908_v52, %v3908_v52  ;;  %v4838_v1 = vsel %vm4158_vm6, %v3909_v21, -inf  ;;  %v4845_v36 = vsel %vm4158_vm6, %v3908_v52, -inf }
 0x311   : > { %v3961_v54 = vcombine.high %v3959_v3, %v3959_v3  ;;  %v4833_v22 = vmax.f32 %v4831_v63, %v4832_v13  ;;  %v4839_v11 = vrot.slane %v4838_v1, 4  ;;  %v4846_v43 = vrot.slane %v4845_v36, 4 }
 0x312   : > { %v4916_v12 = vrot.slane %v4915_v55, 4  ;;  %v4852_v37 = vsel %vm4158_vm6, %v3910_v27, -inf  ;;  %v4922_v32 = vsel %vm4158_vm6, %v3960_v38, -inf  ;;  %v4929_v53 = vsel %vm4158_vm6, %v3959_v3, -inf }
 0x313   : > { %v4936_v7 = vsel %vm4158_vm6, %v3961_v54, -inf  ;;  %v4834_v15 = vrot.slane %v4833_v22, 2  ;;  %v4840_v47 = vmax.f32 %v4838_v1, %v4839_v11  ;;  %v4847_v26 = vmax.f32 %v4845_v36, %v4846_v43 }
 0x314   : > { %v4853_v28 = vrot.slane %v4852_v37, 4  ;;  %v4917_v9 = vmax.f32 %v4915_v55, %v4916_v12  ;;  %v4923_v20 = vrot.slane %v4922_v32, 4  ;;  %v4930_v49 = vrot.slane %v4929_v53, 4 }
 0x315   : > { %v4937_v31 = vrot.slane %v4936_v7, 4  ;;  %v4835_v57 = vmax.f32 %v4833_v22, %v4834_v15  ;;  %v4841_v61 = vrot.slane %v4840_v47, 2  ;;  %v4848_v46 = vrot.slane %v4847_v26, 2 }
 0x316   : > { %v4854_v14 = vmax.f32 %v4852_v37, %v4853_v28  ;;  %v4918_v44 = vrot.slane %v4917_v9, 2  ;;  %v4924_v19 = vmax.f32 %v4922_v32, %v4923_v20  ;;  %v4931_v33 = vmax.f32 %v4929_v53, %v4930_v49 }
 0x317   : > { %v4938_v4 = vmax.f32 %v4936_v7, %v4937_v31  ;;  %v4836_v16 = vrot.slane %v4835_v57, 1  ;;  %v4842_v59 = vmax.f32 %v4840_v47, %v4841_v61  ;;  %v4849_v41 = vmax.f32 %v4847_v26, %v4848_v46 }
 0x318   : > { %v4855_v45 = vrot.slane %v4854_v14, 2  ;;  %v4919_v42 = vmax.f32 %v4917_v9, %v4918_v44  ;;  %v4925_v62 = vrot.slane %v4924_v19, 2  ;;  %v4932_v25 = vrot.slane %v4931_v33, 2 }
 0x319   : > { %v4939_v24 = vrot.slane %v4938_v4, 2  ;;  %v4837_v60 = vmax.f32 %v4835_v57, %v4836_v16  ;;  %v4843_v39 = vrot.slane %v4842_v59, 1  ;;  %v4850_v48 = vrot.slane %v4849_v41, 1 }
 0x31a   : > { %v4856_v17 = vmax.f32 %v4854_v14, %v4855_v45  ;;  %v4920_v58 = vrot.slane %v4919_v42, 1  ;;  %v4926_v6 = vmax.f32 %v4924_v19, %v4925_v62  ;;  %v4933_v8 = vmax.f32 %v4931_v33, %v4932_v25 }
 0x31b   : > { %v4940_v35 = vmax.f32 %v4938_v4, %v4939_v24  ;;  %v4844_v51 = vmax.f32 %v4842_v59, %v4843_v39  ;;  %v4851_v52 = vmax.f32 %v4849_v41, %v4850_v48  ;;  %v5103_v63 = vmax.f32 %v4837_v60, %v8631_v29 }
 0x31c   : > { %v4857_v21 = vrot.slane %v4856_v17, 1  ;;  %v4927_v3 = vrot.slane %v4926_v6, 1  ;;  %v4934_v13 = vrot.slane %v4933_v8, 1  ;;  %v3418_v55 = vadd.f32 %v8599_v23, %v3379_v0 }
 0x31d   : > { %v4941_v38 = vrot.slane %v4940_v35, 1  ;;  %v5104_v1 = vmax.f32 %v4844_v51, %v8648_v18  ;;  %v5105_v36 = vmax.f32 %v4851_v52, %v8650_v56  ;;  %v5978_v54 = vpack.c.bf16 %v5103_v63, %v5103_v63 }
 0x31e   : > { %v4858_v27 = vmax.f32 %v4856_v17, %v4857_v21  ;;  %v8682_v22 = vmax.f32 %v4919_v42, %v4920_v58  ;;  %v8684_v11 = vmax.f32 %v4926_v6, %v4927_v3  ;;  %v3911_v43 = vcombine.high %v8670_v5, %v8670_v5 }
 0x31f   : > { %v8690_v29 = vmul.f32 %v8626_v2, %v8645_v30  ;;  %v5979_v0 = vpack.c.bf16 %v5104_v1, %v5104_v1  ;;  %v5980_v37 = vpack.c.bf16 %v5105_v36, %v5105_v36  ;;  %v8693_v32 = vmax.f32 %v4933_v8, %v4934_v13 }
 0x320   : > { %v5106_v12 = vmax.f32 %v4858_v27, %v8659_v40  ;;  %v8695_v18 = vmax.f32 %v4940_v35, %v4941_v38  ;;  %v3918_v56 = vrot.slane %v8670_v5, %v8092_v10  ;;  %v3925_v53 = vrot.slane %v3911_v43, %v8092_v10 }
 0x321   : > { %v3452_v7 = vmax.f32 %v8663_v34, 0.0  ;;  %v5423_v47 = vunpack.c.l.b16 %v5978_v54  ;;  %v5424_v26 = vunpack.c.l.b16 %v5979_v0  ;;  %v5425_v30 = vunpack.c.l.b16 %v5980_v37 }
 0x322   : > { %v5981_v15 = vpack.c.bf16 %v5106_v12, %v5106_v12  ;;  %v3926_v28 = vcombine.high %v3918_v56, %v3918_v56  ;;  %v3927_v9 = vcombine.high %v3925_v53, %v3925_v53  ;;  %v4859_v40 = vsel %vm4158_vm6, %v3918_v56, -inf }
 0x323   : > { %v4873_v20 = vsel %vm4158_vm6, %v3925_v53, -inf  ;;  %v5488_v31 = vsel %vm5439_vm7, %v5424_v26, %v5423_v47  ;;  %v4860_v57 = vrot.slane %v4859_v40, 4  ;;  %v3996_v14 = vcombine.high %v3452_v7, %v3452_v7 }
 0x324   : > { %v5426_v49 = vunpack.c.l.b16 %v5981_v15  ;;  %v4874_v61 = vrot.slane %v4873_v20, 4  ;;  %v5489_v5 = vsel %vm5441_vm8, %v5425_v30, %v5488_v31  ;;  %v4866_v46 = vsel %vm4158_vm6, %v3926_v28, -inf }
 0x325   : > { %v4880_v34 = vsel %vm4158_vm6, %v3927_v9, -inf  ;;  %v4861_v44 = vmax.f32 %v4859_v40, %v4860_v57  ;;  %v4867_v19 = vrot.slane %v4866_v46, 4  ;;  %v4003_v59 = vrot.slane %v3452_v7, %v8092_v10 }
 0x326   : > { %v4875_v33 = vmax.f32 %v4873_v20, %v4874_v61  ;;  %v4881_v4 = vrot.slane %v4880_v34, 4  ;;  %v5490_v16 = vsel %vm5443_vm9, %v5426_v49, %v5489_v5  ;;  %v4010_v41 = vrot.slane %v3996_v14, %v8092_v10 }
 0x327   : > { %v3450_v45 = vmax.f32 %v3418_v55, 0.0  ;;  %v4862_v42 = vrot.slane %v4861_v44, 2  ;;  %v4868_v62 = vmax.f32 %v4866_v46, %v4867_v19  ;;  %v4011_v60 = vcombine.high %v4003_v59, %v4003_v59 }
 0x328   : > { %v4876_v25 = vrot.slane %v4875_v33, 2  ;;  %v4882_v24 = vmax.f32 %v4880_v34, %v4881_v4  ;;  %v4012_v39 = vcombine.high %v4010_v41, %v4010_v41  ;;  %v4999_v48 = vsel %vm4158_vm6, %v4003_v59, -inf }
 0x329   : > { %v5013_v17 = vsel %vm4158_vm6, %v4010_v41, -inf  ;;  %v4863_v58 = vmax.f32 %v4861_v44, %v4862_v42  ;;  %v4869_v6 = vrot.slane %v4868_v62, 2  ;;  %v5000_v51 = vrot.slane %v4999_v48, 4 }
 0x32a   : > { %v4877_v8 = vmax.f32 %v4875_v33, %v4876_v25  ;;  %v4883_v35 = vrot.slane %v4882_v24, 2  ;;  %v5006_v52 = vsel %vm4158_vm6, %v4011_v60, -inf  ;;  %v5014_v21 = vrot.slane %v5013_v17, 4 }
 0x32b   : > { %v5020_v63 = vsel %vm4158_vm6, %v4012_v39, -inf  ;;  %v4864_v3 = vrot.slane %v4863_v58, 1  ;;  %v4870_v13 = vmax.f32 %v4868_v62, %v4869_v6  ;;  %v5001_v27 = vmax.f32 %v4999_v48, %v5000_v51 }
 0x32c   : > { %v4878_v38 = vrot.slane %v4877_v8, 1  ;;  %v4884_v55 = vmax.f32 %v4882_v24, %v4883_v35  ;;  %v5007_v1 = vrot.slane %v5006_v52, 4  ;;  %v5015_v36 = vmax.f32 %v5013_v17, %v5014_v21 }
 0x32d   : > { %v5021_v54 = vrot.slane %v5020_v63, 4  ;;  %v4865_v43 = vmax.f32 %v4863_v58, %v4864_v3  ;;  %v4871_v12 = vrot.slane %v4870_v13, 1  ;;  %v5002_v56 = vrot.slane %v5001_v27, 2 }
 0x32e   : > { %v4879_v0 = vmax.f32 %v4877_v8, %v4878_v38  ;;  %v4885_v37 = vrot.slane %v4884_v55, 1  ;;  %v5008_v53 = vmax.f32 %v5006_v52, %v5007_v1  ;;  %v5016_v7 = vrot.slane %v5015_v36, 2 }
 0x32f   : > { %v5022_v15 = vmax.f32 %v5020_v63, %v5021_v54  ;;  %v4872_v47 = vmax.f32 %v4870_v13, %v4871_v12  ;;  %v5107_v30 = vmax.f32 %v4865_v43, %v8682_v22  ;;  %v5003_v9 = vmax.f32 %v5001_v27, %v5002_v56 }
 0x330   : > { %v4886_v26 = vmax.f32 %v4884_v55, %v4885_v37  ;;  %v5109_v28 = vmax.f32 %v4879_v0, %v8693_v32  ;;  %v5009_v40 = vrot.slane %v5008_v53, 2  ;;  %v5017_v57 = vmax.f32 %v5015_v36, %v5016_v7 }
 0x331   : > { %v5108_v20 = vmax.f32 %v4872_v47, %v8684_v11  ;;  %v5982_v31 = vpack.c.bf16 %v5107_v30, %v5107_v30  ;;  %v5023_v5 = vrot.slane %v5022_v15, 2  ;;  %v3962_v46 = vcombine.high %v3450_v45, %v3450_v45 }
 0x332   : > { %v5110_v49 = vmax.f32 %v4886_v26, %v8695_v18  ;;  %v5984_v61 = vpack.c.bf16 %v5109_v28, %v5109_v28  ;;  %v3421_v34 = vadd.f32 %v8599_v23, %v8690_v29  ;;  %v5004_v22 = vrot.slane %v5003_v9, 1 }
 0x333   : > { %v5983_v14 = vpack.c.bf16 %v5108_v20, %v5108_v20  ;;  %v5427_v19 = vunpack.c.l.b16 %v5982_v31  ;;  %v5010_v33 = vmax.f32 %v5008_v53, %v5009_v40  ;;  %v5018_v59 = vrot.slane %v5017_v57, 1 }
 0x334   : > { %v5985_v44 = vpack.c.bf16 %v5110_v49, %v5110_v49  ;;  %v3969_v11 = vrot.slane %v3450_v45, %v8092_v10  ;;  %v5429_v18 = vunpack.c.l.b16 %v5984_v61  ;;  %v5024_v41 = vmax.f32 %v5022_v15, %v5023_v5 }
 0x335   : > { %v5428_v32 = vunpack.c.l.b16 %v5983_v14  ;;  %v5491_v4 = vsel %vm5445_vm10, %v5427_v19, %v5490_v16  ;;  %v3976_v42 = vrot.slane %v3962_v46, %v8092_v10  ;;  %v3453_v62 = vmax.f32 %v3421_v34, 0.0 }
 0x336   : > { %v5430_v25 = vunpack.c.l.b16 %v5985_v44  ;;  %v3977_v29 = vcombine.high %v3969_v11, %v3969_v11  ;;  %v4943_v60 = vsel %vm4158_vm6, %v3969_v11, -inf  ;;  %v5011_v55 = vrot.slane %v5010_v33, 1 }
 0x337   : > { %v5492_v24 = vsel %vm5447_vm11, %v5428_v32, %v5491_v4  ;;  %v3978_v48 = vcombine.high %v3976_v42, %v3976_v42  ;;  %v4944_v17 = vrot.slane %v4943_v60, 4  ;;  %v4957_v16 = vsel %vm4158_vm6, %v3976_v42, -inf }
 0x338   : > { %v5493_v39 = vsel %vm5449_vm12, %v5429_v18, %v5492_v24  ;;  %v4950_v58 = vsel %vm4158_vm6, %v3977_v29, -inf  ;;  %v4958_v6 = vrot.slane %v4957_v16, 4  ;;  %v4013_v8 = vcombine.high %v3453_v62, %v3453_v62 }
 0x339   : > { %v5494_v45 = vsel %vm5451_vm13, %v5430_v25, %v5493_v39  ;;  %v4945_v51 = vmax.f32 %v4943_v60, %v4944_v17  ;;  %v4951_v52 = vrot.slane %v4950_v58, 4  ;;  %v4964_v21 = vsel %vm4158_vm6, %v3978_v48, -inf }
 0x33a   : > { %v5508_v35 = vpack.c.b16 %v5494_v45, %v5494_v45  ;;  %v4959_v63 = vmax.f32 %v4957_v16, %v4958_v6  ;;  %v4965_v3 = vrot.slane %v4964_v21, 4  ;;  %v4020_v13 = vrot.slane %v3453_v62, %v8092_v10 }
 0x33b   : > { %v4027_v38 = vrot.slane %v4013_v8, %v8092_v10  ;;  %v4946_v27 = vrot.slane %v4945_v51, 2  ;;  %v4952_v1 = vmax.f32 %v4950_v58, %v4951_v52  ;;  %v5005_v36 = vmax.f32 %v5003_v9, %v5004_v22 }
 0x33c   : > { %5524 = vst [vmem:[%s8211_s24 + $0x18] sm:$0xf] %v5508_v35  ;;  %v4960_v54 = vrot.slane %v4959_v63, 2  ;;  %v4966_v43 = vmax.f32 %v4964_v21, %v4965_v3  ;;  %v4028_v12 = vcombine.high %v4020_v13, %v4020_v13  ;;  %v5027_v53 = vsel %vm4158_vm6, %v4020_v13, -inf }
 0x33d   : > { %v4947_v0 = vmax.f32 %v4945_v51, %v4946_v27  ;;  %v4953_v37 = vrot.slane %v4952_v1, 2  ;;  %v4029_v56 = vcombine.high %v4027_v38, %v4027_v38  ;;  %v5019_v7 = vmax.f32 %v5017_v57, %v5018_v59 }
 0x33e   : > { %v5025_v15 = vrot.slane %v5024_v41, 1  ;;  %v4961_v47 = vmax.f32 %v4959_v63, %v4960_v54  ;;  %v4967_v26 = vrot.slane %v4966_v43, 2  ;;  %v5012_v30 = vmax.f32 %v5010_v33, %v5011_v55 }
 0x33f   : > { %v4948_v28 = vrot.slane %v4947_v0, 1  ;;  %v4954_v40 = vmax.f32 %v4952_v1, %v4953_v37  ;;  %v5034_v20 = vsel %vm4158_vm6, %v4028_v12, -inf  ;;  %v5028_v9 = vrot.slane %v5027_v53, 4 }
 0x340   : > { %v4962_v49 = vrot.slane %v4961_v47, 1  ;;  %v4968_v31 = vmax.f32 %v4966_v43, %v4967_v26  ;;  %v5041_v61 = vsel %vm4158_vm6, %v4027_v38, -inf  ;;  %v5048_v34 = vsel %vm4158_vm6, %v4029_v56, -inf }
 0x341   : > { %v4949_v5 = vmax.f32 %v4947_v0, %v4948_v28  ;;  %v4955_v46 = vrot.slane %v4954_v40, 1  ;;  %v3380_v57 = vmul.f32 %v8626_v2, %v8655_v50  ;;  %v5026_v14 = vmax.f32 %v5024_v41, %v5025_v15 }
 0x342   : > { %v4963_v44 = vmax.f32 %v4961_v47, %v4962_v49  ;;  %v4969_v19 = vrot.slane %v4968_v31, 1  ;;  %v5035_v22 = vrot.slane %v5034_v20, 4  ;;  %v5042_v4 = vrot.slane %v5041_v61, 4 }
 0x343   : > { %v4956_v33 = vmax.f32 %v4954_v40, %v4955_v46  ;;  %v5111_v32 = vmax.f32 %v4949_v5, %v5005_v36  ;;  %v5029_v18 = vmax.f32 %v5027_v53, %v5028_v9  ;;  %v5049_v42 = vrot.slane %v5048_v34, 4 }
 0x344   : > { %v4970_v59 = vmax.f32 %v4968_v31, %v4969_v19  ;;  %v5113_v11 = vmax.f32 %v4963_v44, %v5019_v7  ;;  %v3419_v24 = vadd.f32 %v8599_v23, %v3380_v57  ;;  %v5036_v39 = vmax.f32 %v5034_v20, %v5035_v22 }
 0x345   : > { %v5112_v62 = vmax.f32 %v4956_v33, %v5012_v30  ;;  %v5986_v25 = vpack.c.bf16 %v5111_v32, %v5111_v32  ;;  %v5043_v2 = vmax.f32 %v5041_v61, %v5042_v4  ;;  %v5030_v17 = vrot.slane %v5029_v18, 2 }
 0x346   : > { %v5114_v29 = vmax.f32 %v4970_v59, %v5026_v14  ;;  %v5988_v60 = vpack.c.bf16 %v5113_v11, %v5113_v11  ;;  %v5050_v16 = vmax.f32 %v5048_v34, %v5049_v42  ;;  %v3451_v6 = vmax.f32 %v3419_v24, 0.0 }
 0x347   : > { %v5987_v48 = vpack.c.bf16 %v5112_v62, %v5112_v62  ;;  %v5431_v45 = vunpack.c.l.b16 %v5986_v25  ;;  %v5037_v35 = vrot.slane %v5036_v39, 2  ;;  %v5044_v52 = vrot.slane %v5043_v2, 2 }
 0x348   : > { %v5989_v50 = vpack.c.bf16 %v5114_v29, %v5114_v29  ;;  %v5433_v41 = vunpack.c.l.b16 %v5988_v60  ;;  %v3979_v21 = vcombine.high %v3451_v6, %v3451_v6  ;;  %v3986_v23 = vrot.slane %v3451_v6, %v8092_v10 }
 0x349   : > { %v5432_v58 = vunpack.c.l.b16 %v5987_v48  ;;  %v5031_v3 = vmax.f32 %v5029_v18, %v5030_v17  ;;  %v5051_v13 = vrot.slane %v5050_v16, 2  ;;  %v5038_v36 = vmax.f32 %v5036_v39, %v5037_v35 }
 0x34a   : > { %v5434_v8 = vunpack.c.l.b16 %v5989_v50  ;;  %v3993_v38 = vrot.slane %v3979_v21, %v8092_v10  ;;  %v3994_v55 = vcombine.high %v3986_v23, %v3986_v23  ;;  %v4971_v27 = vsel %vm4158_vm6, %v3986_v23, -inf }
 0x34b   : > { %v5495_v51 = vsel %vm5439_vm7, %v5432_v58, %v5431_v45  ;;  %v4972_v54 = vrot.slane %v4971_v27, 4  ;;  %v5045_v43 = vmax.f32 %v5043_v2, %v5044_v52  ;;  %v5032_v15 = vrot.slane %v5031_v3, 1 }
 0x34c   : > { %v5496_v63 = vsel %vm5441_vm8, %v5433_v41, %v5495_v51  ;;  %v3995_v12 = vcombine.high %v3993_v38, %v3993_v38  ;;  %v4978_v0 = vsel %vm4158_vm6, %v3994_v55, -inf  ;;  %v4985_v37 = vsel %vm4158_vm6, %v3993_v38, -inf }
 0x34d   : > { %v5497_v1 = vsel %vm5443_vm9, %v5434_v8, %v5496_v63  ;;  %v4973_v56 = vmax.f32 %v4971_v27, %v4972_v54  ;;  %v4979_v53 = vrot.slane %v4978_v0, 4  ;;  %v4986_v7 = vrot.slane %v4985_v37, 4 }
 0x34e   : > { %v5052_v47 = vmax.f32 %v5050_v16, %v5051_v13  ;;  %v4992_v10 = vsel %vm4158_vm6, %v3995_v12, -inf  ;;  %v5039_v20 = vrot.slane %v5038_v36, 1  ;;  %v5046_v49 = vrot.slane %v5045_v43, 1 }
 0x34f   : > { %v4974_v26 = vrot.slane %v4973_v56, 2  ;;  %v4980_v30 = vmax.f32 %v4978_v0, %v4979_v53  ;;  %v4987_v28 = vmax.f32 %v4985_v37, %v4986_v7  ;;  %v4993_v40 = vrot.slane %v4992_v10, 4 }
 0x350   : > { %v5033_v46 = vmax.f32 %v5031_v3, %v5032_v15  ;;  %v5053_v34 = vrot.slane %v5052_v47, 1  ;;  %v5040_v22 = vmax.f32 %v5038_v36, %v5039_v20  ;;  %v5047_v33 = vmax.f32 %v5045_v43, %v5046_v49 }
 0x351   : > { %v4975_v31 = vmax.f32 %v4973_v56, %v4974_v26  ;;  %v4981_v9 = vrot.slane %v4980_v30, 2  ;;  %v4988_v61 = vrot.slane %v4987_v28, 2  ;;  %v4994_v5 = vmax.f32 %v4992_v10, %v4993_v40 }
 0x352   : > { %v5054_v18 = vmax.f32 %v5052_v47, %v5053_v34 }
 0x353   : > { %v4976_v57 = vrot.slane %v4975_v31, 1  ;;  %v4982_v14 = vmax.f32 %v4980_v30, %v4981_v9  ;;  %v4989_v44 = vmax.f32 %v4987_v28, %v4988_v61  ;;  %v4995_v19 = vrot.slane %v4994_v5, 2 }
 0x355   : > { %v4977_v32 = vmax.f32 %v4975_v31, %v4976_v57  ;;  %v4983_v4 = vrot.slane %v4982_v14, 1  ;;  %v4990_v59 = vrot.slane %v4989_v44, 1  ;;  %v4996_v11 = vmax.f32 %v4994_v5, %v4995_v19 }
 0x357   : > { %v4984_v42 = vmax.f32 %v4982_v14, %v4983_v4  ;;  %v4991_v62 = vmax.f32 %v4989_v44, %v4990_v59  ;;  %v4997_v25 = vrot.slane %v4996_v11, 1  ;;  %v5115_v24 = vmax.f32 %v4977_v32, %v5033_v46 }
 0x359   : > { %v4998_v29 = vmax.f32 %v4996_v11, %v4997_v25  ;;  %v5116_v60 = vmax.f32 %v4984_v42, %v5040_v22  ;;  %v5117_v39 = vmax.f32 %v4991_v62, %v5047_v33  ;;  %v5990_v48 = vpack.c.bf16 %v5115_v24, %v5115_v24 }
 0x35b   : > { %v5118_v2 = vmax.f32 %v4998_v29, %v5054_v18  ;;  %v5991_v50 = vpack.c.bf16 %v5116_v60, %v5116_v60  ;;  %v5992_v41 = vpack.c.bf16 %v5117_v39, %v5117_v39  ;;  %v5435_v17 = vunpack.c.l.b16 %v5990_v48 }
 0x35d   : > { %v5993_v16 = vpack.c.bf16 %v5118_v2, %v5118_v2  ;;  %v5436_v45 = vunpack.c.l.b16 %v5991_v50  ;;  %v5498_v58 = vsel %vm5445_vm10, %v5435_v17, %v5497_v1  ;;  %v5437_v6 = vunpack.c.l.b16 %v5992_v41 }
 0x35f   : > { %v5438_v8 = vunpack.c.l.b16 %v5993_v16  ;;  %v5499_v35 = vsel %vm5447_vm11, %v5436_v45, %v5498_v58 }
 0x360   : > { %v5500_v51 = vsel %vm5449_vm12, %v5437_v6, %v5499_v35 }
 0x361   : > { %v5501_v52 = vsel %vm5451_vm13, %v5438_v8, %v5500_v51 }
 0x362   : > { %v5509_v21 = vpack.c.b16 %v5501_v52, %v5501_v52 }
 0x364   : > { %5525 = vst [vmem:[%s8211_s24 + $0x1c] sm:$0xf] %v5509_v21 }
 0x365 PF: > { %s14_s15 = sadd.s32 1, %s7041_s15  }
 0x366   : > { %p11_p4 = scmp.ge.s32.totalorder %s14_s15, 4  }
 0x368   :  { %13 = sbr.rel (!%p11_p4) target bundleno = 1 (0x1), region = 74 }

// kernel: simplenet2d_forward.7
= control target key start
LH: loop header
LB: loop body
LE: loop exit
PB: predicated region body
PF: predicated region fallthrough
CT: control target
= control target key end

     0   :  { %vm40_vm0 = vcmask 1043456   ;;  %vm428_vm1 = vcmask 1041409   ;;  %s4364_s0 = inlined_call_operand.vmem [shape: bf16[2,4,512], index: 0, kind: input, shape index: {}]   ;;  %s4365_s1 = inlined_call_operand.vmem [shape: bf16[512,1024], index: 1, kind: input, shape index: {}]   ;;  %s4366_s2 = inlined_call_operand.vmem [shape: f32[1,1024], index: 2, kind: input, shape index: {}]   ;;  %s4367_s3 = inlined_call_operand.vmem [shape: bf16[1024,128], index: 3, kind: input, shape index: {}]   ;;  %s4368_s4 = inlined_call_operand.vmem [shape: f32[1,128], index: 4, kind: input, shape index: {}]   ;;  %s4369_s5 = inlined_call_operand.hbm [shape: f32[2,128], index: 5, kind: output, shape index: {}]  }
   0x1   :  { %v114_v0 = vld [vmem:[%s4365_s1] sm:$0xff]  ;;  %v115_v2 = vld [vmem:[%s4365_s1 + $0x8] sm:$0xff] }
   0x2   :  { %v118_v1 = vld [vmem:[%s4365_s1 + $0x20] sm:$0xff]  ;;  %v119_v4 = vld [vmem:[%s4365_s1 + $0x28] sm:$0xff] }
   0x3   :  { %v2760_v3 = vcombine.high %v114_v0, %v118_v1  ;;  %v2759_v5 = vcombine.low %v114_v0, %v118_v1  ;;  %v122_v6 = vld [vmem:[%s4365_s1 + $0x40] sm:$0xff]  ;;  %v2762_v8 = vcombine.high %v115_v2, %v119_v4  ;;  %v2761_v9 = vcombine.low %v115_v2, %v119_v4  ;;  %v123_v11 = vld [vmem:[%s4365_s1 + $0x48] sm:$0xff] }
   0x4   :  { %v126_v7 = vld [vmem:[%s4365_s1 + $0x60] sm:$0xff]  ;;  %v127_v12 = vld [vmem:[%s4365_s1 + $0x68] sm:$0xff] }
   0x5   :  { %v2768_v10 = vcombine.high %v122_v6, %v126_v7  ;;  %v130_v13 = vld [vmem:[%s4365_s1 + $0x80] sm:$0xff]  ;;  %1721 = vmatprep.subr.bf16.mxu0 %v2760_v3  ;;  %v2770_v14 = vcombine.high %v123_v11, %v127_v12  ;;  %v131_v16 = vld [vmem:[%s4365_s1 + $0x88] sm:$0xff]  ;;  %1803 = vmatprep.subr.bf16.mxu1 %v2762_v8  ;;  %v2767_v18 = vcombine.low %v122_v6, %v126_v7 }
   0x6   :  { %v134_v15 = vld [vmem:[%s4365_s1 + $0xa0] sm:$0xff]  ;;  %v135_v17 = vld [vmem:[%s4365_s1 + $0xa8] sm:$0xff]  ;;  %1722 = vmatpush1.bf16.msra.mxu0 %v2759_v5  ;;  %1804 = vmatpush1.bf16.msra.mxu1 %v2761_v9  ;;  %v2769_v19 = vcombine.low %v123_v11, %v127_v12 }
   0x7   :  { %1723 = vmatprep.subr.bf16.mxu0 %v2768_v10  ;;  %v2776_v20 = vcombine.high %v130_v13, %v134_v15  ;;  %1805 = vmatprep.subr.bf16.mxu1 %v2770_v14  ;;  %v2778_v21 = vcombine.high %v131_v16, %v135_v17  ;;  %v138_v22 = vld [vmem:[%s4365_s1 + $0xc0] sm:$0xff]  ;;  %v139_v24 = vld [vmem:[%s4365_s1 + $0xc8] sm:$0xff]  ;;  %v2775_v26 = vcombine.low %v130_v13, %v134_v15 }
   0x8   :  { %v142_v23 = vld [vmem:[%s4365_s1 + $0xe0] sm:$0xff]  ;;  %v143_v25 = vld [vmem:[%s4365_s1 + $0xe8] sm:$0xff]  ;;  %v2777_v27 = vcombine.low %v131_v16, %v135_v17 }
   0x9   :  { %v2784_v28 = vcombine.high %v138_v22, %v142_v23  ;;  %v2786_v29 = vcombine.high %v139_v24, %v143_v25  ;;  %v146_v30 = vld [vmem:[%s4365_s1 + $0x100] sm:$0xff]  ;;  %v147_v32 = vld [vmem:[%s4365_s1 + $0x108] sm:$0xff]  ;;  %v2783_v34 = vcombine.low %v138_v22, %v142_v23  ;;  %v2785_v35 = vcombine.low %v139_v24, %v143_v25 }
   0xa   :  { %1724 = vmatpush1.bf16.msra.mxu0 %v2767_v18  ;;  %1806 = vmatpush1.bf16.msra.mxu1 %v2769_v19  ;;  %v150_v31 = vld [vmem:[%s4365_s1 + $0x120] sm:$0xff]  ;;  %v151_v33 = vld [vmem:[%s4365_s1 + $0x128] sm:$0xff] }
   0xb   :  { %1725 = vmatprep.subr.bf16.mxu0 %v2776_v20  ;;  %1807 = vmatprep.subr.bf16.mxu1 %v2778_v21  ;;  %v2792_v36 = vcombine.high %v146_v30, %v150_v31  ;;  %v2794_v37 = vcombine.high %v147_v32, %v151_v33  ;;  %v154_v38 = vld [vmem:[%s4365_s1 + $0x140] sm:$0xff]  ;;  %v155_v40 = vld [vmem:[%s4365_s1 + $0x148] sm:$0xff]  ;;  %v2791_v42 = vcombine.low %v146_v30, %v150_v31 }
   0xc   :  { %v158_v39 = vld [vmem:[%s4365_s1 + $0x160] sm:$0xff]  ;;  %v159_v41 = vld [vmem:[%s4365_s1 + $0x168] sm:$0xff]  ;;  %v2793_v43 = vcombine.low %v147_v32, %v151_v33 }
   0xd   :  { %v2800_v44 = vcombine.high %v154_v38, %v158_v39  ;;  %v2802_v45 = vcombine.high %v155_v40, %v159_v41  ;;  %v162_v46 = vld [vmem:[%s4365_s1 + $0x180] sm:$0xff]  ;;  %v163_v48 = vld [vmem:[%s4365_s1 + $0x188] sm:$0xff]  ;;  %v2799_v50 = vcombine.low %v154_v38, %v158_v39  ;;  %v2801_v51 = vcombine.low %v155_v40, %v159_v41 }
   0xe   :  { %1726 = vmatpush1.bf16.msra.mxu0 %v2775_v26  ;;  %1808 = vmatpush1.bf16.msra.mxu1 %v2777_v27  ;;  %v166_v47 = vld [vmem:[%s4365_s1 + $0x1a0] sm:$0xff]  ;;  %v167_v49 = vld [vmem:[%s4365_s1 + $0x1a8] sm:$0xff] }
   0xf   :  { %1727 = vmatprep.subr.bf16.mxu0 %v2784_v28  ;;  %1809 = vmatprep.subr.bf16.mxu1 %v2786_v29  ;;  %v2808_v52 = vcombine.high %v162_v46, %v166_v47  ;;  %v170_v53 = vld [vmem:[%s4365_s1 + $0x1c0] sm:$0xff]  ;;  %v3407_v55 = vld [vmem:[%s4364_s0 + $0x8] sm:$0xff]  ;;  %v2810_v56 = vcombine.high %v163_v48, %v167_v49  ;;  %v2807_v62 = vcombine.low %v162_v46, %v166_v47 }
  0x10   :  { %v3402_v54 = vld [vmem:[%s4364_s0] sm:$0xff]  ;;  %v171_v58 = vld [vmem:[%s4365_s1 + $0x1c8] sm:$0xff]  ;;  %v26_v61 = vunpack.c.l.bf16 %v3407_v55  ;;  %v2809_v63 = vcombine.low %v163_v48, %v167_v49 }
  0x11   :  { %v174_v57 = vld [vmem:[%s4365_s1 + $0x1e0] sm:$0xff]  ;;  %v175_v59 = vld [vmem:[%s4365_s1 + $0x1e8] sm:$0xff]  ;;  %v24_v60 = vunpack.c.l.bf16 %v3402_v54 }
  0x12   :  { %1728 = vmatpush1.bf16.msra.mxu0 %v2783_v34  ;;  %1810 = vmatpush1.bf16.msra.mxu1 %v2785_v35  ;;  %v34_v1 = vcombine.high %v26_v61, %v26_v61  ;;  %v2816_v2 = vcombine.high %v170_v53, %v174_v57  ;;  %v2818_v3 = vcombine.high %v171_v58, %v175_v59  ;;  %v69_v5 = vsel %vm40_vm0, %v26_v61, 0.0  ;;  %v178_v6 = vld [vmem:[%s4365_s1 + $0x200] sm:$0xff]  ;;  %v179_v12 = vld [vmem:[%s4365_s1 + $0x208] sm:$0xff] }
  0x13   :  { %1729 = vmatprep.subr.bf16.mxu0 %v2792_v36  ;;  %1811 = vmatprep.subr.bf16.mxu1 %v2794_v37  ;;  %v32_v0 = vcombine.high %v24_v60, %v24_v60  ;;  %v41_v4 = vsel %vm40_vm0, %v24_v60, 0.0  ;;  %v182_v7 = vld [vmem:[%s4365_s1 + $0x220] sm:$0xff]  ;;  %v70_v11 = vrot.slane %v69_v5, 4  ;;  %v183_v13 = vld [vmem:[%s4365_s1 + $0x228] sm:$0xff]  ;;  %v2815_v16 = vcombine.low %v170_v53, %v174_v57 }
  0x14   :  { %v76_v9 = vsel %vm40_vm0, %v34_v1, 0.0  ;;  %v42_v10 = vrot.slane %v41_v4, 4  ;;  %v2817_v17 = vcombine.low %v171_v58, %v175_v59  ;;  %v2824_v20 = vcombine.high %v178_v6, %v182_v7  ;;  %v186_v24 = vld [vmem:[%s4365_s1 + $0x240] sm:$0xff]  ;;  %v187_v26 = vld [vmem:[%s4365_s1 + $0x248] sm:$0xff] }
  0x15   :  { %v48_v8 = vsel %vm40_vm0, %v32_v0, 0.0  ;;  %v77_v15 = vrot.slane %v76_v9, 4  ;;  %v71_v19 = vadd.f32 %v70_v11, %v69_v5  ;;  %v2826_v23 = vcombine.high %v179_v12, %v183_v13  ;;  %v190_v25 = vld [vmem:[%s4365_s1 + $0x260] sm:$0xff]  ;;  %v191_v27 = vld [vmem:[%s4365_s1 + $0x268] sm:$0xff] }
  0x16   :  { %1730 = vmatpush1.bf16.msra.mxu0 %v2791_v42  ;;  %1812 = vmatpush1.bf16.msra.mxu1 %v2793_v43  ;;  %v49_v14 = vrot.slane %v48_v8, 4  ;;  %v43_v18 = vadd.f32 %v42_v10, %v41_v4  ;;  %v2823_v31 = vcombine.low %v178_v6, %v182_v7  ;;  %v2825_v32 = vcombine.low %v179_v12, %v183_v13  ;;  %v194_v38 = vld [vmem:[%s4365_s1 + $0x280] sm:$0xff]  ;;  %v195_v40 = vld [vmem:[%s4365_s1 + $0x288] sm:$0xff] }
  0x17   :  { %1731 = vmatprep.subr.bf16.mxu0 %v2800_v44  ;;  %1813 = vmatprep.subr.bf16.mxu1 %v2802_v45  ;;  %v78_v22 = vadd.f32 %v77_v15, %v76_v9  ;;  %v72_v33 = vrot.slane %v71_v19, 2  ;;  %v2832_v34 = vcombine.high %v186_v24, %v190_v25  ;;  %v2834_v37 = vcombine.high %v187_v26, %v191_v27  ;;  %v198_v39 = vld [vmem:[%s4365_s1 + $0x2a0] sm:$0xff]  ;;  %v199_v41 = vld [vmem:[%s4365_s1 + $0x2a8] sm:$0xff] }
  0x18   :  { %v50_v21 = vadd.f32 %v49_v14, %v48_v8  ;;  %v44_v30 = vrot.slane %v43_v18, 2  ;;  %v2831_v45 = vcombine.low %v186_v24, %v190_v25  ;;  %v2833_v46 = vcombine.low %v187_v26, %v191_v27  ;;  %v206_v53 = vld [vmem:[%s4365_s1 + $0x2e0] sm:$0xff]  ;;  %v207_v57 = vld [vmem:[%s4365_s1 + $0x2e8] sm:$0xff] }
  0x19   :  { %v79_v29 = vrot.slane %v78_v22, 2  ;;  %v73_v47 = vadd.f32 %v72_v33, %v71_v19  ;;  %v2840_v48 = vcombine.high %v194_v38, %v198_v39  ;;  %v2839_v61 = vcombine.low %v194_v38, %v198_v39  ;;  %v210_v4 = vld [vmem:[%s4365_s1 + $0x300] sm:$0xff]  ;;  %v211_v6 = vld [vmem:[%s4365_s1 + $0x308] sm:$0xff] }
  0x1a   :  { %1732 = vmatpush1.bf16.msra.mxu0 %v2799_v50  ;;  %1814 = vmatpush1.bf16.msra.mxu1 %v2801_v51  ;;  %v51_v28 = vrot.slane %v50_v21, 2  ;;  %v45_v44 = vadd.f32 %v44_v30, %v43_v18  ;;  %v2842_v51 = vcombine.high %v195_v40, %v199_v41  ;;  %v214_v5 = vld [vmem:[%s4365_s1 + $0x320] sm:$0xff]  ;;  %v215_v7 = vld [vmem:[%s4365_s1 + $0x328] sm:$0xff]  ;;  %v25_v13 = vunpack.c.h.bf16 %v3402_v54 }
  0x1b   :  { %1733 = vmatprep.subr.bf16.mxu0 %v2808_v52  ;;  %1815 = vmatprep.subr.bf16.mxu1 %v2810_v56  ;;  %v80_v36 = vadd.f32 %v79_v29, %v78_v22  ;;  %v202_v52 = vld [vmem:[%s4365_s1 + $0x2c0] sm:$0xff]  ;;  %v203_v56 = vld [vmem:[%s4365_s1 + $0x2c8] sm:$0xff]  ;;  %v2856_v15 = vcombine.high %v210_v4, %v214_v5  ;;  %v2858_v18 = vcombine.high %v211_v6, %v215_v7 }
  0x1c   :  { %v52_v35 = vadd.f32 %v51_v28, %v50_v21  ;;  %v46_v60 = vrot.slane %v45_v44, 1  ;;  %v2848_v0 = vcombine.high %v202_v52, %v206_v53  ;;  %v2847_v11 = vcombine.low %v202_v52, %v206_v53  ;;  %v218_v19 = vld [vmem:[%s4365_s1 + $0x340] sm:$0xff]  ;;  %v219_v22 = vld [vmem:[%s4365_s1 + $0x348] sm:$0xff] }
  0x1d   :  { %v81_v43 = vrot.slane %v80_v36, 1  ;;  %v2849_v14 = vcombine.low %v203_v56, %v207_v57  ;;  %v55_v54 = vsel %vm40_vm0, %v25_v13, 0.0  ;;  %v2855_v25 = vcombine.low %v210_v4, %v214_v5  ;;  %v226_v29 = vld [vmem:[%s4365_s1 + $0x380] sm:$0xff] }
  0x1e   :  { %1734 = vmatpush1.bf16.msra.mxu0 %v2807_v62  ;;  %1816 = vmatpush1.bf16.msra.mxu1 %v2809_v63  ;;  %v53_v42 = vrot.slane %v52_v35, 1  ;;  %v2841_v62 = vcombine.low %v195_v40, %v199_v41  ;;  %v74_v63 = vrot.slane %v73_v47, 1  ;;  %v47_v10 = vadd.f32 %v46_v60, %v45_v44  ;;  %v230_v30 = vld [vmem:[%s4365_s1 + $0x3a0] sm:$0xff] }
  0x1f   :  { %1735 = vmatprep.subr.bf16.mxu0 %v2816_v2  ;;  %1817 = vmatprep.subr.bf16.mxu1 %v2818_v3  ;;  %v82_v50 = vadd.f32 %v81_v43, %v80_v36  ;;  %v2850_v3 = vcombine.high %v203_v56, %v207_v57  ;;  %v2857_v27 = vcombine.low %v211_v6, %v215_v7  ;;  %v243_v7 = vld [vmem:[%s4365_s1 + $0x408] sm:$0xff] }
  0x20   :  { %v54_v49 = vadd.f32 %v53_v42, %v52_v35  ;;  %v75_v12 = vadd.f32 %v74_v63, %v73_v47  ;;  %v231_v35 = vld [vmem:[%s4365_s1 + $0x3a8] sm:$0xff]  ;;  %v2872_v39 = vcombine.high %v226_v29, %v230_v30  ;;  %v33_v41 = vcombine.high %v25_v13, %v25_v13  ;;  %v238_v47 = vld [vmem:[%s4365_s1 + $0x3e0] sm:$0xff] }
  0x21   :  { %v103_v59 = vmul.f32 0.25, %v82_v50  ;;  %v239_v50 = vld [vmem:[%s4365_s1 + $0x3e8] sm:$0xff] }
  0x22   :  { %1736 = vmatpush1.bf16.msra.mxu0 %v2815_v16  ;;  %1818 = vmatpush1.bf16.msra.mxu1 %v2817_v17  ;;  %v99_v58 = vmul.f32 0.25, %v54_v49  ;;  %v27_v17 = vunpack.c.h.bf16 %v3407_v55  ;;  %v223_v55 = vld [vmem:[%s4365_s1 + $0x368] sm:$0xff]  ;;  %v102_v26 = vmul.f32 0.25, %v75_v12  ;;  %v62_v52 = vsel %vm40_vm0, %v33_v41, 0.0 }
  0x23   :  { %1737 = vmatprep.subr.bf16.mxu0 %v2824_v20  ;;  %1819 = vmatprep.subr.bf16.mxu1 %v2826_v23  ;;  %v111_v2 = vpack.c.bf16 %v103_v59, %v103_v59  ;;  %v222_v20 = vld [vmem:[%s4365_s1 + $0x360] sm:$0xff]  ;;  %v98_v23 = vmul.f32 0.25, %v47_v10  ;;  %v2865_v38 = vcombine.low %v219_v22, %v223_v55  ;;  %v235_v49 = vld [vmem:[%s4365_s1 + $0x3c8] sm:$0xff] }
  0x24   :  { %v107_v1 = vpack.c.bf16 %v99_v58, %v99_v58  ;;  %v83_v24 = vsel %vm40_vm0, %v27_v17, 0.0  ;;  %v2864_v28 = vcombine.high %v218_v19, %v222_v20  ;;  %v110_v40 = vpack.c.bf16 %v102_v26, %v102_v26 }
  0x25   :  { %v425_v9 = vunpack.c.l.b16 %v111_v2  ;;  %v84_v33 = vrot.slane %v83_v24, 4  ;;  %v106_v36 = vpack.c.bf16 %v98_v23, %v98_v23  ;;  %v35_v42 = vcombine.high %v27_v17, %v27_v17  ;;  %v246_v2 = vld [vmem:[%s4365_s1 + $0x420] sm:$0xff]  ;;  %v251_v23 = vld [vmem:[%s4365_s1 + $0x448] sm:$0xff] }
  0x26   :  { %1738 = vmatpush1.bf16.msra.mxu0 %v2823_v31  ;;  %1820 = vmatpush1.bf16.msra.mxu1 %v2825_v32  ;;  %v421_v8 = vunpack.c.l.b16 %v107_v1  ;;  %v56_v31 = vrot.slane %v55_v54, 4  ;;  %v2866_v32 = vcombine.high %v219_v22, %v223_v55  ;;  %v424_v57 = vunpack.c.l.b16 %v110_v40  ;;  %v242_v1 = vld [vmem:[%s4365_s1 + $0x400] sm:$0xff] }
  0x27   :  { %1739 = vmatprep.subr.bf16.mxu0 %v2832_v34  ;;  %1821 = vmatprep.subr.bf16.mxu1 %v2834_v37  ;;  %v227_v34 = vld [vmem:[%s4365_s1 + $0x388] sm:$0xff]  ;;  %v2863_v37 = vcombine.low %v218_v19, %v222_v20  ;;  %v90_v53 = vsel %vm40_vm0, %v35_v42, 0.0  ;;  %v63_v58 = vrot.slane %v62_v52, 4  ;;  %v254_v19 = vld [vmem:[%s4365_s1 + $0x460] sm:$0xff]  ;;  %v2887_v26 = vcombine.low %v242_v1, %v246_v2 }
  0x28   :  { %v430_v16 = vsel %vm428_vm1, %v425_v9, %v421_v8  ;;  %v57_v43 = vadd.f32 %v56_v31, %v55_v54  ;;  %v2874_v44 = vcombine.high %v227_v34, %v231_v35  ;;  %v91_v59 = vrot.slane %v90_v53, 4  ;;  %v247_v8 = vld [vmem:[%s4365_s1 + $0x428] sm:$0xff] }
  0x29   :  { %v3493_v21 = vpack.c.b16 %v430_v16, %v430_v16  ;;  %v2890_v17 = vcombine.high %v243_v7, %v247_v8 }
  0x2a   :  { %1740 = vmatpush1.bf16.msra.mxu0 %v2831_v45  ;;  %1822 = vmatpush1.bf16.msra.mxu1 %v2833_v46  ;;  %v2871_v45 = vcombine.low %v226_v29, %v230_v30  ;;  %v234_v46 = vld [vmem:[%s4365_s1 + $0x3c0] sm:$0xff]  ;;  %v58_v56 = vrot.slane %v57_v43, 2  ;;  %v92_v4 = vadd.f32 %v91_v59, %v90_v53  ;;  %v2889_v30 = vcombine.low %v243_v7, %v247_v8 }
  0x2b   :  { %1741 = vmatprep.subr.bf16.mxu0 %v2840_v48  ;;  %1823 = vmatprep.subr.bf16.mxu1 %v2842_v51  ;;  %v85_v48 = vadd.f32 %v84_v33, %v83_v24  ;;  %v420_v51 = vunpack.c.l.b16 %v106_v36  ;;  %v2879_v6 = vcombine.low %v234_v46, %v238_v47  ;;  %v255_v24 = vld [vmem:[%s4365_s1 + $0x468] sm:$0xff]  ;;  %v262_v33 = vld [vmem:[%s4365_s1 + $0x4a0] sm:$0xff] }
  0x2c   :  { %1753 = vmatprep.mubr.bf16.mxu0 %v3493_v21  ;;  %1835 = vmatprep.mubr.bf16.mxu1 %v3493_v21  ;;  %v59_v63 = vadd.f32 %v58_v56, %v57_v43  ;;  %v93_v12 = vrot.slane %v92_v4, 2  ;;  %v2898_v36 = vcombine.high %v251_v23, %v255_v24 }
  0x2d   :  { %v86_v60 = vrot.slane %v85_v48, 2  ;;  %v429_v10 = vsel %vm428_vm1, %v424_v57, %v420_v51 }
  0x2e   :  { %1742 = vmatpush1.bf16.msra.mxu0 %v2839_v61  ;;  %1824 = vmatpush1.bf16.msra.mxu1 %v2841_v62  ;;  %v2873_v61 = vcombine.low %v227_v34, %v231_v35  ;;  %v2880_v62 = vcombine.high %v234_v46, %v238_v47  ;;  %v60_v9 = vrot.slane %v59_v63, 1  ;;  %v94_v54 = vadd.f32 %v93_v12, %v92_v4  ;;  %v259_v34 = vld [vmem:[%s4365_s1 + $0x488] sm:$0xff] }
  0x2f   :  { %1743 = vmatprep.subr.bf16.mxu0 %v2848_v0  ;;  %1825 = vmatprep.subr.bf16.mxu1 %v2850_v3  ;;  %v2882_v0 = vcombine.high %v235_v49, %v239_v50  ;;  %v64_v3 = vadd.f32 %v63_v58, %v62_v52  ;;  %v87_v5 = vadd.f32 %v86_v60, %v85_v48  ;;  %v266_v48 = vld [vmem:[%s4365_s1 + $0x4c0] sm:$0xff]  ;;  %v271_v52 = vld [vmem:[%s4365_s1 + $0x4e8] sm:$0xff] }
  0x30   :  { %v61_v16 = vadd.f32 %v60_v9, %v59_v63  ;;  %v3550_v55 = vpack.c.b16 %v429_v10, %v429_v10  ;;  %v2897_v46 = vcombine.low %v251_v23, %v255_v24  ;;  %v274_v63 = vld [vmem:[%s4365_s1 + $0x500] sm:$0xff] }
  0x31   :  { %v88_v13 = vrot.slane %v87_v5, 1  ;;  %v282_v9 = vld [vmem:[%s4365_s1 + $0x540] sm:$0xff] }
  0x32   :  { %1744 = vmatpush1.bf16.msra.mxu0 %v2847_v11  ;;  %1826 = vmatpush1.bf16.msra.mxu1 %v2849_v14  ;;  %v65_v11 = vrot.slane %v64_v3, 2  ;;  %v2881_v14 = vcombine.low %v235_v49, %v239_v50  ;;  %v270_v49 = vld [vmem:[%s4365_s1 + $0x4e0] sm:$0xff]  ;;  %v267_v50 = vld [vmem:[%s4365_s1 + $0x4c8] sm:$0xff] }
  0x33   :  { %1745 = vmatprep.subr.bf16.mxu0 %v2856_v15  ;;  %1827 = vmatprep.subr.bf16.mxu1 %v2858_v18  ;;  %v2888_v15 = vcombine.high %v242_v1, %v246_v2  ;;  %v250_v18 = vld [vmem:[%s4365_s1 + $0x440] sm:$0xff]  ;;  %v89_v22 = vadd.f32 %v88_v13, %v87_v5  ;;  %v275_v1 = vld [vmem:[%s4365_s1 + $0x508] sm:$0xff]  ;;  %v2914_v2 = vcombine.high %v267_v50, %v271_v52 }
  0x34   :  { %v66_v20 = vadd.f32 %v65_v11, %v64_v3  ;;  %v2896_v31 = vcombine.high %v250_v18, %v254_v19  ;;  %v2895_v42 = vcombine.low %v250_v18, %v254_v19  ;;  %v279_v3 = vld [vmem:[%s4365_s1 + $0x528] sm:$0xff]  ;;  %v2913_v7 = vcombine.low %v267_v50, %v271_v52  ;;  %v286_v10 = vld [vmem:[%s4365_s1 + $0x560] sm:$0xff] }
  0x35   :  { %v104_v29 = vmul.f32 0.25, %v89_v22  ;;  %v283_v11 = vld [vmem:[%s4365_s1 + $0x548] sm:$0xff]  ;;  %v2922_v12 = vcombine.high %v275_v1, %v279_v3  ;;  %v294_v18 = vld [vmem:[%s4365_s1 + $0x5a0] sm:$0xff]  ;;  %v2927_v22 = vcombine.low %v282_v9, %v286_v10 }
  0x36   :  { %1746 = vmatpush1.bf16.msra.mxu0 %v2855_v25  ;;  %1828 = vmatpush1.bf16.msra.mxu1 %v2857_v27  ;;  %v100_v25 = vmul.f32 0.25, %v61_v16  ;;  %v67_v27 = vrot.slane %v66_v20, 1  ;;  %v287_v13 = vld [vmem:[%s4365_s1 + $0x568] sm:$0xff]  ;;  %v2928_v16 = vcombine.high %v282_v9, %v286_v10  ;;  %v326_v50 = vld [vmem:[%s4365_s1 + $0x6a0] sm:$0xff] }
  0x37   :  { %1747 = vmatprep.subr.bf16.mxu0 %v2864_v28  ;;  %1829 = vmatprep.subr.bf16.mxu1 %v2866_v32  ;;  %v95_v28 = vrot.slane %v94_v54, 1  ;;  %v258_v32 = vld [vmem:[%s4365_s1 + $0x480] sm:$0xff]  ;;  %v112_v40 = vpack.c.bf16 %v104_v29, %v104_v29  ;;  %v291_v19 = vld [vmem:[%s4365_s1 + $0x588] sm:$0xff]  ;;  %v2929_v23 = vcombine.low %v283_v11, %v287_v13 }
  0x38   :  { %v108_v35 = vpack.c.bf16 %v100_v25, %v100_v25  ;;  %v2904_v47 = vcombine.high %v258_v32, %v262_v33  ;;  %v2903_v58 = vcombine.low %v258_v32, %v262_v33  ;;  %v298_v25 = vld [vmem:[%s4365_s1 + $0x5c0] sm:$0xff]  ;;  %v303_v29 = vld [vmem:[%s4365_s1 + $0x5e8] sm:$0xff] }
  0x39   :  { %v306_v33 = vld [vmem:[%s4365_s1 + $0x600] sm:$0xff]  ;;  %v343_v9 = vld [vmem:[%s4365_s1 + $0x728] sm:$0xff] }
  0x3a   :  { %1748 = vmatpush1.bf16.msra.mxu0 %v2863_v37  ;;  %1830 = vmatpush1.bf16.msra.mxu1 %v2865_v38  ;;  %v263_v37 = vld [vmem:[%s4365_s1 + $0x4a8] sm:$0xff]  ;;  %v68_v38 = vadd.f32 %v67_v27, %v66_v20  ;;  %v422_v41 = vunpack.c.l.b16 %v108_v35  ;;  %v2930_v20 = vcombine.high %v283_v11, %v287_v13  ;;  %v346_v13 = vld [vmem:[%s4365_s1 + $0x740] sm:$0xff] }
  0x3b   :  { %1749 = vmatprep.subr.bf16.mxu0 %v2872_v39  ;;  %1831 = vmatprep.subr.bf16.mxu1 %v2874_v44  ;;  %v96_v39 = vadd.f32 %v95_v28, %v94_v54  ;;  %v2906_v51 = vcombine.high %v259_v34, %v263_v37  ;;  %v295_v54 = vld [vmem:[%s4365_s1 + $0x5a8] sm:$0xff] }
  0x3c   :  { %v101_v43 = vmul.f32 0.25, %v68_v38  ;;  %v299_v27 = vld [vmem:[%s4365_s1 + $0x5c8] sm:$0xff]  ;;  %v2938_v28 = vcombine.high %v291_v19, %v295_v54 }
  0x3d   :  { %v105_v44 = vmul.f32 0.25, %v96_v39  ;;  %v307_v35 = vld [vmem:[%s4365_s1 + $0x608] sm:$0xff]  ;;  %v2945_v39 = vcombine.low %v299_v27, %v303_v29 }
  0x3e   :  { %1750 = vmatpush1.bf16.msra.mxu0 %v2871_v45  ;;  %1832 = vmatpush1.bf16.msra.mxu1 %v2873_v61  ;;  %v426_v45 = vunpack.c.l.b16 %v112_v40  ;;  %v109_v53 = vpack.c.bf16 %v101_v43, %v101_v43  ;;  %v2905_v61 = vcombine.low %v259_v34, %v263_v37  ;;  %v310_v34 = vld [vmem:[%s4365_s1 + $0x620] sm:$0xff]  ;;  %v311_v37 = vld [vmem:[%s4365_s1 + $0x628] sm:$0xff] }
  0x3f   :  { %1751 = vmatprep.subr.bf16.mxu0 %v2880_v62  ;;  %1833 = vmatprep.subr.bf16.mxu1 %v2882_v0  ;;  %v113_v56 = vpack.c.bf16 %v105_v44, %v105_v44  ;;  %v2912_v62 = vcombine.high %v266_v48, %v270_v49  ;;  %v278_v0 = vld [vmem:[%s4365_s1 + $0x520] sm:$0xff]  ;;  %v2952_v40 = vcombine.high %v306_v33, %v310_v34  ;;  %v315_v43 = vld [vmem:[%s4365_s1 + $0x648] sm:$0xff] }
  0x40   :  { %v3585_v57 = vsel %vm428_vm1, %v426_v45, %v422_v41  ;;  %v423_v59 = vunpack.c.l.b16 %v109_v53  ;;  %v2920_v8 = vcombine.high %v274_v63, %v278_v0  ;;  %v314_v41 = vld [vmem:[%s4365_s1 + $0x640] sm:$0xff]  ;;  %v2954_v44 = vcombine.high %v307_v35, %v311_v37  ;;  %v319_v45 = vld [vmem:[%s4365_s1 + $0x668] sm:$0xff] }
  0x41   :  { %v427_v60 = vunpack.c.l.b16 %v113_v56  ;;  %v2962_v52 = vcombine.high %v315_v43, %v319_v45  ;;  %v327_v53 = vld [vmem:[%s4365_s1 + $0x6a8] sm:$0xff] }
  0x42   :  { %1752 = vmatpush1.bf16.msra.mxu0 %v2879_v6  ;;  %1834 = vmatpush1.bf16.msra.mxu1 %v2881_v14  ;;  %v2911_v6 = vcombine.low %v266_v48, %v270_v49  ;;  %v2919_v14 = vcombine.low %v274_v63, %v278_v0  ;;  %v322_v49 = vld [vmem:[%s4365_s1 + $0x680] sm:$0xff]  ;;  %v335_v0 = vld [vmem:[%s4365_s1 + $0x6e8] sm:$0xff] }
  0x43   :  { %1762 = vmatprep.subr.bf16.mxu0 %v2888_v15  ;;  %1844 = vmatprep.subr.bf16.mxu1 %v2890_v17  ;;  %v432_v4 = vsel %vm428_vm1, %v427_v60, %v423_v59  ;;  %v2921_v15 = vcombine.low %v275_v1, %v279_v3  ;;  %v290_v17 = vld [vmem:[%s4365_s1 + $0x580] sm:$0xff]  ;;  %v2968_v59 = vcombine.high %v322_v49, %v326_v50 }
  0x44   :  { %v3600_v5 = vpack.c.b16 %v432_v4, %v432_v4  ;;  %v2936_v24 = vcombine.high %v290_v17, %v294_v18  ;;  %v330_v60 = vld [vmem:[%s4365_s1 + $0x6c0] sm:$0xff]  ;;  %v2967_v1 = vcombine.low %v322_v49, %v326_v50  ;;  %v129_v49 = vld [vmem:[%s4365_s1 + $0x78] sm:$0xff]  ;;  %v3762_v50 = vpack.c.b16 %v3585_v57, %v3585_v57 }
  0x45   :  { %1754 = vmatmul.mubr.bf16.vlgmr.msra.gmra.mrb[0].mxu0 %v3550_v55  ;;  %1836 = vmatmul.mubr.bf16.vlgmr.msra.gmra.mrb[0].mxu1 %v3550_v55  ;;  %v338_v4 = vld [vmem:[%s4365_s1 + $0x700] sm:$0xff] }
  0x46   :  { %1763 = vmatpush1.bf16.msra.mxu0 %v2887_v26  ;;  %1845 = vmatpush1.bf16.msra.mxu1 %v2889_v30  ;;  %v302_v26 = vld [vmem:[%s4365_s1 + $0x5e0] sm:$0xff]  ;;  %v2935_v30 = vcombine.low %v290_v17, %v294_v18  ;;  %v351_v17 = vld [vmem:[%s4365_s1 + $0x768] sm:$0xff] }
  0x47   :  { %1764 = vmatprep.subr.bf16.mxu0 %v2896_v31  ;;  %1846 = vmatprep.subr.bf16.mxu1 %v2898_v36  ;;  %v2937_v31 = vcombine.low %v291_v19, %v295_v54  ;;  %v2944_v32 = vcombine.high %v298_v25, %v302_v26  ;;  %v2946_v36 = vcombine.high %v299_v27, %v303_v29  ;;  %v354_v54 = vld [vmem:[%s4365_s1 + $0x780] sm:$0xff] }
  0x48   :  { %1794 = vmatprep.mubr.bf16.mxu0 %v3600_v5  ;;  %1876 = vmatprep.mubr.bf16.mxu1 %v3600_v5  ;;  %v2943_v38 = vcombine.low %v298_v25, %v302_v26  ;;  %v359_v25 = vld [vmem:[%s4365_s1 + $0x7a8] sm:$0xff]  ;;  %v362_v29 = vld [vmem:[%s4365_s1 + $0x7c0] sm:$0xff] }
  0x4a   :  { %1765 = vmatpush1.bf16.msra.mxu0 %v2895_v42  ;;  %1847 = vmatpush1.bf16.msra.mxu1 %v2897_v46  ;;  %v318_v42 = vld [vmem:[%s4365_s1 + $0x660] sm:$0xff]  ;;  %v2951_v46 = vcombine.low %v306_v33, %v310_v34  ;;  %v367_v33 = vld [vmem:[%s4365_s1 + $0x7e8] sm:$0xff] }
  0x4b   :  { %1766 = vmatprep.subr.bf16.mxu0 %v2904_v47  ;;  %1848 = vmatprep.subr.bf16.mxu1 %v2906_v51  ;;  %v2953_v47 = vcombine.low %v307_v35, %v311_v37  ;;  %v2960_v48 = vcombine.high %v314_v41, %v318_v42  ;;  %v323_v51 = vld [vmem:[%s4365_s1 + $0x688] sm:$0xff]  ;;  %v2959_v56 = vcombine.low %v314_v41, %v318_v42  ;;  %v116_v37 = vld [vmem:[%s4365_s1 + $0x10] sm:$0xff]  ;;  %v121_v41 = vld [vmem:[%s4365_s1 + $0x38] sm:$0xff] }
  0x4c   :  { %v2970_v63 = vcombine.high %v323_v51, %v327_v53 }
  0x4e   :  { %1767 = vmatpush1.bf16.msra.mxu0 %v2903_v58  ;;  %1849 = vmatpush1.bf16.msra.mxu1 %v2905_v61  ;;  %v2961_v58 = vcombine.low %v315_v43, %v319_v45  ;;  %v334_v61 = vld [vmem:[%s4365_s1 + $0x6e0] sm:$0xff]  ;;  %v124_v45 = vld [vmem:[%s4365_s1 + $0x50] sm:$0xff] }
  0x4f   :  { %1768 = vmatprep.subr.bf16.mxu0 %v2912_v62  ;;  %1850 = vmatprep.subr.bf16.mxu1 %v2914_v2  ;;  %v331_v62 = vld [vmem:[%s4365_s1 + $0x6c8] sm:$0xff]  ;;  %v2969_v2 = vcombine.low %v323_v51, %v327_v53  ;;  %v2976_v3 = vcombine.high %v330_v60, %v334_v61  ;;  %v2975_v10 = vcombine.low %v330_v60, %v334_v61 }
  0x50   :  { %v2977_v11 = vcombine.low %v331_v62, %v335_v0 }
  0x52   :  { %1769 = vmatpush1.bf16.msra.mxu0 %v2911_v6  ;;  %1851 = vmatpush1.bf16.msra.mxu1 %v2913_v7  ;;  %v342_v6 = vld [vmem:[%s4365_s1 + $0x720] sm:$0xff]  ;;  %v339_v7 = vld [vmem:[%s4365_s1 + $0x708] sm:$0xff] }
  0x53   :  { %1770 = vmatprep.subr.bf16.mxu0 %v2920_v8  ;;  %1852 = vmatprep.subr.bf16.mxu1 %v2922_v12  ;;  %v2978_v8 = vcombine.high %v331_v62, %v335_v0  ;;  %v2984_v12 = vcombine.high %v338_v4, %v342_v6  ;;  %v2983_v18 = vcombine.low %v338_v4, %v342_v6 }
  0x54   :  { %v2985_v19 = vcombine.low %v339_v7, %v343_v9 }
  0x56   :  { %1771 = vmatpush1.bf16.msra.mxu0 %v2919_v14  ;;  %1853 = vmatpush1.bf16.msra.mxu1 %v2921_v15  ;;  %v350_v14 = vld [vmem:[%s4365_s1 + $0x760] sm:$0xff]  ;;  %v347_v15 = vld [vmem:[%s4365_s1 + $0x748] sm:$0xff] }
  0x57   :  { %1772 = vmatprep.subr.bf16.mxu0 %v2928_v16  ;;  %1854 = vmatprep.subr.bf16.mxu1 %v2930_v20  ;;  %v2986_v16 = vcombine.high %v339_v7, %v343_v9  ;;  %v2992_v20 = vcombine.high %v346_v13, %v350_v14  ;;  %v2991_v26 = vcombine.low %v346_v13, %v350_v14 }
  0x58   :  { %v2993_v27 = vcombine.low %v347_v15, %v351_v17 }
  0x5a   :  { %1773 = vmatpush1.bf16.msra.mxu0 %v2927_v22  ;;  %1855 = vmatpush1.bf16.msra.mxu1 %v2929_v23  ;;  %v358_v22 = vld [vmem:[%s4365_s1 + $0x7a0] sm:$0xff]  ;;  %v355_v23 = vld [vmem:[%s4365_s1 + $0x788] sm:$0xff] }
  0x5b   :  { %1774 = vmatprep.subr.bf16.mxu0 %v2936_v24  ;;  %1856 = vmatprep.subr.bf16.mxu1 %v2938_v28  ;;  %v2994_v24 = vcombine.high %v347_v15, %v351_v17  ;;  %v3000_v28 = vcombine.high %v354_v54, %v358_v22  ;;  %v2999_v34 = vcombine.low %v354_v54, %v358_v22 }
  0x5c   :  { %v3001_v35 = vcombine.low %v355_v23, %v359_v25 }
  0x5e   :  { %1775 = vmatpush1.bf16.msra.mxu0 %v2935_v30  ;;  %1857 = vmatpush1.bf16.msra.mxu1 %v2937_v31  ;;  %v366_v30 = vld [vmem:[%s4365_s1 + $0x7e0] sm:$0xff]  ;;  %v363_v31 = vld [vmem:[%s4365_s1 + $0x7c8] sm:$0xff] }
  0x5f   :  { %1776 = vmatprep.subr.bf16.mxu0 %v2944_v32  ;;  %1858 = vmatprep.subr.bf16.mxu1 %v2946_v36  ;;  %v3002_v32 = vcombine.high %v355_v23, %v359_v25  ;;  %v3008_v36 = vcombine.high %v362_v29, %v366_v30  ;;  %v3007_v42 = vcombine.low %v362_v29, %v366_v30 }
  0x60   :  { %v3009_v43 = vcombine.low %v363_v31, %v367_v33 }
  0x62   :  { %1777 = vmatpush1.bf16.msra.mxu0 %v2943_v38  ;;  %1859 = vmatpush1.bf16.msra.mxu1 %v2945_v39  ;;  %v120_v38 = vld [vmem:[%s4365_s1 + $0x30] sm:$0xff]  ;;  %v117_v39 = vld [vmem:[%s4365_s1 + $0x18] sm:$0xff] }
  0x63   :  { %1778 = vmatprep.subr.bf16.mxu0 %v2952_v40  ;;  %1860 = vmatprep.subr.bf16.mxu1 %v2954_v44  ;;  %v3010_v40 = vcombine.high %v363_v31, %v367_v33  ;;  %v2764_v44 = vcombine.high %v116_v37, %v120_v38  ;;  %v2763_v51 = vcombine.low %v116_v37, %v120_v38 }
  0x66   :  { %1779 = vmatpush1.bf16.msra.mxu0 %v2951_v46  ;;  %1861 = vmatpush1.bf16.msra.mxu1 %v2953_v47  ;;  %v128_v46 = vld [vmem:[%s4365_s1 + $0x70] sm:$0xff]  ;;  %v125_v47 = vld [vmem:[%s4365_s1 + $0x58] sm:$0xff] }
  0x67   :  { %1780 = vmatprep.subr.bf16.mxu0 %v2960_v48  ;;  %1862 = vmatprep.subr.bf16.mxu1 %v2962_v52  ;;  %v2766_v48 = vcombine.high %v117_v39, %v121_v41  ;;  %v2765_v52 = vcombine.low %v117_v39, %v121_v41  ;;  %v2772_v53 = vcombine.high %v124_v45, %v128_v46 }
  0x6a   :  { %1781 = vmatpush1.bf16.msra.mxu0 %v2959_v56  ;;  %1863 = vmatpush1.bf16.msra.mxu1 %v2961_v58 }
  0x6b   :  { %1782 = vmatprep.subr.bf16.mxu0 %v2968_v59  ;;  %1864 = vmatprep.subr.bf16.mxu1 %v2970_v63 }
  0x6e   :  { %1783 = vmatpush1.bf16.msra.mxu0 %v2967_v1  ;;  %1865 = vmatpush1.bf16.msra.mxu1 %v2969_v2 }
  0x6f   :  { %1784 = vmatprep.subr.bf16.mxu0 %v2976_v3  ;;  %1866 = vmatprep.subr.bf16.mxu1 %v2978_v8 }
  0x72   :  { %1785 = vmatpush1.bf16.msra.mxu0 %v2975_v10  ;;  %1867 = vmatpush1.bf16.msra.mxu1 %v2977_v11 }
  0x73   :  { %1786 = vmatprep.subr.bf16.mxu0 %v2984_v12  ;;  %1868 = vmatprep.subr.bf16.mxu1 %v2986_v16 }
  0x76   :  { %1787 = vmatpush1.bf16.msra.mxu0 %v2983_v18  ;;  %1869 = vmatpush1.bf16.msra.mxu1 %v2985_v19 }
  0x77   :  { %1788 = vmatprep.subr.bf16.mxu0 %v2992_v20  ;;  %1870 = vmatprep.subr.bf16.mxu1 %v2994_v24 }
  0x7a   :  { %1789 = vmatpush1.bf16.msra.mxu0 %v2991_v26  ;;  %1871 = vmatpush1.bf16.msra.mxu1 %v2993_v27 }
  0x7b   :  { %1790 = vmatprep.subr.bf16.mxu0 %v3000_v28  ;;  %1872 = vmatprep.subr.bf16.mxu1 %v3002_v32 }
  0x7e   :  { %1791 = vmatpush1.bf16.msra.mxu0 %v2999_v34  ;;  %1873 = vmatpush1.bf16.msra.mxu1 %v3001_v35 }
  0x7f   :  { %1792 = vmatprep.subr.bf16.mxu0 %v3008_v36  ;;  %1874 = vmatprep.subr.bf16.mxu1 %v3010_v40 }
  0x82   :  { %1793 = vmatpush1.bf16.msra.mxu0 %v3007_v42  ;;  %1875 = vmatpush1.bf16.msra.mxu1 %v3009_v43 }
  0x83   :  { %1885 = vmatprep.subr.bf16.mxu0 %v2764_v44 }
  0x84   :  { %10 = vsyncpa [#allocation3], 0  ;;  %1967 = vmatprep.subr.bf16.mxu1 %v2766_v48  ;;  %v2774_v56 = vcombine.high %v125_v47, %v129_v49  ;;  %v132_v58 = vld [vmem:[%s4365_s1 + $0x90] sm:$0xff]  ;;  %v133_v57 = vld [vmem:[%s4365_s1 + $0x98] sm:$0xff]  ;;  %v2771_v61 = vcombine.low %v124_v45, %v128_v46  ;;  %v2773_v62 = vcombine.low %v125_v47, %v129_v49 }
  0x85   :  { %v136_v59 = vld [vmem:[%s4365_s1 + $0xb0] sm:$0xff]  ;;  %1795 = vmatmul.mubr.bf16.vlgmr.msra.gmra.mrb[0].mxu0 %v3762_v50  ;;  %v137_v60 = vld [vmem:[%s4365_s1 + $0xb8] sm:$0xff]  ;;  %1877 = vmatmul.mubr.bf16.vlgmr.msra.gmra.mrb[0].mxu1 %v3762_v50 }
  0x86   :  { %1886 = vmatpush1.bf16.msra.mxu0 %v2763_v51  ;;  %1968 = vmatpush1.bf16.msra.mxu1 %v2765_v52  ;;  %v2780_v63 = vcombine.high %v132_v58, %v136_v59  ;;  %v2782_v0 = vcombine.high %v133_v57, %v137_v60  ;;  %v140_v1 = vld [vmem:[%s4365_s1 + $0xd0] sm:$0xff]  ;;  %v141_v3 = vld [vmem:[%s4365_s1 + $0xd8] sm:$0xff]  ;;  %v2779_v6 = vcombine.low %v132_v58, %v136_v59 }
  0x87   :  { %1887 = vmatprep.subr.bf16.mxu0 %v2772_v53  ;;  %1969 = vmatprep.subr.bf16.mxu1 %v2774_v56  ;;  %v144_v2 = vld [vmem:[%s4365_s1 + $0xf0] sm:$0xff]  ;;  %v145_v4 = vld [vmem:[%s4365_s1 + $0xf8] sm:$0xff]  ;;  %v2781_v7 = vcombine.low %v133_v57, %v137_v60 }
  0x88   :  { %1917 = vmatprep.mubr.bf16.mxu0 %v3493_v21  ;;  %1999 = vmatprep.mubr.bf16.mxu1 %v3493_v21  ;;  %v2788_v8 = vcombine.high %v140_v1, %v144_v2  ;;  %v2790_v9 = vcombine.high %v141_v3, %v145_v4  ;;  %v148_v10 = vld [vmem:[%s4365_s1 + $0x110] sm:$0xff]  ;;  %v149_v21 = vld [vmem:[%s4365_s1 + $0x118] sm:$0xff]  ;;  %v2787_v13 = vcombine.low %v140_v1, %v144_v2 }
  0x89   :  { %v152_v11 = vld [vmem:[%s4365_s1 + $0x130] sm:$0xff]  ;;  %v153_v12 = vld [vmem:[%s4365_s1 + $0x138] sm:$0xff]  ;;  %v2789_v14 = vcombine.low %v141_v3, %v145_v4 }
  0x8a   :  { %1888 = vmatpush1.bf16.msra.mxu0 %v2771_v61  ;;  %1970 = vmatpush1.bf16.msra.mxu1 %v2773_v62  ;;  %v2796_v15 = vcombine.high %v148_v10, %v152_v11  ;;  %v2798_v16 = vcombine.high %v149_v21, %v153_v12  ;;  %v156_v17 = vld [vmem:[%s4365_s1 + $0x150] sm:$0xff]  ;;  %v157_v19 = vld [vmem:[%s4365_s1 + $0x158] sm:$0xff]  ;;  %v2795_v54 = vcombine.low %v148_v10, %v152_v11 }
  0x8b   :  { %1889 = vmatprep.subr.bf16.mxu0 %v2780_v63  ;;  %1971 = vmatprep.subr.bf16.mxu1 %v2782_v0  ;;  %v160_v18 = vld [vmem:[%s4365_s1 + $0x170] sm:$0xff]  ;;  %v161_v20 = vld [vmem:[%s4365_s1 + $0x178] sm:$0xff]  ;;  %v2797_v22 = vcombine.low %v149_v21, %v153_v12 }
  0x8c   :  { %v2804_v23 = vcombine.high %v156_v17, %v160_v18  ;;  %v2806_v24 = vcombine.high %v157_v19, %v161_v20  ;;  %v164_v25 = vld [vmem:[%s4365_s1 + $0x190] sm:$0xff]  ;;  %v165_v27 = vld [vmem:[%s4365_s1 + $0x198] sm:$0xff]  ;;  %v2803_v29 = vcombine.low %v156_v17, %v160_v18  ;;  %v2805_v30 = vcombine.low %v157_v19, %v161_v20 }
  0x8d   :  { %v168_v26 = vld [vmem:[%s4365_s1 + $0x1b0] sm:$0xff]  ;;  %v169_v28 = vld [vmem:[%s4365_s1 + $0x1b8] sm:$0xff] }
  0x8e   :  { %1890 = vmatpush1.bf16.msra.mxu0 %v2779_v6  ;;  %1972 = vmatpush1.bf16.msra.mxu1 %v2781_v7  ;;  %v2812_v31 = vcombine.high %v164_v25, %v168_v26  ;;  %v2814_v32 = vcombine.high %v165_v27, %v169_v28  ;;  %v172_v33 = vld [vmem:[%s4365_s1 + $0x1d0] sm:$0xff]  ;;  %v173_v35 = vld [vmem:[%s4365_s1 + $0x1d8] sm:$0xff]  ;;  %v2811_v37 = vcombine.low %v164_v25, %v168_v26 }
  0x8f   :  { %1891 = vmatprep.subr.bf16.mxu0 %v2788_v8  ;;  %1973 = vmatprep.subr.bf16.mxu1 %v2790_v9  ;;  %v176_v34 = vld [vmem:[%s4365_s1 + $0x1f0] sm:$0xff]  ;;  %v177_v36 = vld [vmem:[%s4365_s1 + $0x1f8] sm:$0xff]  ;;  %v2813_v38 = vcombine.low %v165_v27, %v169_v28 }
  0x90   :  { %v2820_v39 = vcombine.high %v172_v33, %v176_v34  ;;  %v2822_v40 = vcombine.high %v173_v35, %v177_v36  ;;  %v180_v41 = vld [vmem:[%s4365_s1 + $0x210] sm:$0xff]  ;;  %v181_v43 = vld [vmem:[%s4365_s1 + $0x218] sm:$0xff]  ;;  %v2819_v45 = vcombine.low %v172_v33, %v176_v34  ;;  %v2821_v46 = vcombine.low %v173_v35, %v177_v36 }
  0x91   :  { %v184_v42 = vld [vmem:[%s4365_s1 + $0x230] sm:$0xff]  ;;  %v185_v44 = vld [vmem:[%s4365_s1 + $0x238] sm:$0xff] }
  0x92   :  { %1892 = vmatpush1.bf16.msra.mxu0 %v2787_v13  ;;  %1974 = vmatpush1.bf16.msra.mxu1 %v2789_v14  ;;  %v2828_v47 = vcombine.high %v180_v41, %v184_v42  ;;  %v2830_v48 = vcombine.high %v181_v43, %v185_v44  ;;  %v188_v49 = vld [vmem:[%s4365_s1 + $0x250] sm:$0xff]  ;;  %v189_v52 = vld [vmem:[%s4365_s1 + $0x258] sm:$0xff]  ;;  %v2827_v56 = vcombine.low %v180_v41, %v184_v42 }
  0x93   :  { %1893 = vmatprep.subr.bf16.mxu0 %v2796_v15  ;;  %1975 = vmatprep.subr.bf16.mxu1 %v2798_v16  ;;  %v192_v51 = vld [vmem:[%s4365_s1 + $0x270] sm:$0xff]  ;;  %v193_v53 = vld [vmem:[%s4365_s1 + $0x278] sm:$0xff]  ;;  %v2829_v58 = vcombine.low %v181_v43, %v185_v44 }
  0x94   :  { %v2836_v59 = vcombine.high %v188_v49, %v192_v51  ;;  %v2838_v57 = vcombine.high %v189_v52, %v193_v53  ;;  %v196_v60 = vld [vmem:[%s4365_s1 + $0x290] sm:$0xff]  ;;  %v197_v62 = vld [vmem:[%s4365_s1 + $0x298] sm:$0xff]  ;;  %v2835_v0 = vcombine.low %v188_v49, %v192_v51  ;;  %v2837_v1 = vcombine.low %v189_v52, %v193_v53 }
  0x95   :  { %v200_v61 = vld [vmem:[%s4365_s1 + $0x2b0] sm:$0xff]  ;;  %v201_v63 = vld [vmem:[%s4365_s1 + $0x2b8] sm:$0xff] }
  0x96   :  { %1894 = vmatpush1.bf16.msra.mxu0 %v2795_v54  ;;  %1976 = vmatpush1.bf16.msra.mxu1 %v2797_v22  ;;  %v2844_v2 = vcombine.high %v196_v60, %v200_v61  ;;  %v2846_v3 = vcombine.high %v197_v62, %v201_v63  ;;  %v204_v4 = vld [vmem:[%s4365_s1 + $0x2d0] sm:$0xff]  ;;  %v205_v7 = vld [vmem:[%s4365_s1 + $0x2d8] sm:$0xff]  ;;  %v2843_v9 = vcombine.low %v196_v60, %v200_v61 }
  0x97   :  { %1895 = vmatprep.subr.bf16.mxu0 %v2804_v23  ;;  %1977 = vmatprep.subr.bf16.mxu1 %v2806_v24  ;;  %v208_v6 = vld [vmem:[%s4365_s1 + $0x2f0] sm:$0xff]  ;;  %v209_v8 = vld [vmem:[%s4365_s1 + $0x2f8] sm:$0xff]  ;;  %v2845_v10 = vcombine.low %v197_v62, %v201_v63 }
  0x98   :  { %v2852_v11 = vcombine.high %v204_v4, %v208_v6  ;;  %v2854_v21 = vcombine.high %v205_v7, %v209_v8  ;;  %v212_v12 = vld [vmem:[%s4365_s1 + $0x310] sm:$0xff]  ;;  %v213_v14 = vld [vmem:[%s4365_s1 + $0x318] sm:$0xff]  ;;  %v2851_v16 = vcombine.low %v204_v4, %v208_v6  ;;  %v2853_v17 = vcombine.low %v205_v7, %v209_v8 }
  0x99   :  { %v216_v13 = vld [vmem:[%s4365_s1 + $0x330] sm:$0xff]  ;;  %v217_v15 = vld [vmem:[%s4365_s1 + $0x338] sm:$0xff] }
  0x9a   :  { %1896 = vmatpush1.bf16.msra.mxu0 %v2803_v29  ;;  %1978 = vmatpush1.bf16.msra.mxu1 %v2805_v30  ;;  %v2860_v18 = vcombine.high %v212_v12, %v216_v13  ;;  %v2862_v19 = vcombine.high %v213_v14, %v217_v15  ;;  %v220_v20 = vld [vmem:[%s4365_s1 + $0x350] sm:$0xff]  ;;  %v221_v22 = vld [vmem:[%s4365_s1 + $0x358] sm:$0xff]  ;;  %v2859_v24 = vcombine.low %v212_v12, %v216_v13 }
  0x9b   :  { %1897 = vmatprep.subr.bf16.mxu0 %v2812_v31  ;;  %1979 = vmatprep.subr.bf16.mxu1 %v2814_v32  ;;  %v224_v54 = vld [vmem:[%s4365_s1 + $0x370] sm:$0xff]  ;;  %v225_v23 = vld [vmem:[%s4365_s1 + $0x378] sm:$0xff]  ;;  %v2861_v25 = vcombine.low %v213_v14, %v217_v15 }
  0x9c   :  { %v2868_v26 = vcombine.high %v220_v20, %v224_v54  ;;  %v2870_v27 = vcombine.high %v221_v22, %v225_v23  ;;  %v228_v28 = vld [vmem:[%s4365_s1 + $0x390] sm:$0xff]  ;;  %v229_v30 = vld [vmem:[%s4365_s1 + $0x398] sm:$0xff]  ;;  %v2867_v32 = vcombine.low %v220_v20, %v224_v54  ;;  %v2869_v33 = vcombine.low %v221_v22, %v225_v23 }
  0x9d   :  { %v232_v29 = vld [vmem:[%s4365_s1 + $0x3b0] sm:$0xff]  ;;  %v233_v31 = vld [vmem:[%s4365_s1 + $0x3b8] sm:$0xff] }
  0x9e   :  { %1898 = vmatpush1.bf16.msra.mxu0 %v2811_v37  ;;  %1980 = vmatpush1.bf16.msra.mxu1 %v2813_v38  ;;  %v2876_v34 = vcombine.high %v228_v28, %v232_v29  ;;  %v2878_v35 = vcombine.high %v229_v30, %v233_v31  ;;  %v236_v36 = vld [vmem:[%s4365_s1 + $0x3d0] sm:$0xff]  ;;  %v237_v38 = vld [vmem:[%s4365_s1 + $0x3d8] sm:$0xff]  ;;  %v2877_v41 = vcombine.low %v229_v30, %v233_v31 }
  0x9f   :  { %1899 = vmatprep.subr.bf16.mxu0 %v2820_v39  ;;  %1981 = vmatprep.subr.bf16.mxu1 %v2822_v40  ;;  %v240_v37 = vld [vmem:[%s4365_s1 + $0x3f0] sm:$0xff]  ;;  %v241_v39 = vld [vmem:[%s4365_s1 + $0x3f8] sm:$0xff]  ;;  %v2875_v40 = vcombine.low %v228_v28, %v232_v29 }
  0xa0   :  { %v2884_v42 = vcombine.high %v236_v36, %v240_v37  ;;  %v2886_v43 = vcombine.high %v237_v38, %v241_v39  ;;  %v244_v44 = vld [vmem:[%s4365_s1 + $0x410] sm:$0xff]  ;;  %v2885_v49 = vcombine.low %v237_v38, %v241_v39  ;;  %v285_v23 = vld [vmem:[%s4365_s1 + $0x558] sm:$0xff] }
  0xa1   :  { %v252_v53 = vld [vmem:[%s4365_s1 + $0x450] sm:$0xff]  ;;  %v293_v31 = vld [vmem:[%s4365_s1 + $0x598] sm:$0xff] }
  0xa2   :  { %1900 = vmatpush1.bf16.msra.mxu0 %v2819_v45  ;;  %1982 = vmatpush1.bf16.msra.mxu1 %v2821_v46  ;;  %v248_v45 = vld [vmem:[%s4365_s1 + $0x430] sm:$0xff]  ;;  %v245_v46 = vld [vmem:[%s4365_s1 + $0x418] sm:$0xff] }
  0xa3   :  { %1901 = vmatprep.subr.bf16.mxu0 %v2828_v47  ;;  %1983 = vmatprep.subr.bf16.mxu1 %v2830_v48  ;;  %v249_v47 = vld [vmem:[%s4365_s1 + $0x438] sm:$0xff]  ;;  %v2883_v48 = vcombine.low %v236_v36, %v240_v37  ;;  %v2892_v51 = vcombine.high %v244_v44, %v248_v45  ;;  %v260_v63 = vld [vmem:[%s4365_s1 + $0x490] sm:$0xff] }
  0xa4   :  { %v2894_v52 = vcombine.high %v245_v46, %v249_v47  ;;  %v2893_v60 = vcombine.low %v245_v46, %v249_v47  ;;  %v268_v8 = vld [vmem:[%s4365_s1 + $0x4d0] sm:$0xff]  ;;  %v301_v39 = vld [vmem:[%s4365_s1 + $0x5d8] sm:$0xff] }
  0xa5   :  { %v276_v14 = vld [vmem:[%s4365_s1 + $0x510] sm:$0xff]  ;;  %v309_v47 = vld [vmem:[%s4365_s1 + $0x618] sm:$0xff] }
  0xa6   :  { %1902 = vmatpush1.bf16.msra.mxu0 %v2827_v56  ;;  %1984 = vmatpush1.bf16.msra.mxu1 %v2829_v58  ;;  %v256_v56 = vld [vmem:[%s4365_s1 + $0x470] sm:$0xff]  ;;  %v253_v58 = vld [vmem:[%s4365_s1 + $0x458] sm:$0xff] }
  0xa7   :  { %1903 = vmatprep.subr.bf16.mxu0 %v2836_v59  ;;  %1985 = vmatprep.subr.bf16.mxu1 %v2838_v57  ;;  %v257_v59 = vld [vmem:[%s4365_s1 + $0x478] sm:$0xff]  ;;  %v2891_v57 = vcombine.low %v244_v44, %v248_v45  ;;  %v2900_v61 = vcombine.high %v252_v53, %v256_v56  ;;  %v280_v15 = vld [vmem:[%s4365_s1 + $0x530] sm:$0xff] }
  0xa8   :  { %v2902_v62 = vcombine.high %v253_v58, %v257_v59  ;;  %v2901_v4 = vcombine.low %v253_v58, %v257_v59  ;;  %v284_v54 = vld [vmem:[%s4365_s1 + $0x550] sm:$0xff]  ;;  %v317_v59 = vld [vmem:[%s4365_s1 + $0x658] sm:$0xff] }
  0xa9   :  { %v288_v22 = vld [vmem:[%s4365_s1 + $0x570] sm:$0xff] }
  0xaa   :  { %1904 = vmatpush1.bf16.msra.mxu0 %v2835_v0  ;;  %1986 = vmatpush1.bf16.msra.mxu1 %v2837_v1  ;;  %v264_v0 = vld [vmem:[%s4365_s1 + $0x4b0] sm:$0xff]  ;;  %v261_v1 = vld [vmem:[%s4365_s1 + $0x498] sm:$0xff] }
  0xab   :  { %1905 = vmatprep.subr.bf16.mxu0 %v2844_v2  ;;  %1987 = vmatprep.subr.bf16.mxu1 %v2846_v3  ;;  %v265_v2 = vld [vmem:[%s4365_s1 + $0x4b8] sm:$0xff]  ;;  %v2899_v3 = vcombine.low %v252_v53, %v256_v56  ;;  %v2908_v6 = vcombine.high %v260_v63, %v264_v0  ;;  %v292_v29 = vld [vmem:[%s4365_s1 + $0x590] sm:$0xff] }
  0xac   :  { %v2910_v7 = vcombine.high %v261_v1, %v265_v2  ;;  %v296_v30 = vld [vmem:[%s4365_s1 + $0x5b0] sm:$0xff] }
  0xad   :  { %v300_v37 = vld [vmem:[%s4365_s1 + $0x5d0] sm:$0xff] }
  0xae   :  { %1906 = vmatpush1.bf16.msra.mxu0 %v2843_v9  ;;  %1988 = vmatpush1.bf16.msra.mxu1 %v2845_v10  ;;  %v272_v9 = vld [vmem:[%s4365_s1 + $0x4f0] sm:$0xff]  ;;  %v273_v10 = vld [vmem:[%s4365_s1 + $0x4f8] sm:$0xff] }
  0xaf   :  { %1907 = vmatprep.subr.bf16.mxu0 %v2852_v11  ;;  %1989 = vmatprep.subr.bf16.mxu1 %v2854_v21  ;;  %v2907_v11 = vcombine.low %v260_v63, %v264_v0  ;;  %v2909_v21 = vcombine.low %v261_v1, %v265_v2  ;;  %v2916_v12 = vcombine.high %v268_v8, %v272_v9  ;;  %v304_v38 = vld [vmem:[%s4365_s1 + $0x5f0] sm:$0xff]  ;;  %v325_v2 = vld [vmem:[%s4365_s1 + $0x698] sm:$0xff] }
  0xb0   :  { %v308_v45 = vld [vmem:[%s4365_s1 + $0x610] sm:$0xff] }
  0xb1   :  { %v312_v46 = vld [vmem:[%s4365_s1 + $0x630] sm:$0xff] }
  0xb2   :  { %1908 = vmatpush1.bf16.msra.mxu0 %v2851_v16  ;;  %1990 = vmatpush1.bf16.msra.mxu1 %v2853_v17  ;;  %v281_v16 = vld [vmem:[%s4365_s1 + $0x538] sm:$0xff]  ;;  %v2915_v17 = vcombine.low %v268_v8, %v272_v9  ;;  %v316_v56 = vld [vmem:[%s4365_s1 + $0x650] sm:$0xff] }
  0xb3   :  { %1909 = vmatprep.subr.bf16.mxu0 %v2860_v18  ;;  %1991 = vmatprep.subr.bf16.mxu1 %v2862_v19  ;;  %v2924_v19 = vcombine.high %v276_v14, %v280_v15  ;;  %v320_v58 = vld [vmem:[%s4365_s1 + $0x670] sm:$0xff] }
  0xb4   :  { %v324_v0 = vld [vmem:[%s4365_s1 + $0x690] sm:$0xff] }
  0xb5   :  { %v328_v1 = vld [vmem:[%s4365_s1 + $0x6b0] sm:$0xff] }
  0xb6   :  { %1910 = vmatpush1.bf16.msra.mxu0 %v2859_v24  ;;  %1992 = vmatpush1.bf16.msra.mxu1 %v2861_v25  ;;  %v289_v24 = vld [vmem:[%s4365_s1 + $0x578] sm:$0xff]  ;;  %v2923_v25 = vcombine.low %v276_v14, %v280_v15  ;;  %v332_v9 = vld [vmem:[%s4365_s1 + $0x6d0] sm:$0xff] }
  0xb7   :  { %1911 = vmatprep.subr.bf16.mxu0 %v2868_v26  ;;  %1993 = vmatprep.subr.bf16.mxu1 %v2870_v27  ;;  %v2932_v27 = vcombine.high %v284_v54, %v288_v22  ;;  %v2934_v28 = vcombine.high %v285_v23, %v289_v24  ;;  %v340_v15 = vld [vmem:[%s4365_s1 + $0x710] sm:$0xff] }
  0xba   :  { %1912 = vmatpush1.bf16.msra.mxu0 %v2867_v32  ;;  %1994 = vmatpush1.bf16.msra.mxu1 %v2869_v33  ;;  %v297_v32 = vld [vmem:[%s4365_s1 + $0x5b8] sm:$0xff]  ;;  %v2931_v33 = vcombine.low %v284_v54, %v288_v22  ;;  %v348_v22 = vld [vmem:[%s4365_s1 + $0x750] sm:$0xff] }
  0xbb   :  { %1913 = vmatprep.subr.bf16.mxu0 %v2876_v34  ;;  %1995 = vmatprep.subr.bf16.mxu1 %v2878_v35  ;;  %v2933_v34 = vcombine.low %v285_v23, %v289_v24  ;;  %v2940_v35 = vcombine.high %v292_v29, %v296_v30  ;;  %v2942_v36 = vcombine.high %v293_v31, %v297_v32  ;;  %v352_v23 = vld [vmem:[%s4365_s1 + $0x770] sm:$0xff]  ;;  %v349_v24 = vld [vmem:[%s4365_s1 + $0x758] sm:$0xff] }
  0xbe   :  { %1914 = vmatpush1.bf16.msra.mxu0 %v2875_v40  ;;  %1996 = vmatpush1.bf16.msra.mxu1 %v2877_v41  ;;  %v305_v40 = vld [vmem:[%s4365_s1 + $0x5f8] sm:$0xff]  ;;  %v2939_v41 = vcombine.low %v292_v29, %v296_v30  ;;  %v356_v30 = vld [vmem:[%s4365_s1 + $0x790] sm:$0xff] }
  0xbf   :  { %1915 = vmatprep.subr.bf16.mxu0 %v2884_v42  ;;  %1997 = vmatprep.subr.bf16.mxu1 %v2886_v43  ;;  %v2941_v42 = vcombine.low %v293_v31, %v297_v32  ;;  %v2948_v43 = vcombine.high %v300_v37, %v304_v38  ;;  %v2950_v44 = vcombine.high %v301_v39, %v305_v40  ;;  %v360_v31 = vld [vmem:[%s4365_s1 + $0x7b0] sm:$0xff]  ;;  %v357_v32 = vld [vmem:[%s4365_s1 + $0x798] sm:$0xff] }
  0xc2   :  { %1916 = vmatpush1.bf16.msra.mxu0 %v2883_v48  ;;  %1998 = vmatpush1.bf16.msra.mxu1 %v2885_v49  ;;  %v313_v48 = vld [vmem:[%s4365_s1 + $0x638] sm:$0xff]  ;;  %v2947_v49 = vcombine.low %v300_v37, %v304_v38  ;;  %v364_v38 = vld [vmem:[%s4365_s1 + $0x7d0] sm:$0xff] }
  0xc3   :  { %1926 = vmatprep.subr.bf16.mxu0 %v2892_v51  ;;  %2008 = vmatprep.subr.bf16.mxu1 %v2894_v52  ;;  %v2949_v51 = vcombine.low %v301_v39, %v305_v40  ;;  %v2956_v52 = vcombine.high %v308_v45, %v312_v46  ;;  %v2958_v53 = vcombine.high %v309_v47, %v313_v48  ;;  %v368_v39 = vld [vmem:[%s4365_s1 + $0x7f0] sm:$0xff]  ;;  %v365_v40 = vld [vmem:[%s4365_s1 + $0x7d8] sm:$0xff] }
  0xc5   :  { %1918 = vmatmul.mubr.bf16.vlgmr.msra.gmra.mrb[4].mxu0 %v3550_v55  ;;  %2000 = vmatmul.mubr.bf16.vlgmr.msra.gmra.mrb[4].mxu1 %v3550_v55  ;;  %v269_v55 = vld [vmem:[%s4365_s1 + $0x4d8] sm:$0xff] }
  0xc6   :  { %1927 = vmatpush1.bf16.msra.mxu0 %v2891_v57  ;;  %2009 = vmatpush1.bf16.msra.mxu1 %v2893_v60  ;;  %v2918_v13 = vcombine.high %v269_v55, %v273_v10  ;;  %v2917_v18 = vcombine.low %v269_v55, %v273_v10  ;;  %v321_v57 = vld [vmem:[%s4365_s1 + $0x678] sm:$0xff]  ;;  %v2955_v60 = vcombine.low %v308_v45, %v312_v46  ;;  %v336_v55 = vld [vmem:[%s4365_s1 + $0x6f0] sm:$0xff] }
  0xc7   :  { %1928 = vmatprep.subr.bf16.mxu0 %v2900_v61  ;;  %2010 = vmatprep.subr.bf16.mxu1 %v2902_v62  ;;  %v2957_v61 = vcombine.low %v309_v47, %v313_v48  ;;  %v2964_v62 = vcombine.high %v316_v56, %v320_v58  ;;  %v2966_v63 = vcombine.high %v317_v59, %v321_v57  ;;  %v333_v10 = vld [vmem:[%s4365_s1 + $0x6d8] sm:$0xff]  ;;  %v3193_v48 = vld [vmem:[%s4367_s3 + $0x40] sm:$0xff]  }
  0xc8   :  { %1958 = vmatprep.mubr.bf16.mxu0 %v3600_v5  ;;  %2040 = vmatprep.mubr.bf16.mxu1 %v3600_v5  ;;  %v277_v5 = vld [vmem:[%s4365_s1 + $0x518] sm:$0xff]  ;;  %v3011_v46 = vcombine.low %v364_v38, %v368_v39 }
  0xc9   :  { %v2926_v20 = vcombine.high %v277_v5, %v281_v16  ;;  %v2925_v26 = vcombine.low %v277_v5, %v281_v16  ;;  %v344_v5 = vld [vmem:[%s4365_s1 + $0x730] sm:$0xff]  ;;  %v341_v16 = vld [vmem:[%s4365_s1 + $0x718] sm:$0xff] }
  0xca   :  { %1929 = vmatpush1.bf16.msra.mxu0 %v2899_v3  ;;  %2011 = vmatpush1.bf16.msra.mxu1 %v2901_v4  ;;  %v329_v3 = vld [vmem:[%s4365_s1 + $0x6b8] sm:$0xff]  ;;  %v2963_v4 = vcombine.low %v316_v56, %v320_v58  ;;  %v3198_v56 = vld [vmem:[%s4367_s3 + $0xc8] sm:$0xff]  }
  0xcb   :  { %1930 = vmatprep.subr.bf16.mxu0 %v2908_v6  ;;  %2012 = vmatprep.subr.bf16.mxu1 %v2910_v7  ;;  %v2965_v6 = vcombine.low %v317_v59, %v321_v57  ;;  %v2972_v7 = vcombine.high %v324_v0, %v328_v1  ;;  %v2974_v8 = vcombine.high %v325_v2, %v329_v3  ;;  %v3199_v58 = vld [vmem:[%s4367_s3 + $0x8] sm:$0xff]   ;;  %v3201_v57 = vld [vmem:[%s4367_s3 + $0x50] sm:$0xff]  }
  0xcc   :  { %v3200_v59 = vld [vmem:[%s4367_s3 + $0x88] sm:$0xff]  }
  0xce   :  { %1931 = vmatpush1.bf16.msra.mxu0 %v2907_v11  ;;  %2013 = vmatpush1.bf16.msra.mxu1 %v2909_v21  ;;  %v337_v11 = vld [vmem:[%s4365_s1 + $0x6f8] sm:$0xff]  ;;  %v2971_v21 = vcombine.low %v324_v0, %v328_v1 }
  0xcf   :  { %1932 = vmatprep.subr.bf16.mxu0 %v2916_v12  ;;  %2014 = vmatprep.subr.bf16.mxu1 %v2918_v13  ;;  %v2973_v12 = vcombine.low %v325_v2, %v329_v3  ;;  %v2980_v13 = vcombine.high %v332_v9, %v336_v55  ;;  %v2982_v14 = vcombine.high %v333_v10, %v337_v11  ;;  %v3207_v0 = vld [vmem:[%s4367_s3 + $0x18] sm:$0xff]   ;;  %v3209_v2 = vld [vmem:[%s4367_s3 + $0x60] sm:$0xff]  }
  0xd0   :  { %v3208_v1 = vld [vmem:[%s4367_s3 + $0x98] sm:$0xff]   ;;  %v3210_v3 = vld [vmem:[%s4367_s3 + $0xe0] sm:$0xff]  }
  0xd2   :  { %1933 = vmatpush1.bf16.msra.mxu0 %v2915_v17  ;;  %2015 = vmatpush1.bf16.msra.mxu1 %v2917_v18  ;;  %v345_v17 = vld [vmem:[%s4365_s1 + $0x738] sm:$0xff]  ;;  %v2979_v18 = vcombine.low %v332_v9, %v336_v55  ;;  %v3215_v9 = vld [vmem:[%s4367_s3 + $0x28] sm:$0xff]  }
  0xd3   :  { %1934 = vmatprep.subr.bf16.mxu0 %v2924_v19  ;;  %2016 = vmatprep.subr.bf16.mxu1 %v2926_v20  ;;  %v2981_v19 = vcombine.low %v333_v10, %v337_v11  ;;  %v2988_v20 = vcombine.high %v340_v15, %v344_v5  ;;  %v2990_v54 = vcombine.high %v341_v16, %v345_v17  ;;  %v3216_v55 = vld [vmem:[%s4367_s3 + $0xa8] sm:$0xff]   ;;  %v3217_v10 = vld [vmem:[%s4367_s3 + $0x70] sm:$0xff]  }
  0xd4   :  { %v3218_v11 = vld [vmem:[%s4367_s3 + $0xf0] sm:$0xff]  }
  0xd6   :  { %1935 = vmatpush1.bf16.msra.mxu0 %v2923_v25  ;;  %2017 = vmatpush1.bf16.msra.mxu1 %v2925_v26  ;;  %v353_v25 = vld [vmem:[%s4365_s1 + $0x778] sm:$0xff]  ;;  %v2987_v26 = vcombine.low %v340_v15, %v344_v5 }
  0xd7   :  { %1936 = vmatprep.subr.bf16.mxu0 %v2932_v27  ;;  %2018 = vmatprep.subr.bf16.mxu1 %v2934_v28  ;;  %v2989_v27 = vcombine.low %v341_v16, %v345_v17  ;;  %v2996_v28 = vcombine.high %v348_v22, %v352_v23  ;;  %v2998_v29 = vcombine.high %v349_v24, %v353_v25  ;;  %v3223_v15 = vld [vmem:[%s4367_s3 + $0x38] sm:$0xff]   ;;  %v3225_v16 = vld [vmem:[%s4367_s3 + $0x140] sm:$0xff]  }
  0xd8   :  { %v3224_v5 = vld [vmem:[%s4367_s3 + $0xb8] sm:$0xff]   ;;  %v3226_v17 = vld [vmem:[%s4367_s3 + $0x1c0] sm:$0xff]  }
  0xda   :  { %1937 = vmatpush1.bf16.msra.mxu0 %v2931_v33  ;;  %2019 = vmatpush1.bf16.msra.mxu1 %v2933_v34  ;;  %v361_v33 = vld [vmem:[%s4365_s1 + $0x7b8] sm:$0xff]  ;;  %v2995_v34 = vcombine.low %v348_v22, %v352_v23 }
  0xdb   :  { %1938 = vmatprep.subr.bf16.mxu0 %v2940_v35  ;;  %2020 = vmatprep.subr.bf16.mxu1 %v2942_v36  ;;  %v2997_v35 = vcombine.low %v349_v24, %v353_v25  ;;  %v3004_v36 = vcombine.high %v356_v30, %v360_v31  ;;  %v3006_v37 = vcombine.high %v357_v32, %v361_v33 }
  0xde   :  { %1939 = vmatpush1.bf16.msra.mxu0 %v2939_v41  ;;  %2021 = vmatpush1.bf16.msra.mxu1 %v2941_v42  ;;  %v369_v41 = vld [vmem:[%s4365_s1 + $0x7f8] sm:$0xff]  ;;  %v3003_v42 = vcombine.low %v356_v30, %v360_v31 }
  0xdf   :  { %1940 = vmatprep.subr.bf16.mxu0 %v2948_v43  ;;  %2022 = vmatprep.subr.bf16.mxu1 %v2950_v44  ;;  %v3005_v43 = vcombine.low %v357_v32, %v361_v33  ;;  %v3012_v44 = vcombine.high %v364_v38, %v368_v39  ;;  %v3014_v45 = vcombine.high %v365_v40, %v369_v41 }
  0xe0   :  { %v3013_v47 = vcombine.low %v365_v40, %v369_v41 }
  0xe2   :  { %1941 = vmatpush1.bf16.msra.mxu0 %v2947_v49  ;;  %2023 = vmatpush1.bf16.msra.mxu1 %v2949_v51  ;;  %v3194_v49 = vld [vmem:[%s4367_s3 + $0xc0] sm:$0xff]  }
  0xe3   :  { %1942 = vmatprep.subr.bf16.mxu0 %v2956_v52  ;;  %2024 = vmatprep.subr.bf16.mxu1 %v2958_v53  ;;  %v3195_v51 = vld [vmem:[%s4367_s3] sm:$0xff]   ;;  %v3197_v53 = vld [vmem:[%s4367_s3 + $0x48] sm:$0xff]  }
  0xe4   :  { %v3196_v52 = vld [vmem:[%s4367_s3 + $0x80] sm:$0xff]  }
  0xe6   :  { %1943 = vmatpush1.bf16.msra.mxu0 %v2955_v60  ;;  %2025 = vmatpush1.bf16.msra.mxu1 %v2957_v61  ;;  %v3203_v60 = vld [vmem:[%s4367_s3 + $0x10] sm:$0xff]  }
  0xe7   :  { %1944 = vmatprep.subr.bf16.mxu0 %v2964_v62  ;;  %2026 = vmatprep.subr.bf16.mxu1 %v2966_v63  ;;  %v3204_v61 = vld [vmem:[%s4367_s3 + $0x90] sm:$0xff]   ;;  %v3205_v62 = vld [vmem:[%s4367_s3 + $0x58] sm:$0xff]  }
  0xe8   :  { %v3206_v63 = vld [vmem:[%s4367_s3 + $0xd8] sm:$0xff]  }
  0xea   :  { %1945 = vmatpush1.bf16.msra.mxu0 %v2963_v4  ;;  %2027 = vmatpush1.bf16.msra.mxu1 %v2965_v6  ;;  %v3211_v4 = vld [vmem:[%s4367_s3 + $0x20] sm:$0xff]  }
  0xeb   :  { %1946 = vmatprep.subr.bf16.mxu0 %v2972_v7  ;;  %2028 = vmatprep.subr.bf16.mxu1 %v2974_v8  ;;  %v3212_v6 = vld [vmem:[%s4367_s3 + $0xa0] sm:$0xff]   ;;  %v3213_v7 = vld [vmem:[%s4367_s3 + $0x68] sm:$0xff]  }
  0xec   :  { %v3214_v8 = vld [vmem:[%s4367_s3 + $0xe8] sm:$0xff]  }
  0xee   :  { %1947 = vmatpush1.bf16.msra.mxu0 %v2971_v21  ;;  %2029 = vmatpush1.bf16.msra.mxu1 %v2973_v12  ;;  %v3219_v21 = vld [vmem:[%s4367_s3 + $0x30] sm:$0xff]  }
  0xef   :  { %1948 = vmatprep.subr.bf16.mxu0 %v2980_v13  ;;  %2030 = vmatprep.subr.bf16.mxu1 %v2982_v14  ;;  %v3220_v12 = vld [vmem:[%s4367_s3 + $0xb0] sm:$0xff]   ;;  %v3221_v13 = vld [vmem:[%s4367_s3 + $0x78] sm:$0xff]  }
  0xf0   :  { %v3222_v14 = vld [vmem:[%s4367_s3 + $0xf8] sm:$0xff]  }
  0xf2   :  { %1949 = vmatpush1.bf16.msra.mxu0 %v2979_v18  ;;  %2031 = vmatpush1.bf16.msra.mxu1 %v2981_v19  ;;  %v372_v18 = vlaneseq }
  0xf3   :  { %1950 = vmatprep.subr.bf16.mxu0 %v2988_v20  ;;  %2032 = vmatprep.subr.bf16.mxu1 %v2990_v54  ;;  %v4242_v54 = vld [vmem:[%s4366_s2] sm:$0xff] }
  0xf4   :  { %v4236_v19 = vshrl.u32 %v372_v18, 7 }
  0xf6   :  { %1951 = vmatpush1.bf16.msra.mxu0 %v2987_v26  ;;  %2033 = vmatpush1.bf16.msra.mxu1 %v2989_v27  ;;  %v374_v20 = vsub.s32 0, %v4236_v19  ;;  %v382_v22 = vsub.s32 2, %v4236_v19  ;;  %v378_v23 = vsub.s32 1, %v4236_v19  ;;  %v386_v24 = vsub.s32 3, %v4236_v19 }
  0xf7   :  { %1952 = vmatprep.subr.bf16.mxu0 %v2996_v28  ;;  %2034 = vmatprep.subr.bf16.mxu1 %v2998_v29  ;;  %v402_v18 = vsub.s32 7, %v4236_v19 }
  0xf8   :  { %v375_v25 = vrot.slane %v4242_v54, %v374_v20  ;;  %v383_v26 = vrot.slane %v4242_v54, %v382_v22  ;;  %v379_v27 = vrot.slane %v4242_v54, %v378_v23  ;;  %v387_v28 = vrot.slane %v4242_v54, %v386_v24 }
  0xf9   :  { %v403_v24 = vrot.slane %v4242_v54, %v402_v18 }
  0xfa   :  { %1953 = vmatpush1.bf16.msra.mxu0 %v2995_v34  ;;  %2035 = vmatpush1.bf16.msra.mxu1 %v2997_v35 }
  0xfb   :  { %1954 = vmatprep.subr.bf16.mxu0 %v3004_v36  ;;  %2036 = vmatprep.subr.bf16.mxu1 %v3006_v37 }
  0xfe   :  { %1955 = vmatpush1.bf16.msra.mxu0 %v3003_v42  ;;  %2037 = vmatpush1.bf16.msra.mxu1 %v3005_v43 }
  0xff   :  { %1956 = vmatprep.subr.bf16.mxu0 %v3012_v44  ;;  %2038 = vmatprep.subr.bf16.mxu1 %v3014_v45 }
 0x102   :  { %1957 = vmatpush1.bf16.msra.mxu0 %v3011_v46  ;;  %2039 = vmatpush1.bf16.msra.mxu1 %v3013_v47  ;;  %v3227_v46 = vld [vmem:[%s4367_s3 + $0x100] sm:$0xff]  }
 0x103   :  { %3080 = vmatprep.subr.bf16.mxu0 %v3193_v48  ;;  %3102 = vmatprep.subr.bf16.mxu1 %v3194_v49  ;;  %v3228_v49 = vld [vmem:[%s4367_s3 + $0x180] sm:$0xff]  }
 0x105   :  { %1959 = vmatmul.mubr.bf16.vlgmr.msra.gmra.mrb[4].mxu0 %v3762_v50  ;;  %2041 = vmatmul.mubr.bf16.vlgmr.msra.gmra.mrb[4].mxu1 %v3762_v50  ;;  %v3202_v50 = vld [vmem:[%s4367_s3 + $0xd0] sm:$0xff]  }
 0x106   :  { %3081 = vmatpush3.bf16.msra.mxu0 %v3195_v51  ;;  %3103 = vmatpush3.bf16.msra.mxu1 %v3196_v52  ;;  %v3229_v51 = vld [vmem:[%s4367_s3 + $0x148] sm:$0xff]  }
 0x107   :  { %3082 = vmatprep.subr.bf16.mxu0 %v3197_v53  ;;  %3104 = vmatprep.subr.bf16.mxu1 %v3198_v56  ;;  %v3230_v53 = vld [vmem:[%s4367_s3 + $0x1c8] sm:$0xff]  }
 0x108   :  { %v3231_v56 = vld [vmem:[%s4367_s3 + $0x108] sm:$0xff]  }
 0x10a   :  { %3083 = vmatpush3.bf16.msra.mxu0 %v3199_v58  ;;  %3105 = vmatpush3.bf16.msra.mxu1 %v3200_v59  ;;  %v3232_v58 = vld [vmem:[%s4367_s3 + $0x188] sm:$0xff]   ;;  %v3233_v59 = vld [vmem:[%s4367_s3 + $0x150] sm:$0xff]  }
 0x10b   :  { %3084 = vmatprep.subr.bf16.mxu0 %v3201_v57  ;;  %3106 = vmatprep.subr.bf16.mxu1 %v3202_v50  ;;  %v3234_v57 = vld [vmem:[%s4367_s3 + $0x1d0] sm:$0xff]  }
 0x10c   :  { %v3235_v50 = vld [vmem:[%s4367_s3 + $0x110] sm:$0xff]  }
 0x10e   :  { %3085 = vmatpush3.bf16.msra.mxu0 %v3203_v60  ;;  %3107 = vmatpush3.bf16.msra.mxu1 %v3204_v61  ;;  %v3236_v60 = vld [vmem:[%s4367_s3 + $0x190] sm:$0xff]   ;;  %v3237_v61 = vld [vmem:[%s4367_s3 + $0x158] sm:$0xff]  }
 0x10f   :  { %3086 = vmatprep.subr.bf16.mxu0 %v3205_v62  ;;  %3108 = vmatprep.subr.bf16.mxu1 %v3206_v63  ;;  %v3238_v62 = vld [vmem:[%s4367_s3 + $0x1d8] sm:$0xff]  }
 0x110   :  { %v3239_v63 = vld [vmem:[%s4367_s3 + $0x118] sm:$0xff]  }
 0x112   :  { %3087 = vmatpush3.bf16.msra.mxu0 %v3207_v0  ;;  %3109 = vmatpush3.bf16.msra.mxu1 %v3208_v1  ;;  %v3240_v0 = vld [vmem:[%s4367_s3 + $0x198] sm:$0xff]   ;;  %v3241_v1 = vld [vmem:[%s4367_s3 + $0x160] sm:$0xff]  }
 0x113   :  { %3088 = vmatprep.subr.bf16.mxu0 %v3209_v2  ;;  %3110 = vmatprep.subr.bf16.mxu1 %v3210_v3  ;;  %v3242_v2 = vld [vmem:[%s4367_s3 + $0x1e0] sm:$0xff]  }
 0x114   :  { %v3243_v3 = vld [vmem:[%s4367_s3 + $0x120] sm:$0xff]  }
 0x116   :  { %3089 = vmatpush3.bf16.msra.mxu0 %v3211_v4  ;;  %3111 = vmatpush3.bf16.msra.mxu1 %v3212_v6  ;;  %v3244_v4 = vld [vmem:[%s4367_s3 + $0x1a0] sm:$0xff]   ;;  %v3245_v6 = vld [vmem:[%s4367_s3 + $0x168] sm:$0xff]  }
 0x117   :  { %3090 = vmatprep.subr.bf16.mxu0 %v3213_v7  ;;  %3112 = vmatprep.subr.bf16.mxu1 %v3214_v8  ;;  %v3246_v7 = vld [vmem:[%s4367_s3 + $0x1e8] sm:$0xff]  }
 0x118   :  { %v3247_v8 = vld [vmem:[%s4367_s3 + $0x128] sm:$0xff]  }
 0x11a   :  { %3091 = vmatpush3.bf16.msra.mxu0 %v3215_v9  ;;  %3113 = vmatpush3.bf16.msra.mxu1 %v3216_v55  ;;  %v3248_v9 = vld [vmem:[%s4367_s3 + $0x1a8] sm:$0xff]   ;;  %v3249_v55 = vld [vmem:[%s4367_s3 + $0x170] sm:$0xff]  }
 0x11b   :  { %3092 = vmatprep.subr.bf16.mxu0 %v3217_v10  ;;  %3114 = vmatprep.subr.bf16.mxu1 %v3218_v11  ;;  %v3250_v10 = vld [vmem:[%s4367_s3 + $0x1f0] sm:$0xff]  }
 0x11c   :  { %v3251_v11 = vld [vmem:[%s4367_s3 + $0x130] sm:$0xff]  }
 0x11e   :  { %3093 = vmatpush3.bf16.msra.mxu0 %v3219_v21  ;;  %3115 = vmatpush3.bf16.msra.mxu1 %v3220_v12  ;;  %v3252_v21 = vld [vmem:[%s4367_s3 + $0x1b0] sm:$0xff]   ;;  %v3253_v12 = vld [vmem:[%s4367_s3 + $0x178] sm:$0xff]  }
 0x11f   :  { %3094 = vmatprep.subr.bf16.mxu0 %v3221_v13  ;;  %3116 = vmatprep.subr.bf16.mxu1 %v3222_v14  ;;  %v3254_v13 = vld [vmem:[%s4367_s3 + $0x1f8] sm:$0xff]  }
 0x120   :  { %v3255_v14 = vld [vmem:[%s4367_s3 + $0x138] sm:$0xff]  }
 0x122   :  { %3095 = vmatpush3.bf16.msra.mxu0 %v3223_v15  ;;  %3117 = vmatpush3.bf16.msra.mxu1 %v3224_v5  ;;  %v3256_v15 = vld [vmem:[%s4367_s3 + $0x1b8] sm:$0xff]   ;;  %v390_v5 = vsub.s32 4, %v4236_v19 }
 0x123   :  { %3124 = vmatprep.subr.bf16.mxu0 %v3225_v16  ;;  %3146 = vmatprep.subr.bf16.mxu1 %v3226_v17  ;;  %v398_v16 = vsub.s32 6, %v4236_v19  ;;  %v394_v17 = vsub.s32 5, %v4236_v19 }
 0x124   :  { %v391_v20 = vrot.slane %v4242_v54, %v390_v5 }
 0x125   :  { %v399_v22 = vrot.slane %v4242_v54, %v398_v16  ;;  %v395_v23 = vrot.slane %v4242_v54, %v394_v17 }
 0x158   :  { %v1796_v29 = vpop.f32.mrb[0].mxu0  ;;  %v1878_v31 = vpop.f32.mrb[0].mxu1 }
 0x159   :  { %v3168_v30 = vadd.f32 %v1796_v29, %v375_v25  ;;  %v1798_v32 = vpop.f32.mrb[1].mxu0  ;;  %v3170_v33 = vadd.f32 %v1878_v31, %v383_v26  ;;  %v1880_v35 = vpop.f32.mrb[1].mxu1 }
 0x15a   :  { %v3169_v34 = vadd.f32 %v1798_v32, %v379_v27  ;;  %v1800_v36 = vpop.f32.mrb[2].mxu0  ;;  %v3171_v38 = vadd.f32 %v1880_v35, %v387_v28  ;;  %v1882_v39 = vpop.f32.mrb[2].mxu1 }
 0x15b   :  { %v2049_v37 = vmax.f32 %v3168_v30, 0.0  ;;  %v1801_v40 = vpop.f32.mrb[3].mxu0  ;;  %v2051_v41 = vmax.f32 %v3170_v33, 0.0  ;;  %v1883_v43 = vpop.f32.mrb[3].mxu1 }
 0x15c   :  { %v2050_v42 = vmax.f32 %v3169_v34, 0.0  ;;  %v2052_v44 = vmax.f32 %v3171_v38, 0.0 }
 0x15d   :  { %v2057_v47 = vpack.c.bf16 %v2049_v37, %v2049_v37  ;;  %v2059_v52 = vpack.c.bf16 %v2051_v41, %v2051_v41 }
 0x15e   :  { %v2058_v45 = vpack.c.bf16 %v2050_v42, %v2050_v42  ;;  %v2060_v48 = vpack.c.bf16 %v2052_v44, %v2052_v44 }
 0x160   :  { %2616 = vmatprep.mubr.bf16.mxu0 %v2058_v45  ;;  %2656 = vmatprep.mubr.bf16.mxu1 %v2060_v48  ;;  %v3015_v45 = vld [vmem:[%s4368_s4] ss:$0 sm:$0xff]  ;;  %s3281_s4 = smov [#allocation2]  }
 0x161   :  { %2617 = vmatmul.mubr.bf16.vlgmr.msra.gmra.mrb[8].mxu0 %v2057_v47  ;;  %2657 = vmatmul.mubr.bf16.vlgmr.msra.gmra.mrb[8].mxu1 %v2059_v52  ;;  %s2751_s10 = sshll.u32 %s3281_s4, 4  ;;  %s2752_s10 = int_to_ptr.vmem [resolvable:$true] %s2751_s10 }
 0x162   :  { %3125 = vmatpush3.bf16.msra.mxu0 %v3227_v46  ;;  %3147 = vmatpush3.bf16.msra.mxu1 %v3228_v49  ;;  %s3257_s0 = scalar_lea.vmem %s2752_s10, 32  ;;  %p3262_p1 = scmp.lt.s32.totalorder %s2752_s10, %s2752_s10 }
 0x163   :  { %3126 = vmatprep.subr.bf16.mxu0 %v3229_v51  ;;  %3148 = vmatprep.subr.bf16.mxu1 %v3230_v53  ;;  %p3258_p0 = scmp.ne.s32.totalorder %s2752_s10, %s3257_s0  ;;  %p3263_p2 = scmp.lt.s32.totalorder %s3257_s0, %s3257_s0 }
 0x165   :  { %p3264_p3 = por %p3263_p2, %p3262_p1 }
 0x166   :  { %3127 = vmatpush3.bf16.msra.mxu0 %v3231_v56  ;;  %3149 = vmatpush3.bf16.msra.mxu1 %v3232_v58 }
 0x167   :  { %3128 = vmatprep.subr.bf16.mxu0 %v3233_v59  ;;  %3150 = vmatprep.subr.bf16.mxu1 %v3234_v57  ;;  %p3265_p4 = pnand %p3264_p3, %p3258_p0 }
 0x16a   :  { %3129 = vmatpush3.bf16.msra.mxu0 %v3235_v50  ;;  %3151 = vmatpush3.bf16.msra.mxu1 %v3236_v60 }
 0x16b   :  { %3130 = vmatprep.subr.bf16.mxu0 %v3237_v61  ;;  %3152 = vmatprep.subr.bf16.mxu1 %v3238_v62 }
 0x16e   :  { %3131 = vmatpush3.bf16.msra.mxu0 %v3239_v63  ;;  %3153 = vmatpush3.bf16.msra.mxu1 %v3240_v0 }
 0x16f   :  { %3132 = vmatprep.subr.bf16.mxu0 %v3241_v1  ;;  %3154 = vmatprep.subr.bf16.mxu1 %v3242_v2 }
 0x172   :  { %3133 = vmatpush3.bf16.msra.mxu0 %v3243_v3  ;;  %3155 = vmatpush3.bf16.msra.mxu1 %v3244_v4 }
 0x173   :  { %3134 = vmatprep.subr.bf16.mxu0 %v3245_v6  ;;  %3156 = vmatprep.subr.bf16.mxu1 %v3246_v7 }
 0x176   :  { %3135 = vmatpush3.bf16.msra.mxu0 %v3247_v8  ;;  %3157 = vmatpush3.bf16.msra.mxu1 %v3248_v9 }
 0x177   :  { %3136 = vmatprep.subr.bf16.mxu0 %v3249_v55  ;;  %3158 = vmatprep.subr.bf16.mxu1 %v3250_v10 }
 0x17a   :  { %3137 = vmatpush3.bf16.msra.mxu0 %v3251_v11  ;;  %3159 = vmatpush3.bf16.msra.mxu1 %v3252_v21 }
 0x17b   :  { %3138 = vmatprep.subr.bf16.mxu0 %v3253_v12  ;;  %3160 = vmatprep.subr.bf16.mxu1 %v3254_v13 }
 0x17e   :  { %3139 = vmatpush3.bf16.msra.mxu0 %v3255_v14  ;;  %3161 = vmatpush3.bf16.msra.mxu1 %v3256_v15 }
 0x1d8   :  { %v1960_v25 = vpop.f32.mrb[4].mxu0  ;;  %v2042_v27 = vpop.f32.mrb[4].mxu1 }
 0x1d9   :  { %v3172_v26 = vadd.f32 %v1960_v25, %v391_v20  ;;  %v1962_v28 = vpop.f32.mrb[5].mxu0  ;;  %v3174_v29 = vadd.f32 %v2042_v27, %v399_v22  ;;  %v2044_v31 = vpop.f32.mrb[5].mxu1 }
 0x1da   :  { %v3173_v30 = vadd.f32 %v1962_v28, %v395_v23  ;;  %v1964_v32 = vpop.f32.mrb[6].mxu0  ;;  %v3175_v34 = vadd.f32 %v2044_v31, %v403_v24  ;;  %v2046_v35 = vpop.f32.mrb[6].mxu1 }
 0x1db   :  { %v2053_v33 = vmax.f32 %v3172_v26, 0.0  ;;  %v1965_v19 = vpop.f32.mrb[7].mxu0  ;;  %v2055_v36 = vmax.f32 %v3174_v29, 0.0  ;;  %v2047_v38 = vpop.f32.mrb[7].mxu1 }
 0x1dc   :  { %v2054_v37 = vmax.f32 %v3173_v30, 0.0  ;;  %v2056_v39 = vmax.f32 %v3175_v34, 0.0 }
 0x1dd   :  { %v2061_v41 = vpack.c.bf16 %v2053_v33, %v2053_v33  ;;  %v2063_v54 = vpack.c.bf16 %v2055_v36, %v2055_v36 }
 0x1de   :  { %v2062_v40 = vpack.c.bf16 %v2054_v37, %v2054_v37  ;;  %v2064_v42 = vpack.c.bf16 %v2056_v39, %v2056_v39 }
 0x1e0   :  { %2696 = vmatprep.mubr.bf16.mxu0 %v2062_v40  ;;  %2736 = vmatprep.mubr.bf16.mxu1 %v2064_v42 }
 0x1e1   :  { %2697 = vmatmul.mubr.bf16.vlgmr.msra.gmra.mrb[12].mxu0 %v2061_v41  ;;  %2737 = vmatmul.mubr.bf16.vlgmr.msra.gmra.mrb[12].mxu1 %v2063_v54 }
 0x234   :  { %v3096_v43 = vpop.f32.mrb[8].mxu0  ;;  %v3118_v44 = vpop.f32.mrb[8].mxu1 }
 0x235   :  { %v3097_v46 = vpop.f32.mrb[9].mxu0  ;;  %v3119_v48 = vpop.f32.mrb[9].mxu1 }
 0x236   :  { %v3098_v47 = vadd.f32 %v3097_v46, %v3096_v43  ;;  %v3099_v49 = vpop.f32.mrb[10].mxu0  ;;  %v3120_v51 = vadd.f32 %v3119_v48, %v3118_v44  ;;  %v3121_v52 = vpop.f32.mrb[10].mxu1 }
 0x237   :  { %v3100_v53 = vpop.f32.mrb[11].mxu0  ;;  %v3122_v58 = vpop.f32.mrb[11].mxu1 }
 0x238   :  { %v2619_v56 = vadd.f32 %v3098_v47, %v3015_v45 }
 0x23a   :  { %v2659_v59 = vadd.f32 %v3120_v51, %v2619_v56 }
 0x2b4   :  { %v3140_v57 = vpop.f32.mrb[12].mxu0  ;;  %v3162_v50 = vpop.f32.mrb[12].mxu1 }
 0x2b5   :  { %v3141_v60 = vpop.f32.mrb[13].mxu0  ;;  %v3163_v62 = vpop.f32.mrb[13].mxu1 }
 0x2b6   :  { %v3142_v61 = vadd.f32 %v3141_v60, %v3140_v57  ;;  %v3143_v63 = vpop.f32.mrb[14].mxu0  ;;  %v3164_v0 = vadd.f32 %v3163_v62, %v3162_v50  ;;  %v3165_v1 = vpop.f32.mrb[14].mxu1 }
 0x2b7   :  { %v3144_v2 = vpop.f32.mrb[15].mxu0  ;;  %v3166_v4 = vpop.f32.mrb[15].mxu1 }
 0x2b8   :  { %v2699_v3 = vadd.f32 %v3142_v61, %v2659_v59 }
 0x2ba   :  { %v2739_v6 = vadd.f32 %v3164_v0, %v2699_v3 }
 0x2bc   :  { %2744 = vst [vmem:[#allocation2] sm:$0x3] %v2739_v6 }
 0x2bd   :  { %3268 = shalt.err (!%p3265_p4)
}
 0x2be   :  { %s3269_s13 = scalar_lea.hbm %s4369_s5, 32 }
 0x2bf   :  { %p3270_p5 = scmp.ne.s32.totalorder %s4369_s5, %s3269_s13  ;;  %p3273_p6 = scmp.lt.u32.totalorder %s3269_s13, %s4369_s5 }
 0x2c1   :  { %p3275_p7 = pnand %p3273_p6, %p3270_p5 }
 0x2c3   :  { %3278 = shalt.err (!%p3275_p7)
}
 0x2c4   :  { %2754 = dma.vmem_to_hbm [thread:$0]  %s2752_s10, 32, %s4369_s5, [#allocation3]  }
 0x2c5   :  { %3279 = dma.done.wait [#allocation3], 32  }
 0x2c6   :  { %3280 = vsyncadd [#allocation3], 4294967264 }
 0x2c7   :  { %2758 = vsyncpa [#allocation3], 1 }

</bundles_post_ra>
